<compile_context>
chip_gen: v6e
topology: v6e:2x2x1
jax: 0.10.0
libtpu: 0.0.40
codegen_flags: <defaults>
</compile_context>

<pallas_src>
import jax
import jax.numpy as jnp
from jax.experimental import pallas as pl
from jax.experimental.pallas import tpu as pltpu

# ------------------------- small synthetic config ---------------------------
DIM_IN = 32           # backbone channels (256 in the real model; scaled down)
ROI_SIZE = 4          # cfg.FAST_RCNN.ROI_XFORM_RESOLUTION
CROP_SIZE = 4         # cfg.VCOCO.PART_CROP_SIZE
HIDDEN = 32           # cfg.VCOCO.MLP_HEAD_DIM
HEATMAP = 8           # cfg.KRCNN.HEATMAP_SIZE
PART_NUM = 17
NUM_ACTIONS = 24      # interaction_num_action_classes (= action_mask.sum())
SPATIAL_SCALE = 1.0   # boxes given directly in feature-map coordinates
IMG_H = IMG_W = 16

LANES = 128
ROI_FEAT = DIM_IN * ROI_SIZE ** 2                            # 512
HOU_IN = 3 * ROI_FEAT                                        # 1536
HEAT_IN = 3 * HEATMAP ** 2                                   # 192
HEAT_KP = 256                                                # 192 -> lane multiple
POSE_IN = (PART_NUM + 1) * (DIM_IN + 2) * CROP_SIZE ** 2     # 9792
POSE_N = 1024
POSE_TK = 5120
POSE_TN = 512
POSE_KP = ((POSE_IN + POSE_TK - 1) // POSE_TK) * POSE_TK     # 10240


def _round_up(x, m):
    return ((x + m - 1) // m) * m


# ============================================================================
# Kernel 1 (fused A+B): human/object/union fc1 + pose_fc3->fc4 + attention MLP
# Weights are laid out block-diagonally so the single relu(sum) directly
# produces x_base packed as lanes [human 0:32 | object 32:64 | union 64:96 |
# pose_line 96:128] in bf16.
# ============================================================================
def _features_kernel(xhou_ref, pc_ref,
                     whou_ref, wfc3_ref, bfc3_ref, wfc4_ref, bfeat_ref,
                     wm1_ref, bm1_ref, wm2_ref, bm2_ref,
                     xb_ref, atten_ref):
    pc = pc_ref[...]
    # pose_fc3 -> hidden (f32 accumulate)
    h3 = jnp.maximum(
        jnp.dot(pc, wfc3_ref[...], preferred_element_type=jnp.float32)
        + bfc3_ref[...], 0.0)
    # packed x_base: hou branches + pose_fc4 land in disjoint lane bands,
    # so a single relu over the sum equals the per-branch relus.
    xb = jnp.maximum(
        jnp.dot(xhou_ref[...], whou_ref[...],
                preferred_element_type=jnp.float32)
        + jnp.dot(h3.astype(jnp.bfloat16), wfc4_ref[...],
                  preferred_element_type=jnp.float32)
        + bfeat_ref[...], 0.0)
    xb_ref[...] = xb.astype(jnp.bfloat16)
    # semantic-attention MLP (shared poseconfig input)
    hm = jnp.maximum(
        jnp.dot(pc, wm1_ref[...], preferred_element_type=jnp.float32)
        + bm1_ref[...], 0.0)
    atten_ref[...] = jax.nn.sigmoid(
        jnp.dot(hm.astype(jnp.bfloat16), wm2_ref[...],
                preferred_element_type=jnp.float32) + bm2_ref[...])


def features_fused(xhou_p, pc_p, p):
    MPr = xhou_p.shape[0]
    return pl.pallas_call(
        _features_kernel,
        out_shape=(jax.ShapeDtypeStruct((MPr, LANES), jnp.bfloat16),
                   jax.ShapeDtypeStruct((MPr, LANES), jnp.float32)),
    )(xhou_p, pc_p,
      p["feat_hou_w"], p["feat_fc3_w"], p["feat_fc3_b"], p["feat_fc4_w"],
      p["feat_b"], p["feat_mlp1_w"], p["feat_mlp1_b"],
      p["feat_mlp2_w"], p["feat_mlp2_b"])


# ============================================================================
# Kernel 2: pose_fc1 (K=9792->10240, N=1024), int8 weight stream, bf16 MXU,
# f32 accumulation, per-channel dequant + bias + relu in the finalize,
# bf16 output.  Grid (N tiles=2, K tiles=2) = 4 steps; N is "parallel" so a
# dual-TensorCore chip splits the weight stream.
# ============================================================================
def _pose_fc1_kernel(x_ref, wq_ref, scale_ref, b_ref, o_ref, acc_ref):
    k = pl.program_id(1)

    @pl.when(k == 0)
    def _init():
        acc_ref[...] = jnp.zeros_like(acc_ref)

    acc_ref[...] += jnp.dot(x_ref[...], wq_ref[...].astype(jnp.bfloat16),
                            preferred_element_type=jnp.float32)

    @pl.when(k == pl.num_programs(1) - 1)
    def _finalize():
        o_ref[...] = jnp.maximum(
            acc_ref[...] * scale_ref[...] + b_ref[...], 0.0
        ).astype(o_ref.dtype)


def pose_fc1(xp, wq, scale, b, tn=POSE_TN, tk=POSE_TK):
    MPr, KP = xp.shape
    NP = wq.shape[1]
    grid = (NP // tn, KP // tk)              # (2, 2)
    return pl.pallas_call(
        _pose_fc1_kernel,
        out_shape=jax.ShapeDtypeStruct((MPr, NP), jnp.bfloat16),
        grid_spec=pltpu.PrefetchScalarGridSpec(
            num_scalar_prefetch=0,
            grid=grid,
            in_specs=[
                pl.BlockSpec((MPr, tk), lambda j, k: (0, k)),
                pl.BlockSpec((tk, tn), lambda j, k: (k, j)),
                pl.BlockSpec((1, tn), lambda j, k: (0, j)),
                pl.BlockSpec((1, tn), lambda j, k: (0, j)),
            ],
            out_specs=pl.BlockSpec((MPr, tn), lambda j, k: (0, j)),
            scratch_shapes=[pltpu.VMEM((MPr, tn), jnp.float32)],
        ),
        compiler_params=pltpu.CompilerParams(
            dimension_semantics=("parallel", "arbitrary"),
            vmem_limit_bytes=32 * 1024 * 1024),
    )(xp, wq, scale, b)


# ============================================================================
# Kernel 3: pose_fc2 + (interaction_fc1 & global_affinity fc1 fused into one
# (256,128) weight) + (action score & affinity fused into one (128,128)
# weight).  Output lanes: [action 0:24 | affinity 24:25 | zeros].
# ============================================================================
def _heads_kernel(pose1_ref, xb_ref, wfc2_ref, bfc2_ref,
                  wh1_ref, bh1_ref, wsc_ref, bsc_ref, out_ref):
    xp = jnp.maximum(
        jnp.dot(pose1_ref[...], wfc2_ref[...],
                preferred_element_type=jnp.float32) + bfc2_ref[...], 0.0)
    xfull = jnp.concatenate([xb_ref[...], xp.astype(jnp.bfloat16)], axis=1)
    h = jnp.maximum(
        jnp.dot(xfull, wh1_ref[...], preferred_element_type=jnp.float32)
        + bh1_ref[...], 0.0)
    out_ref[...] = (jnp.dot(h.astype(jnp.bfloat16), wsc_ref[...],
                            preferred_element_type=jnp.float32)
                    + bsc_ref[...])


def interaction_heads(pose1, xb, p):
    MPr = pose1.shape[0]
    return pl.pallas_call(
        _heads_kernel,
        out_shape=jax.ShapeDtypeStruct((MPr, LANES), jnp.float32),
    )(pose1, xb, p["fc2_w"], p["fc2_b"], p["h1_w"], p["h1_b"],
      p["sc_w"], p["sc_b"])


# ------------------------- ROI-align (MXU formulation, plain JAX) ------------
def roi_align(feat, rois, resolution, spatial_scale=1.0):
    """Bilinear ROI-align expressed as a per-ROI one-hot matmul over HW.

    feat: (N, C, H, W); rois: (R, 5) = (batch, x1, y1, x2, y2).
    TODO(synk): one bilinear sample per output bin; the reference
    RoIAlignFunction averages sampling_ratio**2 sub-samples per bin.
    """
    N, C, H, W = feat.shape
    R = rois.shape[0]
    res = resolution
    ii = (jnp.arange(res, dtype=jnp.float32) + 0.5) / res
    bidx = rois[:, 0].astype(jnp.int32)
    x1 = rois[:, 1] * spatial_scale
    y1 = rois[:, 2] * spatial_scale
    x2 = rois[:, 3] * spatial_scale
    y2 = rois[:, 4] * spatial_scale
    bw = jnp.maximum(x2 - x1, 1.0)
    bh = jnp.maximum(y2 - y1, 1.0)
    ys = jnp.clip(y1[:, None] + ii[None, :] * bh[:, None], 0.0, H - 1.0)   # (R,res)
    xs = jnp.clip(x1[:, None] + ii[None, :] * bw[:, None], 0.0, W - 1.0)   # (R,res)
    y0 = jnp.floor(ys).astype(jnp.int32)
    x0 = jnp.floor(xs).astype(jnp.int32)
    y1i = jnp.minimum(y0 + 1, H - 1)
    x1i = jnp.minimum(x0 + 1, W - 1)
    ly = ys - y0.astype(jnp.float32)
    lx = xs - x0.astype(jnp.float32)
    # corner order [00, 01, 10, 11]
    wy = jnp.stack([1.0 - ly, 1.0 - ly, ly, ly], axis=1)[:, :, :, None]    # (R,4,res,1)
    wx = jnp.stack([1.0 - lx, lx, 1.0 - lx, lx], axis=1)[:, :, None, :]    # (R,4,1,res)
    wgt = (wy * wx).reshape(R, 4, res * res)                               # (R,4,P)
    yy = jnp.stack([y0, y0, y1i, y1i], axis=1)[:, :, :, None]              # (R,4,res,1)
    xx = jnp.stack([x0, x1i, x0, x1i], axis=1)[:, :, None, :]              # (R,4,1,res)
    idx = (yy * W + xx).reshape(R, 4, res * res)                           # (R,4,P)
    onehot = (idx[..., None] == jnp.arange(H * W, dtype=jnp.int32)
              [None, None, None, :]).astype(feat.dtype)                    # (R,4,P,HW)
    interp = jnp.sum(onehot * wgt[..., None], axis=1)                      # (R,P,HW)
    fmaps = feat.reshape(N, C, H * W)[bidx]                                # (R,C,HW)
    out = jnp.einsum('rph,rch->rcp', interp, fmaps)                        # (R,C,P)
    return out.reshape(R, C, res, res)


# ------------------------- parameter init (pre-packed) -----------------------
def _dense(key, fan_in, fan_out):
    kw, kb = jax.random.split(key)
    s = 1.0 / jnp.sqrt(jnp.float32(fan_in))
    w = jax.random.uniform(kw, (fan_in, fan_out), jnp.float32, -s, s)
    b = jax.random.uniform(kb, (fan_out,), jnp.float32, -s, s)
    return w, b


def init_params(key):
    ks = jax.random.split(key, 13)
    p = {}

    # ---- fused features kernel ----
    # human/object/union fc1 packed block-diagonally: K rows
    # [0:512|512:1024|1024:1536] -> N lanes [0:32|32:64|64:96].
    whou = jnp.zeros((HOU_IN, LANES), jnp.float32)
    bfeat = jnp.zeros((1, LANES), jnp.float32)
    for i in range(3):
        w, b = _dense(ks[i], ROI_FEAT, HIDDEN)
        whou = whou.at[i * ROI_FEAT:(i + 1) * ROI_FEAT,
                       i * HIDDEN:(i + 1) * HIDDEN].set(w)
        bfeat = bfeat.at[0, i * HIDDEN:(i + 1) * HIDDEN].set(b)
    p["feat_hou_w"] = whou.astype(jnp.bfloat16)

    # pose_fc3 / pose_fc4 (fc4 output into lanes 96:128 of x_base)
    w, b = _dense(ks[3], HEAT_IN, 512)
    p["feat_fc3_w"] = (jnp.zeros((HEAT_KP, 512), jnp.float32)
                       .at[:HEAT_IN].set(w).astype(jnp.bfloat16))
    p["feat_fc3_b"] = b.reshape(1, -1)
    w, b = _dense(ks[4], 512, HIDDEN)
    p["feat_fc4_w"] = (jnp.zeros((512, LANES), jnp.float32)
                       .at[:, 3 * HIDDEN:4 * HIDDEN].set(w).astype(jnp.bfloat16))
    bfeat = bfeat.at[0, 3 * HIDDEN:4 * HIDDEN].set(b)
    p["feat_b"] = bfeat

    # semantic-attention MLP
    w, b = _dense(ks[5], HEAT_IN, 64)
    p["feat_mlp1_w"] = (jnp.zeros((HEAT_KP, LANES), jnp.float32)
                        .at[:HEAT_IN, :64].set(w).astype(jnp.bfloat16))
    p["feat_mlp1_b"] = jnp.zeros((1, LANES), jnp.float32).at[0, :64].set(b)
    w, b = _dense(ks[6], 64, PART_NUM)
    p["feat_mlp2_w"] = (jnp.zeros((LANES, LANES), jnp.float32)
                        .at[:64, :PART_NUM].set(w).astype(jnp.bfloat16))
    p["feat_mlp2_b"] = jnp.zeros((1, LANES), jnp.float32).at[0, :PART_NUM].set(b)

    # ---- pose_fc1: int8 weight-only quant (per-output-channel scale) ----
    # TODO(synk): on v5e/v6e an int8 MXU path (quantized activations) and on
    # v7x native fp8 would avoid the in-kernel int8->bf16 cast entirely.
    w, b = _dense(ks[7], POSE_IN, POSE_N)
    w_pad = jnp.zeros((POSE_KP, POSE_N), jnp.float32).at[:POSE_IN].set(w)
    amax = jnp.maximum(jnp.max(jnp.abs(w_pad), axis=0), 1e-8)
    scale = amax / 127.0
    p["fc1_wq"] = jnp.clip(jnp.round(w_pad / scale[None, :]),
                           -127, 127).astype(jnp.int8)
    p["fc1_scale"] = scale.reshape(1, -1).astype(jnp.float32)
    p["fc1_b"] = b.reshape(1, -1)

    # pose_fc2 (64 outputs -> lanes 0:64 of xp)
    w, b = _dense(ks[8], POSE_N, 2 * HIDDEN)
    p["fc2_w"] = (jnp.zeros((POSE_N, LANES), jnp.float32)
                  .at[:, :2 * HIDDEN].set(w).astype(jnp.bfloat16))
    p["fc2_b"] = jnp.zeros((1, LANES), jnp.float32).at[0, :2 * HIDDEN].set(b)

    # ---- fused heads ----
    # Canonical 192-d x_interaction row order of the reference:
    #   [human 0:32 | object 32:64 | union 64:96 | pose(64) 96:160 | pose_line 160:192]
    # In-kernel operand xfull = concat[xb | xp]:
    #   [human 0:32 | object 32:64 | union 64:96 | pose_line 96:128 |
    #    pose 128:192 | zeros 192:256]
    def pack_fc1_rows(w):                       # w: (192, n) -> (256, n)
        out = jnp.zeros((2 * LANES, w.shape[1]), jnp.float32)
        out = out.at[0:96].set(w[0:96])         # human, object, union
        out = out.at[96:128].set(w[160:192])    # pose_line
        out = out.at[128:192].set(w[96:160])    # pose (fc2 output)
        return out

    inter_in = 6 * HIDDEN                       # 192
    wh1 = jnp.zeros((2 * LANES, LANES), jnp.float32)
    bh1 = jnp.zeros((1, LANES), jnp.float32)
    wi, bi = _dense(ks[9], inter_in, HIDDEN)    # interaction_fc1 -> lanes 0:32
    wh1 = wh1.at[:, 0:HIDDEN].set(pack_fc1_rows(wi))
    bh1 = bh1.at[0, 0:HIDDEN].set(bi)
    wg, bg = _dense(ks[11], inter_in, HIDDEN)   # global_affinity fc1 -> 32:64
    wh1 = wh1.at[:, HIDDEN:2 * HIDDEN].set(pack_fc1_rows(wg))
    bh1 = bh1.at[0, HIDDEN:2 * HIDDEN].set(bg)
    p["h1_w"] = wh1.astype(jnp.bfloat16)
    p["h1_b"] = bh1

    wsc = jnp.zeros((LANES, LANES), jnp.float32)
    bsc = jnp.zeros((1, LANES), jnp.float32)
    wa, ba = _dense(ks[10], HIDDEN, NUM_ACTIONS)     # action score -> lanes 0:24
    wsc = wsc.at[0:HIDDEN, 0:NUM_ACTIONS].set(wa)
    bsc = bsc.at[0, 0:NUM_ACTIONS].set(ba)
    wf, bfa = _dense(ks[12], HIDDEN, 1)              # affinity -> lane 24
    wsc = wsc.at[HIDDEN:2 * HIDDEN, NUM_ACTIONS:NUM_ACTIONS + 1].set(wf)
    bsc = bsc.at[0, NUM_ACTIONS:NUM_ACTIONS + 1].set(bfa)
    p["sc_w"] = wsc.astype(jnp.bfloat16)
    p["sc_b"] = bsc
    return p


# ------------------------- forward pass --------------------------------------
def pmfnet_forward(params, x, hoi_blob):
    N, C, H, W = x.shape
    hi = hoi_blob["interaction_human_inds"]
    oi = hoi_blob["interaction_object_inds"]
    T = hoi_blob["union_boxes"].shape[0]
    MPr = max(16, _round_up(T, 16))        # bf16 sublane tile -> unmasked I/O

    # relative coordinate maps (coord_x varies along W, coord_y along H)
    coord_x, coord_y = jnp.meshgrid(jnp.arange(W), jnp.arange(H))
    coords = jnp.stack((coord_x, coord_y), axis=0).astype(jnp.float32)   # (2,H,W)
    x_coords = jnp.broadcast_to(coords[None], (N, 2, H, W))

    # ---- appearance branch: ROI features -> fused features kernel ----
    x_human = roi_align(x, hoi_blob["human_boxes"], ROI_SIZE, SPATIAL_SCALE)
    x_object = roi_align(x, hoi_blob["object_boxes"], ROI_SIZE, SPATIAL_SCALE)
    x_union = roi_align(x, hoi_blob["union_boxes"], ROI_SIZE, SPATIAL_SCALE)
    x_human = x_human.reshape(x_human.shape[0], -1)[hi]          # (T, 512)
    x_object = x_object.reshape(x_object.shape[0], -1)[oi]       # (T, 512)
    x_union = x_union.reshape(x_union.shape[0], -1)              # (T, 512)
    xhou = jnp.concatenate([x_human, x_object, x_union], axis=1)  # (T, 1536)
    xhou_p = jnp.zeros((MPr, HOU_IN), jnp.bfloat16).at[:T].set(
        xhou.astype(jnp.bfloat16))

    poseconfig = hoi_blob["poseconfig"].reshape(T, -1)            # (T, 192)
    pc_p = jnp.zeros((MPr, HEAT_KP), jnp.bfloat16).at[:T, :HEAT_IN].set(
        poseconfig.astype(jnp.bfloat16))

    xb_p, atten_p = features_fused(xhou_p, pc_p, params)
    semantic_atten = atten_p[:T, :PART_NUM]                       # (T, 17)

    # ---- part-crop branch (features + relative coordinates) ----
    x_new = jnp.concatenate((x, x_coords), axis=1)                # (N, C+2, H, W)
    x_object2 = roi_align(x_new, hoi_blob["object_boxes"], CROP_SIZE,
                          SPATIAL_SCALE)

    part_boxes = hoi_blob["part_boxes"]                           # (nh, 17, 5)
    flag = hoi_blob["flag"]                                       # (nh, 17)
    nh = part_boxes.shape[0]
    part_feats = roi_align(x_new, part_boxes.reshape(-1, 5), CROP_SIZE,
                           SPATIAL_SCALE)
    part_feats = part_feats.reshape(nh, PART_NUM, C + 2, CROP_SIZE, CROP_SIZE)
    x_pose_full = part_feats * (flag > 0).astype(jnp.float32)[:, :, None, None, None]

    x_pose = x_pose_full[hi]                                      # (T,17,C+2,c,c)
    x_object2 = x_object2[oi][:, None]                            # (T,1,C+2,c,c)
    # TODO(synk): bin index 2 hard-coded as "center" to match the reference
    # (it is the geometric center only for odd PART_CROP_SIZE, e.g. 5).
    center_xy = x_object2[:, :, -2:, 2:3, 2:3]                    # (T,1,2,1,1)
    x_pose = x_pose.at[:, :, -2:].set(x_pose[:, :, -2:] - center_xy)
    x_object2 = x_object2.at[:, :, -2:].set(x_object2[:, :, -2:] - center_xy)
    x_pose = jnp.concatenate((x_pose, x_object2), axis=1)         # (T,18,C+2,c,c)

    atten_full = jnp.concatenate(
        [semantic_atten, jnp.ones((T, 1), jnp.float32)], axis=1)  # (T, 18)
    x_pose = x_pose * atten_full[:, :, None, None, None]
    x_pose_flat = x_pose.reshape(T, -1)                           # (T, 9792)

    # ---- pose_fc1: int8 weight stream, 4-step tiled matmul ----
    xp_p = jnp.zeros((MPr, POSE_KP), jnp.bfloat16).at[:T, :POSE_IN].set(
        x_pose_flat.astype(jnp.bfloat16))
    pose1 = pose_fc1(xp_p, params["fc1_wq"], params["fc1_scale"],
                     params["fc1_b"])                             # (MPr,1024) bf16

    # ---- fused heads: pose_fc2 + interaction/affinity heads (one launch) ----
    scores = interaction_heads(pose1, xb_p, params)               # (MPr, 128) f32
    interaction_action_score = scores[:T, :NUM_ACTIONS]
    interaction_affinity_score = scores[:T, NUM_ACTIONS:NUM_ACTIONS + 1]
    return interaction_action_score, interaction_affinity_score


# TODO(synk): the FABRICATOR training-time branch (fabricate_objs / remove_vars,
# obj_embedding, obj_fabricator, interaction_fake_* heads) and loss() are not
# part of the default eval forward and are not implemented.


# ------------------------- example data / main --------------------------------
def _make_boxes(key, n):
    k1, k2, k3, k4 = jax.random.split(key, 4)
    x1 = jax.random.uniform(k1, (n,), jnp.float32, 0.0, IMG_W / 2)
    y1 = jax.random.uniform(k2, (n,), jnp.float32, 0.0, IMG_H / 2)
    w = jax.random.uniform(k3, (n,), jnp.float32, 2.0, IMG_W / 2)
    h = jax.random.uniform(k4, (n,), jnp.float32, 2.0, IMG_H / 2)
    x2 = jnp.minimum(x1 + w, IMG_W - 1.0)
    y2 = jnp.minimum(y1 + h, IMG_H - 1.0)
    batch = jnp.zeros((n,), jnp.float32)
    return jnp.stack([batch, x1, y1, x2, y2], axis=1)


if __name__ == "__main__":
    key = jax.random.PRNGKey(0)
    k_param, k_x, k_hb, k_ob, k_ub, k_pb, k_flag, k_pose = jax.random.split(key, 8)

    params = init_params(k_param)

    num_human, num_object, num_inter = 3, 4, 6
    x = jax.random.normal(k_x, (1, DIM_IN, IMG_H, IMG_W), jnp.float32)

    hoi_blob = {
        "human_boxes": _make_boxes(k_hb, num_human),
        "object_boxes": _make_boxes(k_ob, num_object),
        "union_boxes": _make_boxes(k_ub, num_inter),
        "part_boxes": _make_boxes(k_pb, num_human * PART_NUM).reshape(
            num_human, PART_NUM, 5),
        "flag": (jax.random.uniform(k_flag, (num_human, PART_NUM)) > 0.3
                 ).astype(jnp.int32),
        "poseconfig": jax.random.normal(k_pose, (num_inter, 3, HEATMAP, HEATMAP),
                                        jnp.float32),
        "interaction_human_inds": jnp.array([0, 0, 1, 1, 2, 2], jnp.int32),
        "interaction_object_inds": jnp.array([0, 1, 1, 2, 3, 3], jnp.int32),
    }

    fwd = jax.jit(pmfnet_forward)
    action_score, affinity_score = fwd(params, x, hoi_blob)
    jax.block_until_ready((action_score, affinity_score))

    assert action_score.shape == (num_inter, NUM_ACTIONS)
    assert affinity_score.shape == (num_inter, 1)
    print("KERNEL_OK")
</pallas_src>

<mosaic_0001>
module attributes {stable_mosaic.version = 11 : i64} {
  func.func @_features_kernel(%arg0: memref<16x1536xbf16, #tpu.memory_space<vmem>>, %arg1: memref<16x256xbf16, #tpu.memory_space<vmem>>, %arg2: memref<1536x128xbf16, #tpu.memory_space<vmem>>, %arg3: memref<256x512xbf16, #tpu.memory_space<vmem>>, %arg4: memref<1x512xf32, #tpu.memory_space<vmem>>, %arg5: memref<512x128xbf16, #tpu.memory_space<vmem>>, %arg6: memref<1x128xf32, #tpu.memory_space<vmem>>, %arg7: memref<256x128xbf16, #tpu.memory_space<vmem>>, %arg8: memref<1x128xf32, #tpu.memory_space<vmem>>, %arg9: memref<128x128xbf16, #tpu.memory_space<vmem>>, %arg10: memref<1x128xf32, #tpu.memory_space<vmem>>, %arg11: memref<16x128xbf16, #tpu.memory_space<vmem>>, %arg12: memref<16x128xf32, #tpu.memory_space<vmem>>) attributes {dimension_semantics = [], scalar_prefetch = 0 : i64, scratch_operands = 0 : i64, tpu.core_type = #tpu.core_type<tc>} {
    %c0 = arith.constant 0 : index
    %c0_0 = arith.constant 0 : index
    %0 = vector.load %arg1[%c0, %c0_0] : memref<16x256xbf16, #tpu.memory_space<vmem>>, vector<16x256xbf16>
    %c0_1 = arith.constant 0 : index
    %c0_2 = arith.constant 0 : index
    %1 = vector.load %arg3[%c0_1, %c0_2] : memref<256x512xbf16, #tpu.memory_space<vmem>>, vector<256x512xbf16>
    %cst = arith.constant dense<0.000000e+00> : vector<16x512xf32>
    %2 = tpu.matmul %0, %1, %cst {dimension_numbers = #tpu.dot_dimension_numbers<[1], [0], [0], [1], [0, 0, 1, 1], [], []>} : vector<16x256xbf16>, vector<256x512xbf16>, vector<16x512xf32> -> vector<16x512xf32>
    %c0_3 = arith.constant 0 : index
    %c0_4 = arith.constant 0 : index
    %3 = vector.load %arg4[%c0_3, %c0_4] : memref<1x512xf32, #tpu.memory_space<vmem>>, vector<1x512xf32>
    %4 = vector.broadcast %3 : vector<1x512xf32> to vector<16x512xf32>
    %5 = arith.addf %2, %4 : vector<16x512xf32>
    %cst_5 = arith.constant 0.000000e+00 : f32
    %6 = vector.broadcast %cst_5 : f32 to vector<16x512xf32>
    %7 = arith.maximumf %5, %6 : vector<16x512xf32>
    %c0_6 = arith.constant 0 : index
    %c0_7 = arith.constant 0 : index
    %8 = vector.load %arg0[%c0_6, %c0_7] : memref<16x1536xbf16, #tpu.memory_space<vmem>>, vector<16x1536xbf16>
    %c0_8 = arith.constant 0 : index
    %c0_9 = arith.constant 0 : index
    %9 = vector.load %arg2[%c0_8, %c0_9] : memref<1536x128xbf16, #tpu.memory_space<vmem>>, vector<1536x128xbf16>
    %cst_10 = arith.constant dense<0.000000e+00> : vector<16x128xf32>
    %10 = tpu.matmul %8, %9, %cst_10 {dimension_numbers = #tpu.dot_dimension_numbers<[1], [0], [0], [1], [0, 0, 1, 1], [], []>} : vector<16x1536xbf16>, vector<1536x128xbf16>, vector<16x128xf32> -> vector<16x128xf32>
    %11 = arith.truncf %7 : vector<16x512xf32> to vector<16x512xbf16>
    %c0_11 = arith.constant 0 : index
    %c0_12 = arith.constant 0 : index
    %12 = vector.load %arg5[%c0_11, %c0_12] : memref<512x128xbf16, #tpu.memory_space<vmem>>, vector<512x128xbf16>
    %cst_13 = arith.constant dense<0.000000e+00> : vector<16x128xf32>
    %13 = tpu.matmul %11, %12, %cst_13 {dimension_numbers = #tpu.dot_dimension_numbers<[1], [0], [0], [1], [0, 0, 1, 1], [], []>} : vector<16x512xbf16>, vector<512x128xbf16>, vector<16x128xf32> -> vector<16x128xf32>
    %14 = arith.addf %10, %13 : vector<16x128xf32>
    %c0_14 = arith.constant 0 : index
    %c0_15 = arith.constant 0 : index
    %15 = vector.load %arg6[%c0_14, %c0_15] : memref<1x128xf32, #tpu.memory_space<vmem>>, vector<1x128xf32>
    %16 = vector.broadcast %15 : vector<1x128xf32> to vector<16x128xf32>
    %17 = arith.addf %14, %16 : vector<16x128xf32>
    %cst_16 = arith.constant 0.000000e+00 : f32
    %18 = vector.broadcast %cst_16 : f32 to vector<16x128xf32>
    %19 = arith.maximumf %17, %18 : vector<16x128xf32>
    %20 = arith.truncf %19 : vector<16x128xf32> to vector<16x128xbf16>
    %c0_17 = arith.constant 0 : index
    %c0_18 = arith.constant 0 : index
    %21 = vector.load %arg11[%c0_17, %c0_18] : memref<16x128xbf16, #tpu.memory_space<vmem>>, vector<16x128xbf16>
    tpu.vector_store %arg11[%c0_17, %c0_18], %20 {strides = array<i32>} : memref<16x128xbf16, #tpu.memory_space<vmem>>, vector<16x128xbf16>,
    %c0_19 = arith.constant 0 : index
    %c0_20 = arith.constant 0 : index
    %22 = vector.load %arg7[%c0_19, %c0_20] : memref<256x128xbf16, #tpu.memory_space<vmem>>, vector<256x128xbf16>
    %cst_21 = arith.constant dense<0.000000e+00> : vector<16x128xf32>
    %23 = tpu.matmul %0, %22, %cst_21 {dimension_numbers = #tpu.dot_dimension_numbers<[1], [0], [0], [1], [0, 0, 1, 1], [], []>} : vector<16x256xbf16>, vector<256x128xbf16>, vector<16x128xf32> -> vector<16x128xf32>
    %c0_22 = arith.constant 0 : index
    %c0_23 = arith.constant 0 : index
    %24 = vector.load %arg8[%c0_22, %c0_23] : memref<1x128xf32, #tpu.memory_space<vmem>>, vector<1x128xf32>
    %25 = vector.broadcast %24 : vector<1x128xf32> to vector<16x128xf32>
    %26 = arith.addf %23, %25 : vector<16x128xf32>
    %cst_24 = arith.constant 0.000000e+00 : f32
    %27 = vector.broadcast %cst_24 : f32 to vector<16x128xf32>
    %28 = arith.maximumf %26, %27 : vector<16x128xf32>
    %29 = arith.truncf %28 : vector<16x128xf32> to vector<16x128xbf16>
    %c0_25 = arith.constant 0 : index
    %c0_26 = arith.constant 0 : index
    %30 = vector.load %arg9[%c0_25, %c0_26] : memref<128x128xbf16, #tpu.memory_space<vmem>>, vector<128x128xbf16>
    %cst_27 = arith.constant dense<0.000000e+00> : vector<16x128xf32>
    %31 = tpu.matmul %29, %30, %cst_27 {dimension_numbers = #tpu.dot_dimension_numbers<[1], [0], [0], [1], [0, 0, 1, 1], [], []>} : vector<16x128xbf16>, vector<128x128xbf16>, vector<16x128xf32> -> vector<16x128xf32>
    %c0_28 = arith.constant 0 : index
    %c0_29 = arith.constant 0 : index
    %32 = vector.load %arg10[%c0_28, %c0_29] : memref<1x128xf32, #tpu.memory_space<vmem>>, vector<1x128xf32>
    %33 = vector.broadcast %32 : vector<1x128xf32> to vector<16x128xf32>
    %34 = arith.addf %31, %33 : vector<16x128xf32>
    %35 = arith.negf %34 : vector<16x128xf32>
    %36 = math.exp %35 : vector<16x128xf32>
    %cst_30 = arith.constant 1.000000e+00 : f32
    %37 = vector.broadcast %cst_30 : f32 to vector<16x128xf32>
    %38 = arith.addf %37, %36 : vector<16x128xf32>
    %39 = arith.divf %37, %38 : vector<16x128xf32>
    %c0_31 = arith.constant 0 : index
    %c0_32 = arith.constant 0 : index
    %40 = vector.load %arg12[%c0_31, %c0_32] : memref<16x128xf32, #tpu.memory_space<vmem>>, vector<16x128xf32>
    tpu.vector_store %arg12[%c0_31, %c0_32], %39 {strides = array<i32>} : memref<16x128xf32, #tpu.memory_space<vmem>>, vector<16x128xf32>,
    return
  }
}

module attributes {stable_mosaic.version = 11 : i64} {
  func.func @_pose_fc1_kernel(%arg0: i32, %arg1: i32, %arg2: memref<16x5120xbf16, #tpu.memory_space<vmem>>, %arg3: memref<5120x512xi8, #tpu.memory_space<vmem>>, %arg4: memref<1x512xf32, #tpu.memory_space<vmem>>, %arg5: memref<1x512xf32, #tpu.memory_space<vmem>>, %arg6: memref<16x512xbf16, #tpu.memory_space<vmem>>, %arg7: memref<16x512xf32, #tpu.memory_space<vmem>>) attributes {dimension_semantics = [#tpu.dimension_semantics<parallel>, #tpu.dimension_semantics<arbitrary>], iteration_bounds = array<i64: 2, 2>, scalar_prefetch = 0 : i64, scratch_operands = 1 : i64, tpu.core_type = #tpu.core_type<tc>, window_params = [{transform_indices = @transform_0, window_bounds = array<i64: 16, 5120>}, {transform_indices = @transform_1, window_bounds = array<i64: 5120, 512>}, {transform_indices = @transform_2, window_bounds = array<i64: 1, 512>}, {transform_indices = @transform_3, window_bounds = array<i64: 1, 512>}, {transform_indices = @transform_4, window_bounds = array<i64: 16, 512>}]} {
    %c0_i32 = arith.constant 0 : i32
    %0 = arith.cmpi eq, %arg1, %c0_i32 : i32
    %1 = arith.extui %0 : i1 to i32
    %c0_i32_0 = arith.constant 0 : i32
    %2 = arith.cmpi ne, %1, %c0_i32_0 : i32
    scf.if %2 {
      %cst_9 = arith.constant 0.000000e+00 : f32
      %13 = vector.broadcast %cst_9 : f32 to vector<16x512xf32>
      %c0_10 = arith.constant 0 : index
      %c0_11 = arith.constant 0 : index
      %14 = vector.load %arg7[%c0_10, %c0_11] : memref<16x512xf32, #tpu.memory_space<vmem>>, vector<16x512xf32>
      tpu.vector_store %arg7[%c0_10, %c0_11], %13 {strides = array<i32>} : memref<16x512xf32, #tpu.memory_space<vmem>>, vector<16x512xf32>,
    } else {
    }
    %c0 = arith.constant 0 : index
    %c0_1 = arith.constant 0 : index
    %3 = vector.load %arg7[%c0, %c0_1] : memref<16x512xf32, #tpu.memory_space<vmem>>, vector<16x512xf32>
    %c0_2 = arith.constant 0 : index
    %c0_3 = arith.constant 0 : index
    %4 = vector.load %arg2[%c0_2, %c0_3] : memref<16x5120xbf16, #tpu.memory_space<vmem>>, vector<16x5120xbf16>
    %c0_4 = arith.constant 0 : index
    %c0_5 = arith.constant 0 : index
    %5 = vector.load %arg3[%c0_4, %c0_5] : memref<5120x512xi8, #tpu.memory_space<vmem>>, vector<5120x512xi8>
    %6 = arith.sitofp %5 : vector<5120x512xi8> to vector<5120x512xbf16>
    %cst = arith.constant dense<0.000000e+00> : vector<16x512xf32>
    %7 = tpu.matmul %4, %6, %cst {dimension_numbers = #tpu.dot_dimension_numbers<[1], [0], [0], [1], [0, 0, 1, 1], [], []>} : vector<16x5120xbf16>, vector<5120x512xbf16>, vector<16x512xf32> -> vector<16x512xf32>
    %8 = arith.addf %3, %7 : vector<16x512xf32>
    %c0_6 = arith.constant 0 : index
    %c0_7 = arith.constant 0 : index
    %9 = vector.load %arg7[%c0_6, %c0_7] : memref<16x512xf32, #tpu.memory_space<vmem>>, vector<16x512xf32>
    tpu.vector_store %arg7[%c0_6, %c0_7], %8 {strides = array<i32>} : memref<16x512xf32, #tpu.memory_space<vmem>>, vector<16x512xf32>,
    %c1_i32 = arith.constant 1 : i32
    %10 = arith.cmpi eq, %arg1, %c1_i32 : i32
    %11 = arith.extui %10 : i1 to i32
    %c0_i32_8 = arith.constant 0 : i32
    %12 = arith.cmpi ne, %11, %c0_i32_8 : i32
    scf.if %12 {
      %c0_9 = arith.constant 0 : index
      %c0_10 = arith.constant 0 : index
      %13 = vector.load %arg7[%c0_9, %c0_10] : memref<16x512xf32, #tpu.memory_space<vmem>>, vector<16x512xf32>
      %c0_11 = arith.constant 0 : index
      %c0_12 = arith.constant 0 : index
      %14 = vector.load %arg4[%c0_11, %c0_12] : memref<1x512xf32, #tpu.memory_space<vmem>>, vector<1x512xf32>
      %15 = vector.broadcast %14 : vector<1x512xf32> to vector<16x512xf32>
      %16 = arith.mulf %13, %15 : vector<16x512xf32>
      %c0_13 = arith.constant 0 : index
      %c0_14 = arith.constant 0 : index
      %17 = vector.load %arg5[%c0_13, %c0_14] : memref<1x512xf32, #tpu.memory_space<vmem>>, vector<1x512xf32>
      %18 = vector.broadcast %17 : vector<1x512xf32> to vector<16x512xf32>
      %19 = arith.addf %16, %18 : vector<16x512xf32>
      %cst_15 = arith.constant 0.000000e+00 : f32
      %20 = vector.broadcast %cst_15 : f32 to vector<16x512xf32>
      %21 = arith.maximumf %19, %20 : vector<16x512xf32>
      %22 = arith.truncf %21 : vector<16x512xf32> to vector<16x512xbf16>
      %c0_16 = arith.constant 0 : index
      %c0_17 = arith.constant 0 : index
      %23 = vector.load %arg6[%c0_16, %c0_17] : memref<16x512xbf16, #tpu.memory_space<vmem>>, vector<16x512xbf16>
      tpu.vector_store %arg6[%c0_16, %c0_17], %22 {strides = array<i32>} : memref<16x512xbf16, #tpu.memory_space<vmem>>, vector<16x512xbf16>,
    } else {
    }
    return
  }
  func.func @transform_0(%arg0: i32, %arg1: i32) -> (i32, i32) {
    %c0_i32 = arith.constant 0 : i32
    %c0_i32_0 = arith.constant 0 : i32
    return %c0_i32, %arg1 : i32, i32
  }
  func.func @transform_1(%arg0: i32, %arg1: i32) -> (i32, i32) {
    %c0_i32 = arith.constant 0 : i32
    return %arg1, %arg0 : i32, i32
  }
  func.func @transform_2(%arg0: i32, %arg1: i32) -> (i32, i32) {
    %c0_i32 = arith.constant 0 : i32
    %c0_i32_0 = arith.constant 0 : i32
    return %c0_i32, %arg0 : i32, i32
  }
  func.func @transform_3(%arg0: i32, %arg1: i32) -> (i32, i32) {
    %c0_i32 = arith.constant 0 : i32
    %c0_i32_0 = arith.constant 0 : i32
    return %c0_i32, %arg0 : i32, i32
  }
  func.func @transform_4(%arg0: i32, %arg1: i32) -> (i32, i32) {
    %c0_i32 = arith.constant 0 : i32
    %c0_i32_0 = arith.constant 0 : i32
    return %c0_i32, %arg0 : i32, i32
  }
}

module attributes {stable_mosaic.version = 11 : i64} {
  func.func @_heads_kernel(%arg0: memref<16x1024xbf16, #tpu.memory_space<vmem>>, %arg1: memref<16x128xbf16, #tpu.memory_space<vmem>>, %arg2: memref<1024x128xbf16, #tpu.memory_space<vmem>>, %arg3: memref<1x128xf32, #tpu.memory_space<vmem>>, %arg4: memref<256x128xbf16, #tpu.memory_space<vmem>>, %arg5: memref<1x128xf32, #tpu.memory_space<vmem>>, %arg6: memref<128x128xbf16, #tpu.memory_space<vmem>>, %arg7: memref<1x128xf32, #tpu.memory_space<vmem>>, %arg8: memref<16x128xf32, #tpu.memory_space<vmem>>) attributes {dimension_semantics = [], scalar_prefetch = 0 : i64, scratch_operands = 0 : i64, tpu.core_type = #tpu.core_type<tc>} {
    %c0 = arith.constant 0 : index
    %c0_0 = arith.constant 0 : index
    %0 = vector.load %arg0[%c0, %c0_0] : memref<16x1024xbf16, #tpu.memory_space<vmem>>, vector<16x1024xbf16>
    %c0_1 = arith.constant 0 : index
    %c0_2 = arith.constant 0 : index
    %1 = vector.load %arg2[%c0_1, %c0_2] : memref<1024x128xbf16, #tpu.memory_space<vmem>>, vector<1024x128xbf16>
    %cst = arith.constant dense<0.000000e+00> : vector<16x128xf32>
    %2 = tpu.matmul %0, %1, %cst {dimension_numbers = #tpu.dot_dimension_numbers<[1], [0], [0], [1], [0, 0, 1, 1], [], []>} : vector<16x1024xbf16>, vector<1024x128xbf16>, vector<16x128xf32> -> vector<16x128xf32>
    %c0_3 = arith.constant 0 : index
    %c0_4 = arith.constant 0 : index
    %3 = vector.load %arg3[%c0_3, %c0_4] : memref<1x128xf32, #tpu.memory_space<vmem>>, vector<1x128xf32>
    %4 = vector.broadcast %3 : vector<1x128xf32> to vector<16x128xf32>
    %5 = arith.addf %2, %4 : vector<16x128xf32>
    %cst_5 = arith.constant 0.000000e+00 : f32
    %6 = vector.broadcast %cst_5 : f32 to vector<16x128xf32>
    %7 = arith.maximumf %5, %6 : vector<16x128xf32>
    %c0_6 = arith.constant 0 : index
    %c0_7 = arith.constant 0 : index
    %8 = vector.load %arg1[%c0_6, %c0_7] : memref<16x128xbf16, #tpu.memory_space<vmem>>, vector<16x128xbf16>
    %9 = arith.truncf %7 : vector<16x128xf32> to vector<16x128xbf16>
    %10 = tpu.concatenate %8, %9 in 1 : vector<16x128xbf16>, vector<16x128xbf16> -> vector<16x256xbf16>
    %c0_8 = arith.constant 0 : index
    %c0_9 = arith.constant 0 : index
    %11 = vector.load %arg4[%c0_8, %c0_9] : memref<256x128xbf16, #tpu.memory_space<vmem>>, vector<256x128xbf16>
    %cst_10 = arith.constant dense<0.000000e+00> : vector<16x128xf32>
    %12 = tpu.matmul %10, %11, %cst_10 {dimension_numbers = #tpu.dot_dimension_numbers<[1], [0], [0], [1], [0, 0, 1, 1], [], []>} : vector<16x256xbf16>, vector<256x128xbf16>, vector<16x128xf32> -> vector<16x128xf32>
    %c0_11 = arith.constant 0 : index
    %c0_12 = arith.constant 0 : index
    %13 = vector.load %arg5[%c0_11, %c0_12] : memref<1x128xf32, #tpu.memory_space<vmem>>, vector<1x128xf32>
    %14 = vector.broadcast %13 : vector<1x128xf32> to vector<16x128xf32>
    %15 = arith.addf %12, %14 : vector<16x128xf32>
    %cst_13 = arith.constant 0.000000e+00 : f32
    %16 = vector.broadcast %cst_13 : f32 to vector<16x128xf32>
    %17 = arith.maximumf %15, %16 : vector<16x128xf32>
    %18 = arith.truncf %17 : vector<16x128xf32> to vector<16x128xbf16>
    %c0_14 = arith.constant 0 : index
    %c0_15 = arith.constant 0 : index
    %19 = vector.load %arg6[%c0_14, %c0_15] : memref<128x128xbf16, #tpu.memory_space<vmem>>, vector<128x128xbf16>
    %cst_16 = arith.constant dense<0.000000e+00> : vector<16x128xf32>
    %20 = tpu.matmul %18, %19, %cst_16 {dimension_numbers = #tpu.dot_dimension_numbers<[1], [0], [0], [1], [0, 0, 1, 1], [], []>} : vector<16x128xbf16>, vector<128x128xbf16>, vector<16x128xf32> -> vector<16x128xf32>
    %c0_17 = arith.constant 0 : index
    %c0_18 = arith.constant 0 : index
    %21 = vector.load %arg7[%c0_17, %c0_18] : memref<1x128xf32, #tpu.memory_space<vmem>>, vector<1x128xf32>
    %22 = vector.broadcast %21 : vector<1x128xf32> to vector<16x128xf32>
    %23 = arith.addf %20, %22 : vector<16x128xf32>
    %c0_19 = arith.constant 0 : index
    %c0_20 = arith.constant 0 : index
    %24 = vector.load %arg8[%c0_19, %c0_20] : memref<16x128xf32, #tpu.memory_space<vmem>>, vector<16x128xf32>
    tpu.vector_store %arg8[%c0_19, %c0_20], %23 {strides = array<i32>} : memref<16x128xf32, #tpu.memory_space<vmem>>, vector<16x128xf32>,
    return
  }
}

</mosaic_0001>

<bundles_post_ra>
// kernel: pmfnet_forward.3
= control target key start
LH: loop header
LB: loop body
LE: loop exit
PB: predicated region body
PF: predicated region fallthrough
CT: control target
= control target key end

     0   :  { %vm3068_vm0 = vmmov 0   ;;  %s3851_s3 = inlined_call_operand.vmem [shape: bf16[256,512], index: 3, kind: input, shape index: {}]   ;;  %s3852_s1 = inlined_call_operand.vmem [shape: bf16[16,256], index: 1, kind: input, shape index: {}]   ;;  %s3853_s5 = inlined_call_operand.vmem [shape: bf16[512,128], index: 5, kind: input, shape index: {}]   ;;  %s3854_s2 = inlined_call_operand.vmem [shape: bf16[1536,128], index: 2, kind: input, shape index: {}]   ;;  %s3855_s0 = inlined_call_operand.vmem [shape: bf16[16,1536], index: 0, kind: input, shape index: {}]   ;;  %s3856_s7 = inlined_call_operand.vmem [shape: bf16[256,128], index: 7, kind: input, shape index: {}]   ;;  %s3857_s4 = inlined_call_operand.vmem [shape: f32[1,512], index: 4, kind: input, shape index: {}]   ;;  %s3858_s9 = inlined_call_operand.vmem [shape: bf16[128,128], index: 9, kind: input, shape index: {}]   ;;  %s3859_s6 = inlined_call_operand.vmem [shape: f32[1,128], index: 6, kind: input, shape index: {}]   ;;  %s3860_s11 = inlined_call_operand.vmem [shape: bf16[16,128], index: 11, kind: output, shape index: {0}]   ;;  %s3861_s8 = inlined_call_operand.vmem [shape: f32[1,128], index: 8, kind: input, shape index: {}]   ;;  %s3862_s10 = inlined_call_operand.vmem [shape: f32[1,128], index: 10, kind: input, shape index: {}]   ;;  %s3863_s12 = inlined_call_operand.vmem [shape: f32[16,128], index: 12, kind: output, shape index: {1}]  }
   0x1   :  { %v2788_v0 = vld [vmem:[%s3851_s3 + $0xe4] ss:$16 sps:$4 sm:$0xff]   ;;  %v2790_v1 = vld [vmem:[%s3851_s3 + $0xec] ss:$16 sps:$4 sm:$0xff]   ;;  %v2792_v2 = vld [vmem:[%s3851_s3 + $0xe0] ss:$16 sps:$4 sm:$0xff]  }
   0x2   :  { %459 = vmatprep.subr.bf16.mxu0 %v2788_v0  ;;  %v2793_v3 = vld [vmem:[%s3851_s3 + $0xe8] ss:$16 sps:$4 sm:$0xff]   ;;  %502 = vmatprep.subr.bf16.mxu1 %v2790_v1  ;;  %v2794_v4 = vld [vmem:[%s3851_s3 + $0xc4] ss:$16 sps:$4 sm:$0xff]   ;;  %v2796_v5 = vld [vmem:[%s3851_s3 + $0xcc] ss:$16 sps:$4 sm:$0xff]  }
   0x3   :  { %460 = vmatpush1.bf16.msra.mxu0 %v2792_v2  ;;  %503 = vmatpush1.bf16.msra.mxu1 %v2793_v3  ;;  %v2798_v6 = vld [vmem:[%s3851_s3 + $0xc0] ss:$16 sps:$4 sm:$0xff]   ;;  %v2799_v7 = vld [vmem:[%s3851_s3 + $0xc8] ss:$16 sps:$4 sm:$0xff]   ;;  %v2800_v8 = vld [vmem:[%s3851_s3 + $0xa4] ss:$16 sps:$4 sm:$0xff]  }
   0x4   :  { %461 = vmatprep.subr.bf16.mxu0 %v2794_v4  ;;  %504 = vmatprep.subr.bf16.mxu1 %v2796_v5  ;;  %v2802_v9 = vld [vmem:[%s3851_s3 + $0xac] ss:$16 sps:$4 sm:$0xff]   ;;  %v2804_v10 = vld [vmem:[%s3851_s3 + $0xa0] ss:$16 sps:$4 sm:$0xff]   ;;  %v2805_v11 = vld [vmem:[%s3851_s3 + $0xa8] ss:$16 sps:$4 sm:$0xff]  }
   0x5   :  { %v2806_v12 = vld [vmem:[%s3851_s3 + $0x84] ss:$16 sps:$4 sm:$0xff]   ;;  %v2808_v13 = vld [vmem:[%s3851_s3 + $0x8c] ss:$16 sps:$4 sm:$0xff]   ;;  %v2810_v14 = vld [vmem:[%s3851_s3 + $0x80] ss:$16 sps:$4 sm:$0xff]  }
   0x6   :  { %v2811_v15 = vld [vmem:[%s3851_s3 + $0x88] ss:$16 sps:$4 sm:$0xff]   ;;  %v2812_v16 = vld [vmem:[%s3851_s3 + $0x64] ss:$16 sps:$4 sm:$0xff]   ;;  %v2814_v17 = vld [vmem:[%s3851_s3 + $0x6c] ss:$16 sps:$4 sm:$0xff]  }
   0x7   :  { %462 = vmatpush1.bf16.msra.mxu0 %v2798_v6  ;;  %505 = vmatpush1.bf16.msra.mxu1 %v2799_v7  ;;  %v2816_v18 = vld [vmem:[%s3851_s3 + $0x60] ss:$16 sps:$4 sm:$0xff]   ;;  %v2817_v19 = vld [vmem:[%s3851_s3 + $0x68] ss:$16 sps:$4 sm:$0xff]   ;;  %v2818_v20 = vld [vmem:[%s3851_s3 + $0x44] ss:$16 sps:$4 sm:$0xff]  }
   0x8   :  { %463 = vmatprep.subr.bf16.mxu0 %v2800_v8  ;;  %506 = vmatprep.subr.bf16.mxu1 %v2802_v9  ;;  %v2820_v21 = vld [vmem:[%s3851_s3 + $0x4c] ss:$16 sps:$4 sm:$0xff]   ;;  %v2822_v22 = vld [vmem:[%s3851_s3 + $0x40] ss:$16 sps:$4 sm:$0xff]   ;;  %v2823_v23 = vld [vmem:[%s3851_s3 + $0x48] ss:$16 sps:$4 sm:$0xff]  }
   0x9   :  { %v2824_v24 = vld [vmem:[%s3851_s3 + $0x24] ss:$16 sps:$4 sm:$0xff]   ;;  %v2826_v25 = vld [vmem:[%s3851_s3 + $0x2c] ss:$16 sps:$4 sm:$0xff]   ;;  %v2828_v26 = vld [vmem:[%s3851_s3 + $0x20] ss:$16 sps:$4 sm:$0xff]  }
   0xa   :  { %v2829_v27 = vld [vmem:[%s3851_s3 + $0x28] ss:$16 sps:$4 sm:$0xff]   ;;  %v2830_v28 = vld [vmem:[%s3851_s3 + $0x4] ss:$16 sps:$4 sm:$0xff]   ;;  %v2832_v29 = vld [vmem:[%s3851_s3 + $0xc] ss:$16 sps:$4 sm:$0xff]  }
   0xb   :  { %464 = vmatpush1.bf16.msra.mxu0 %v2804_v10  ;;  %507 = vmatpush1.bf16.msra.mxu1 %v2805_v11  ;;  %v2834_v30 = vld [vmem:[%s3851_s3] ss:$16 sps:$4 sm:$0xff]   ;;  %v2835_v31 = vld [vmem:[%s3851_s3 + $0x8] ss:$16 sps:$4 sm:$0xff]   ;;  %v2836_v32 = vld [vmem:[%s3851_s3 + $0x1e4] ss:$16 sps:$4 sm:$0xff]  }
   0xc   :  { %465 = vmatprep.subr.bf16.mxu0 %v2806_v12  ;;  %508 = vmatprep.subr.bf16.mxu1 %v2808_v13  ;;  %v2838_v33 = vld [vmem:[%s3851_s3 + $0x1ec] ss:$16 sps:$4 sm:$0xff]   ;;  %v2840_v34 = vld [vmem:[%s3851_s3 + $0x1e0] ss:$16 sps:$4 sm:$0xff]   ;;  %v2841_v35 = vld [vmem:[%s3851_s3 + $0x1e8] ss:$16 sps:$4 sm:$0xff]  }
   0xd   :  { %v2842_v36 = vld [vmem:[%s3851_s3 + $0x1c4] ss:$16 sps:$4 sm:$0xff]   ;;  %v2844_v37 = vld [vmem:[%s3851_s3 + $0x1cc] ss:$16 sps:$4 sm:$0xff]   ;;  %v2846_v38 = vld [vmem:[%s3851_s3 + $0x1c0] ss:$16 sps:$4 sm:$0xff]  }
   0xe   :  { %v2847_v39 = vld [vmem:[%s3851_s3 + $0x1c8] ss:$16 sps:$4 sm:$0xff]   ;;  %v2848_v40 = vld [vmem:[%s3851_s3 + $0x1a4] ss:$16 sps:$4 sm:$0xff]   ;;  %v2850_v41 = vld [vmem:[%s3851_s3 + $0x1ac] ss:$16 sps:$4 sm:$0xff]  }
   0xf   :  { %466 = vmatpush1.bf16.msra.mxu0 %v2810_v14  ;;  %509 = vmatpush1.bf16.msra.mxu1 %v2811_v15  ;;  %v2852_v42 = vld [vmem:[%s3851_s3 + $0x1a0] ss:$16 sps:$4 sm:$0xff]   ;;  %v2853_v43 = vld [vmem:[%s3851_s3 + $0x1a8] ss:$16 sps:$4 sm:$0xff]   ;;  %v2854_v44 = vld [vmem:[%s3851_s3 + $0x184] ss:$16 sps:$4 sm:$0xff]  }
  0x10   :  { %467 = vmatprep.subr.bf16.mxu0 %v2812_v16  ;;  %510 = vmatprep.subr.bf16.mxu1 %v2814_v17  ;;  %v2856_v45 = vld [vmem:[%s3851_s3 + $0x18c] ss:$16 sps:$4 sm:$0xff]   ;;  %v2858_v46 = vld [vmem:[%s3851_s3 + $0x180] ss:$16 sps:$4 sm:$0xff]   ;;  %v2859_v47 = vld [vmem:[%s3851_s3 + $0x188] ss:$16 sps:$4 sm:$0xff]  }
  0x11   :  { %v2884_v48 = vld [vmem:[%s3852_s1 + $0x4] ss:$8 sps:$4 sm:$0xff]   ;;  %v2864_v51 = vld [vmem:[%s3851_s3 + $0x160] ss:$16 sps:$4 sm:$0xff]   ;;  %v2865_v52 = vld [vmem:[%s3851_s3 + $0x168] ss:$16 sps:$4 sm:$0xff]  }
  0x12   :  { %v2860_v49 = vld [vmem:[%s3851_s3 + $0x164] ss:$16 sps:$4 sm:$0xff]   ;;  %v2862_v50 = vld [vmem:[%s3851_s3 + $0x16c] ss:$16 sps:$4 sm:$0xff]   ;;  %491 = vmatprep.mubr.bf16.mxu0 %v2884_v48  ;;  %534 = vmatprep.mubr.bf16.mxu1 %v2884_v48  ;;  %v2870_v55 = vld [vmem:[%s3851_s3 + $0x140] ss:$16 sps:$4 sm:$0xff]  }
  0x13   :  { %468 = vmatpush1.bf16.msra.mxu0 %v2816_v18  ;;  %511 = vmatpush1.bf16.msra.mxu1 %v2817_v19  ;;  %v2866_v53 = vld [vmem:[%s3851_s3 + $0x144] ss:$16 sps:$4 sm:$0xff]   ;;  %v2868_v54 = vld [vmem:[%s3851_s3 + $0x14c] ss:$16 sps:$4 sm:$0xff]   ;;  %v2871_v56 = vld [vmem:[%s3851_s3 + $0x148] ss:$16 sps:$4 sm:$0xff]  }
  0x14   :  { %469 = vmatprep.subr.bf16.mxu0 %v2818_v20  ;;  %512 = vmatprep.subr.bf16.mxu1 %v2820_v21  ;;  %v2872_v57 = vld [vmem:[%s3851_s3 + $0x124] ss:$16 sps:$4 sm:$0xff]   ;;  %v2874_v58 = vld [vmem:[%s3851_s3 + $0x12c] ss:$16 sps:$4 sm:$0xff]   ;;  %v2876_v59 = vld [vmem:[%s3851_s3 + $0x120] ss:$16 sps:$4 sm:$0xff]  }
  0x15   :  { %v2877_v60 = vld [vmem:[%s3851_s3 + $0x128] ss:$16 sps:$4 sm:$0xff]   ;;  %v2878_v61 = vld [vmem:[%s3851_s3 + $0x104] ss:$16 sps:$4 sm:$0xff]   ;;  %v2880_v62 = vld [vmem:[%s3851_s3 + $0x10c] ss:$16 sps:$4 sm:$0xff]  }
  0x16   :  { %v2882_v63 = vld [vmem:[%s3851_s3 + $0x100] ss:$16 sps:$4 sm:$0xff]   ;;  %v2883_v0 = vld [vmem:[%s3851_s3 + $0x108] ss:$16 sps:$4 sm:$0xff]  }
  0x17   :  { %470 = vmatpush1.bf16.msra.mxu0 %v2822_v22  ;;  %513 = vmatpush1.bf16.msra.mxu1 %v2823_v23  ;;  %v2887_v1 = vld [vmem:[%s3853_s5 + $0x78] sm:$0xff]   ;;  %v2886_v2 = vld [vmem:[%s3852_s1] ss:$8 sps:$4 sm:$0xff]   ;;  %v2891_v6 = vld [vmem:[%s3853_s5 + $0x70] sm:$0xff]  }
  0x18   :  { %471 = vmatprep.subr.bf16.mxu0 %v2824_v24  ;;  %514 = vmatprep.subr.bf16.mxu1 %v2826_v25  ;;  %v2889_v3 = vld [vmem:[%s3853_s5 + $0xf8] sm:$0xff]   ;;  %v2893_v7 = vld [vmem:[%s3853_s5 + $0xf0] sm:$0xff]   ;;  %v2895_v10 = vld [vmem:[%s3853_s5 + $0x68] sm:$0xff]  }
  0x19   :  { %v2888_v4 = vld [vmem:[%s3853_s5 + $0x38] sm:$0xff]   ;;  %v2892_v8 = vld [vmem:[%s3853_s5 + $0x30] sm:$0xff]   ;;  %v2897_v11 = vld [vmem:[%s3853_s5 + $0xe8] sm:$0xff]  }
  0x1a   :  { %v2890_v5 = vld [vmem:[%s3853_s5 + $0xb8] sm:$0xff]   ;;  %v2894_v9 = vld [vmem:[%s3853_s5 + $0xb0] sm:$0xff]   ;;  %v2896_v12 = vld [vmem:[%s3853_s5 + $0x28] sm:$0xff]  }
  0x1b   :  { %472 = vmatpush1.bf16.msra.mxu0 %v2828_v26  ;;  %515 = vmatpush1.bf16.msra.mxu1 %v2829_v27  ;;  %v2898_v13 = vld [vmem:[%s3853_s5 + $0xa8] sm:$0xff]   ;;  %v2899_v14 = vld [vmem:[%s3853_s5 + $0x60] sm:$0xff]   ;;  %v2903_v18 = vld [vmem:[%s3853_s5 + $0x58] sm:$0xff]  }
  0x1c   :  { %473 = vmatprep.subr.bf16.mxu0 %v2830_v28  ;;  %516 = vmatprep.subr.bf16.mxu1 %v2832_v29  ;;  %v2901_v15 = vld [vmem:[%s3853_s5 + $0xe0] sm:$0xff]   ;;  %v2905_v19 = vld [vmem:[%s3853_s5 + $0xd8] sm:$0xff]   ;;  %v2907_v22 = vld [vmem:[%s3853_s5 + $0x50] sm:$0xff]  }
  0x1d   :  { %v2900_v16 = vld [vmem:[%s3853_s5 + $0x20] sm:$0xff]   ;;  %v2904_v20 = vld [vmem:[%s3853_s5 + $0x18] sm:$0xff]   ;;  %v2908_v23 = vld [vmem:[%s3853_s5 + $0x10] sm:$0xff]  }
  0x1e   :  { %v2902_v17 = vld [vmem:[%s3853_s5 + $0xa0] sm:$0xff]   ;;  %v2906_v21 = vld [vmem:[%s3853_s5 + $0x98] sm:$0xff]   ;;  %v2909_v24 = vld [vmem:[%s3853_s5 + $0xd0] sm:$0xff]  }
  0x1f   :  { %474 = vmatpush1.bf16.msra.mxu0 %v2834_v30  ;;  %517 = vmatpush1.bf16.msra.mxu1 %v2835_v31  ;;  %v2910_v25 = vld [vmem:[%s3853_s5 + $0x90] sm:$0xff]   ;;  %v2911_v26 = vld [vmem:[%s3853_s5 + $0x48] sm:$0xff]   ;;  %v2915_v30 = vld [vmem:[%s3853_s5 + $0x40] sm:$0xff]  }
  0x20   :  { %475 = vmatprep.subr.bf16.mxu0 %v2836_v32  ;;  %518 = vmatprep.subr.bf16.mxu1 %v2838_v33  ;;  %v2912_v27 = vld [vmem:[%s3853_s5 + $0x8] sm:$0xff]   ;;  %v2916_v31 = vld [vmem:[%s3853_s5] sm:$0xff]  }
  0x21   :  { %v2913_v28 = vld [vmem:[%s3853_s5 + $0xc8] sm:$0xff]   ;;  %v2917_v32 = vld [vmem:[%s3853_s5 + $0xc0] sm:$0xff]  }
  0x22   :  { %v2914_v29 = vld [vmem:[%s3853_s5 + $0x88] sm:$0xff]   ;;  %v2918_v33 = vld [vmem:[%s3853_s5 + $0x80] sm:$0xff]  }
  0x23   :  { %476 = vmatpush2.bf16.msra.mxu0 %v2840_v34  ;;  %519 = vmatpush2.bf16.msra.mxu1 %v2841_v35  ;;  %v2919_v34 = vld [vmem:[%s3854_s2 + $0x78] sm:$0xff]  }
  0x24   :  { %477 = vmatprep.subr.bf16.mxu0 %v2842_v36  ;;  %520 = vmatprep.subr.bf16.mxu1 %v2844_v37  ;;  %v2921_v35 = vld [vmem:[%s3854_s2 + $0xf8] sm:$0xff]   ;;  %v109_v36 = vlaneseq }
  0x26   :  { %v110_v37 = vshrl.u32 %v109_v36, 7  ;;  %v2945_v36 = vld [vmem:[%s3854_s2 + $0xc8] sm:$0xff]  }
  0x27   :  { %478 = vmatpush2.bf16.msra.mxu0 %v2846_v38  ;;  %521 = vmatpush2.bf16.msra.mxu1 %v2847_v39  ;;  %v107_v39 = vld [vmem:[%s3857_s4] sm:$0xf] }
  0x28   :  { %479 = vmatprep.subr.bf16.mxu0 %v2848_v40  ;;  %522 = vmatprep.subr.bf16.mxu1 %v2850_v41  ;;  %v119_v38 = vsub.s32 2, %v110_v37  ;;  %v123_v40 = vsub.s32 3, %v110_v37  ;;  %v111_v41 = vsub.s32 0, %v110_v37 }
  0x2a   :  { %v112_v48 = vrot.slane %v107_v39, %v111_v41  ;;  %v2948_v41 = vld [vmem:[%s3854_s2] sm:$0xff]  }
  0x2b   :  { %480 = vmatpush2.bf16.msra.mxu0 %v2852_v42  ;;  %523 = vmatpush2.bf16.msra.mxu1 %v2853_v43  ;;  %v115_v42 = vsub.s32 1, %v110_v37  ;;  %v120_v43 = vrot.slane %v107_v39, %v119_v38  ;;  %v2944_v37 = vld [vmem:[%s3854_s2 + $0x8] sm:$0xff]  }
  0x2c   :  { %481 = vmatprep.subr.bf16.mxu0 %v2854_v44  ;;  %524 = vmatprep.subr.bf16.mxu1 %v2856_v45  ;;  %v124_v44 = vrot.slane %v107_v39, %v123_v40  ;;  %v2946_v38 = vld [vmem:[%s3854_s2 + $0x88] sm:$0xff]   ;;  %v2949_v40 = vld [vmem:[%s3854_s2 + $0xc0] sm:$0xff]  }
  0x2f   :  { %482 = vmatpush2.bf16.msra.mxu0 %v2858_v46  ;;  %525 = vmatpush2.bf16.msra.mxu1 %v2859_v47  ;;  %v116_v47 = vrot.slane %v107_v39, %v115_v42  ;;  %v2947_v39 = vld [vmem:[%s3854_s2 + $0x40] sm:$0xff]  }
  0x30   :  { %483 = vmatprep.subr.bf16.mxu0 %v2860_v49  ;;  %526 = vmatprep.subr.bf16.mxu1 %v2862_v50  ;;  %v2953_v42 = vld [vmem:[%s3854_s2 + $0x80] sm:$0xff]  }
  0x33   :  { %484 = vmatpush2.bf16.msra.mxu0 %v2864_v51  ;;  %527 = vmatpush2.bf16.msra.mxu1 %v2865_v52 }
  0x34   :  { %485 = vmatprep.subr.bf16.mxu0 %v2866_v53  ;;  %528 = vmatprep.subr.bf16.mxu1 %v2868_v54 }
  0x37   :  { %486 = vmatpush2.bf16.msra.mxu0 %v2870_v55  ;;  %529 = vmatpush2.bf16.msra.mxu1 %v2871_v56 }
  0x38   :  { %487 = vmatprep.subr.bf16.mxu0 %v2872_v57  ;;  %530 = vmatprep.subr.bf16.mxu1 %v2874_v58 }
  0x3b   :  { %488 = vmatpush2.bf16.msra.mxu0 %v2876_v59  ;;  %531 = vmatpush2.bf16.msra.mxu1 %v2877_v60 }
  0x3c   :  { %489 = vmatprep.subr.bf16.mxu0 %v2878_v61  ;;  %532 = vmatprep.subr.bf16.mxu1 %v2880_v62 }
  0x3f   :  { %490 = vmatpush2.bf16.msra.mxu0 %v2882_v63  ;;  %533 = vmatpush2.bf16.msra.mxu1 %v2883_v0 }
  0x40   :  { %2559 = vmatprep.subr.bf16.mxu0 %v2887_v1  ;;  %2581 = vmatprep.subr.bf16.mxu1 %v2889_v3 }
  0x42   :  { %492 = vmatmul.mubr.bf16.vlgmr.msra.gmra.mxu0 %v2886_v2  ;;  %535 = vmatmul.mubr.bf16.vlgmr.msra.gmra.mxu1 %v2886_v2 }
  0x43   :  { %2560 = vmatpush3.bf16.msra.mxu0 %v2888_v4  ;;  %2582 = vmatpush3.bf16.msra.mxu1 %v2890_v5 }
  0x44   :  { %2561 = vmatprep.subr.bf16.mxu0 %v2891_v6  ;;  %2583 = vmatprep.subr.bf16.mxu1 %v2893_v7 }
  0x47   :  { %2562 = vmatpush3.bf16.msra.mxu0 %v2892_v8  ;;  %2584 = vmatpush3.bf16.msra.mxu1 %v2894_v9 }
  0x48   :  { %2563 = vmatprep.subr.bf16.mxu0 %v2895_v10  ;;  %2585 = vmatprep.subr.bf16.mxu1 %v2897_v11  ;;  %v2920_v10 = vld [vmem:[%s3854_s2 + $0x38] sm:$0xff]  }
  0x49   :  { %v2922_v11 = vld [vmem:[%s3854_s2 + $0xb8] sm:$0xff]  }
  0x4b   :  { %2564 = vmatpush3.bf16.msra.mxu0 %v2896_v12  ;;  %2586 = vmatpush3.bf16.msra.mxu1 %v2898_v13  ;;  %v2923_v13 = vld [vmem:[%s3854_s2 + $0x70] sm:$0xff]  }
  0x4c   :  { %2565 = vmatprep.subr.bf16.mxu0 %v2899_v14  ;;  %2587 = vmatprep.subr.bf16.mxu1 %v2901_v15  ;;  %v2925_v14 = vld [vmem:[%s3854_s2 + $0xf0] sm:$0xff]  }
  0x4d   :  { %v2952_v15 = vld [vmem:[%s3855_s0 + $0x4] ss:$48 sps:$4 sm:$0xff]  }
  0x4f   :  { %2566 = vmatpush3.bf16.msra.mxu0 %v2900_v16  ;;  %2588 = vmatpush3.bf16.msra.mxu1 %v2902_v17  ;;  %v2957_v16 = vld [vmem:[%s3855_s0 + $0xc] ss:$48 sps:$4 sm:$0xff]   ;;  %v2924_v17 = vld [vmem:[%s3854_s2 + $0x30] sm:$0xff]  }
  0x50   :  { %2567 = vmatprep.subr.bf16.mxu0 %v2903_v18  ;;  %2589 = vmatprep.subr.bf16.mxu1 %v2905_v19  ;;  %v2926_v18 = vld [vmem:[%s3854_s2 + $0xb0] sm:$0xff]   ;;  %v2927_v19 = vld [vmem:[%s3854_s2 + $0x68] sm:$0xff]  }
  0x53   :  { %2568 = vmatpush3.bf16.msra.mxu0 %v2904_v20  ;;  %2590 = vmatpush3.bf16.msra.mxu1 %v2906_v21  ;;  %v2929_v20 = vld [vmem:[%s3854_s2 + $0xe8] sm:$0xff]  }
  0x54   :  { %2569 = vmatprep.subr.bf16.mxu0 %v2907_v22  ;;  %2591 = vmatprep.subr.bf16.mxu1 %v2909_v24  ;;  %v2928_v21 = vld [vmem:[%s3854_s2 + $0x28] sm:$0xff]   ;;  %v2933_v24 = vld [vmem:[%s3854_s2 + $0xe0] sm:$0xff]  }
  0x55   :  { %v2930_v22 = vld [vmem:[%s3854_s2 + $0xa8] sm:$0xff]  }
  0x57   :  { %2570 = vmatpush3.bf16.msra.mxu0 %v2908_v23  ;;  %2592 = vmatpush3.bf16.msra.mxu1 %v2910_v25  ;;  %v2931_v23 = vld [vmem:[%s3854_s2 + $0x60] sm:$0xff]  }
  0x58   :  { %2571 = vmatprep.subr.bf16.mxu0 %v2911_v26  ;;  %2593 = vmatprep.subr.bf16.mxu1 %v2913_v28  ;;  %v2932_v25 = vld [vmem:[%s3854_s2 + $0x20] sm:$0xff]   ;;  %v2937_v28 = vld [vmem:[%s3854_s2 + $0xd8] sm:$0xff]  }
  0x59   :  { %v2934_v26 = vld [vmem:[%s3854_s2 + $0xa0] sm:$0xff]  }
  0x5b   :  { %2572 = vmatpush3.bf16.msra.mxu0 %v2912_v27  ;;  %2594 = vmatpush3.bf16.msra.mxu1 %v2914_v29  ;;  %v2935_v27 = vld [vmem:[%s3854_s2 + $0x58] sm:$0xff]  }
  0x5c   :  { %2573 = vmatprep.subr.bf16.mxu0 %v2915_v30  ;;  %2595 = vmatprep.subr.bf16.mxu1 %v2917_v32  ;;  %v2936_v29 = vld [vmem:[%s3854_s2 + $0x18] sm:$0xff]   ;;  %v2941_v32 = vld [vmem:[%s3854_s2 + $0xd0] sm:$0xff]  }
  0x5d   :  { %v2938_v30 = vld [vmem:[%s3854_s2 + $0x98] sm:$0xff]  }
  0x5f   :  { %2574 = vmatpush3.bf16.msra.mxu0 %v2916_v31  ;;  %2596 = vmatpush3.bf16.msra.mxu1 %v2918_v33  ;;  %v2939_v31 = vld [vmem:[%s3854_s2 + $0x50] sm:$0xff]  }
  0x60   :  { %2603 = vmatprep.subr.bf16.mxu0 %v2919_v34  ;;  %2625 = vmatprep.subr.bf16.mxu1 %v2921_v35  ;;  %v2940_v33 = vld [vmem:[%s3854_s2 + $0x10] sm:$0xff]   ;;  %v2943_v35 = vld [vmem:[%s3854_s2 + $0x48] sm:$0xff]  }
  0x61   :  { %v2942_v34 = vld [vmem:[%s3854_s2 + $0x90] sm:$0xff]  }
 0x102   :  { %v493_v45 = vpop.f32.mrf.mxu0  ;;  %v536_v46 = vpop.f32.mrf.mxu1 }
 0x103   :  { %v537_v49 = vadd.f32 %v536_v46, %v120_v43  ;;  %v494_v58 = vadd.f32 %v493_v45, %v112_v48  ;;  %v2950_v45 = vld [vmem:[%s3855_s0] ss:$48 sps:$4 sm:$0xff]   ;;  %v2955_v46 = vld [vmem:[%s3855_s0 + $0x8] ss:$48 sps:$4 sm:$0xff]  }
 0x104   :  { %v495_v50 = vpop.f32.mrf.mxu0  ;;  %v538_v51 = vpop.f32.mrf.mxu1 }
 0x105   :  { %v539_v52 = vadd.f32 %v538_v51, %v124_v44  ;;  %v496_v55 = vadd.f32 %v495_v50, %v116_v47  ;;  %v547_v59 = vmax.f32 %v537_v49, 0.0  ;;  %v545_v6 = vmax.f32 %v494_v58, 0.0  ;;  %v2961_v49 = vld [vmem:[%s3854_s2 + $0x170] sm:$0xff]   ;;  %v2968_v58 = vld [vmem:[%s3854_s2 + $0x1a8] sm:$0xff]  }
 0x106   :  { %v497_v53 = vpop.f32.mrf.mxu0  ;;  %v540_v54 = vpop.f32.mrf.mxu1  ;;  %v2963_v50 = vld [vmem:[%s3854_s2 + $0x1f0] sm:$0xff]  }
 0x107   :  { %v498_v56 = vadd.f32 %v497_v53, %v112_v48  ;;  %v541_v57 = vadd.f32 %v540_v54, %v120_v43  ;;  %v548_v62 = vmax.f32 %v539_v52, 0.0  ;;  %v546_v3 = vmax.f32 %v496_v55, 0.0  ;;  %v2954_v43 = vld [vmem:[%s3854_s2 + $0x178] sm:$0xff]   ;;  %v2990_v51 = vld [vmem:[%s3855_s0 + $0x14] ss:$48 sps:$4 sm:$0xff]   ;;  %v2965_v55 = vld [vmem:[%s3854_s2 + $0x168] sm:$0xff]  }
 0x108   :  { %v499_v60 = vpop.f32.mrf.mxu0  ;;  %v542_v61 = vpop.f32.mrf.mxu1  ;;  %v2960_v48 = vld [vmem:[%s3854_s2 + $0x1b8] sm:$0xff]   ;;  %v2962_v53 = vld [vmem:[%s3854_s2 + $0x130] sm:$0xff]  }
 0x109   :  { %v551_v63 = vmax.f32 %v541_v57, 0.0  ;;  %v500_v0 = vadd.f32 %v499_v60, %v116_v47  ;;  %v543_v1 = vadd.f32 %v542_v61, %v124_v44  ;;  %v549_v2 = vmax.f32 %v498_v56, 0.0  ;;  %v2959_v44 = vld [vmem:[%s3854_s2 + $0x1f8] sm:$0xff]   ;;  %v2964_v54 = vld [vmem:[%s3854_s2 + $0x1b0] sm:$0xff]   ;;  %v2967_v56 = vld [vmem:[%s3854_s2 + $0x1e8] sm:$0xff]  }
 0x10a   :  { %v2958_v47 = vld [vmem:[%s3854_s2 + $0x138] sm:$0xff]   ;;  %v2966_v57 = vld [vmem:[%s3854_s2 + $0x128] sm:$0xff]   ;;  %v2971_v60 = vld [vmem:[%s3854_s2 + $0x1e0] sm:$0xff]  }
 0x10b   :  { %v550_v4 = vmax.f32 %v500_v0, 0.0  ;;  %v552_v5 = vmax.f32 %v543_v1, 0.0  ;;  %v759_v7 = vpack.c.bf16 %v551_v63, %v547_v59  ;;  %v757_v12 = vpack.c.bf16 %v549_v2, %v545_v6  ;;  %v2995_v52 = vld [vmem:[%s3855_s0 + $0x1c] ss:$48 sps:$4 sm:$0xff]   ;;  %v2969_v59 = vld [vmem:[%s3854_s2 + $0x160] sm:$0xff]   ;;  %v2980_v6 = vld [vmem:[%s3854_s2 + $0x190] sm:$0xff]  }
 0x10c   :  { %v2970_v61 = vld [vmem:[%s3854_s2 + $0x120] sm:$0xff]   ;;  %v2973_v63 = vld [vmem:[%s3854_s2 + $0x158] sm:$0xff]  }
 0x10d   :  { %v758_v8 = vpack.c.bf16 %v550_v4, %v546_v3  ;;  %v760_v9 = vpack.c.bf16 %v552_v5, %v548_v62  ;;  %v2972_v62 = vld [vmem:[%s3854_s2 + $0x1a0] sm:$0xff]   ;;  %v2975_v0 = vld [vmem:[%s3854_s2 + $0x1d8] sm:$0xff]   ;;  %v2977_v3 = vld [vmem:[%s3854_s2 + $0x150] sm:$0xff]  }
 0x10e   :  { %v2974_v1 = vld [vmem:[%s3854_s2 + $0x118] sm:$0xff]   ;;  %v2979_v4 = vld [vmem:[%s3854_s2 + $0x1d0] sm:$0xff]  }
 0x10f   :  { %1049 = vmatprep.mubr.bf16.mxu0 %v758_v8  ;;  %1090 = vmatprep.mubr.bf16.mxu1 %v760_v9  ;;  %v2976_v2 = vld [vmem:[%s3854_s2 + $0x198] sm:$0xff]   ;;  %v2978_v5 = vld [vmem:[%s3854_s2 + $0x110] sm:$0xff]   ;;  %v2983_v8 = vld [vmem:[%s3854_s2 + $0x1c8] sm:$0xff]  }
 0x110   :  { %1050 = vmatmul.mubr.bf16.vlgmr.msra.gmra.mxu0 %v757_v12  ;;  %1091 = vmatmul.mubr.bf16.vlgmr.msra.gmra.mxu1 %v759_v7  ;;  %v2981_v7 = vld [vmem:[%s3854_s2 + $0x148] sm:$0xff]   ;;  %v2987_v12 = vld [vmem:[%s3854_s2 + $0x1c0] sm:$0xff]  }
 0x111   :  { %2604 = vmatpush3.bf16.msra.mxu0 %v2920_v10  ;;  %2626 = vmatpush3.bf16.msra.mxu1 %v2922_v11  ;;  %v2982_v9 = vld [vmem:[%s3854_s2 + $0x108] sm:$0xff]   ;;  %v2985_v11 = vld [vmem:[%s3854_s2 + $0x140] sm:$0xff]  }
 0x112   :  { %2605 = vmatprep.subr.bf16.mxu0 %v2923_v13  ;;  %2627 = vmatprep.subr.bf16.mxu1 %v2925_v14  ;;  %v2984_v10 = vld [vmem:[%s3854_s2 + $0x188] sm:$0xff]   ;;  %v2986_v13 = vld [vmem:[%s3854_s2 + $0x100] sm:$0xff]  }
 0x113   :  { %1767 = vmatprep.mubr.bf16.mxu0 %v2952_v15  ;;  %1808 = vmatprep.mubr.bf16.mxu1 %v2957_v16  ;;  %v2991_v14 = vld [vmem:[%s3854_s2 + $0x180] sm:$0xff]   ;;  %v2992_v15 = vld [vmem:[%s3854_s2 + $0x278] sm:$0xff]  }
 0x114   :  { %v2997_v16 = vld [vmem:[%s3854_s2 + $0x2f8] sm:$0xff]  }
 0x115   :  { %2606 = vmatpush3.bf16.msra.mxu0 %v2924_v17  ;;  %2628 = vmatpush3.bf16.msra.mxu1 %v2926_v18  ;;  %v2988_v17 = vld [vmem:[%s3855_s0 + $0x10] ss:$48 sps:$4 sm:$0xff]   ;;  %v2993_v18 = vld [vmem:[%s3855_s0 + $0x18] ss:$48 sps:$4 sm:$0xff]  }
 0x116   :  { %2607 = vmatprep.subr.bf16.mxu0 %v2927_v19  ;;  %2629 = vmatprep.subr.bf16.mxu1 %v2929_v20  ;;  %v2996_v19 = vld [vmem:[%s3854_s2 + $0x238] sm:$0xff]  }
 0x117   :  { %v2998_v20 = vld [vmem:[%s3854_s2 + $0x2b8] sm:$0xff]  }
 0x119   :  { %2608 = vmatpush3.bf16.msra.mxu0 %v2928_v21  ;;  %2630 = vmatpush3.bf16.msra.mxu1 %v2930_v22  ;;  %v2999_v21 = vld [vmem:[%s3854_s2 + $0x270] sm:$0xff]  }
 0x11a   :  { %2609 = vmatprep.subr.bf16.mxu0 %v2931_v23  ;;  %2631 = vmatprep.subr.bf16.mxu1 %v2933_v24  ;;  %v3001_v22 = vld [vmem:[%s3854_s2 + $0x2f0] sm:$0xff]   ;;  %v3033_v24 = vld [vmem:[%s3855_s0 + $0x2c] ss:$48 sps:$4 sm:$0xff]  }
 0x11b   :  { %v3028_v23 = vld [vmem:[%s3855_s0 + $0x24] ss:$48 sps:$4 sm:$0xff]  }
 0x11d   :  { %2610 = vmatpush3.bf16.msra.mxu0 %v2932_v25  ;;  %2632 = vmatpush3.bf16.msra.mxu1 %v2934_v26  ;;  %v3000_v25 = vld [vmem:[%s3854_s2 + $0x230] sm:$0xff]  }
 0x11e   :  { %2611 = vmatprep.subr.bf16.mxu0 %v2935_v27  ;;  %2633 = vmatprep.subr.bf16.mxu1 %v2937_v28  ;;  %v3002_v26 = vld [vmem:[%s3854_s2 + $0x2b0] sm:$0xff]   ;;  %v3003_v27 = vld [vmem:[%s3854_s2 + $0x268] sm:$0xff]  }
 0x11f   :  { %v3005_v28 = vld [vmem:[%s3854_s2 + $0x2e8] sm:$0xff]  }
 0x121   :  { %2612 = vmatpush3.bf16.msra.mxu0 %v2936_v29  ;;  %2634 = vmatpush3.bf16.msra.mxu1 %v2938_v30  ;;  %v3004_v29 = vld [vmem:[%s3854_s2 + $0x228] sm:$0xff]  }
 0x122   :  { %2613 = vmatprep.subr.bf16.mxu0 %v2939_v31  ;;  %2635 = vmatprep.subr.bf16.mxu1 %v2941_v32  ;;  %v3006_v30 = vld [vmem:[%s3854_s2 + $0x2a8] sm:$0xff]   ;;  %v3007_v31 = vld [vmem:[%s3854_s2 + $0x260] sm:$0xff]  }
 0x123   :  { %v3009_v32 = vld [vmem:[%s3854_s2 + $0x2e0] sm:$0xff]  }
 0x125   :  { %2614 = vmatpush3.bf16.msra.mxu0 %v2940_v33  ;;  %2636 = vmatpush3.bf16.msra.mxu1 %v2942_v34  ;;  %v3008_v33 = vld [vmem:[%s3854_s2 + $0x220] sm:$0xff]  }
 0x126   :  { %2615 = vmatprep.subr.bf16.mxu0 %v2943_v35  ;;  %2637 = vmatprep.subr.bf16.mxu1 %v2945_v36  ;;  %v3010_v34 = vld [vmem:[%s3854_s2 + $0x2a0] sm:$0xff]   ;;  %v3011_v35 = vld [vmem:[%s3854_s2 + $0x258] sm:$0xff]  }
 0x127   :  { %v3013_v36 = vld [vmem:[%s3854_s2 + $0x2d8] sm:$0xff]  }
 0x129   :  { %2616 = vmatpush3.bf16.msra.mxu0 %v2944_v37  ;;  %2638 = vmatpush3.bf16.msra.mxu1 %v2946_v38  ;;  %v3012_v37 = vld [vmem:[%s3854_s2 + $0x218] sm:$0xff]  }
 0x12a   :  { %2617 = vmatprep.subr.bf16.mxu0 %v2947_v39  ;;  %2639 = vmatprep.subr.bf16.mxu1 %v2949_v40  ;;  %v3014_v38 = vld [vmem:[%s3854_s2 + $0x298] sm:$0xff]   ;;  %v3015_v39 = vld [vmem:[%s3854_s2 + $0x250] sm:$0xff]  }
 0x12b   :  { %v3017_v40 = vld [vmem:[%s3854_s2 + $0x2d0] sm:$0xff]  }
 0x12d   :  { %2618 = vmatpush3.bf16.msra.mxu0 %v2948_v41  ;;  %2640 = vmatpush3.bf16.msra.mxu1 %v2953_v42  ;;  %v3016_v41 = vld [vmem:[%s3854_s2 + $0x210] sm:$0xff]  }
 0x12e   :  { %2647 = vmatprep.subr.bf16.mxu0 %v2954_v43  ;;  %2669 = vmatprep.subr.bf16.mxu1 %v2959_v44  ;;  %v3018_v42 = vld [vmem:[%s3854_s2 + $0x290] sm:$0xff]   ;;  %v3019_v43 = vld [vmem:[%s3854_s2 + $0x248] sm:$0xff]  }
 0x12f   :  { %v3021_v44 = vld [vmem:[%s3854_s2 + $0x2c8] sm:$0xff]  }
 0x130   :  { %1768 = vmatmul.mubr.bf16.vlgmr.msra.gmra.mxu0 %v2950_v45  ;;  %1809 = vmatmul.mubr.bf16.vlgmr.msra.gmra.mxu1 %v2955_v46  ;;  %v3020_v45 = vld [vmem:[%s3854_s2 + $0x208] sm:$0xff]  }
 0x131   :  { %2648 = vmatpush3.bf16.msra.mxu0 %v2958_v47  ;;  %2670 = vmatpush3.bf16.msra.mxu1 %v2960_v48  ;;  %v3022_v46 = vld [vmem:[%s3854_s2 + $0x288] sm:$0xff]   ;;  %v3023_v47 = vld [vmem:[%s3854_s2 + $0x240] sm:$0xff]  }
 0x132   :  { %2649 = vmatprep.subr.bf16.mxu0 %v2961_v49  ;;  %2671 = vmatprep.subr.bf16.mxu1 %v2963_v50  ;;  %v3025_v48 = vld [vmem:[%s3854_s2 + $0x2c0] sm:$0xff]  }
 0x133   :  { %1849 = vmatprep.mubr.bf16.mxu0 %v2990_v51  ;;  %1890 = vmatprep.mubr.bf16.mxu1 %v2995_v52  ;;  %v3024_v49 = vld [vmem:[%s3854_s2 + $0x200] sm:$0xff]   ;;  %v3030_v51 = vld [vmem:[%s3856_s7 + $0x78] sm:$0xff]  }
 0x134   :  { %v3029_v50 = vld [vmem:[%s3854_s2 + $0x280] sm:$0xff]  }
 0x135   :  { %2650 = vmatpush3.bf16.msra.mxu0 %v2962_v53  ;;  %2672 = vmatpush3.bf16.msra.mxu1 %v2964_v54  ;;  %v3026_v52 = vld [vmem:[%s3855_s0 + $0x20] ss:$48 sps:$4 sm:$0xff]   ;;  %v3031_v53 = vld [vmem:[%s3855_s0 + $0x28] ss:$48 sps:$4 sm:$0xff]  }
 0x136   :  { %2651 = vmatprep.subr.bf16.mxu0 %v2965_v55  ;;  %2673 = vmatprep.subr.bf16.mxu1 %v2967_v56  ;;  %v3034_v54 = vld [vmem:[%s3856_s7 + $0x38] sm:$0xff]   ;;  %v3035_v55 = vld [vmem:[%s3856_s7 + $0x70] sm:$0xff]  }
 0x137   :  { %v3036_v56 = vld [vmem:[%s3856_s7 + $0x30] sm:$0xff]  }
 0x139   :  { %2652 = vmatpush3.bf16.msra.mxu0 %v2966_v57  ;;  %2674 = vmatpush3.bf16.msra.mxu1 %v2968_v58  ;;  %v3065_v57 = vld [vmem:[%s3852_s1 + $0x4] ss:$8 sps:$4 sm:$0xff]  }
 0x13a   :  { %2653 = vmatprep.subr.bf16.mxu0 %v2969_v59  ;;  %2675 = vmatprep.subr.bf16.mxu1 %v2971_v60  ;;  %v3037_v58 = vld [vmem:[%s3856_s7 + $0x68] sm:$0xff]   ;;  %v3039_v60 = vld [vmem:[%s3856_s7 + $0x60] sm:$0xff]  }
 0x13b   :  { %v3038_v59 = vld [vmem:[%s3856_s7 + $0x28] sm:$0xff]  }
 0x13d   :  { %2654 = vmatpush3.bf16.msra.mxu0 %v2970_v61  ;;  %2676 = vmatpush3.bf16.msra.mxu1 %v2972_v62  ;;  %v3040_v61 = vld [vmem:[%s3856_s7 + $0x20] sm:$0xff]   ;;  %v3041_v62 = vld [vmem:[%s3856_s7 + $0x58] sm:$0xff]  }
 0x13e   :  { %2655 = vmatprep.subr.bf16.mxu0 %v2973_v63  ;;  %2677 = vmatprep.subr.bf16.mxu1 %v2975_v0  ;;  %v3042_v63 = vld [vmem:[%s3856_s7 + $0x18] sm:$0xff]   ;;  %v3043_v0 = vld [vmem:[%s3856_s7 + $0x50] sm:$0xff]  }
 0x141   :  { %2656 = vmatpush3.bf16.msra.mxu0 %v2974_v1  ;;  %2678 = vmatpush3.bf16.msra.mxu1 %v2976_v2  ;;  %v3044_v1 = vld [vmem:[%s3856_s7 + $0x10] sm:$0xff]   ;;  %v3045_v2 = vld [vmem:[%s3856_s7 + $0x48] sm:$0xff]  }
 0x142   :  { %2657 = vmatprep.subr.bf16.mxu0 %v2977_v3  ;;  %2679 = vmatprep.subr.bf16.mxu1 %v2979_v4  ;;  %v3046_v3 = vld [vmem:[%s3856_s7 + $0x8] sm:$0xff]   ;;  %v3047_v4 = vld [vmem:[%s3856_s7 + $0x40] sm:$0xff]  }
 0x145   :  { %2658 = vmatpush3.bf16.msra.mxu0 %v2978_v5  ;;  %2680 = vmatpush3.bf16.msra.mxu1 %v2980_v6  ;;  %v3048_v5 = vld [vmem:[%s3856_s7] sm:$0xff]  }
 0x146   :  { %2659 = vmatprep.subr.bf16.mxu0 %v2981_v7  ;;  %2681 = vmatprep.subr.bf16.mxu1 %v2983_v8  ;;  %v3066_v6 = vld [vmem:[%s3852_s1] ss:$8 sps:$4 sm:$0xff]   ;;  %v3049_v7 = vld [vmem:[%s3858_s9 + $0x38] sm:$0xff]   ;;  %v3067_v8 = vmov 0.0  }
 0x149   :  { %2660 = vmatpush3.bf16.msra.mxu0 %v2982_v9  ;;  %2682 = vmatpush3.bf16.msra.mxu1 %v2984_v10  ;;  %v3050_v9 = vld [vmem:[%s3858_s9 + $0x30] sm:$0xff]   ;;  %v3051_v10 = vld [vmem:[%s3858_s9 + $0x28] sm:$0xff]  }
 0x14a   :  { %2661 = vmatprep.subr.bf16.mxu0 %v2985_v11  ;;  %2683 = vmatprep.subr.bf16.mxu1 %v2987_v12  ;;  %v3052_v11 = vld [vmem:[%s3858_s9 + $0x20] sm:$0xff]   ;;  %v3053_v12 = vld [vmem:[%s3858_s9 + $0x18] sm:$0xff]  }
 0x14d   :  { %2662 = vmatpush3.bf16.msra.mxu0 %v2986_v13  ;;  %2684 = vmatpush3.bf16.msra.mxu1 %v2991_v14  ;;  %v3054_v13 = vld [vmem:[%s3858_s9 + $0x10] sm:$0xff]   ;;  %v3055_v14 = vld [vmem:[%s3858_s9 + $0x8] sm:$0xff]  }
 0x14e   :  { %2691 = vmatprep.subr.bf16.mxu0 %v2992_v15  ;;  %2713 = vmatprep.subr.bf16.mxu1 %v2997_v16  ;;  %v3056_v15 = vld [vmem:[%s3858_s9] sm:$0xff]  }
 0x150   :  { %1850 = vmatmul.mubr.bf16.vlgmr.msra.gmra.mxu0 %v2988_v17  ;;  %1891 = vmatmul.mubr.bf16.vlgmr.msra.gmra.mxu1 %v2993_v18 }
 0x151   :  { %2692 = vmatpush3.bf16.msra.mxu0 %v2996_v19  ;;  %2714 = vmatpush3.bf16.msra.mxu1 %v2998_v20 }
 0x152   :  { %2693 = vmatprep.subr.bf16.mxu0 %v2999_v21  ;;  %2715 = vmatprep.subr.bf16.mxu1 %v3001_v22 }
 0x153   :  { %1931 = vmatprep.mubr.bf16.mxu0 %v3028_v23  ;;  %1972 = vmatprep.mubr.bf16.mxu1 %v3033_v24 }
 0x155   :  { %2694 = vmatpush3.bf16.msra.mxu0 %v3000_v25  ;;  %2716 = vmatpush3.bf16.msra.mxu1 %v3002_v26 }
 0x156   :  { %2695 = vmatprep.subr.bf16.mxu0 %v3003_v27  ;;  %2717 = vmatprep.subr.bf16.mxu1 %v3005_v28 }
 0x159   :  { %2696 = vmatpush3.bf16.msra.mxu0 %v3004_v29  ;;  %2718 = vmatpush3.bf16.msra.mxu1 %v3006_v30 }
 0x15a   :  { %2697 = vmatprep.subr.bf16.mxu0 %v3007_v31  ;;  %2719 = vmatprep.subr.bf16.mxu1 %v3009_v32 }
 0x15d   :  { %2698 = vmatpush3.bf16.msra.mxu0 %v3008_v33  ;;  %2720 = vmatpush3.bf16.msra.mxu1 %v3010_v34 }
 0x15e   :  { %2699 = vmatprep.subr.bf16.mxu0 %v3011_v35  ;;  %2721 = vmatprep.subr.bf16.mxu1 %v3013_v36 }
 0x161   :  { %2700 = vmatpush3.bf16.msra.mxu0 %v3012_v37  ;;  %2722 = vmatpush3.bf16.msra.mxu1 %v3014_v38 }
 0x162   :  { %2701 = vmatprep.subr.bf16.mxu0 %v3015_v39  ;;  %2723 = vmatprep.subr.bf16.mxu1 %v3017_v40 }
 0x165   :  { %2702 = vmatpush3.bf16.msra.mxu0 %v3016_v41  ;;  %2724 = vmatpush3.bf16.msra.mxu1 %v3018_v42 }
 0x166   :  { %2703 = vmatprep.subr.bf16.mxu0 %v3019_v43  ;;  %2725 = vmatprep.subr.bf16.mxu1 %v3021_v44 }
 0x169   :  { %2704 = vmatpush3.bf16.msra.mxu0 %v3020_v45  ;;  %2726 = vmatpush3.bf16.msra.mxu1 %v3022_v46 }
 0x16a   :  { %2705 = vmatprep.subr.bf16.mxu0 %v3023_v47  ;;  %2727 = vmatprep.subr.bf16.mxu1 %v3025_v48 }
 0x16d   :  { %2706 = vmatpush3.bf16.msra.mxu0 %v3024_v49  ;;  %2728 = vmatpush3.bf16.msra.mxu1 %v3029_v50 }
 0x16e   :  { %2735 = vmatprep.subr.bf16.mxu0 %v3030_v51  ;;  %2766 = vmatprep.subr.bf16.mxu1 %v3067_v8 }
 0x170   :  { %1932 = vmatmul.mubr.bf16.vlgmr.msra.gmra.mxu0 %v3026_v52  ;;  %1973 = vmatmul.mubr.bf16.vlgmr.msra.gmra.mxu1 %v3031_v53 }
 0x171   :  { %2736 = vmatpush3.bf16.msra.mxu0 %v3034_v54  ;;  %2169 = vmatprep.mubr.bf16.mxu0 %v3065_v57 }
 0x172   :  { %2737 = vmatprep.subr.bf16.mxu0 %v3035_v55  ;;  %2767 = vmatpush3.bf16.msra.mxu1 %v3049_v7 }
 0x173   :  { %2768 = vmatprep.subr.bf16.mxu1 %v3067_v8  ;;  %2782 = vmatprep.mubr.msk.bf16.mxu1 %vm3068_vm0, %v3067_v8 }
 0x175   :  { %2738 = vmatpush3.bf16.msra.mxu0 %v3036_v56 }
 0x176   :  { %2739 = vmatprep.subr.bf16.mxu0 %v3037_v58  ;;  %2769 = vmatpush3.bf16.msra.mxu1 %v3050_v9 }
 0x177   :  { %2770 = vmatprep.subr.bf16.mxu1 %v3067_v8 }
 0x179   :  { %2740 = vmatpush3.bf16.msra.mxu0 %v3038_v59 }
 0x17a   :  { %2741 = vmatprep.subr.bf16.mxu0 %v3039_v60  ;;  %2771 = vmatpush3.bf16.msra.mxu1 %v3051_v10 }
 0x17b   :  { %2772 = vmatprep.subr.bf16.mxu1 %v3067_v8 }
 0x17d   :  { %2742 = vmatpush3.bf16.msra.mxu0 %v3040_v61 }
 0x17e   :  { %2743 = vmatprep.subr.bf16.mxu0 %v3041_v62  ;;  %2773 = vmatpush3.bf16.msra.mxu1 %v3052_v11 }
 0x17f   :  { %2774 = vmatprep.subr.bf16.mxu1 %v3067_v8 }
 0x181   :  { %2744 = vmatpush3.bf16.msra.mxu0 %v3042_v63 }
 0x182   :  { %2745 = vmatprep.subr.bf16.mxu0 %v3043_v0  ;;  %2775 = vmatpush3.bf16.msra.mxu1 %v3053_v12  ;;  %v2521_v12 = vld [vmem:[%s3859_s6] ss:$0 sm:$0xff] }
 0x183   :  { %2776 = vmatprep.subr.bf16.mxu1 %v3067_v8 }
 0x185   :  { %2746 = vmatpush3.bf16.msra.mxu0 %v3044_v1 }
 0x186   :  { %2747 = vmatprep.subr.bf16.mxu0 %v3045_v2  ;;  %2777 = vmatpush3.bf16.msra.mxu1 %v3054_v13 }
 0x187   :  { %2778 = vmatprep.subr.bf16.mxu1 %v3067_v8 }
 0x189   :  { %2748 = vmatpush3.bf16.msra.mxu0 %v3046_v3 }
 0x18a   :  { %2749 = vmatprep.subr.bf16.mxu0 %v3047_v4  ;;  %2779 = vmatpush3.bf16.msra.mxu1 %v3055_v14 }
 0x18b   :  { %2780 = vmatprep.subr.bf16.mxu1 %v3067_v8 }
 0x18d   :  { %2750 = vmatpush3.bf16.msra.mxu0 %v3048_v5 }
 0x18e   :  { %2781 = vmatpush3.bf16.msra.mxu1 %v3056_v15 }
 0x190   :  { %2170 = vmatmul.mubr.bf16.vlgmr.msra.gmra.mxu0 %v3066_v6 }
 0x1d0   :  { %v2575_v16 = vpop.f32.mrf.mxu0  ;;  %v2597_v17 = vpop.f32.mrf.mxu1 }
 0x1d2   :  { %v2576_v18 = vpop.f32.mrf.mxu0  ;;  %v2598_v19 = vpop.f32.mrf.mxu1 }
 0x1d3   :  { %v2577_v33 = vadd.f32 %v2576_v18, %v2575_v16  ;;  %v2599_v34 = vadd.f32 %v2598_v19, %v2597_v17 }
 0x1d4   :  { %v2578_v20 = vpop.f32.mrf.mxu0  ;;  %v2600_v21 = vpop.f32.mrf.mxu1 }
 0x1d5   :  { %v1093_v38 = vadd.f32 %v2599_v34, %v2577_v33 }
 0x1d6   :  { %v2579_v22 = vpop.f32.mrf.mxu0  ;;  %v2601_v23 = vpop.f32.mrf.mxu1 }
 0x1d7   :  { %v2580_v40 = vadd.f32 %v2579_v22, %v2578_v20  ;;  %v2602_v41 = vadd.f32 %v2601_v23, %v2600_v21  ;;  %v2524_v23 = vld [vmem:[%s3861_s8] ss:$0 sm:$0xff] }
 0x1d9   :  { %v1096_v48 = vadd.f32 %v2602_v41, %v2580_v40 }
 0x1f0   :  { %v2619_v24 = vpop.f32.mrf.mxu0  ;;  %v2641_v25 = vpop.f32.mrf.mxu1 }
 0x1f2   :  { %v2620_v26 = vpop.f32.mrf.mxu0  ;;  %v2642_v27 = vpop.f32.mrf.mxu1 }
 0x1f3   :  { %v2621_v36 = vadd.f32 %v2620_v26, %v2619_v24  ;;  %v2643_v43 = vadd.f32 %v2642_v27, %v2641_v25 }
 0x1f4   :  { %v2622_v28 = vpop.f32.mrf.mxu0  ;;  %v2644_v29 = vpop.f32.mrf.mxu1 }
 0x1f5   :  { %v1770_v42 = vadd.f32 %v2621_v36, %v1093_v38 }
 0x1f6   :  { %v2623_v30 = vpop.f32.mrf.mxu0  ;;  %v2645_v31 = vpop.f32.mrf.mxu1 }
 0x1f7   :  { %v2624_v45 = vadd.f32 %v2623_v30, %v2622_v28  ;;  %v1811_v49 = vadd.f32 %v2643_v43, %v1770_v42  ;;  %v2646_v52 = vadd.f32 %v2645_v31, %v2644_v29 }
 0x1f9   :  { %v1773_v51 = vadd.f32 %v2624_v45, %v1096_v48 }
 0x1fb   :  { %v1814_v59 = vadd.f32 %v2646_v52, %v1773_v51 }
 0x210   :  { %v2663_v32 = vpop.f32.mrf.mxu0  ;;  %v2685_v35 = vpop.f32.mrf.mxu1 }
 0x212   :  { %v2664_v37 = vpop.f32.mrf.mxu0  ;;  %v2686_v39 = vpop.f32.mrf.mxu1 }
 0x213   :  { %v2665_v46 = vadd.f32 %v2664_v37, %v2663_v32  ;;  %v2687_v54 = vadd.f32 %v2686_v39, %v2685_v35  ;;  %v2541_v32 = vld [vmem:[%s3862_s10] ss:$0 sm:$0xff] }
 0x214   :  { %v2666_v44 = vpop.f32.mrf.mxu0  ;;  %v2688_v47 = vpop.f32.mrf.mxu1 }
 0x215   :  { %v1852_v53 = vadd.f32 %v2665_v46, %v1811_v49 }
 0x216   :  { %v2667_v50 = vpop.f32.mrf.mxu0  ;;  %v2689_v55 = vpop.f32.mrf.mxu1 }
 0x217   :  { %v2668_v56 = vadd.f32 %v2667_v50, %v2666_v44  ;;  %v1893_v60 = vadd.f32 %v2687_v54, %v1852_v53  ;;  %v2690_v0 = vadd.f32 %v2689_v55, %v2688_v47 }
 0x219   :  { %v1855_v63 = vadd.f32 %v2668_v56, %v1814_v59 }
 0x21b   :  { %v1896_v8 = vadd.f32 %v2690_v0, %v1855_v63 }
 0x230   :  { %v2707_v57 = vpop.f32.mrf.mxu0  ;;  %v2729_v58 = vpop.f32.mrf.mxu1 }
 0x232   :  { %v2708_v61 = vpop.f32.mrf.mxu0  ;;  %v2730_v62 = vpop.f32.mrf.mxu1 }
 0x233   :  { %v2709_v1 = vadd.f32 %v2708_v61, %v2707_v57  ;;  %v2731_v2 = vadd.f32 %v2730_v62, %v2729_v58 }
 0x234   :  { %v2710_v3 = vpop.f32.mrf.mxu0  ;;  %v2732_v4 = vpop.f32.mrf.mxu1 }
 0x235   :  { %v1934_v5 = vadd.f32 %v2709_v1, %v1893_v60 }
 0x236   :  { %v2711_v6 = vpop.f32.mrf.mxu0  ;;  %v2733_v7 = vpop.f32.mrf.mxu1 }
 0x237   :  { %v1975_v9 = vadd.f32 %v2731_v2, %v1934_v5  ;;  %v2712_v10 = vadd.f32 %v2711_v6, %v2710_v3  ;;  %v2734_v11 = vadd.f32 %v2733_v7, %v2732_v4 }
 0x239   :  { %v1937_v13 = vadd.f32 %v2712_v10, %v1896_v8  ;;  %v1988_v14 = vadd.f32 %v2521_v12, %v1975_v9 }
 0x23b   :  { %v1978_v15 = vadd.f32 %v2734_v11, %v1937_v13  ;;  %v1990_v17 = vmax.f32 %v1988_v14, 0.0 }
 0x23d   :  { %v1989_v16 = vadd.f32 %v2521_v12, %v1978_v15 }
 0x23f   :  { %v1991_v18 = vmax.f32 %v1989_v16, 0.0 }
 0x241   :  { %v2557_v19 = vpack.c.bf16 %v1991_v18, %v1990_v17 }
 0x243   :  { %2558 = vst [vmem:[%s3860_s11] sm:$0xff] %v2557_v19  }
 0x250   :  { %v2751_v20 = vpop.f32.mrf.mxu0 }
 0x252   :  { %v2752_v21 = vpop.f32.mrf.mxu0 }
 0x253   :  { %v2753_v22 = vadd.f32 %v2752_v21, %v2751_v20 }
 0x254   :  { %v2754_v24 = vpop.f32.mrf.mxu0 }
 0x255   :  { %v2172_v26 = vadd.f32 %v2753_v22, %v2524_v23 }
 0x256   :  { %v2755_v25 = vpop.f32.mrf.mxu0 }
 0x257   :  { %v2756_v27 = vadd.f32 %v2755_v25, %v2754_v24  ;;  %v2178_v29 = vmax.f32 %v2172_v26, 0.0 }
 0x259   :  { %v2175_v28 = vadd.f32 %v2756_v27, %v2524_v23 }
 0x25b   :  { %v2179_v30 = vmax.f32 %v2175_v28, 0.0 }
 0x25d   :  { %v2180_v31 = vpack.c.bf16 %v2179_v30, %v2178_v29 }
 0x25f   :  { %2783 = vmatmul.mubr.bf16.vlgmr.msra.gmra.mxu1 %v2180_v31 }
 0x31f   :  { %v2286_v33 = vpop.f32.mrf.mxu1 }
 0x320   :  { %v2287_v34 = vadd.f32 %v2541_v32, %v2286_v33 }
 0x321   :  { %v2784_v35 = vpop.f32.mrf.mxu1 }
 0x322   :  { %v2550_v36 = vmul.f32 -1.442695, %v2287_v34 }
 0x323   :  { %v2289_v37 = vpop.f32.mrf.mxu1 }
 0x324   :  { %3057 = vpow2.f32 %v2550_v36  ;;  %v2290_v38 = vadd.f32 %v2541_v32, %v2289_v37 }
 0x325   :  { %v2785_v39 = vpop.f32.mrf.mxu1 }
 0x326   :  { %v2551_v40 = vmul.f32 -1.442695, %v2290_v38 }
 0x328   :  { %3059 = vpow2.f32 %v2551_v40 }
 0x331   :  { %v3058_v41 = vpop.eup %3057 }
 0x332   :  { %v2299_v42 = vadd.f32 1.0, %v3058_v41 }
 0x334   :  { %3061 = vrcp.f32 %v2299_v42 }
 0x335   :  { %v3060_v43 = vpop.eup %3059 }
 0x336   :  { %v2300_v44 = vadd.f32 1.0, %v3060_v43 }
 0x338   :  { %3063 = vrcp.f32 %v2300_v44 }
 0x341   :  { %v3062_v45 = vpop.eup %3061 }
 0x342   :  { %2305 = vst [vmem:[%s3863_s12] sm:$0xff] %v3062_v45 }
 0x345   :  { %v3064_v46 = vpop.eup %3063 }
 0x346   :  { %2306 = vst [vmem:[%s3863_s12 + $0x8] sm:$0xff] %v3064_v46 }

// kernel: pmfnet_forward.5
= control target key start
LH: loop header
LB: loop body
LE: loop exit
PB: predicated region body
PF: predicated region fallthrough
CT: control target
= control target key end

     0   :  { %vm1400_vm0 = vmmov 0   ;;  %s1761_s2 = inlined_call_operand.vmem [shape: bf16[1024,128], index: 2, kind: input, shape index: {}]   ;;  %s1762_s0 = inlined_call_operand.vmem [shape: bf16[16,1024], index: 0, kind: input, shape index: {}]   ;;  %s1763_s4 = inlined_call_operand.vmem [shape: bf16[256,128], index: 4, kind: input, shape index: {}]   ;;  %s1764_s1 = inlined_call_operand.vmem [shape: bf16[16,128], index: 1, kind: input, shape index: {}]   ;;  %s1765_s6 = inlined_call_operand.vmem [shape: bf16[128,128], index: 6, kind: input, shape index: {}]   ;;  %s1766_s3 = inlined_call_operand.vmem [shape: f32[1,128], index: 3, kind: input, shape index: {}]   ;;  %s1767_s5 = inlined_call_operand.vmem [shape: f32[1,128], index: 5, kind: input, shape index: {}]   ;;  %s1768_s7 = inlined_call_operand.vmem [shape: f32[1,128], index: 7, kind: input, shape index: {}]   ;;  %s1769_s8 = inlined_call_operand.vmem [shape: f32[16,128], index: 8, kind: output, shape index: {}]  }
   0x1   :  { %v1310_v0 = vld [vmem:[%s1761_s2 + $0x78] sm:$0xff]   ;;  %v1314_v4 = vld [vmem:[%s1761_s2 + $0x70] sm:$0xff]   ;;  %v1318_v8 = vld [vmem:[%s1761_s2 + $0x68] sm:$0xff]  }
   0x2   :  { %v1311_v1 = vld [vmem:[%s1761_s2 + $0xf8] sm:$0xff]   ;;  %1169 = vmatprep.subr.bf16.mxu0 %v1310_v0  ;;  %v1315_v5 = vld [vmem:[%s1761_s2 + $0xf0] sm:$0xff]   ;;  %v1319_v9 = vld [vmem:[%s1761_s2 + $0xe8] sm:$0xff]  }
   0x3   :  { %v1312_v2 = vld [vmem:[%s1761_s2 + $0x38] sm:$0xff]   ;;  %1191 = vmatprep.subr.bf16.mxu1 %v1311_v1  ;;  %v1316_v6 = vld [vmem:[%s1761_s2 + $0x30] sm:$0xff]   ;;  %v1320_v10 = vld [vmem:[%s1761_s2 + $0x28] sm:$0xff]  }
   0x4   :  { %v1313_v3 = vld [vmem:[%s1761_s2 + $0xb8] sm:$0xff]   ;;  %1170 = vmatpush3.bf16.msra.mxu0 %v1312_v2  ;;  %v1317_v7 = vld [vmem:[%s1761_s2 + $0xb0] sm:$0xff]   ;;  %v1321_v11 = vld [vmem:[%s1761_s2 + $0xa8] sm:$0xff]  }
   0x5   :  { %1192 = vmatpush3.bf16.msra.mxu1 %v1313_v3  ;;  %1171 = vmatprep.subr.bf16.mxu0 %v1314_v4  ;;  %v1322_v12 = vld [vmem:[%s1761_s2 + $0x60] sm:$0xff]   ;;  %v1326_v16 = vld [vmem:[%s1761_s2 + $0x58] sm:$0xff]   ;;  %v1330_v20 = vld [vmem:[%s1761_s2 + $0x50] sm:$0xff]  }
   0x6   :  { %1193 = vmatprep.subr.bf16.mxu1 %v1315_v5  ;;  %v1323_v13 = vld [vmem:[%s1761_s2 + $0xe0] sm:$0xff]   ;;  %v1327_v17 = vld [vmem:[%s1761_s2 + $0xd8] sm:$0xff]   ;;  %v1331_v21 = vld [vmem:[%s1761_s2 + $0xd0] sm:$0xff]  }
   0x7   :  { %v1324_v14 = vld [vmem:[%s1761_s2 + $0x20] sm:$0xff]   ;;  %v1328_v18 = vld [vmem:[%s1761_s2 + $0x18] sm:$0xff]   ;;  %v1332_v22 = vld [vmem:[%s1761_s2 + $0x10] sm:$0xff]  }
   0x8   :  { %1172 = vmatpush3.bf16.msra.mxu0 %v1316_v6  ;;  %v1325_v15 = vld [vmem:[%s1761_s2 + $0xa0] sm:$0xff]   ;;  %v1329_v19 = vld [vmem:[%s1761_s2 + $0x98] sm:$0xff]   ;;  %v1333_v23 = vld [vmem:[%s1761_s2 + $0x90] sm:$0xff]  }
   0x9   :  { %1194 = vmatpush3.bf16.msra.mxu1 %v1317_v7  ;;  %1173 = vmatprep.subr.bf16.mxu0 %v1318_v8  ;;  %v1334_v24 = vld [vmem:[%s1761_s2 + $0x48] sm:$0xff]   ;;  %v1338_v28 = vld [vmem:[%s1761_s2 + $0x40] sm:$0xff]   ;;  %v1342_v40 = vld [vmem:[%s1761_s2 + $0x178] sm:$0xff]  }
   0xa   :  { %1195 = vmatprep.subr.bf16.mxu1 %v1319_v9  ;;  %v1335_v25 = vld [vmem:[%s1761_s2 + $0xc8] sm:$0xff]   ;;  %v1339_v29 = vld [vmem:[%s1761_s2 + $0xc0] sm:$0xff]   ;;  %v1343_v41 = vld [vmem:[%s1761_s2 + $0x1f8] sm:$0xff]  }
   0xb   :  { %v1336_v26 = vld [vmem:[%s1761_s2 + $0x8] sm:$0xff]   ;;  %v1340_v30 = vld [vmem:[%s1761_s2] sm:$0xff]   ;;  %v1344_v42 = vld [vmem:[%s1761_s2 + $0x138] sm:$0xff]  }
   0xc   :  { %1174 = vmatpush3.bf16.msra.mxu0 %v1320_v10  ;;  %v1337_v27 = vld [vmem:[%s1761_s2 + $0x88] sm:$0xff]   ;;  %v1341_v31 = vld [vmem:[%s1761_s2 + $0x80] sm:$0xff]   ;;  %v1345_v43 = vld [vmem:[%s1761_s2 + $0x1b8] sm:$0xff]  }
   0xd   :  { %1196 = vmatpush3.bf16.msra.mxu1 %v1321_v11  ;;  %1175 = vmatprep.subr.bf16.mxu0 %v1322_v12  ;;  %v30_v32 = vld [vmem:[%s1762_s0] sm:$0xff]  ;;  %v31_v34 = vld [vmem:[%s1762_s0 + $0x8] sm:$0xff]  ;;  %v1346_v44 = vld [vmem:[%s1761_s2 + $0x170] sm:$0xff]  }
   0xe   :  { %1197 = vmatprep.subr.bf16.mxu1 %v1323_v13  ;;  %v34_v33 = vld [vmem:[%s1762_s0 + $0x20] sm:$0xff]  ;;  %v35_v37 = vld [vmem:[%s1762_s0 + $0x28] sm:$0xff]  ;;  %v1347_v45 = vld [vmem:[%s1761_s2 + $0x1f0] sm:$0xff]  }
   0xf   :  { %v1070_v35 = vcombine.low %v30_v32, %v34_v33  ;;  %v1071_v36 = vcombine.high %v30_v32, %v34_v33  ;;  %v1072_v38 = vcombine.low %v31_v34, %v35_v37  ;;  %v1073_v39 = vcombine.high %v31_v34, %v35_v37  ;;  %v1348_v46 = vld [vmem:[%s1761_s2 + $0x130] sm:$0xff]   ;;  %v1350_v48 = vld [vmem:[%s1761_s2 + $0x168] sm:$0xff]   ;;  %v1354_v52 = vld [vmem:[%s1761_s2 + $0x160] sm:$0xff]  }
  0x10   :  { %1176 = vmatpush3.bf16.msra.mxu0 %v1324_v14  ;;  %v1349_v47 = vld [vmem:[%s1761_s2 + $0x1b0] sm:$0xff]   ;;  %v1351_v49 = vld [vmem:[%s1761_s2 + $0x1e8] sm:$0xff]   ;;  %v1355_v53 = vld [vmem:[%s1761_s2 + $0x1e0] sm:$0xff]   ;;  %v1399_v32 = vmov 0.0  }
  0x11   :  { %1198 = vmatpush3.bf16.msra.mxu1 %v1325_v15  ;;  %1177 = vmatprep.subr.bf16.mxu0 %v1326_v16  ;;  %v1352_v50 = vld [vmem:[%s1761_s2 + $0x128] sm:$0xff]   ;;  %v1356_v54 = vld [vmem:[%s1761_s2 + $0x120] sm:$0xff]   ;;  %v1358_v56 = vld [vmem:[%s1761_s2 + $0x158] sm:$0xff]  }
  0x12   :  { %1199 = vmatprep.subr.bf16.mxu1 %v1327_v17  ;;  %629 = vmatprep.mubr.bf16.mxu0 %v1071_v36  ;;  %v1353_v51 = vld [vmem:[%s1761_s2 + $0x1a8] sm:$0xff]   ;;  %v1357_v55 = vld [vmem:[%s1761_s2 + $0x1a0] sm:$0xff]   ;;  %v1359_v57 = vld [vmem:[%s1761_s2 + $0x1d8] sm:$0xff]  }
  0x13   :  { %670 = vmatprep.mubr.bf16.mxu1 %v1073_v39  ;;  %v1360_v58 = vld [vmem:[%s1761_s2 + $0x118] sm:$0xff]   ;;  %v1362_v60 = vld [vmem:[%s1761_s2 + $0x150] sm:$0xff]   ;;  %v1366_v0 = vld [vmem:[%s1761_s2 + $0x148] sm:$0xff]  }
  0x14   :  { %1178 = vmatpush3.bf16.msra.mxu0 %v1328_v18  ;;  %v1361_v59 = vld [vmem:[%s1761_s2 + $0x198] sm:$0xff]   ;;  %v1363_v61 = vld [vmem:[%s1761_s2 + $0x1d0] sm:$0xff]   ;;  %v1367_v1 = vld [vmem:[%s1761_s2 + $0x1c8] sm:$0xff]  }
  0x15   :  { %1200 = vmatpush3.bf16.msra.mxu1 %v1329_v19  ;;  %1179 = vmatprep.subr.bf16.mxu0 %v1330_v20  ;;  %v1364_v62 = vld [vmem:[%s1761_s2 + $0x110] sm:$0xff]   ;;  %v1368_v2 = vld [vmem:[%s1761_s2 + $0x108] sm:$0xff]   ;;  %v1370_v4 = vld [vmem:[%s1761_s2 + $0x140] sm:$0xff]  }
  0x16   :  { %1201 = vmatprep.subr.bf16.mxu1 %v1331_v21  ;;  %v1365_v63 = vld [vmem:[%s1761_s2 + $0x190] sm:$0xff]   ;;  %v1369_v3 = vld [vmem:[%s1761_s2 + $0x188] sm:$0xff]   ;;  %v1371_v5 = vld [vmem:[%s1761_s2 + $0x1c0] sm:$0xff]  }
  0x17   :  { %v1372_v6 = vld [vmem:[%s1761_s2 + $0x100] sm:$0xff]   ;;  %v32_v8 = vld [vmem:[%s1762_s0 + $0x10] sm:$0xff]  ;;  %v33_v12 = vld [vmem:[%s1762_s0 + $0x18] sm:$0xff] }
  0x18   :  { %1180 = vmatpush3.bf16.msra.mxu0 %v1332_v22  ;;  %v1373_v7 = vld [vmem:[%s1761_s2 + $0x180] sm:$0xff]   ;;  %v36_v9 = vld [vmem:[%s1762_s0 + $0x30] sm:$0xff]  ;;  %v37_v13 = vld [vmem:[%s1762_s0 + $0x38] sm:$0xff] }
  0x19   :  { %1202 = vmatpush3.bf16.msra.mxu1 %v1333_v23  ;;  %1181 = vmatprep.subr.bf16.mxu0 %v1334_v24  ;;  %v1074_v10 = vcombine.low %v32_v8, %v36_v9  ;;  %v1075_v11 = vcombine.high %v32_v8, %v36_v9  ;;  %v1076_v14 = vcombine.low %v33_v12, %v37_v13  ;;  %v1374_v16 = vld [vmem:[%s1763_s4 + $0x78] sm:$0xff]   ;;  %v1376_v18 = vld [vmem:[%s1763_s4 + $0x70] sm:$0xff]   ;;  %v1378_v20 = vld [vmem:[%s1763_s4 + $0x68] sm:$0xff]  }
  0x1a   :  { %1203 = vmatprep.subr.bf16.mxu1 %v1335_v25  ;;  %v1077_v15 = vcombine.high %v33_v12, %v37_v13  ;;  %v1375_v17 = vld [vmem:[%s1763_s4 + $0x38] sm:$0xff]   ;;  %v1377_v19 = vld [vmem:[%s1763_s4 + $0x30] sm:$0xff]   ;;  %v1379_v21 = vld [vmem:[%s1763_s4 + $0x28] sm:$0xff]  }
  0x1b   :  { %v1380_v22 = vld [vmem:[%s1763_s4 + $0x60] sm:$0xff]   ;;  %v1382_v24 = vld [vmem:[%s1763_s4 + $0x58] sm:$0xff]   ;;  %v1392_v34 = vld [vmem:[%s1765_s6 + $0x30] sm:$0xff]  }
  0x1c   :  { %1182 = vmatpush3.bf16.msra.mxu0 %v1336_v26  ;;  %v1381_v23 = vld [vmem:[%s1763_s4 + $0x20] sm:$0xff]   ;;  %v1383_v25 = vld [vmem:[%s1763_s4 + $0x18] sm:$0xff]   ;;  %v1384_v26 = vld [vmem:[%s1763_s4 + $0x50] sm:$0xff]  }
  0x1d   :  { %1204 = vmatpush3.bf16.msra.mxu1 %v1337_v27  ;;  %1183 = vmatprep.subr.bf16.mxu0 %v1338_v28  ;;  %v1385_v27 = vld [vmem:[%s1763_s4 + $0x10] sm:$0xff]   ;;  %v1386_v28 = vld [vmem:[%s1763_s4 + $0x48] sm:$0xff]   ;;  %v1391_v33 = vld [vmem:[%s1765_s6 + $0x38] sm:$0xff]  }
  0x1e   :  { %1205 = vmatprep.subr.bf16.mxu1 %v1339_v29  ;;  %v1387_v29 = vld [vmem:[%s1763_s4 + $0x8] sm:$0xff]   ;;  %v1394_v36 = vld [vmem:[%s1765_s6 + $0x20] sm:$0xff]  }
  0x1f   :  { %v1390_v8 = vld [vmem:[%s1764_s1] sm:$0xff]   ;;  %v1397_v12 = vld [vmem:[%s1765_s6 + $0x8] sm:$0xff]  }
  0x20   :  { %1184 = vmatpush3.bf16.msra.mxu0 %v1340_v30  ;;  %v1388_v30 = vld [vmem:[%s1763_s4 + $0x40] sm:$0xff]  }
  0x21   :  { %1206 = vmatpush3.bf16.msra.mxu1 %v1341_v31  ;;  %1213 = vmatprep.subr.bf16.mxu0 %v1342_v40  ;;  %v1389_v31 = vld [vmem:[%s1763_s4] sm:$0xff]  }
  0x22   :  { %1235 = vmatprep.subr.bf16.mxu1 %v1343_v41  ;;  %v1398_v13 = vld [vmem:[%s1765_s6] sm:$0xff]  }
  0x23   :  { %630 = vmatmul.mubr.bf16.vlgmr.msra.gmra.mxu0 %v1070_v35  ;;  %v1393_v35 = vld [vmem:[%s1765_s6 + $0x28] sm:$0xff]  }
  0x24   :  { %671 = vmatmul.mubr.bf16.vlgmr.msra.gmra.mxu1 %v1072_v38  ;;  %1214 = vmatpush3.bf16.msra.mxu0 %v1344_v42 }
  0x25   :  { %1236 = vmatpush3.bf16.msra.mxu1 %v1345_v43  ;;  %1215 = vmatprep.subr.bf16.mxu0 %v1346_v44  ;;  %v1069_v44 = vld [vmem:[%s1766_s3] ss:$0 sm:$0xff] }
  0x26   :  { %1237 = vmatprep.subr.bf16.mxu1 %v1347_v45  ;;  %711 = vmatprep.mubr.bf16.mxu0 %v1075_v11  ;;  %v1396_v11 = vld [vmem:[%s1765_s6 + $0x10] sm:$0xff]  }
  0x27   :  { %752 = vmatprep.mubr.bf16.mxu1 %v1077_v15 }
  0x28   :  { %1216 = vmatpush3.bf16.msra.mxu0 %v1348_v46 }
  0x29   :  { %1238 = vmatpush3.bf16.msra.mxu1 %v1349_v47  ;;  %1217 = vmatprep.subr.bf16.mxu0 %v1350_v48 }
  0x2a   :  { %1239 = vmatprep.subr.bf16.mxu1 %v1351_v49 }
  0x2c   :  { %1218 = vmatpush3.bf16.msra.mxu0 %v1352_v50 }
  0x2d   :  { %1240 = vmatpush3.bf16.msra.mxu1 %v1353_v51  ;;  %1219 = vmatprep.subr.bf16.mxu0 %v1354_v52 }
  0x2e   :  { %1241 = vmatprep.subr.bf16.mxu1 %v1355_v53 }
  0x30   :  { %1220 = vmatpush3.bf16.msra.mxu0 %v1356_v54 }
  0x31   :  { %1242 = vmatpush3.bf16.msra.mxu1 %v1357_v55  ;;  %1221 = vmatprep.subr.bf16.mxu0 %v1358_v56 }
  0x32   :  { %1243 = vmatprep.subr.bf16.mxu1 %v1359_v57 }
  0x34   :  { %1222 = vmatpush3.bf16.msra.mxu0 %v1360_v58 }
  0x35   :  { %1244 = vmatpush3.bf16.msra.mxu1 %v1361_v59  ;;  %1223 = vmatprep.subr.bf16.mxu0 %v1362_v60 }
  0x36   :  { %1245 = vmatprep.subr.bf16.mxu1 %v1363_v61 }
  0x38   :  { %1224 = vmatpush3.bf16.msra.mxu0 %v1364_v62 }
  0x39   :  { %1246 = vmatpush3.bf16.msra.mxu1 %v1365_v63  ;;  %1225 = vmatprep.subr.bf16.mxu0 %v1366_v0 }
  0x3a   :  { %1247 = vmatprep.subr.bf16.mxu1 %v1367_v1 }
  0x3c   :  { %1226 = vmatpush3.bf16.msra.mxu0 %v1368_v2 }
  0x3d   :  { %1248 = vmatpush3.bf16.msra.mxu1 %v1369_v3  ;;  %1227 = vmatprep.subr.bf16.mxu0 %v1370_v4 }
  0x3e   :  { %1249 = vmatprep.subr.bf16.mxu1 %v1371_v5 }
  0x40   :  { %1228 = vmatpush3.bf16.msra.mxu0 %v1372_v6 }
  0x41   :  { %1250 = vmatpush3.bf16.msra.mxu1 %v1373_v7  ;;  %1257 = vmatprep.subr.bf16.mxu0 %v1374_v16 }
  0x42   :  { %1288 = vmatprep.subr.bf16.mxu1 %v1399_v32 }
  0x43   :  { %712 = vmatmul.mubr.bf16.vlgmr.msra.gmra.mxu0 %v1074_v10  ;;  %v1395_v10 = vld [vmem:[%s1765_s6 + $0x18] sm:$0xff]  }
  0x44   :  { %753 = vmatmul.mubr.bf16.vlgmr.msra.gmra.mxu1 %v1076_v14  ;;  %1258 = vmatpush3.bf16.msra.mxu0 %v1375_v17  ;;  %v1143_v17 = vld [vmem:[%s1767_s5] ss:$0 sm:$0xff] }
  0x45   :  { %1259 = vmatprep.subr.bf16.mxu0 %v1376_v18  ;;  %1289 = vmatpush3.bf16.msra.mxu1 %v1391_v33 }
  0x46   :  { %1290 = vmatprep.subr.bf16.mxu1 %v1399_v32  ;;  %1304 = vmatprep.mubr.msk.bf16.mxu1 %vm1400_vm0, %v1399_v32 }
  0x48   :  { %1260 = vmatpush3.bf16.msra.mxu0 %v1377_v19 }
  0x49   :  { %1261 = vmatprep.subr.bf16.mxu0 %v1378_v20  ;;  %1291 = vmatpush3.bf16.msra.mxu1 %v1392_v34 }
  0x4a   :  { %1292 = vmatprep.subr.bf16.mxu1 %v1399_v32 }
  0x4c   :  { %1262 = vmatpush3.bf16.msra.mxu0 %v1379_v21 }
  0x4d   :  { %1263 = vmatprep.subr.bf16.mxu0 %v1380_v22  ;;  %1293 = vmatpush3.bf16.msra.mxu1 %v1393_v35 }
  0x4e   :  { %1294 = vmatprep.subr.bf16.mxu1 %v1399_v32 }
  0x50   :  { %1264 = vmatpush3.bf16.msra.mxu0 %v1381_v23 }
  0x51   :  { %1265 = vmatprep.subr.bf16.mxu0 %v1382_v24  ;;  %1295 = vmatpush3.bf16.msra.mxu1 %v1394_v36 }
  0x52   :  { %1296 = vmatprep.subr.bf16.mxu1 %v1399_v32 }
  0x54   :  { %1266 = vmatpush3.bf16.msra.mxu0 %v1383_v25 }
  0x55   :  { %1267 = vmatprep.subr.bf16.mxu0 %v1384_v26  ;;  %1297 = vmatpush3.bf16.msra.mxu1 %v1395_v10  ;;  %v1160_v26 = vld [vmem:[%s1768_s7] ss:$0 sm:$0xff] }
  0x56   :  { %1298 = vmatprep.subr.bf16.mxu1 %v1399_v32 }
  0x58   :  { %1268 = vmatpush3.bf16.msra.mxu0 %v1385_v27 }
  0x59   :  { %1269 = vmatprep.subr.bf16.mxu0 %v1386_v28  ;;  %1299 = vmatpush3.bf16.msra.mxu1 %v1396_v11 }
  0x5a   :  { %1300 = vmatprep.subr.bf16.mxu1 %v1399_v32 }
  0x5c   :  { %1270 = vmatpush3.bf16.msra.mxu0 %v1387_v29 }
  0x5d   :  { %1271 = vmatprep.subr.bf16.mxu0 %v1388_v30  ;;  %1301 = vmatpush3.bf16.msra.mxu1 %v1397_v12 }
  0x5e   :  { %1302 = vmatprep.subr.bf16.mxu1 %v1399_v32 }
  0x60   :  { %1272 = vmatpush3.bf16.msra.mxu0 %v1389_v31 }
  0x61   :  { %1303 = vmatpush3.bf16.msra.mxu1 %v1398_v13 }
  0xe3   :  { %v1185_v37 = vpop.f32.mrf.mxu0 }
  0xe4   :  { %v1207_v38 = vpop.f32.mrf.mxu1 }
  0xe5   :  { %v1186_v39 = vpop.f32.mrf.mxu0 }
  0xe6   :  { %v1208_v40 = vpop.f32.mrf.mxu1  ;;  %v1187_v42 = vadd.f32 %v1186_v39, %v1185_v37 }
  0xe7   :  { %v1188_v41 = vpop.f32.mrf.mxu0  ;;  %v1209_v47 = vadd.f32 %v1208_v40, %v1207_v38 }
  0xe8   :  { %v1210_v43 = vpop.f32.mrf.mxu1  ;;  %v632_v46 = vadd.f32 %v1187_v42, %v1069_v44 }
  0xe9   :  { %v1189_v45 = vpop.f32.mrf.mxu0 }
  0xea   :  { %v1190_v48 = vadd.f32 %v1189_v45, %v1188_v41  ;;  %v1211_v49 = vpop.f32.mrf.mxu1  ;;  %v673_v53 = vadd.f32 %v1209_v47, %v632_v46 }
  0xeb   :  { %v1212_v58 = vadd.f32 %v1211_v49, %v1210_v43 }
  0xec   :  { %v635_v54 = vadd.f32 %v1190_v48, %v1069_v44 }
  0xee   :  { %v676_v62 = vadd.f32 %v1212_v58, %v635_v54 }
 0x103   :  { %v1229_v50 = vpop.f32.mrf.mxu0 }
 0x104   :  { %v1251_v51 = vpop.f32.mrf.mxu1 }
 0x105   :  { %v1230_v52 = vpop.f32.mrf.mxu0 }
 0x106   :  { %v1231_v55 = vadd.f32 %v1230_v52, %v1229_v50  ;;  %v1252_v56 = vpop.f32.mrf.mxu1 }
 0x107   :  { %v1232_v57 = vpop.f32.mrf.mxu0  ;;  %v1253_v63 = vadd.f32 %v1252_v56, %v1251_v51 }
 0x108   :  { %v714_v59 = vadd.f32 %v1231_v55, %v673_v53  ;;  %v1254_v60 = vpop.f32.mrf.mxu1 }
 0x109   :  { %v1233_v61 = vpop.f32.mrf.mxu0 }
 0x10a   :  { %v1234_v0 = vadd.f32 %v1233_v61, %v1232_v57  ;;  %v1255_v1 = vpop.f32.mrf.mxu1  ;;  %v755_v2 = vadd.f32 %v1253_v63, %v714_v59 }
 0x10b   :  { %v1256_v4 = vadd.f32 %v1255_v1, %v1254_v60 }
 0x10c   :  { %v717_v3 = vadd.f32 %v1234_v0, %v676_v62  ;;  %v761_v6 = vmax.f32 %v755_v2, 0.0 }
 0x10e   :  { %v758_v5 = vadd.f32 %v1256_v4, %v717_v3 }
 0x110   :  { %v762_v7 = vmax.f32 %v758_v5, 0.0 }
 0x112   :  { %v765_v9 = vpack.c.bf16 %v762_v7, %v761_v6 }
 0x114   :  { %939 = vmatprep.mubr.bf16.mxu0 %v765_v9 }
 0x115   :  { %940 = vmatmul.mubr.bf16.vlgmr.msra.gmra.mxu0 %v1390_v8 }
 0x1d5   :  { %v1273_v14 = vpop.f32.mrf.mxu0 }
 0x1d7   :  { %v1274_v15 = vpop.f32.mrf.mxu0 }
 0x1d8   :  { %v1275_v16 = vadd.f32 %v1274_v15, %v1273_v14 }
 0x1d9   :  { %v1276_v18 = vpop.f32.mrf.mxu0 }
 0x1da   :  { %v942_v20 = vadd.f32 %v1275_v16, %v1143_v17 }
 0x1db   :  { %v1277_v19 = vpop.f32.mrf.mxu0 }
 0x1dc   :  { %v1278_v21 = vadd.f32 %v1277_v19, %v1276_v18  ;;  %v948_v23 = vmax.f32 %v942_v20, 0.0 }
 0x1de   :  { %v945_v22 = vadd.f32 %v1278_v21, %v1143_v17 }
 0x1e0   :  { %v949_v24 = vmax.f32 %v945_v22, 0.0 }
 0x1e2   :  { %v950_v25 = vpack.c.bf16 %v949_v24, %v948_v23 }
 0x1e4   :  { %1305 = vmatmul.mubr.bf16.vlgmr.msra.gmra.mxu1 %v950_v25 }
 0x2a4   :  { %v1056_v27 = vpop.f32.mrf.mxu1 }
 0x2a5   :  { %v1057_v28 = vadd.f32 %v1160_v26, %v1056_v27 }
 0x2a6   :  { %v1306_v29 = vpop.f32.mrf.mxu1 }
 0x2a7   :  { %1063 = vst [vmem:[%s1769_s8] sm:$0xff] %v1057_v28 }
 0x2a8   :  { %v1059_v30 = vpop.f32.mrf.mxu1 }
 0x2a9   :  { %v1060_v31 = vadd.f32 %v1160_v26, %v1059_v30 }
 0x2aa   :  { %v1307_v32 = vpop.f32.mrf.mxu1 }
 0x2ab   :  { %1064 = vst [vmem:[%s1769_s8 + $0x8] sm:$0xff] %v1060_v31 }

// kernel: pmfnet_forward.4
= control target key start
LH: loop header
LB: loop body
LE: loop exit
PB: predicated region body
PF: predicated region fallthrough
CT: control target
= control target key end

     0   :  { %s8854_s0 = inlined_call_operand.vmem [shape: bf16[16,10240], index: 0, kind: input, shape index: {}]   ;;  %s8855_s1 = inlined_call_operand.vmem [shape: s8[10240,1024], index: 1, kind: input, shape index: {}]   ;;  %s8856_s2 = inlined_call_operand.vmem [shape: f32[1,1024], index: 2, kind: input, shape index: {}]   ;;  %s8857_s3 = inlined_call_operand.vmem [shape: f32[1,1024], index: 3, kind: input, shape index: {}]   ;;  %s8858_s4 = inlined_call_operand.vmem [shape: bf16[16,1024], index: 4, kind: output, shape index: {}]  }
   0x1   :  { %8891 = sst [smem:[#allocation38_spill]] %s8854_s0 }
   0x2   :  { %8892 = sst [smem:[#allocation39_spill]] %s8855_s1 }
   0x3   :  { %s6108_s15 = smov 0   ;;  %s6110_s16 = smov 0  }
   0x4   :  { %s6112_s17 = smov 0   ;;  %s6114_s18 = smov 0  }
   0x5   :  { %s6116_s19 = smov 0   ;;  %s6118_s20 = smov 0  }
   0x6   :  { %s6120_s21 = smov 0   ;;  %s6122_s22 = smov 0  }
   0x7   :  { %s6124_s23 = smov 0   ;;  %s6126_s24 = smov 0  }
   0x8   :  { %s6128_s25 = smov 0  }
   0x9 LB: > { %s5831_s26 = sadd.s32 4294967295, %s6080_s25   ;;  %s23_s27 = sadd.s32 1, %s6072_s23  ;;  %s6080_s25 = sphi %s6128_s25, %s14_s25   ;;  %s6076_s24 = sphi %s6126_s24, %s8971_s24   ;;  %s6072_s23 = sphi %s6124_s23, %s8970_s23   ;;  %s6068_s22 = sphi %s6122_s22, %s8969_s22   ;;  %s6064_s21 = sphi %s6120_s21, %s8968_s21   ;;  %s6060_s20 = sphi %s6118_s20, %s8967_s20   ;;  %s6056_s19 = sphi %s6116_s19, %s8966_s19   ;;  %s6052_s18 = sphi %s6114_s18, %s8965_s18   ;;  %s6048_s17 = sphi %s6112_s17, %s8964_s17   ;;  %s6044_s16 = sphi %s6110_s16, %s8963_s16   ;;  %s6040_s15 = sphi %s6108_s15, %s8962_s15  }
   0xa   : > { %p24_p0 = scmp.ge.s32.totalorder %s23_s27, 2  ;;  %s26_s28 = sadd.s32 1, %s6076_s24 }
   0xb   : > { %s33_s29 = sadd.s32 1, %s6060_s20  ;;  %p40_p1 = scmp.ne.s32.totalorder %s6060_s20, %s6056_s19 }
   0xc   : > { %s8973_s27 = smov (%p24_p0, %s23_s27), 0  ;;  %s8975_s28 = smov (!%p24_p0, %s26_s28), %s6076_s24 }
   0xd   : > { %8893 = sst [smem:[#allocation6_spill]] %s8973_s27  ;;  %s30_s30 = ssub.s32 %s6072_s23, %s8973_s27 }
   0xe   : > { %p41_p2 = scmp.eq.s32.totalorder %s6080_s25, 0  ;;  %p28_p3 = scmp.ge.s32.totalorder %s8975_s28, 2 }
   0xf   : > { %p31_p4 = scmp.eq.s32.totalorder %s30_s30, 0  ;;  %s61_s6 = sadd.s32 1, %s6052_s18 }
  0x10   : > { %p6175_p5 = por %p41_p2, %p40_p1  ;;  %s8977_s28 = smov (%p28_p3, %s8975_s28), 0 }
  0x11   : > { %8895 = sst [smem:[#allocation7_spill]] %s8977_s28  ;;  %s57_s8 = ssub.s32 %s6076_s24, %s8977_s28 }
  0x12   : > { %s6183_s7 = scalar_select %p31_p4, %s6060_s20, %s33_s29  }
  0x13   : > { %p68_p6 = scmp.ne.s32.totalorder %s6052_s18, %s6048_s17  ;;  %s58_s9 = sor.u32 %s57_s8, %s30_s30 }
  0x14   : > { %p137_p7 = scmp.eq.s32.totalorder %s57_s8, 0  ;;  %p59_p8 = scmp.eq.s32.totalorder %s58_s9, 0 }
  0x15   : > { %p6189_p9 = por %p68_p6, %p41_p2  ;;  %s139_s11 = sadd.s32 1, %s6044_s16 }
  0x16   : > { %p149_p10 = scmp.ne.s32.totalorder %s6044_s16, %s6040_s15  ;;  %p150_p11 = scmp.eq.s32.totalorder %s5831_s26, 3 }
  0x17   : > { %s6197_s12 = scalar_select %p59_p8, %s6052_s18, %s61_s6  }
  0x18   : > { %s6200_s13 = scalar_select %p137_p7, %s6044_s16, %s139_s11  }
  0x19   : > { %p6202_p12 = por %p150_p11, %p149_p10  ;;  %p5834_p13 = scmp.ge.s32.totalorder %s6080_s25, 4 }
  0x1b   : > { %172 = sbr.rel (%p5834_p13) target bundleno = 391 (0x187), region = 16 }
  0x20   : > { %175 = sbr.rel (!%p6175_p5) target bundleno = 61 (0x3d), region = 20  ;;  %s177_s29 = sand.u32 (%p6175_p5), 1, %s6060_s20  }
  0x21   : > { %s5894_s30 = smul.u32 (%p6175_p5), 160, %s6072_s23  ;;  %s8898_s0 = sld [smem:[#allocation38_spill]] (%p6175_p5) }
  0x22   : > { %s5901_s8 = smul.u32 (%p6175_p5), 320, %s177_s29 }
  0x24   : > { %s6219_s26 = scalar_lea.vmem (%p6175_p5), [#allocation3], %s5901_s8 }
  0x27   : > { %s6214_s11 = scalar_lea.vmem %s8898_s0, %s5894_s30 }
  0x28   : > { %v195_v0 = vld [vmem:[%s6214_s11] sm:$0xff]  ;;  %v197_v1 = vld [vmem:[%s6214_s11 + $0x8] sm:$0xff]  ;;  %v199_v2 = vld [vmem:[%s6214_s11 + $0x10] sm:$0xff] }
  0x29   : > { %196 = vst [vmem:[%s6219_s26] sm:$0xff] %v195_v0  ;;  %198 = vst [vmem:[%s6219_s26 + $0x8] sm:$0xff] %v197_v1  ;;  %v201_v3 = vld [vmem:[%s6214_s11 + $0x18] sm:$0xff]  ;;  %v203_v4 = vld [vmem:[%s6214_s11 + $0x20] sm:$0xff] }
  0x2a   : > { %200 = vst [vmem:[%s6219_s26 + $0x10] sm:$0xff] %v199_v2  ;;  %v205_v5 = vld [vmem:[%s6214_s11 + $0x28] sm:$0xff]  ;;  %202 = vst [vmem:[%s6219_s26 + $0x18] sm:$0xff] %v201_v3  ;;  %v207_v6 = vld [vmem:[%s6214_s11 + $0x30] sm:$0xff] }
  0x2b   : > { %204 = vst [vmem:[%s6219_s26 + $0x20] sm:$0xff] %v203_v4  ;;  %206 = vst [vmem:[%s6219_s26 + $0x28] sm:$0xff] %v205_v5  ;;  %v209_v7 = vld [vmem:[%s6214_s11 + $0x38] sm:$0xff]  ;;  %v211_v8 = vld [vmem:[%s6214_s11 + $0x40] sm:$0xff] }
  0x2c   : > { %208 = vst [vmem:[%s6219_s26 + $0x30] sm:$0xff] %v207_v6  ;;  %210 = vst [vmem:[%s6219_s26 + $0x38] sm:$0xff] %v209_v7  ;;  %v213_v9 = vld [vmem:[%s6214_s11 + $0x48] sm:$0xff]  ;;  %v215_v10 = vld [vmem:[%s6214_s11 + $0x50] sm:$0xff] }
  0x2d   : > { %212 = vst [vmem:[%s6219_s26 + $0x40] sm:$0xff] %v211_v8  ;;  %v217_v11 = vld [vmem:[%s6214_s11 + $0x58] sm:$0xff]  ;;  %214 = vst [vmem:[%s6219_s26 + $0x48] sm:$0xff] %v213_v9  ;;  %v219_v12 = vld [vmem:[%s6214_s11 + $0x60] sm:$0xff] }
  0x2e   : > { %216 = vst [vmem:[%s6219_s26 + $0x50] sm:$0xff] %v215_v10  ;;  %218 = vst [vmem:[%s6219_s26 + $0x58] sm:$0xff] %v217_v11  ;;  %v221_v13 = vld [vmem:[%s6214_s11 + $0x68] sm:$0xff]  ;;  %v223_v14 = vld [vmem:[%s6214_s11 + $0x70] sm:$0xff] }
  0x2f   : > { %220 = vst [vmem:[%s6219_s26 + $0x60] sm:$0xff] %v219_v12  ;;  %222 = vst [vmem:[%s6219_s26 + $0x68] sm:$0xff] %v221_v13  ;;  %v225_v15 = vld [vmem:[%s6214_s11 + $0x78] sm:$0xff]  ;;  %v227_v16 = vld [vmem:[%s6214_s11 + $0x80] sm:$0xff] }
  0x30   : > { %224 = vst [vmem:[%s6219_s26 + $0x70] sm:$0xff] %v223_v14  ;;  %v229_v17 = vld [vmem:[%s6214_s11 + $0x88] sm:$0xff]  ;;  %226 = vst [vmem:[%s6219_s26 + $0x78] sm:$0xff] %v225_v15  ;;  %v231_v18 = vld [vmem:[%s6214_s11 + $0x90] sm:$0xff] }
  0x31   : > { %228 = vst [vmem:[%s6219_s26 + $0x80] sm:$0xff] %v227_v16  ;;  %230 = vst [vmem:[%s6219_s26 + $0x88] sm:$0xff] %v229_v17  ;;  %v233_v19 = vld [vmem:[%s6214_s11 + $0x98] sm:$0xff]  ;;  %v235_v20 = vld [vmem:[%s6214_s11 + $0x140] sm:$0xff] }
  0x32   : > { %232 = vst [vmem:[%s6219_s26 + $0x90] sm:$0xff] %v231_v18  ;;  %234 = vst [vmem:[%s6219_s26 + $0x98] sm:$0xff] %v233_v19  ;;  %v237_v21 = vld [vmem:[%s6214_s11 + $0x148] sm:$0xff]  ;;  %v239_v22 = vld [vmem:[%s6214_s11 + $0x150] sm:$0xff] }
  0x33   : > { %236 = vst [vmem:[%s6219_s26 + $0xa0] sm:$0xff] %v235_v20  ;;  %v241_v23 = vld [vmem:[%s6214_s11 + $0x158] sm:$0xff]  ;;  %238 = vst [vmem:[%s6219_s26 + $0xa8] sm:$0xff] %v237_v21  ;;  %v243_v24 = vld [vmem:[%s6214_s11 + $0x160] sm:$0xff] }
  0x34   : > { %240 = vst [vmem:[%s6219_s26 + $0xb0] sm:$0xff] %v239_v22  ;;  %242 = vst [vmem:[%s6219_s26 + $0xb8] sm:$0xff] %v241_v23  ;;  %v245_v25 = vld [vmem:[%s6214_s11 + $0x168] sm:$0xff]  ;;  %v247_v26 = vld [vmem:[%s6214_s11 + $0x170] sm:$0xff] }
  0x35   : > { %244 = vst [vmem:[%s6219_s26 + $0xc0] sm:$0xff] %v243_v24  ;;  %246 = vst [vmem:[%s6219_s26 + $0xc8] sm:$0xff] %v245_v25  ;;  %v249_v27 = vld [vmem:[%s6214_s11 + $0x178] sm:$0xff]  ;;  %v251_v28 = vld [vmem:[%s6214_s11 + $0x180] sm:$0xff] }
  0x36   : > { %248 = vst [vmem:[%s6219_s26 + $0xd0] sm:$0xff] %v247_v26  ;;  %v253_v29 = vld [vmem:[%s6214_s11 + $0x188] sm:$0xff]  ;;  %250 = vst [vmem:[%s6219_s26 + $0xd8] sm:$0xff] %v249_v27  ;;  %v255_v30 = vld [vmem:[%s6214_s11 + $0x190] sm:$0xff] }
  0x37   : > { %252 = vst [vmem:[%s6219_s26 + $0xe0] sm:$0xff] %v251_v28  ;;  %254 = vst [vmem:[%s6219_s26 + $0xe8] sm:$0xff] %v253_v29  ;;  %v257_v31 = vld [vmem:[%s6214_s11 + $0x198] sm:$0xff]  ;;  %v259_v32 = vld [vmem:[%s6214_s11 + $0x1a0] sm:$0xff] }
  0x38   : > { %256 = vst [vmem:[%s6219_s26 + $0xf0] sm:$0xff] %v255_v30  ;;  %258 = vst [vmem:[%s6219_s26 + $0xf8] sm:$0xff] %v257_v31  ;;  %v261_v33 = vld [vmem:[%s6214_s11 + $0x1a8] sm:$0xff]  ;;  %v263_v34 = vld [vmem:[%s6214_s11 + $0x1b0] sm:$0xff] }
  0x39   : > { %260 = vst [vmem:[%s6219_s26 + $0x100] sm:$0xff] %v259_v32  ;;  %v265_v35 = vld [vmem:[%s6214_s11 + $0x1b8] sm:$0xff]  ;;  %262 = vst [vmem:[%s6219_s26 + $0x108] sm:$0xff] %v261_v33  ;;  %v267_v36 = vld [vmem:[%s6214_s11 + $0x1c0] sm:$0xff] }
  0x3a   : > { %264 = vst [vmem:[%s6219_s26 + $0x110] sm:$0xff] %v263_v34  ;;  %266 = vst [vmem:[%s6219_s26 + $0x118] sm:$0xff] %v265_v35  ;;  %v269_v37 = vld [vmem:[%s6214_s11 + $0x1c8] sm:$0xff]  ;;  %v271_v38 = vld [vmem:[%s6214_s11 + $0x1d0] sm:$0xff] }
  0x3b   : > { %268 = vst [vmem:[%s6219_s26 + $0x120] sm:$0xff] %v267_v36  ;;  %270 = vst [vmem:[%s6219_s26 + $0x128] sm:$0xff] %v269_v37  ;;  %v273_v39 = vld [vmem:[%s6214_s11 + $0x1d8] sm:$0xff] }
  0x3c   : > { %272 = vst [vmem:[%s6219_s26 + $0x130] sm:$0xff] %v271_v38  ;;  %274 = vst [vmem:[%s6219_s26 + $0x138] sm:$0xff] %v273_v39 }
  0x3d PF: > { %280 = sbr.rel (!%p6189_p9) target bundleno = 391 (0x187), region = 43  ;;  %s282_s5 = sand.u32 (%p6189_p9), 1, %s6052_s18  }
  0x3e   : > { %s5902_s29 = smul.u32 (%p6189_p9), 5120, %s282_s5  ;;  %s5836_s30 = sshll.u32 (%p6189_p9), %s6076_s24, 2 }
  0x3f   : > { %s5895_s8 = smul.u32 (%p6189_p9), 1280, %s6072_s23  ;;  %s8899_s1 = sld [smem:[#allocation39_spill]] (%p6189_p9) }
  0x40   : > { %s6311_s10 = scalar_lea.vmem (%p6189_p9), [#allocation4], %s5902_s29 }
  0x41   : > { %s288_s6 = sadd.s32 (%p6189_p9), %s5895_s8, %s5836_s30 }
  0x42   : > { %s5838_s9 = sshll.u32 %s288_s6, 3 }
  0x45   : > { %s6306_s27 = scalar_lea.vmem %s8899_s1, %s5838_s9 }
  0x46   : > { %v303_v40 = vld [vmem:[%s6306_s27] sm:$0xff]  ;;  %v305_v41 = vld [vmem:[%s6306_s27 + $0x8] sm:$0xff]  ;;  %v307_v42 = vld [vmem:[%s6306_s27 + $0x10] sm:$0xff] }
  0x47   : > { %304 = vst [vmem:[%s6311_s10] sm:$0xff] %v303_v40  ;;  %306 = vst [vmem:[%s6311_s10 + $0x8] sm:$0xff] %v305_v41  ;;  %v309_v43 = vld [vmem:[%s6306_s27 + $0x18] sm:$0xff]  ;;  %v311_v44 = vld [vmem:[%s6306_s27 + $0x40] sm:$0xff] }
  0x48   : > { %308 = vst [vmem:[%s6311_s10 + $0x10] sm:$0xff] %v307_v42  ;;  %v313_v45 = vld [vmem:[%s6306_s27 + $0x48] sm:$0xff]  ;;  %310 = vst [vmem:[%s6311_s10 + $0x18] sm:$0xff] %v309_v43  ;;  %v315_v46 = vld [vmem:[%s6306_s27 + $0x50] sm:$0xff] }
  0x49   : > { %312 = vst [vmem:[%s6311_s10 + $0x20] sm:$0xff] %v311_v44  ;;  %314 = vst [vmem:[%s6311_s10 + $0x28] sm:$0xff] %v313_v45  ;;  %v317_v47 = vld [vmem:[%s6306_s27 + $0x58] sm:$0xff]  ;;  %v319_v48 = vld [vmem:[%s6306_s27 + $0x80] sm:$0xff] }
  0x4a   : > { %316 = vst [vmem:[%s6311_s10 + $0x30] sm:$0xff] %v315_v46  ;;  %318 = vst [vmem:[%s6311_s10 + $0x38] sm:$0xff] %v317_v47  ;;  %v321_v49 = vld [vmem:[%s6306_s27 + $0x88] sm:$0xff]  ;;  %v323_v50 = vld [vmem:[%s6306_s27 + $0x90] sm:$0xff] }
  0x4b   : > { %320 = vst [vmem:[%s6311_s10 + $0x40] sm:$0xff] %v319_v48  ;;  %v325_v51 = vld [vmem:[%s6306_s27 + $0x98] sm:$0xff]  ;;  %322 = vst [vmem:[%s6311_s10 + $0x48] sm:$0xff] %v321_v49  ;;  %v327_v52 = vld [vmem:[%s6306_s27 + $0xc0] sm:$0xff] }
  0x4c   : > { %324 = vst [vmem:[%s6311_s10 + $0x50] sm:$0xff] %v323_v50  ;;  %326 = vst [vmem:[%s6311_s10 + $0x58] sm:$0xff] %v325_v51  ;;  %v329_v53 = vld [vmem:[%s6306_s27 + $0xc8] sm:$0xff]  ;;  %v331_v54 = vld [vmem:[%s6306_s27 + $0xd0] sm:$0xff] }
  0x4d   : > { %328 = vst [vmem:[%s6311_s10 + $0x60] sm:$0xff] %v327_v52  ;;  %330 = vst [vmem:[%s6311_s10 + $0x68] sm:$0xff] %v329_v53  ;;  %v333_v55 = vld [vmem:[%s6306_s27 + $0xd8] sm:$0xff]  ;;  %v335_v56 = vld [vmem:[%s6306_s27 + $0x100] sm:$0xff] }
  0x4e   : > { %332 = vst [vmem:[%s6311_s10 + $0x70] sm:$0xff] %v331_v54  ;;  %v337_v57 = vld [vmem:[%s6306_s27 + $0x108] sm:$0xff]  ;;  %334 = vst [vmem:[%s6311_s10 + $0x78] sm:$0xff] %v333_v55  ;;  %v339_v58 = vld [vmem:[%s6306_s27 + $0x110] sm:$0xff] }
  0x4f   : > { %336 = vst [vmem:[%s6311_s10 + $0x80] sm:$0xff] %v335_v56  ;;  %338 = vst [vmem:[%s6311_s10 + $0x88] sm:$0xff] %v337_v57  ;;  %v341_v59 = vld [vmem:[%s6306_s27 + $0x118] sm:$0xff]  ;;  %v343_v60 = vld [vmem:[%s6306_s27 + $0x140] sm:$0xff] }
  0x50   : > { %340 = vst [vmem:[%s6311_s10 + $0x90] sm:$0xff] %v339_v58  ;;  %342 = vst [vmem:[%s6311_s10 + $0x98] sm:$0xff] %v341_v59  ;;  %v345_v61 = vld [vmem:[%s6306_s27 + $0x148] sm:$0xff]  ;;  %v347_v62 = vld [vmem:[%s6306_s27 + $0x150] sm:$0xff] }
  0x51   : > { %344 = vst [vmem:[%s6311_s10 + $0xa0] sm:$0xff] %v343_v60  ;;  %v349_v63 = vld [vmem:[%s6306_s27 + $0x158] sm:$0xff]  ;;  %346 = vst [vmem:[%s6311_s10 + $0xa8] sm:$0xff] %v345_v61  ;;  %v351_v0 = vld [vmem:[%s6306_s27 + $0x180] sm:$0xff] }
  0x52   : > { %348 = vst [vmem:[%s6311_s10 + $0xb0] sm:$0xff] %v347_v62  ;;  %350 = vst [vmem:[%s6311_s10 + $0xb8] sm:$0xff] %v349_v63  ;;  %v353_v1 = vld [vmem:[%s6306_s27 + $0x188] sm:$0xff]  ;;  %v355_v2 = vld [vmem:[%s6306_s27 + $0x190] sm:$0xff] }
  0x53   : > { %352 = vst [vmem:[%s6311_s10 + $0xc0] sm:$0xff] %v351_v0  ;;  %354 = vst [vmem:[%s6311_s10 + $0xc8] sm:$0xff] %v353_v1  ;;  %v357_v3 = vld [vmem:[%s6306_s27 + $0x198] sm:$0xff]  ;;  %v359_v4 = vld [vmem:[%s6306_s27 + $0x1c0] sm:$0xff] }
  0x54   : > { %356 = vst [vmem:[%s6311_s10 + $0xd0] sm:$0xff] %v355_v2  ;;  %v361_v5 = vld [vmem:[%s6306_s27 + $0x1c8] sm:$0xff]  ;;  %358 = vst [vmem:[%s6311_s10 + $0xd8] sm:$0xff] %v357_v3  ;;  %v363_v6 = vld [vmem:[%s6306_s27 + $0x1d0] sm:$0xff] }
  0x55   : > { %360 = vst [vmem:[%s6311_s10 + $0xe0] sm:$0xff] %v359_v4  ;;  %362 = vst [vmem:[%s6311_s10 + $0xe8] sm:$0xff] %v361_v5  ;;  %v365_v7 = vld [vmem:[%s6306_s27 + $0x1d8] sm:$0xff]  ;;  %v367_v8 = vld [vmem:[%s6306_s27 + $0x200] sm:$0xff] }
  0x56   : > { %364 = vst [vmem:[%s6311_s10 + $0xf0] sm:$0xff] %v363_v6  ;;  %366 = vst [vmem:[%s6311_s10 + $0xf8] sm:$0xff] %v365_v7  ;;  %v369_v9 = vld [vmem:[%s6306_s27 + $0x208] sm:$0xff]  ;;  %v371_v10 = vld [vmem:[%s6306_s27 + $0x210] sm:$0xff] }
  0x57   : > { %368 = vst [vmem:[%s6311_s10 + $0x100] sm:$0xff] %v367_v8  ;;  %v373_v11 = vld [vmem:[%s6306_s27 + $0x218] sm:$0xff]  ;;  %370 = vst [vmem:[%s6311_s10 + $0x108] sm:$0xff] %v369_v9  ;;  %v375_v12 = vld [vmem:[%s6306_s27 + $0x240] sm:$0xff] }
  0x58   : > { %372 = vst [vmem:[%s6311_s10 + $0x110] sm:$0xff] %v371_v10  ;;  %374 = vst [vmem:[%s6311_s10 + $0x118] sm:$0xff] %v373_v11  ;;  %v377_v13 = vld [vmem:[%s6306_s27 + $0x248] sm:$0xff]  ;;  %v379_v14 = vld [vmem:[%s6306_s27 + $0x250] sm:$0xff] }
  0x59   : > { %376 = vst [vmem:[%s6311_s10 + $0x120] sm:$0xff] %v375_v12  ;;  %378 = vst [vmem:[%s6311_s10 + $0x128] sm:$0xff] %v377_v13  ;;  %v381_v15 = vld [vmem:[%s6306_s27 + $0x258] sm:$0xff]  ;;  %v383_v16 = vld [vmem:[%s6306_s27 + $0x280] sm:$0xff] }
  0x5a   : > { %380 = vst [vmem:[%s6311_s10 + $0x130] sm:$0xff] %v379_v14  ;;  %v385_v17 = vld [vmem:[%s6306_s27 + $0x288] sm:$0xff]  ;;  %382 = vst [vmem:[%s6311_s10 + $0x138] sm:$0xff] %v381_v15  ;;  %v387_v18 = vld [vmem:[%s6306_s27 + $0x290] sm:$0xff] }
  0x5b   : > { %384 = vst [vmem:[%s6311_s10 + $0x140] sm:$0xff] %v383_v16  ;;  %386 = vst [vmem:[%s6311_s10 + $0x148] sm:$0xff] %v385_v17  ;;  %v389_v19 = vld [vmem:[%s6306_s27 + $0x298] sm:$0xff]  ;;  %v391_v20 = vld [vmem:[%s6306_s27 + $0x2c0] sm:$0xff] }
  0x5c   : > { %388 = vst [vmem:[%s6311_s10 + $0x150] sm:$0xff] %v387_v18  ;;  %390 = vst [vmem:[%s6311_s10 + $0x158] sm:$0xff] %v389_v19  ;;  %v393_v21 = vld [vmem:[%s6306_s27 + $0x2c8] sm:$0xff]  ;;  %v395_v22 = vld [vmem:[%s6306_s27 + $0x2d0] sm:$0xff] }
  0x5d   : > { %392 = vst [vmem:[%s6311_s10 + $0x160] sm:$0xff] %v391_v20  ;;  %v397_v23 = vld [vmem:[%s6306_s27 + $0x2d8] sm:$0xff]  ;;  %394 = vst [vmem:[%s6311_s10 + $0x168] sm:$0xff] %v393_v21  ;;  %v399_v24 = vld [vmem:[%s6306_s27 + $0x300] sm:$0xff] }
  0x5e   : > { %396 = vst [vmem:[%s6311_s10 + $0x170] sm:$0xff] %v395_v22  ;;  %398 = vst [vmem:[%s6311_s10 + $0x178] sm:$0xff] %v397_v23  ;;  %v401_v25 = vld [vmem:[%s6306_s27 + $0x308] sm:$0xff]  ;;  %v403_v26 = vld [vmem:[%s6306_s27 + $0x310] sm:$0xff] }
  0x5f   : > { %400 = vst [vmem:[%s6311_s10 + $0x180] sm:$0xff] %v399_v24  ;;  %402 = vst [vmem:[%s6311_s10 + $0x188] sm:$0xff] %v401_v25  ;;  %v405_v27 = vld [vmem:[%s6306_s27 + $0x318] sm:$0xff]  ;;  %v407_v28 = vld [vmem:[%s6306_s27 + $0x340] sm:$0xff] }
  0x60   : > { %404 = vst [vmem:[%s6311_s10 + $0x190] sm:$0xff] %v403_v26  ;;  %v409_v29 = vld [vmem:[%s6306_s27 + $0x348] sm:$0xff]  ;;  %406 = vst [vmem:[%s6311_s10 + $0x198] sm:$0xff] %v405_v27  ;;  %v411_v30 = vld [vmem:[%s6306_s27 + $0x350] sm:$0xff] }
  0x61   : > { %408 = vst [vmem:[%s6311_s10 + $0x1a0] sm:$0xff] %v407_v28  ;;  %410 = vst [vmem:[%s6311_s10 + $0x1a8] sm:$0xff] %v409_v29  ;;  %v413_v31 = vld [vmem:[%s6306_s27 + $0x358] sm:$0xff]  ;;  %v415_v32 = vld [vmem:[%s6306_s27 + $0x380] sm:$0xff] }
  0x62   : > { %412 = vst [vmem:[%s6311_s10 + $0x1b0] sm:$0xff] %v411_v30  ;;  %414 = vst [vmem:[%s6311_s10 + $0x1b8] sm:$0xff] %v413_v31  ;;  %v417_v33 = vld [vmem:[%s6306_s27 + $0x388] sm:$0xff]  ;;  %v419_v34 = vld [vmem:[%s6306_s27 + $0x390] sm:$0xff] }
  0x63   : > { %416 = vst [vmem:[%s6311_s10 + $0x1c0] sm:$0xff] %v415_v32  ;;  %v421_v35 = vld [vmem:[%s6306_s27 + $0x398] sm:$0xff]  ;;  %418 = vst [vmem:[%s6311_s10 + $0x1c8] sm:$0xff] %v417_v33  ;;  %v423_v36 = vld [vmem:[%s6306_s27 + $0x3c0] sm:$0xff] }
  0x64   : > { %420 = vst [vmem:[%s6311_s10 + $0x1d0] sm:$0xff] %v419_v34  ;;  %422 = vst [vmem:[%s6311_s10 + $0x1d8] sm:$0xff] %v421_v35  ;;  %v425_v37 = vld [vmem:[%s6306_s27 + $0x3c8] sm:$0xff]  ;;  %v427_v38 = vld [vmem:[%s6306_s27 + $0x3d0] sm:$0xff] }
  0x65   : > { %424 = vst [vmem:[%s6311_s10 + $0x1e0] sm:$0xff] %v423_v36  ;;  %426 = vst [vmem:[%s6311_s10 + $0x1e8] sm:$0xff] %v425_v37  ;;  %v429_v39 = vld [vmem:[%s6306_s27 + $0x3d8] sm:$0xff]  ;;  %v431_v40 = vld [vmem:[%s6306_s27 + $0x400] sm:$0xff] }
  0x66   : > { %428 = vst [vmem:[%s6311_s10 + $0x1f0] sm:$0xff] %v427_v38  ;;  %v433_v41 = vld [vmem:[%s6306_s27 + $0x408] sm:$0xff]  ;;  %430 = vst [vmem:[%s6311_s10 + $0x1f8] sm:$0xff] %v429_v39  ;;  %v435_v42 = vld [vmem:[%s6306_s27 + $0x410] sm:$0xff] }
  0x67   : > { %432 = vst [vmem:[%s6311_s10 + $0x200] sm:$0xff] %v431_v40  ;;  %434 = vst [vmem:[%s6311_s10 + $0x208] sm:$0xff] %v433_v41  ;;  %v437_v43 = vld [vmem:[%s6306_s27 + $0x418] sm:$0xff]  ;;  %v439_v44 = vld [vmem:[%s6306_s27 + $0x440] sm:$0xff] }
  0x68   : > { %436 = vst [vmem:[%s6311_s10 + $0x210] sm:$0xff] %v435_v42  ;;  %438 = vst [vmem:[%s6311_s10 + $0x218] sm:$0xff] %v437_v43  ;;  %v441_v45 = vld [vmem:[%s6306_s27 + $0x448] sm:$0xff]  ;;  %v443_v46 = vld [vmem:[%s6306_s27 + $0x450] sm:$0xff] }
  0x69   : > { %440 = vst [vmem:[%s6311_s10 + $0x220] sm:$0xff] %v439_v44  ;;  %v445_v47 = vld [vmem:[%s6306_s27 + $0x458] sm:$0xff]  ;;  %442 = vst [vmem:[%s6311_s10 + $0x228] sm:$0xff] %v441_v45  ;;  %v447_v48 = vld [vmem:[%s6306_s27 + $0x480] sm:$0xff] }
  0x6a   : > { %444 = vst [vmem:[%s6311_s10 + $0x230] sm:$0xff] %v443_v46  ;;  %446 = vst [vmem:[%s6311_s10 + $0x238] sm:$0xff] %v445_v47  ;;  %v449_v49 = vld [vmem:[%s6306_s27 + $0x488] sm:$0xff]  ;;  %v451_v50 = vld [vmem:[%s6306_s27 + $0x490] sm:$0xff] }
  0x6b   : > { %448 = vst [vmem:[%s6311_s10 + $0x240] sm:$0xff] %v447_v48  ;;  %450 = vst [vmem:[%s6311_s10 + $0x248] sm:$0xff] %v449_v49  ;;  %v453_v51 = vld [vmem:[%s6306_s27 + $0x498] sm:$0xff]  ;;  %v455_v52 = vld [vmem:[%s6306_s27 + $0x4c0] sm:$0xff] }
  0x6c   : > { %452 = vst [vmem:[%s6311_s10 + $0x250] sm:$0xff] %v451_v50  ;;  %v457_v53 = vld [vmem:[%s6306_s27 + $0x4c8] sm:$0xff]  ;;  %454 = vst [vmem:[%s6311_s10 + $0x258] sm:$0xff] %v453_v51  ;;  %v459_v54 = vld [vmem:[%s6306_s27 + $0x4d0] sm:$0xff] }
  0x6d   : > { %456 = vst [vmem:[%s6311_s10 + $0x260] sm:$0xff] %v455_v52  ;;  %458 = vst [vmem:[%s6311_s10 + $0x268] sm:$0xff] %v457_v53  ;;  %v461_v55 = vld [vmem:[%s6306_s27 + $0x4d8] sm:$0xff]  ;;  %v463_v56 = vld [vmem:[%s6306_s27 + $0x500] sm:$0xff] }
  0x6e   : > { %460 = vst [vmem:[%s6311_s10 + $0x270] sm:$0xff] %v459_v54  ;;  %462 = vst [vmem:[%s6311_s10 + $0x278] sm:$0xff] %v461_v55  ;;  %v465_v57 = vld [vmem:[%s6306_s27 + $0x508] sm:$0xff]  ;;  %v467_v58 = vld [vmem:[%s6306_s27 + $0x510] sm:$0xff] }
  0x6f   : > { %464 = vst [vmem:[%s6311_s10 + $0x280] sm:$0xff] %v463_v56  ;;  %v469_v59 = vld [vmem:[%s6306_s27 + $0x518] sm:$0xff]  ;;  %466 = vst [vmem:[%s6311_s10 + $0x288] sm:$0xff] %v465_v57  ;;  %v471_v60 = vld [vmem:[%s6306_s27 + $0x540] sm:$0xff] }
  0x70   : > { %468 = vst [vmem:[%s6311_s10 + $0x290] sm:$0xff] %v467_v58  ;;  %470 = vst [vmem:[%s6311_s10 + $0x298] sm:$0xff] %v469_v59  ;;  %v473_v61 = vld [vmem:[%s6306_s27 + $0x548] sm:$0xff]  ;;  %v475_v62 = vld [vmem:[%s6306_s27 + $0x550] sm:$0xff] }
  0x71   : > { %472 = vst [vmem:[%s6311_s10 + $0x2a0] sm:$0xff] %v471_v60  ;;  %474 = vst [vmem:[%s6311_s10 + $0x2a8] sm:$0xff] %v473_v61  ;;  %v477_v63 = vld [vmem:[%s6306_s27 + $0x558] sm:$0xff]  ;;  %v479_v0 = vld [vmem:[%s6306_s27 + $0x580] sm:$0xff] }
  0x72   : > { %476 = vst [vmem:[%s6311_s10 + $0x2b0] sm:$0xff] %v475_v62  ;;  %v481_v1 = vld [vmem:[%s6306_s27 + $0x588] sm:$0xff]  ;;  %478 = vst [vmem:[%s6311_s10 + $0x2b8] sm:$0xff] %v477_v63  ;;  %v483_v2 = vld [vmem:[%s6306_s27 + $0x590] sm:$0xff] }
  0x73   : > { %480 = vst [vmem:[%s6311_s10 + $0x2c0] sm:$0xff] %v479_v0  ;;  %482 = vst [vmem:[%s6311_s10 + $0x2c8] sm:$0xff] %v481_v1  ;;  %v485_v3 = vld [vmem:[%s6306_s27 + $0x598] sm:$0xff]  ;;  %v487_v4 = vld [vmem:[%s6306_s27 + $0x5c0] sm:$0xff] }
  0x74   : > { %484 = vst [vmem:[%s6311_s10 + $0x2d0] sm:$0xff] %v483_v2  ;;  %486 = vst [vmem:[%s6311_s10 + $0x2d8] sm:$0xff] %v485_v3  ;;  %v489_v5 = vld [vmem:[%s6306_s27 + $0x5c8] sm:$0xff]  ;;  %v491_v6 = vld [vmem:[%s6306_s27 + $0x5d0] sm:$0xff] }
  0x75   : > { %488 = vst [vmem:[%s6311_s10 + $0x2e0] sm:$0xff] %v487_v4  ;;  %v493_v7 = vld [vmem:[%s6306_s27 + $0x5d8] sm:$0xff]  ;;  %490 = vst [vmem:[%s6311_s10 + $0x2e8] sm:$0xff] %v489_v5  ;;  %v495_v8 = vld [vmem:[%s6306_s27 + $0x600] sm:$0xff] }
  0x76   : > { %492 = vst [vmem:[%s6311_s10 + $0x2f0] sm:$0xff] %v491_v6  ;;  %494 = vst [vmem:[%s6311_s10 + $0x2f8] sm:$0xff] %v493_v7  ;;  %v497_v9 = vld [vmem:[%s6306_s27 + $0x608] sm:$0xff]  ;;  %v499_v10 = vld [vmem:[%s6306_s27 + $0x610] sm:$0xff] }
  0x77   : > { %496 = vst [vmem:[%s6311_s10 + $0x300] sm:$0xff] %v495_v8  ;;  %498 = vst [vmem:[%s6311_s10 + $0x308] sm:$0xff] %v497_v9  ;;  %v501_v11 = vld [vmem:[%s6306_s27 + $0x618] sm:$0xff]  ;;  %v503_v12 = vld [vmem:[%s6306_s27 + $0x640] sm:$0xff] }
  0x78   : > { %500 = vst [vmem:[%s6311_s10 + $0x310] sm:$0xff] %v499_v10  ;;  %v505_v13 = vld [vmem:[%s6306_s27 + $0x648] sm:$0xff]  ;;  %502 = vst [vmem:[%s6311_s10 + $0x318] sm:$0xff] %v501_v11  ;;  %v507_v14 = vld [vmem:[%s6306_s27 + $0x650] sm:$0xff] }
  0x79   : > { %504 = vst [vmem:[%s6311_s10 + $0x320] sm:$0xff] %v503_v12  ;;  %506 = vst [vmem:[%s6311_s10 + $0x328] sm:$0xff] %v505_v13  ;;  %v509_v15 = vld [vmem:[%s6306_s27 + $0x658] sm:$0xff]  ;;  %v511_v16 = vld [vmem:[%s6306_s27 + $0x680] sm:$0xff] }
  0x7a   : > { %508 = vst [vmem:[%s6311_s10 + $0x330] sm:$0xff] %v507_v14  ;;  %510 = vst [vmem:[%s6311_s10 + $0x338] sm:$0xff] %v509_v15  ;;  %v513_v17 = vld [vmem:[%s6306_s27 + $0x688] sm:$0xff]  ;;  %v515_v18 = vld [vmem:[%s6306_s27 + $0x690] sm:$0xff] }
  0x7b   : > { %512 = vst [vmem:[%s6311_s10 + $0x340] sm:$0xff] %v511_v16  ;;  %v517_v19 = vld [vmem:[%s6306_s27 + $0x698] sm:$0xff]  ;;  %514 = vst [vmem:[%s6311_s10 + $0x348] sm:$0xff] %v513_v17  ;;  %v519_v20 = vld [vmem:[%s6306_s27 + $0x6c0] sm:$0xff] }
  0x7c   : > { %516 = vst [vmem:[%s6311_s10 + $0x350] sm:$0xff] %v515_v18  ;;  %518 = vst [vmem:[%s6311_s10 + $0x358] sm:$0xff] %v517_v19  ;;  %v521_v21 = vld [vmem:[%s6306_s27 + $0x6c8] sm:$0xff]  ;;  %v523_v22 = vld [vmem:[%s6306_s27 + $0x6d0] sm:$0xff] }
  0x7d   : > { %520 = vst [vmem:[%s6311_s10 + $0x360] sm:$0xff] %v519_v20  ;;  %522 = vst [vmem:[%s6311_s10 + $0x368] sm:$0xff] %v521_v21  ;;  %v525_v23 = vld [vmem:[%s6306_s27 + $0x6d8] sm:$0xff]  ;;  %v527_v24 = vld [vmem:[%s6306_s27 + $0x700] sm:$0xff] }
  0x7e   : > { %524 = vst [vmem:[%s6311_s10 + $0x370] sm:$0xff] %v523_v22  ;;  %v529_v25 = vld [vmem:[%s6306_s27 + $0x708] sm:$0xff]  ;;  %526 = vst [vmem:[%s6311_s10 + $0x378] sm:$0xff] %v525_v23  ;;  %v531_v26 = vld [vmem:[%s6306_s27 + $0x710] sm:$0xff] }
  0x7f   : > { %528 = vst [vmem:[%s6311_s10 + $0x380] sm:$0xff] %v527_v24  ;;  %530 = vst [vmem:[%s6311_s10 + $0x388] sm:$0xff] %v529_v25  ;;  %v533_v27 = vld [vmem:[%s6306_s27 + $0x718] sm:$0xff]  ;;  %v535_v28 = vld [vmem:[%s6306_s27 + $0x740] sm:$0xff] }
  0x80   : > { %532 = vst [vmem:[%s6311_s10 + $0x390] sm:$0xff] %v531_v26  ;;  %534 = vst [vmem:[%s6311_s10 + $0x398] sm:$0xff] %v533_v27  ;;  %v537_v29 = vld [vmem:[%s6306_s27 + $0x748] sm:$0xff]  ;;  %v539_v30 = vld [vmem:[%s6306_s27 + $0x750] sm:$0xff] }
  0x81   : > { %536 = vst [vmem:[%s6311_s10 + $0x3a0] sm:$0xff] %v535_v28  ;;  %v541_v31 = vld [vmem:[%s6306_s27 + $0x758] sm:$0xff]  ;;  %538 = vst [vmem:[%s6311_s10 + $0x3a8] sm:$0xff] %v537_v29  ;;  %v543_v32 = vld [vmem:[%s6306_s27 + $0x780] sm:$0xff] }
  0x82   : > { %540 = vst [vmem:[%s6311_s10 + $0x3b0] sm:$0xff] %v539_v30  ;;  %542 = vst [vmem:[%s6311_s10 + $0x3b8] sm:$0xff] %v541_v31  ;;  %v545_v33 = vld [vmem:[%s6306_s27 + $0x788] sm:$0xff]  ;;  %v547_v34 = vld [vmem:[%s6306_s27 + $0x790] sm:$0xff] }
  0x83   : > { %544 = vst [vmem:[%s6311_s10 + $0x3c0] sm:$0xff] %v543_v32  ;;  %546 = vst [vmem:[%s6311_s10 + $0x3c8] sm:$0xff] %v545_v33  ;;  %v549_v35 = vld [vmem:[%s6306_s27 + $0x798] sm:$0xff]  ;;  %v551_v36 = vld [vmem:[%s6306_s27 + $0x7c0] sm:$0xff] }
  0x84   : > { %548 = vst [vmem:[%s6311_s10 + $0x3d0] sm:$0xff] %v547_v34  ;;  %v553_v37 = vld [vmem:[%s6306_s27 + $0x7c8] sm:$0xff]  ;;  %550 = vst [vmem:[%s6311_s10 + $0x3d8] sm:$0xff] %v549_v35  ;;  %v555_v38 = vld [vmem:[%s6306_s27 + $0x7d0] sm:$0xff] }
  0x85   : > { %552 = vst [vmem:[%s6311_s10 + $0x3e0] sm:$0xff] %v551_v36  ;;  %554 = vst [vmem:[%s6311_s10 + $0x3e8] sm:$0xff] %v553_v37  ;;  %v557_v39 = vld [vmem:[%s6306_s27 + $0x7d8] sm:$0xff]  ;;  %v559_v40 = vld [vmem:[%s6306_s27 + $0x800] sm:$0xff] }
  0x86   : > { %556 = vst [vmem:[%s6311_s10 + $0x3f0] sm:$0xff] %v555_v38  ;;  %558 = vst [vmem:[%s6311_s10 + $0x3f8] sm:$0xff] %v557_v39  ;;  %v561_v41 = vld [vmem:[%s6306_s27 + $0x808] sm:$0xff]  ;;  %v563_v42 = vld [vmem:[%s6306_s27 + $0x810] sm:$0xff] }
  0x87   : > { %560 = vst [vmem:[%s6311_s10 + $0x400] sm:$0xff] %v559_v40  ;;  %v565_v43 = vld [vmem:[%s6306_s27 + $0x818] sm:$0xff]  ;;  %562 = vst [vmem:[%s6311_s10 + $0x408] sm:$0xff] %v561_v41  ;;  %v567_v44 = vld [vmem:[%s6306_s27 + $0x840] sm:$0xff] }
  0x88   : > { %564 = vst [vmem:[%s6311_s10 + $0x410] sm:$0xff] %v563_v42  ;;  %566 = vst [vmem:[%s6311_s10 + $0x418] sm:$0xff] %v565_v43  ;;  %v569_v45 = vld [vmem:[%s6306_s27 + $0x848] sm:$0xff]  ;;  %v571_v46 = vld [vmem:[%s6306_s27 + $0x850] sm:$0xff] }
  0x89   : > { %568 = vst [vmem:[%s6311_s10 + $0x420] sm:$0xff] %v567_v44  ;;  %570 = vst [vmem:[%s6311_s10 + $0x428] sm:$0xff] %v569_v45  ;;  %v573_v47 = vld [vmem:[%s6306_s27 + $0x858] sm:$0xff]  ;;  %v575_v48 = vld [vmem:[%s6306_s27 + $0x880] sm:$0xff] }
  0x8a   : > { %572 = vst [vmem:[%s6311_s10 + $0x430] sm:$0xff] %v571_v46  ;;  %v577_v49 = vld [vmem:[%s6306_s27 + $0x888] sm:$0xff]  ;;  %574 = vst [vmem:[%s6311_s10 + $0x438] sm:$0xff] %v573_v47  ;;  %v579_v50 = vld [vmem:[%s6306_s27 + $0x890] sm:$0xff] }
  0x8b   : > { %576 = vst [vmem:[%s6311_s10 + $0x440] sm:$0xff] %v575_v48  ;;  %578 = vst [vmem:[%s6311_s10 + $0x448] sm:$0xff] %v577_v49  ;;  %v581_v51 = vld [vmem:[%s6306_s27 + $0x898] sm:$0xff]  ;;  %v583_v52 = vld [vmem:[%s6306_s27 + $0x8c0] sm:$0xff] }
  0x8c   : > { %580 = vst [vmem:[%s6311_s10 + $0x450] sm:$0xff] %v579_v50  ;;  %582 = vst [vmem:[%s6311_s10 + $0x458] sm:$0xff] %v581_v51  ;;  %v585_v53 = vld [vmem:[%s6306_s27 + $0x8c8] sm:$0xff]  ;;  %v587_v54 = vld [vmem:[%s6306_s27 + $0x8d0] sm:$0xff] }
  0x8d   : > { %584 = vst [vmem:[%s6311_s10 + $0x460] sm:$0xff] %v583_v52  ;;  %v589_v55 = vld [vmem:[%s6306_s27 + $0x8d8] sm:$0xff]  ;;  %586 = vst [vmem:[%s6311_s10 + $0x468] sm:$0xff] %v585_v53  ;;  %v591_v56 = vld [vmem:[%s6306_s27 + $0x900] sm:$0xff] }
  0x8e   : > { %588 = vst [vmem:[%s6311_s10 + $0x470] sm:$0xff] %v587_v54  ;;  %590 = vst [vmem:[%s6311_s10 + $0x478] sm:$0xff] %v589_v55  ;;  %v593_v57 = vld [vmem:[%s6306_s27 + $0x908] sm:$0xff]  ;;  %v595_v58 = vld [vmem:[%s6306_s27 + $0x910] sm:$0xff] }
  0x8f   : > { %592 = vst [vmem:[%s6311_s10 + $0x480] sm:$0xff] %v591_v56  ;;  %594 = vst [vmem:[%s6311_s10 + $0x488] sm:$0xff] %v593_v57  ;;  %v597_v59 = vld [vmem:[%s6306_s27 + $0x918] sm:$0xff]  ;;  %v599_v60 = vld [vmem:[%s6306_s27 + $0x940] sm:$0xff] }
  0x90   : > { %596 = vst [vmem:[%s6311_s10 + $0x490] sm:$0xff] %v595_v58  ;;  %v601_v61 = vld [vmem:[%s6306_s27 + $0x948] sm:$0xff]  ;;  %598 = vst [vmem:[%s6311_s10 + $0x498] sm:$0xff] %v597_v59  ;;  %v603_v62 = vld [vmem:[%s6306_s27 + $0x950] sm:$0xff] }
  0x91   : > { %600 = vst [vmem:[%s6311_s10 + $0x4a0] sm:$0xff] %v599_v60  ;;  %602 = vst [vmem:[%s6311_s10 + $0x4a8] sm:$0xff] %v601_v61  ;;  %v605_v63 = vld [vmem:[%s6306_s27 + $0x958] sm:$0xff]  ;;  %v607_v0 = vld [vmem:[%s6306_s27 + $0x980] sm:$0xff] }
  0x92   : > { %604 = vst [vmem:[%s6311_s10 + $0x4b0] sm:$0xff] %v603_v62  ;;  %606 = vst [vmem:[%s6311_s10 + $0x4b8] sm:$0xff] %v605_v63  ;;  %v609_v1 = vld [vmem:[%s6306_s27 + $0x988] sm:$0xff]  ;;  %v611_v2 = vld [vmem:[%s6306_s27 + $0x990] sm:$0xff] }
  0x93   : > { %608 = vst [vmem:[%s6311_s10 + $0x4c0] sm:$0xff] %v607_v0  ;;  %v613_v3 = vld [vmem:[%s6306_s27 + $0x998] sm:$0xff]  ;;  %610 = vst [vmem:[%s6311_s10 + $0x4c8] sm:$0xff] %v609_v1  ;;  %v615_v4 = vld [vmem:[%s6306_s27 + $0x9c0] sm:$0xff] }
  0x94   : > { %612 = vst [vmem:[%s6311_s10 + $0x4d0] sm:$0xff] %v611_v2  ;;  %614 = vst [vmem:[%s6311_s10 + $0x4d8] sm:$0xff] %v613_v3  ;;  %v617_v5 = vld [vmem:[%s6306_s27 + $0x9c8] sm:$0xff]  ;;  %v619_v6 = vld [vmem:[%s6306_s27 + $0x9d0] sm:$0xff] }
  0x95   : > { %616 = vst [vmem:[%s6311_s10 + $0x4e0] sm:$0xff] %v615_v4  ;;  %618 = vst [vmem:[%s6311_s10 + $0x4e8] sm:$0xff] %v617_v5  ;;  %v621_v7 = vld [vmem:[%s6306_s27 + $0x9d8] sm:$0xff]  ;;  %v623_v8 = vld [vmem:[%s6306_s27 + $0xa00] sm:$0xff] }
  0x96   : > { %620 = vst [vmem:[%s6311_s10 + $0x4f0] sm:$0xff] %v619_v6  ;;  %v625_v9 = vld [vmem:[%s6306_s27 + $0xa08] sm:$0xff]  ;;  %622 = vst [vmem:[%s6311_s10 + $0x4f8] sm:$0xff] %v621_v7  ;;  %v627_v10 = vld [vmem:[%s6306_s27 + $0xa10] sm:$0xff] }
  0x97   : > { %624 = vst [vmem:[%s6311_s10 + $0x500] sm:$0xff] %v623_v8  ;;  %626 = vst [vmem:[%s6311_s10 + $0x508] sm:$0xff] %v625_v9  ;;  %v629_v11 = vld [vmem:[%s6306_s27 + $0xa18] sm:$0xff]  ;;  %v631_v12 = vld [vmem:[%s6306_s27 + $0xa40] sm:$0xff] }
  0x98   : > { %628 = vst [vmem:[%s6311_s10 + $0x510] sm:$0xff] %v627_v10  ;;  %630 = vst [vmem:[%s6311_s10 + $0x518] sm:$0xff] %v629_v11  ;;  %v633_v13 = vld [vmem:[%s6306_s27 + $0xa48] sm:$0xff]  ;;  %v635_v14 = vld [vmem:[%s6306_s27 + $0xa50] sm:$0xff] }
  0x99   : > { %632 = vst [vmem:[%s6311_s10 + $0x520] sm:$0xff] %v631_v12  ;;  %v637_v15 = vld [vmem:[%s6306_s27 + $0xa58] sm:$0xff]  ;;  %634 = vst [vmem:[%s6311_s10 + $0x528] sm:$0xff] %v633_v13  ;;  %v639_v16 = vld [vmem:[%s6306_s27 + $0xa80] sm:$0xff] }
  0x9a   : > { %636 = vst [vmem:[%s6311_s10 + $0x530] sm:$0xff] %v635_v14  ;;  %638 = vst [vmem:[%s6311_s10 + $0x538] sm:$0xff] %v637_v15  ;;  %v641_v17 = vld [vmem:[%s6306_s27 + $0xa88] sm:$0xff]  ;;  %v643_v18 = vld [vmem:[%s6306_s27 + $0xa90] sm:$0xff] }
  0x9b   : > { %640 = vst [vmem:[%s6311_s10 + $0x540] sm:$0xff] %v639_v16  ;;  %642 = vst [vmem:[%s6311_s10 + $0x548] sm:$0xff] %v641_v17  ;;  %v645_v19 = vld [vmem:[%s6306_s27 + $0xa98] sm:$0xff]  ;;  %v647_v20 = vld [vmem:[%s6306_s27 + $0xac0] sm:$0xff] }
  0x9c   : > { %644 = vst [vmem:[%s6311_s10 + $0x550] sm:$0xff] %v643_v18  ;;  %v649_v21 = vld [vmem:[%s6306_s27 + $0xac8] sm:$0xff]  ;;  %646 = vst [vmem:[%s6311_s10 + $0x558] sm:$0xff] %v645_v19  ;;  %v651_v22 = vld [vmem:[%s6306_s27 + $0xad0] sm:$0xff] }
  0x9d   : > { %648 = vst [vmem:[%s6311_s10 + $0x560] sm:$0xff] %v647_v20  ;;  %650 = vst [vmem:[%s6311_s10 + $0x568] sm:$0xff] %v649_v21  ;;  %v653_v23 = vld [vmem:[%s6306_s27 + $0xad8] sm:$0xff]  ;;  %v655_v24 = vld [vmem:[%s6306_s27 + $0xb00] sm:$0xff] }
  0x9e   : > { %652 = vst [vmem:[%s6311_s10 + $0x570] sm:$0xff] %v651_v22  ;;  %654 = vst [vmem:[%s6311_s10 + $0x578] sm:$0xff] %v653_v23  ;;  %v657_v25 = vld [vmem:[%s6306_s27 + $0xb08] sm:$0xff]  ;;  %v659_v26 = vld [vmem:[%s6306_s27 + $0xb10] sm:$0xff] }
  0x9f   : > { %656 = vst [vmem:[%s6311_s10 + $0x580] sm:$0xff] %v655_v24  ;;  %v661_v27 = vld [vmem:[%s6306_s27 + $0xb18] sm:$0xff]  ;;  %658 = vst [vmem:[%s6311_s10 + $0x588] sm:$0xff] %v657_v25  ;;  %v663_v28 = vld [vmem:[%s6306_s27 + $0xb40] sm:$0xff] }
  0xa0   : > { %660 = vst [vmem:[%s6311_s10 + $0x590] sm:$0xff] %v659_v26  ;;  %662 = vst [vmem:[%s6311_s10 + $0x598] sm:$0xff] %v661_v27  ;;  %v665_v29 = vld [vmem:[%s6306_s27 + $0xb48] sm:$0xff]  ;;  %v667_v30 = vld [vmem:[%s6306_s27 + $0xb50] sm:$0xff] }
  0xa1   : > { %664 = vst [vmem:[%s6311_s10 + $0x5a0] sm:$0xff] %v663_v28  ;;  %666 = vst [vmem:[%s6311_s10 + $0x5a8] sm:$0xff] %v665_v29  ;;  %v669_v31 = vld [vmem:[%s6306_s27 + $0xb58] sm:$0xff]  ;;  %v671_v32 = vld [vmem:[%s6306_s27 + $0xb80] sm:$0xff] }
  0xa2   : > { %668 = vst [vmem:[%s6311_s10 + $0x5b0] sm:$0xff] %v667_v30  ;;  %v673_v33 = vld [vmem:[%s6306_s27 + $0xb88] sm:$0xff]  ;;  %670 = vst [vmem:[%s6311_s10 + $0x5b8] sm:$0xff] %v669_v31  ;;  %v675_v34 = vld [vmem:[%s6306_s27 + $0xb90] sm:$0xff] }
  0xa3   : > { %672 = vst [vmem:[%s6311_s10 + $0x5c0] sm:$0xff] %v671_v32  ;;  %674 = vst [vmem:[%s6311_s10 + $0x5c8] sm:$0xff] %v673_v33  ;;  %v677_v35 = vld [vmem:[%s6306_s27 + $0xb98] sm:$0xff]  ;;  %v679_v36 = vld [vmem:[%s6306_s27 + $0xbc0] sm:$0xff] }
  0xa4   : > { %676 = vst [vmem:[%s6311_s10 + $0x5d0] sm:$0xff] %v675_v34  ;;  %678 = vst [vmem:[%s6311_s10 + $0x5d8] sm:$0xff] %v677_v35  ;;  %v681_v37 = vld [vmem:[%s6306_s27 + $0xbc8] sm:$0xff]  ;;  %v683_v38 = vld [vmem:[%s6306_s27 + $0xbd0] sm:$0xff] }
  0xa5   : > { %680 = vst [vmem:[%s6311_s10 + $0x5e0] sm:$0xff] %v679_v36  ;;  %v685_v39 = vld [vmem:[%s6306_s27 + $0xbd8] sm:$0xff]  ;;  %682 = vst [vmem:[%s6311_s10 + $0x5e8] sm:$0xff] %v681_v37  ;;  %v687_v40 = vld [vmem:[%s6306_s27 + $0xc00] sm:$0xff] }
  0xa6   : > { %684 = vst [vmem:[%s6311_s10 + $0x5f0] sm:$0xff] %v683_v38  ;;  %686 = vst [vmem:[%s6311_s10 + $0x5f8] sm:$0xff] %v685_v39  ;;  %v689_v41 = vld [vmem:[%s6306_s27 + $0xc08] sm:$0xff]  ;;  %v691_v42 = vld [vmem:[%s6306_s27 + $0xc10] sm:$0xff] }
  0xa7   : > { %688 = vst [vmem:[%s6311_s10 + $0x600] sm:$0xff] %v687_v40  ;;  %690 = vst [vmem:[%s6311_s10 + $0x608] sm:$0xff] %v689_v41  ;;  %v693_v43 = vld [vmem:[%s6306_s27 + $0xc18] sm:$0xff]  ;;  %v695_v44 = vld [vmem:[%s6306_s27 + $0xc40] sm:$0xff] }
  0xa8   : > { %692 = vst [vmem:[%s6311_s10 + $0x610] sm:$0xff] %v691_v42  ;;  %v697_v45 = vld [vmem:[%s6306_s27 + $0xc48] sm:$0xff]  ;;  %694 = vst [vmem:[%s6311_s10 + $0x618] sm:$0xff] %v693_v43  ;;  %v699_v46 = vld [vmem:[%s6306_s27 + $0xc50] sm:$0xff] }
  0xa9   : > { %696 = vst [vmem:[%s6311_s10 + $0x620] sm:$0xff] %v695_v44  ;;  %698 = vst [vmem:[%s6311_s10 + $0x628] sm:$0xff] %v697_v45  ;;  %v701_v47 = vld [vmem:[%s6306_s27 + $0xc58] sm:$0xff]  ;;  %v703_v48 = vld [vmem:[%s6306_s27 + $0xc80] sm:$0xff] }
  0xaa   : > { %700 = vst [vmem:[%s6311_s10 + $0x630] sm:$0xff] %v699_v46  ;;  %702 = vst [vmem:[%s6311_s10 + $0x638] sm:$0xff] %v701_v47  ;;  %v705_v49 = vld [vmem:[%s6306_s27 + $0xc88] sm:$0xff]  ;;  %v707_v50 = vld [vmem:[%s6306_s27 + $0xc90] sm:$0xff] }
  0xab   : > { %704 = vst [vmem:[%s6311_s10 + $0x640] sm:$0xff] %v703_v48  ;;  %v709_v51 = vld [vmem:[%s6306_s27 + $0xc98] sm:$0xff]  ;;  %706 = vst [vmem:[%s6311_s10 + $0x648] sm:$0xff] %v705_v49  ;;  %v711_v52 = vld [vmem:[%s6306_s27 + $0xcc0] sm:$0xff] }
  0xac   : > { %708 = vst [vmem:[%s6311_s10 + $0x650] sm:$0xff] %v707_v50  ;;  %710 = vst [vmem:[%s6311_s10 + $0x658] sm:$0xff] %v709_v51  ;;  %v713_v53 = vld [vmem:[%s6306_s27 + $0xcc8] sm:$0xff]  ;;  %v715_v54 = vld [vmem:[%s6306_s27 + $0xcd0] sm:$0xff] }
  0xad   : > { %712 = vst [vmem:[%s6311_s10 + $0x660] sm:$0xff] %v711_v52  ;;  %714 = vst [vmem:[%s6311_s10 + $0x668] sm:$0xff] %v713_v53  ;;  %v717_v55 = vld [vmem:[%s6306_s27 + $0xcd8] sm:$0xff]  ;;  %v719_v56 = vld [vmem:[%s6306_s27 + $0xd00] sm:$0xff] }
  0xae   : > { %716 = vst [vmem:[%s6311_s10 + $0x670] sm:$0xff] %v715_v54  ;;  %v721_v57 = vld [vmem:[%s6306_s27 + $0xd08] sm:$0xff]  ;;  %718 = vst [vmem:[%s6311_s10 + $0x678] sm:$0xff] %v717_v55  ;;  %v723_v58 = vld [vmem:[%s6306_s27 + $0xd10] sm:$0xff] }
  0xaf   : > { %720 = vst [vmem:[%s6311_s10 + $0x680] sm:$0xff] %v719_v56  ;;  %722 = vst [vmem:[%s6311_s10 + $0x688] sm:$0xff] %v721_v57  ;;  %v725_v59 = vld [vmem:[%s6306_s27 + $0xd18] sm:$0xff]  ;;  %v727_v60 = vld [vmem:[%s6306_s27 + $0xd40] sm:$0xff] }
  0xb0   : > { %724 = vst [vmem:[%s6311_s10 + $0x690] sm:$0xff] %v723_v58  ;;  %726 = vst [vmem:[%s6311_s10 + $0x698] sm:$0xff] %v725_v59  ;;  %v729_v61 = vld [vmem:[%s6306_s27 + $0xd48] sm:$0xff]  ;;  %v731_v62 = vld [vmem:[%s6306_s27 + $0xd50] sm:$0xff] }
  0xb1   : > { %728 = vst [vmem:[%s6311_s10 + $0x6a0] sm:$0xff] %v727_v60  ;;  %v733_v63 = vld [vmem:[%s6306_s27 + $0xd58] sm:$0xff]  ;;  %730 = vst [vmem:[%s6311_s10 + $0x6a8] sm:$0xff] %v729_v61  ;;  %v735_v0 = vld [vmem:[%s6306_s27 + $0xd80] sm:$0xff] }
  0xb2   : > { %732 = vst [vmem:[%s6311_s10 + $0x6b0] sm:$0xff] %v731_v62  ;;  %734 = vst [vmem:[%s6311_s10 + $0x6b8] sm:$0xff] %v733_v63  ;;  %v737_v1 = vld [vmem:[%s6306_s27 + $0xd88] sm:$0xff]  ;;  %v739_v2 = vld [vmem:[%s6306_s27 + $0xd90] sm:$0xff] }
  0xb3   : > { %736 = vst [vmem:[%s6311_s10 + $0x6c0] sm:$0xff] %v735_v0  ;;  %738 = vst [vmem:[%s6311_s10 + $0x6c8] sm:$0xff] %v737_v1  ;;  %v741_v3 = vld [vmem:[%s6306_s27 + $0xd98] sm:$0xff]  ;;  %v743_v4 = vld [vmem:[%s6306_s27 + $0xdc0] sm:$0xff] }
  0xb4   : > { %740 = vst [vmem:[%s6311_s10 + $0x6d0] sm:$0xff] %v739_v2  ;;  %v745_v5 = vld [vmem:[%s6306_s27 + $0xdc8] sm:$0xff]  ;;  %742 = vst [vmem:[%s6311_s10 + $0x6d8] sm:$0xff] %v741_v3  ;;  %v747_v6 = vld [vmem:[%s6306_s27 + $0xdd0] sm:$0xff] }
  0xb5   : > { %744 = vst [vmem:[%s6311_s10 + $0x6e0] sm:$0xff] %v743_v4  ;;  %746 = vst [vmem:[%s6311_s10 + $0x6e8] sm:$0xff] %v745_v5  ;;  %v749_v7 = vld [vmem:[%s6306_s27 + $0xdd8] sm:$0xff]  ;;  %v751_v8 = vld [vmem:[%s6306_s27 + $0xe00] sm:$0xff] }
  0xb6   : > { %748 = vst [vmem:[%s6311_s10 + $0x6f0] sm:$0xff] %v747_v6  ;;  %750 = vst [vmem:[%s6311_s10 + $0x6f8] sm:$0xff] %v749_v7  ;;  %v753_v9 = vld [vmem:[%s6306_s27 + $0xe08] sm:$0xff]  ;;  %v755_v10 = vld [vmem:[%s6306_s27 + $0xe10] sm:$0xff] }
  0xb7   : > { %752 = vst [vmem:[%s6311_s10 + $0x700] sm:$0xff] %v751_v8  ;;  %v757_v11 = vld [vmem:[%s6306_s27 + $0xe18] sm:$0xff]  ;;  %754 = vst [vmem:[%s6311_s10 + $0x708] sm:$0xff] %v753_v9  ;;  %v759_v12 = vld [vmem:[%s6306_s27 + $0xe40] sm:$0xff] }
  0xb8   : > { %756 = vst [vmem:[%s6311_s10 + $0x710] sm:$0xff] %v755_v10  ;;  %758 = vst [vmem:[%s6311_s10 + $0x718] sm:$0xff] %v757_v11  ;;  %v761_v13 = vld [vmem:[%s6306_s27 + $0xe48] sm:$0xff]  ;;  %v763_v14 = vld [vmem:[%s6306_s27 + $0xe50] sm:$0xff] }
  0xb9   : > { %760 = vst [vmem:[%s6311_s10 + $0x720] sm:$0xff] %v759_v12  ;;  %762 = vst [vmem:[%s6311_s10 + $0x728] sm:$0xff] %v761_v13  ;;  %v765_v15 = vld [vmem:[%s6306_s27 + $0xe58] sm:$0xff]  ;;  %v767_v16 = vld [vmem:[%s6306_s27 + $0xe80] sm:$0xff] }
  0xba   : > { %764 = vst [vmem:[%s6311_s10 + $0x730] sm:$0xff] %v763_v14  ;;  %v769_v17 = vld [vmem:[%s6306_s27 + $0xe88] sm:$0xff]  ;;  %766 = vst [vmem:[%s6311_s10 + $0x738] sm:$0xff] %v765_v15  ;;  %v771_v18 = vld [vmem:[%s6306_s27 + $0xe90] sm:$0xff] }
  0xbb   : > { %768 = vst [vmem:[%s6311_s10 + $0x740] sm:$0xff] %v767_v16  ;;  %770 = vst [vmem:[%s6311_s10 + $0x748] sm:$0xff] %v769_v17  ;;  %v773_v19 = vld [vmem:[%s6306_s27 + $0xe98] sm:$0xff]  ;;  %v775_v20 = vld [vmem:[%s6306_s27 + $0xec0] sm:$0xff] }
  0xbc   : > { %772 = vst [vmem:[%s6311_s10 + $0x750] sm:$0xff] %v771_v18  ;;  %774 = vst [vmem:[%s6311_s10 + $0x758] sm:$0xff] %v773_v19  ;;  %v777_v21 = vld [vmem:[%s6306_s27 + $0xec8] sm:$0xff]  ;;  %v779_v22 = vld [vmem:[%s6306_s27 + $0xed0] sm:$0xff] }
  0xbd   : > { %776 = vst [vmem:[%s6311_s10 + $0x760] sm:$0xff] %v775_v20  ;;  %v781_v23 = vld [vmem:[%s6306_s27 + $0xed8] sm:$0xff]  ;;  %778 = vst [vmem:[%s6311_s10 + $0x768] sm:$0xff] %v777_v21  ;;  %v783_v24 = vld [vmem:[%s6306_s27 + $0xf00] sm:$0xff] }
  0xbe   : > { %780 = vst [vmem:[%s6311_s10 + $0x770] sm:$0xff] %v779_v22  ;;  %782 = vst [vmem:[%s6311_s10 + $0x778] sm:$0xff] %v781_v23  ;;  %v785_v25 = vld [vmem:[%s6306_s27 + $0xf08] sm:$0xff]  ;;  %v787_v26 = vld [vmem:[%s6306_s27 + $0xf10] sm:$0xff] }
  0xbf   : > { %784 = vst [vmem:[%s6311_s10 + $0x780] sm:$0xff] %v783_v24  ;;  %786 = vst [vmem:[%s6311_s10 + $0x788] sm:$0xff] %v785_v25  ;;  %v789_v27 = vld [vmem:[%s6306_s27 + $0xf18] sm:$0xff]  ;;  %v791_v28 = vld [vmem:[%s6306_s27 + $0xf40] sm:$0xff] }
  0xc0   : > { %788 = vst [vmem:[%s6311_s10 + $0x790] sm:$0xff] %v787_v26  ;;  %v793_v29 = vld [vmem:[%s6306_s27 + $0xf48] sm:$0xff]  ;;  %790 = vst [vmem:[%s6311_s10 + $0x798] sm:$0xff] %v789_v27  ;;  %v795_v30 = vld [vmem:[%s6306_s27 + $0xf50] sm:$0xff] }
  0xc1   : > { %792 = vst [vmem:[%s6311_s10 + $0x7a0] sm:$0xff] %v791_v28  ;;  %794 = vst [vmem:[%s6311_s10 + $0x7a8] sm:$0xff] %v793_v29  ;;  %v797_v31 = vld [vmem:[%s6306_s27 + $0xf58] sm:$0xff]  ;;  %v799_v32 = vld [vmem:[%s6306_s27 + $0xf80] sm:$0xff] }
  0xc2   : > { %796 = vst [vmem:[%s6311_s10 + $0x7b0] sm:$0xff] %v795_v30  ;;  %798 = vst [vmem:[%s6311_s10 + $0x7b8] sm:$0xff] %v797_v31  ;;  %v801_v33 = vld [vmem:[%s6306_s27 + $0xf88] sm:$0xff]  ;;  %v803_v34 = vld [vmem:[%s6306_s27 + $0xf90] sm:$0xff] }
  0xc3   : > { %800 = vst [vmem:[%s6311_s10 + $0x7c0] sm:$0xff] %v799_v32  ;;  %v805_v35 = vld [vmem:[%s6306_s27 + $0xf98] sm:$0xff]  ;;  %802 = vst [vmem:[%s6311_s10 + $0x7c8] sm:$0xff] %v801_v33  ;;  %v807_v36 = vld [vmem:[%s6306_s27 + $0xfc0] sm:$0xff] }
  0xc4   : > { %804 = vst [vmem:[%s6311_s10 + $0x7d0] sm:$0xff] %v803_v34  ;;  %806 = vst [vmem:[%s6311_s10 + $0x7d8] sm:$0xff] %v805_v35  ;;  %v809_v37 = vld [vmem:[%s6306_s27 + $0xfc8] sm:$0xff]  ;;  %v811_v38 = vld [vmem:[%s6306_s27 + $0xfd0] sm:$0xff] }
  0xc5   : > { %808 = vst [vmem:[%s6311_s10 + $0x7e0] sm:$0xff] %v807_v36  ;;  %810 = vst [vmem:[%s6311_s10 + $0x7e8] sm:$0xff] %v809_v37  ;;  %v813_v39 = vld [vmem:[%s6306_s27 + $0xfd8] sm:$0xff]  ;;  %v815_v40 = vld [vmem:[%s6306_s27 + $0x1000] sm:$0xff] }
  0xc6   : > { %812 = vst [vmem:[%s6311_s10 + $0x7f0] sm:$0xff] %v811_v38  ;;  %v817_v41 = vld [vmem:[%s6306_s27 + $0x1008] sm:$0xff]  ;;  %814 = vst [vmem:[%s6311_s10 + $0x7f8] sm:$0xff] %v813_v39  ;;  %v819_v42 = vld [vmem:[%s6306_s27 + $0x1010] sm:$0xff] }
  0xc7   : > { %816 = vst [vmem:[%s6311_s10 + $0x800] sm:$0xff] %v815_v40  ;;  %818 = vst [vmem:[%s6311_s10 + $0x808] sm:$0xff] %v817_v41  ;;  %v821_v43 = vld [vmem:[%s6306_s27 + $0x1018] sm:$0xff]  ;;  %v823_v44 = vld [vmem:[%s6306_s27 + $0x1040] sm:$0xff] }
  0xc8   : > { %820 = vst [vmem:[%s6311_s10 + $0x810] sm:$0xff] %v819_v42  ;;  %822 = vst [vmem:[%s6311_s10 + $0x818] sm:$0xff] %v821_v43  ;;  %v825_v45 = vld [vmem:[%s6306_s27 + $0x1048] sm:$0xff]  ;;  %v827_v46 = vld [vmem:[%s6306_s27 + $0x1050] sm:$0xff] }
  0xc9   : > { %824 = vst [vmem:[%s6311_s10 + $0x820] sm:$0xff] %v823_v44  ;;  %v829_v47 = vld [vmem:[%s6306_s27 + $0x1058] sm:$0xff]  ;;  %826 = vst [vmem:[%s6311_s10 + $0x828] sm:$0xff] %v825_v45  ;;  %v831_v48 = vld [vmem:[%s6306_s27 + $0x1080] sm:$0xff] }
  0xca   : > { %828 = vst [vmem:[%s6311_s10 + $0x830] sm:$0xff] %v827_v46  ;;  %830 = vst [vmem:[%s6311_s10 + $0x838] sm:$0xff] %v829_v47  ;;  %v833_v49 = vld [vmem:[%s6306_s27 + $0x1088] sm:$0xff]  ;;  %v835_v50 = vld [vmem:[%s6306_s27 + $0x1090] sm:$0xff] }
  0xcb   : > { %832 = vst [vmem:[%s6311_s10 + $0x840] sm:$0xff] %v831_v48  ;;  %834 = vst [vmem:[%s6311_s10 + $0x848] sm:$0xff] %v833_v49  ;;  %v837_v51 = vld [vmem:[%s6306_s27 + $0x1098] sm:$0xff]  ;;  %v839_v52 = vld [vmem:[%s6306_s27 + $0x10c0] sm:$0xff] }
  0xcc   : > { %836 = vst [vmem:[%s6311_s10 + $0x850] sm:$0xff] %v835_v50  ;;  %v841_v53 = vld [vmem:[%s6306_s27 + $0x10c8] sm:$0xff]  ;;  %838 = vst [vmem:[%s6311_s10 + $0x858] sm:$0xff] %v837_v51  ;;  %v843_v54 = vld [vmem:[%s6306_s27 + $0x10d0] sm:$0xff] }
  0xcd   : > { %840 = vst [vmem:[%s6311_s10 + $0x860] sm:$0xff] %v839_v52  ;;  %842 = vst [vmem:[%s6311_s10 + $0x868] sm:$0xff] %v841_v53  ;;  %v845_v55 = vld [vmem:[%s6306_s27 + $0x10d8] sm:$0xff]  ;;  %v847_v56 = vld [vmem:[%s6306_s27 + $0x1100] sm:$0xff] }
  0xce   : > { %844 = vst [vmem:[%s6311_s10 + $0x870] sm:$0xff] %v843_v54  ;;  %846 = vst [vmem:[%s6311_s10 + $0x878] sm:$0xff] %v845_v55  ;;  %v849_v57 = vld [vmem:[%s6306_s27 + $0x1108] sm:$0xff]  ;;  %v851_v58 = vld [vmem:[%s6306_s27 + $0x1110] sm:$0xff] }
  0xcf   : > { %848 = vst [vmem:[%s6311_s10 + $0x880] sm:$0xff] %v847_v56  ;;  %v853_v59 = vld [vmem:[%s6306_s27 + $0x1118] sm:$0xff]  ;;  %850 = vst [vmem:[%s6311_s10 + $0x888] sm:$0xff] %v849_v57  ;;  %v855_v60 = vld [vmem:[%s6306_s27 + $0x1140] sm:$0xff] }
  0xd0   : > { %852 = vst [vmem:[%s6311_s10 + $0x890] sm:$0xff] %v851_v58  ;;  %854 = vst [vmem:[%s6311_s10 + $0x898] sm:$0xff] %v853_v59  ;;  %v857_v61 = vld [vmem:[%s6306_s27 + $0x1148] sm:$0xff]  ;;  %v859_v62 = vld [vmem:[%s6306_s27 + $0x1150] sm:$0xff] }
  0xd1   : > { %856 = vst [vmem:[%s6311_s10 + $0x8a0] sm:$0xff] %v855_v60  ;;  %858 = vst [vmem:[%s6311_s10 + $0x8a8] sm:$0xff] %v857_v61  ;;  %v861_v63 = vld [vmem:[%s6306_s27 + $0x1158] sm:$0xff]  ;;  %v863_v0 = vld [vmem:[%s6306_s27 + $0x1180] sm:$0xff] }
  0xd2   : > { %860 = vst [vmem:[%s6311_s10 + $0x8b0] sm:$0xff] %v859_v62  ;;  %v865_v1 = vld [vmem:[%s6306_s27 + $0x1188] sm:$0xff]  ;;  %862 = vst [vmem:[%s6311_s10 + $0x8b8] sm:$0xff] %v861_v63  ;;  %v867_v2 = vld [vmem:[%s6306_s27 + $0x1190] sm:$0xff] }
  0xd3   : > { %864 = vst [vmem:[%s6311_s10 + $0x8c0] sm:$0xff] %v863_v0  ;;  %866 = vst [vmem:[%s6311_s10 + $0x8c8] sm:$0xff] %v865_v1  ;;  %v869_v3 = vld [vmem:[%s6306_s27 + $0x1198] sm:$0xff]  ;;  %v871_v4 = vld [vmem:[%s6306_s27 + $0x11c0] sm:$0xff] }
  0xd4   : > { %868 = vst [vmem:[%s6311_s10 + $0x8d0] sm:$0xff] %v867_v2  ;;  %870 = vst [vmem:[%s6311_s10 + $0x8d8] sm:$0xff] %v869_v3  ;;  %v873_v5 = vld [vmem:[%s6306_s27 + $0x11c8] sm:$0xff]  ;;  %v875_v6 = vld [vmem:[%s6306_s27 + $0x11d0] sm:$0xff] }
  0xd5   : > { %872 = vst [vmem:[%s6311_s10 + $0x8e0] sm:$0xff] %v871_v4  ;;  %v877_v7 = vld [vmem:[%s6306_s27 + $0x11d8] sm:$0xff]  ;;  %874 = vst [vmem:[%s6311_s10 + $0x8e8] sm:$0xff] %v873_v5  ;;  %v879_v8 = vld [vmem:[%s6306_s27 + $0x1200] sm:$0xff] }
  0xd6   : > { %876 = vst [vmem:[%s6311_s10 + $0x8f0] sm:$0xff] %v875_v6  ;;  %878 = vst [vmem:[%s6311_s10 + $0x8f8] sm:$0xff] %v877_v7  ;;  %v881_v9 = vld [vmem:[%s6306_s27 + $0x1208] sm:$0xff]  ;;  %v883_v10 = vld [vmem:[%s6306_s27 + $0x1210] sm:$0xff] }
  0xd7   : > { %880 = vst [vmem:[%s6311_s10 + $0x900] sm:$0xff] %v879_v8  ;;  %882 = vst [vmem:[%s6311_s10 + $0x908] sm:$0xff] %v881_v9  ;;  %v885_v11 = vld [vmem:[%s6306_s27 + $0x1218] sm:$0xff]  ;;  %v887_v12 = vld [vmem:[%s6306_s27 + $0x1240] sm:$0xff] }
  0xd8   : > { %884 = vst [vmem:[%s6311_s10 + $0x910] sm:$0xff] %v883_v10  ;;  %v889_v13 = vld [vmem:[%s6306_s27 + $0x1248] sm:$0xff]  ;;  %886 = vst [vmem:[%s6311_s10 + $0x918] sm:$0xff] %v885_v11  ;;  %v891_v14 = vld [vmem:[%s6306_s27 + $0x1250] sm:$0xff] }
  0xd9   : > { %888 = vst [vmem:[%s6311_s10 + $0x920] sm:$0xff] %v887_v12  ;;  %890 = vst [vmem:[%s6311_s10 + $0x928] sm:$0xff] %v889_v13  ;;  %v893_v15 = vld [vmem:[%s6306_s27 + $0x1258] sm:$0xff]  ;;  %v895_v16 = vld [vmem:[%s6306_s27 + $0x1280] sm:$0xff] }
  0xda   : > { %892 = vst [vmem:[%s6311_s10 + $0x930] sm:$0xff] %v891_v14  ;;  %894 = vst [vmem:[%s6311_s10 + $0x938] sm:$0xff] %v893_v15  ;;  %v897_v17 = vld [vmem:[%s6306_s27 + $0x1288] sm:$0xff]  ;;  %v899_v18 = vld [vmem:[%s6306_s27 + $0x1290] sm:$0xff] }
  0xdb   : > { %896 = vst [vmem:[%s6311_s10 + $0x940] sm:$0xff] %v895_v16  ;;  %v901_v19 = vld [vmem:[%s6306_s27 + $0x1298] sm:$0xff]  ;;  %898 = vst [vmem:[%s6311_s10 + $0x948] sm:$0xff] %v897_v17  ;;  %v903_v20 = vld [vmem:[%s6306_s27 + $0x12c0] sm:$0xff] }
  0xdc   : > { %900 = vst [vmem:[%s6311_s10 + $0x950] sm:$0xff] %v899_v18  ;;  %902 = vst [vmem:[%s6311_s10 + $0x958] sm:$0xff] %v901_v19  ;;  %v905_v21 = vld [vmem:[%s6306_s27 + $0x12c8] sm:$0xff]  ;;  %v907_v22 = vld [vmem:[%s6306_s27 + $0x12d0] sm:$0xff] }
  0xdd   : > { %904 = vst [vmem:[%s6311_s10 + $0x960] sm:$0xff] %v903_v20  ;;  %906 = vst [vmem:[%s6311_s10 + $0x968] sm:$0xff] %v905_v21  ;;  %v909_v23 = vld [vmem:[%s6306_s27 + $0x12d8] sm:$0xff]  ;;  %v911_v24 = vld [vmem:[%s6306_s27 + $0x1300] sm:$0xff] }
  0xde   : > { %908 = vst [vmem:[%s6311_s10 + $0x970] sm:$0xff] %v907_v22  ;;  %v913_v25 = vld [vmem:[%s6306_s27 + $0x1308] sm:$0xff]  ;;  %910 = vst [vmem:[%s6311_s10 + $0x978] sm:$0xff] %v909_v23  ;;  %v915_v26 = vld [vmem:[%s6306_s27 + $0x1310] sm:$0xff] }
  0xdf   : > { %912 = vst [vmem:[%s6311_s10 + $0x980] sm:$0xff] %v911_v24  ;;  %914 = vst [vmem:[%s6311_s10 + $0x988] sm:$0xff] %v913_v25  ;;  %v917_v27 = vld [vmem:[%s6306_s27 + $0x1318] sm:$0xff]  ;;  %v919_v28 = vld [vmem:[%s6306_s27 + $0x1340] sm:$0xff] }
  0xe0   : > { %916 = vst [vmem:[%s6311_s10 + $0x990] sm:$0xff] %v915_v26  ;;  %918 = vst [vmem:[%s6311_s10 + $0x998] sm:$0xff] %v917_v27  ;;  %v921_v29 = vld [vmem:[%s6306_s27 + $0x1348] sm:$0xff]  ;;  %v923_v30 = vld [vmem:[%s6306_s27 + $0x1350] sm:$0xff] }
  0xe1   : > { %920 = vst [vmem:[%s6311_s10 + $0x9a0] sm:$0xff] %v919_v28  ;;  %v925_v31 = vld [vmem:[%s6306_s27 + $0x1358] sm:$0xff]  ;;  %922 = vst [vmem:[%s6311_s10 + $0x9a8] sm:$0xff] %v921_v29  ;;  %v927_v32 = vld [vmem:[%s6306_s27 + $0x1380] sm:$0xff] }
  0xe2   : > { %924 = vst [vmem:[%s6311_s10 + $0x9b0] sm:$0xff] %v923_v30  ;;  %926 = vst [vmem:[%s6311_s10 + $0x9b8] sm:$0xff] %v925_v31  ;;  %v929_v33 = vld [vmem:[%s6306_s27 + $0x1388] sm:$0xff]  ;;  %v931_v34 = vld [vmem:[%s6306_s27 + $0x1390] sm:$0xff] }
  0xe3   : > { %928 = vst [vmem:[%s6311_s10 + $0x9c0] sm:$0xff] %v927_v32  ;;  %930 = vst [vmem:[%s6311_s10 + $0x9c8] sm:$0xff] %v929_v33  ;;  %v933_v35 = vld [vmem:[%s6306_s27 + $0x1398] sm:$0xff]  ;;  %v935_v36 = vld [vmem:[%s6306_s27 + $0x13c0] sm:$0xff] }
  0xe4   : > { %932 = vst [vmem:[%s6311_s10 + $0x9d0] sm:$0xff] %v931_v34  ;;  %v937_v37 = vld [vmem:[%s6306_s27 + $0x13c8] sm:$0xff]  ;;  %934 = vst [vmem:[%s6311_s10 + $0x9d8] sm:$0xff] %v933_v35  ;;  %v939_v38 = vld [vmem:[%s6306_s27 + $0x13d0] sm:$0xff] }
  0xe5   : > { %936 = vst [vmem:[%s6311_s10 + $0x9e0] sm:$0xff] %v935_v36  ;;  %938 = vst [vmem:[%s6311_s10 + $0x9e8] sm:$0xff] %v937_v37  ;;  %v941_v39 = vld [vmem:[%s6306_s27 + $0x13d8] sm:$0xff]  ;;  %v943_v40 = vld [vmem:[%s6306_s27 + $0x1400] sm:$0xff] }
  0xe6   : > { %940 = vst [vmem:[%s6311_s10 + $0x9f0] sm:$0xff] %v939_v38  ;;  %942 = vst [vmem:[%s6311_s10 + $0x9f8] sm:$0xff] %v941_v39  ;;  %v945_v41 = vld [vmem:[%s6306_s27 + $0x1408] sm:$0xff]  ;;  %v947_v42 = vld [vmem:[%s6306_s27 + $0x1410] sm:$0xff] }
  0xe7   : > { %944 = vst [vmem:[%s6311_s10 + $0xa00] sm:$0xff] %v943_v40  ;;  %v949_v43 = vld [vmem:[%s6306_s27 + $0x1418] sm:$0xff]  ;;  %946 = vst [vmem:[%s6311_s10 + $0xa08] sm:$0xff] %v945_v41  ;;  %v951_v44 = vld [vmem:[%s6306_s27 + $0x1440] sm:$0xff] }
  0xe8   : > { %948 = vst [vmem:[%s6311_s10 + $0xa10] sm:$0xff] %v947_v42  ;;  %950 = vst [vmem:[%s6311_s10 + $0xa18] sm:$0xff] %v949_v43  ;;  %v953_v45 = vld [vmem:[%s6306_s27 + $0x1448] sm:$0xff]  ;;  %v955_v46 = vld [vmem:[%s6306_s27 + $0x1450] sm:$0xff] }
  0xe9   : > { %952 = vst [vmem:[%s6311_s10 + $0xa20] sm:$0xff] %v951_v44  ;;  %954 = vst [vmem:[%s6311_s10 + $0xa28] sm:$0xff] %v953_v45  ;;  %v957_v47 = vld [vmem:[%s6306_s27 + $0x1458] sm:$0xff]  ;;  %v959_v48 = vld [vmem:[%s6306_s27 + $0x1480] sm:$0xff] }
  0xea   : > { %956 = vst [vmem:[%s6311_s10 + $0xa30] sm:$0xff] %v955_v46  ;;  %v961_v49 = vld [vmem:[%s6306_s27 + $0x1488] sm:$0xff]  ;;  %958 = vst [vmem:[%s6311_s10 + $0xa38] sm:$0xff] %v957_v47  ;;  %v963_v50 = vld [vmem:[%s6306_s27 + $0x1490] sm:$0xff] }
  0xeb   : > { %960 = vst [vmem:[%s6311_s10 + $0xa40] sm:$0xff] %v959_v48  ;;  %962 = vst [vmem:[%s6311_s10 + $0xa48] sm:$0xff] %v961_v49  ;;  %v965_v51 = vld [vmem:[%s6306_s27 + $0x1498] sm:$0xff]  ;;  %v967_v52 = vld [vmem:[%s6306_s27 + $0x14c0] sm:$0xff] }
  0xec   : > { %964 = vst [vmem:[%s6311_s10 + $0xa50] sm:$0xff] %v963_v50  ;;  %966 = vst [vmem:[%s6311_s10 + $0xa58] sm:$0xff] %v965_v51  ;;  %v969_v53 = vld [vmem:[%s6306_s27 + $0x14c8] sm:$0xff]  ;;  %v971_v54 = vld [vmem:[%s6306_s27 + $0x14d0] sm:$0xff] }
  0xed   : > { %968 = vst [vmem:[%s6311_s10 + $0xa60] sm:$0xff] %v967_v52  ;;  %v973_v55 = vld [vmem:[%s6306_s27 + $0x14d8] sm:$0xff]  ;;  %970 = vst [vmem:[%s6311_s10 + $0xa68] sm:$0xff] %v969_v53  ;;  %v975_v56 = vld [vmem:[%s6306_s27 + $0x1500] sm:$0xff] }
  0xee   : > { %972 = vst [vmem:[%s6311_s10 + $0xa70] sm:$0xff] %v971_v54  ;;  %974 = vst [vmem:[%s6311_s10 + $0xa78] sm:$0xff] %v973_v55  ;;  %v977_v57 = vld [vmem:[%s6306_s27 + $0x1508] sm:$0xff]  ;;  %v979_v58 = vld [vmem:[%s6306_s27 + $0x1510] sm:$0xff] }
  0xef   : > { %976 = vst [vmem:[%s6311_s10 + $0xa80] sm:$0xff] %v975_v56  ;;  %978 = vst [vmem:[%s6311_s10 + $0xa88] sm:$0xff] %v977_v57  ;;  %v981_v59 = vld [vmem:[%s6306_s27 + $0x1518] sm:$0xff]  ;;  %v983_v60 = vld [vmem:[%s6306_s27 + $0x1540] sm:$0xff] }
  0xf0   : > { %980 = vst [vmem:[%s6311_s10 + $0xa90] sm:$0xff] %v979_v58  ;;  %v985_v61 = vld [vmem:[%s6306_s27 + $0x1548] sm:$0xff]  ;;  %982 = vst [vmem:[%s6311_s10 + $0xa98] sm:$0xff] %v981_v59  ;;  %v987_v62 = vld [vmem:[%s6306_s27 + $0x1550] sm:$0xff] }
  0xf1   : > { %984 = vst [vmem:[%s6311_s10 + $0xaa0] sm:$0xff] %v983_v60  ;;  %986 = vst [vmem:[%s6311_s10 + $0xaa8] sm:$0xff] %v985_v61  ;;  %v989_v63 = vld [vmem:[%s6306_s27 + $0x1558] sm:$0xff]  ;;  %v991_v0 = vld [vmem:[%s6306_s27 + $0x1580] sm:$0xff] }
  0xf2   : > { %988 = vst [vmem:[%s6311_s10 + $0xab0] sm:$0xff] %v987_v62  ;;  %990 = vst [vmem:[%s6311_s10 + $0xab8] sm:$0xff] %v989_v63  ;;  %v993_v1 = vld [vmem:[%s6306_s27 + $0x1588] sm:$0xff]  ;;  %v995_v2 = vld [vmem:[%s6306_s27 + $0x1590] sm:$0xff] }
  0xf3   : > { %992 = vst [vmem:[%s6311_s10 + $0xac0] sm:$0xff] %v991_v0  ;;  %v997_v3 = vld [vmem:[%s6306_s27 + $0x1598] sm:$0xff]  ;;  %994 = vst [vmem:[%s6311_s10 + $0xac8] sm:$0xff] %v993_v1  ;;  %v999_v4 = vld [vmem:[%s6306_s27 + $0x15c0] sm:$0xff] }
  0xf4   : > { %996 = vst [vmem:[%s6311_s10 + $0xad0] sm:$0xff] %v995_v2  ;;  %998 = vst [vmem:[%s6311_s10 + $0xad8] sm:$0xff] %v997_v3  ;;  %v1001_v5 = vld [vmem:[%s6306_s27 + $0x15c8] sm:$0xff]  ;;  %v1003_v6 = vld [vmem:[%s6306_s27 + $0x15d0] sm:$0xff] }
  0xf5   : > { %1000 = vst [vmem:[%s6311_s10 + $0xae0] sm:$0xff] %v999_v4  ;;  %1002 = vst [vmem:[%s6311_s10 + $0xae8] sm:$0xff] %v1001_v5  ;;  %v1005_v7 = vld [vmem:[%s6306_s27 + $0x15d8] sm:$0xff]  ;;  %v1007_v8 = vld [vmem:[%s6306_s27 + $0x1600] sm:$0xff] }
  0xf6   : > { %1004 = vst [vmem:[%s6311_s10 + $0xaf0] sm:$0xff] %v1003_v6  ;;  %v1009_v9 = vld [vmem:[%s6306_s27 + $0x1608] sm:$0xff]  ;;  %1006 = vst [vmem:[%s6311_s10 + $0xaf8] sm:$0xff] %v1005_v7  ;;  %v1011_v10 = vld [vmem:[%s6306_s27 + $0x1610] sm:$0xff] }
  0xf7   : > { %1008 = vst [vmem:[%s6311_s10 + $0xb00] sm:$0xff] %v1007_v8  ;;  %1010 = vst [vmem:[%s6311_s10 + $0xb08] sm:$0xff] %v1009_v9  ;;  %v1013_v11 = vld [vmem:[%s6306_s27 + $0x1618] sm:$0xff]  ;;  %v1015_v12 = vld [vmem:[%s6306_s27 + $0x1640] sm:$0xff] }
  0xf8   : > { %1012 = vst [vmem:[%s6311_s10 + $0xb10] sm:$0xff] %v1011_v10  ;;  %1014 = vst [vmem:[%s6311_s10 + $0xb18] sm:$0xff] %v1013_v11  ;;  %v1017_v13 = vld [vmem:[%s6306_s27 + $0x1648] sm:$0xff]  ;;  %v1019_v14 = vld [vmem:[%s6306_s27 + $0x1650] sm:$0xff] }
  0xf9   : > { %1016 = vst [vmem:[%s6311_s10 + $0xb20] sm:$0xff] %v1015_v12  ;;  %v1021_v15 = vld [vmem:[%s6306_s27 + $0x1658] sm:$0xff]  ;;  %1018 = vst [vmem:[%s6311_s10 + $0xb28] sm:$0xff] %v1017_v13  ;;  %v1023_v16 = vld [vmem:[%s6306_s27 + $0x1680] sm:$0xff] }
  0xfa   : > { %1020 = vst [vmem:[%s6311_s10 + $0xb30] sm:$0xff] %v1019_v14  ;;  %1022 = vst [vmem:[%s6311_s10 + $0xb38] sm:$0xff] %v1021_v15  ;;  %v1025_v17 = vld [vmem:[%s6306_s27 + $0x1688] sm:$0xff]  ;;  %v1027_v18 = vld [vmem:[%s6306_s27 + $0x1690] sm:$0xff] }
  0xfb   : > { %1024 = vst [vmem:[%s6311_s10 + $0xb40] sm:$0xff] %v1023_v16  ;;  %1026 = vst [vmem:[%s6311_s10 + $0xb48] sm:$0xff] %v1025_v17  ;;  %v1029_v19 = vld [vmem:[%s6306_s27 + $0x1698] sm:$0xff]  ;;  %v1031_v20 = vld [vmem:[%s6306_s27 + $0x16c0] sm:$0xff] }
  0xfc   : > { %1028 = vst [vmem:[%s6311_s10 + $0xb50] sm:$0xff] %v1027_v18  ;;  %v1033_v21 = vld [vmem:[%s6306_s27 + $0x16c8] sm:$0xff]  ;;  %1030 = vst [vmem:[%s6311_s10 + $0xb58] sm:$0xff] %v1029_v19  ;;  %v1035_v22 = vld [vmem:[%s6306_s27 + $0x16d0] sm:$0xff] }
  0xfd   : > { %1032 = vst [vmem:[%s6311_s10 + $0xb60] sm:$0xff] %v1031_v20  ;;  %1034 = vst [vmem:[%s6311_s10 + $0xb68] sm:$0xff] %v1033_v21  ;;  %v1037_v23 = vld [vmem:[%s6306_s27 + $0x16d8] sm:$0xff]  ;;  %v1039_v24 = vld [vmem:[%s6306_s27 + $0x1700] sm:$0xff] }
  0xfe   : > { %1036 = vst [vmem:[%s6311_s10 + $0xb70] sm:$0xff] %v1035_v22  ;;  %1038 = vst [vmem:[%s6311_s10 + $0xb78] sm:$0xff] %v1037_v23  ;;  %v1041_v25 = vld [vmem:[%s6306_s27 + $0x1708] sm:$0xff]  ;;  %v1043_v26 = vld [vmem:[%s6306_s27 + $0x1710] sm:$0xff] }
  0xff   : > { %1040 = vst [vmem:[%s6311_s10 + $0xb80] sm:$0xff] %v1039_v24  ;;  %v1045_v27 = vld [vmem:[%s6306_s27 + $0x1718] sm:$0xff]  ;;  %1042 = vst [vmem:[%s6311_s10 + $0xb88] sm:$0xff] %v1041_v25  ;;  %v1047_v28 = vld [vmem:[%s6306_s27 + $0x1740] sm:$0xff] }
 0x100   : > { %1044 = vst [vmem:[%s6311_s10 + $0xb90] sm:$0xff] %v1043_v26  ;;  %1046 = vst [vmem:[%s6311_s10 + $0xb98] sm:$0xff] %v1045_v27  ;;  %v1049_v29 = vld [vmem:[%s6306_s27 + $0x1748] sm:$0xff]  ;;  %v1051_v30 = vld [vmem:[%s6306_s27 + $0x1750] sm:$0xff] }
 0x101   : > { %1048 = vst [vmem:[%s6311_s10 + $0xba0] sm:$0xff] %v1047_v28  ;;  %1050 = vst [vmem:[%s6311_s10 + $0xba8] sm:$0xff] %v1049_v29  ;;  %v1053_v31 = vld [vmem:[%s6306_s27 + $0x1758] sm:$0xff]  ;;  %v1055_v32 = vld [vmem:[%s6306_s27 + $0x1780] sm:$0xff] }
 0x102   : > { %1052 = vst [vmem:[%s6311_s10 + $0xbb0] sm:$0xff] %v1051_v30  ;;  %v1057_v33 = vld [vmem:[%s6306_s27 + $0x1788] sm:$0xff]  ;;  %1054 = vst [vmem:[%s6311_s10 + $0xbb8] sm:$0xff] %v1053_v31  ;;  %v1059_v34 = vld [vmem:[%s6306_s27 + $0x1790] sm:$0xff] }
 0x103   : > { %1056 = vst [vmem:[%s6311_s10 + $0xbc0] sm:$0xff] %v1055_v32  ;;  %1058 = vst [vmem:[%s6311_s10 + $0xbc8] sm:$0xff] %v1057_v33  ;;  %v1061_v35 = vld [vmem:[%s6306_s27 + $0x1798] sm:$0xff]  ;;  %v1063_v36 = vld [vmem:[%s6306_s27 + $0x17c0] sm:$0xff] }
 0x104   : > { %1060 = vst [vmem:[%s6311_s10 + $0xbd0] sm:$0xff] %v1059_v34  ;;  %1062 = vst [vmem:[%s6311_s10 + $0xbd8] sm:$0xff] %v1061_v35  ;;  %v1065_v37 = vld [vmem:[%s6306_s27 + $0x17c8] sm:$0xff]  ;;  %v1067_v38 = vld [vmem:[%s6306_s27 + $0x17d0] sm:$0xff] }
 0x105   : > { %1064 = vst [vmem:[%s6311_s10 + $0xbe0] sm:$0xff] %v1063_v36  ;;  %v1069_v39 = vld [vmem:[%s6306_s27 + $0x17d8] sm:$0xff]  ;;  %1066 = vst [vmem:[%s6311_s10 + $0xbe8] sm:$0xff] %v1065_v37  ;;  %v1071_v40 = vld [vmem:[%s6306_s27 + $0x1800] sm:$0xff] }
 0x106   : > { %1068 = vst [vmem:[%s6311_s10 + $0xbf0] sm:$0xff] %v1067_v38  ;;  %1070 = vst [vmem:[%s6311_s10 + $0xbf8] sm:$0xff] %v1069_v39  ;;  %v1073_v41 = vld [vmem:[%s6306_s27 + $0x1808] sm:$0xff]  ;;  %v1075_v42 = vld [vmem:[%s6306_s27 + $0x1810] sm:$0xff] }
 0x107   : > { %1072 = vst [vmem:[%s6311_s10 + $0xc00] sm:$0xff] %v1071_v40  ;;  %1074 = vst [vmem:[%s6311_s10 + $0xc08] sm:$0xff] %v1073_v41  ;;  %v1077_v43 = vld [vmem:[%s6306_s27 + $0x1818] sm:$0xff]  ;;  %v1079_v44 = vld [vmem:[%s6306_s27 + $0x1840] sm:$0xff] }
 0x108   : > { %1076 = vst [vmem:[%s6311_s10 + $0xc10] sm:$0xff] %v1075_v42  ;;  %v1081_v45 = vld [vmem:[%s6306_s27 + $0x1848] sm:$0xff]  ;;  %1078 = vst [vmem:[%s6311_s10 + $0xc18] sm:$0xff] %v1077_v43  ;;  %v1083_v46 = vld [vmem:[%s6306_s27 + $0x1850] sm:$0xff] }
 0x109   : > { %1080 = vst [vmem:[%s6311_s10 + $0xc20] sm:$0xff] %v1079_v44  ;;  %1082 = vst [vmem:[%s6311_s10 + $0xc28] sm:$0xff] %v1081_v45  ;;  %v1085_v47 = vld [vmem:[%s6306_s27 + $0x1858] sm:$0xff]  ;;  %v1087_v48 = vld [vmem:[%s6306_s27 + $0x1880] sm:$0xff] }
 0x10a   : > { %1084 = vst [vmem:[%s6311_s10 + $0xc30] sm:$0xff] %v1083_v46  ;;  %1086 = vst [vmem:[%s6311_s10 + $0xc38] sm:$0xff] %v1085_v47  ;;  %v1089_v49 = vld [vmem:[%s6306_s27 + $0x1888] sm:$0xff]  ;;  %v1091_v50 = vld [vmem:[%s6306_s27 + $0x1890] sm:$0xff] }
 0x10b   : > { %1088 = vst [vmem:[%s6311_s10 + $0xc40] sm:$0xff] %v1087_v48  ;;  %v1093_v51 = vld [vmem:[%s6306_s27 + $0x1898] sm:$0xff]  ;;  %1090 = vst [vmem:[%s6311_s10 + $0xc48] sm:$0xff] %v1089_v49  ;;  %v1095_v52 = vld [vmem:[%s6306_s27 + $0x18c0] sm:$0xff] }
 0x10c   : > { %1092 = vst [vmem:[%s6311_s10 + $0xc50] sm:$0xff] %v1091_v50  ;;  %1094 = vst [vmem:[%s6311_s10 + $0xc58] sm:$0xff] %v1093_v51  ;;  %v1097_v53 = vld [vmem:[%s6306_s27 + $0x18c8] sm:$0xff]  ;;  %v1099_v54 = vld [vmem:[%s6306_s27 + $0x18d0] sm:$0xff] }
 0x10d   : > { %1096 = vst [vmem:[%s6311_s10 + $0xc60] sm:$0xff] %v1095_v52  ;;  %1098 = vst [vmem:[%s6311_s10 + $0xc68] sm:$0xff] %v1097_v53  ;;  %v1101_v55 = vld [vmem:[%s6306_s27 + $0x18d8] sm:$0xff]  ;;  %v1103_v56 = vld [vmem:[%s6306_s27 + $0x1900] sm:$0xff] }
 0x10e   : > { %1100 = vst [vmem:[%s6311_s10 + $0xc70] sm:$0xff] %v1099_v54  ;;  %v1105_v57 = vld [vmem:[%s6306_s27 + $0x1908] sm:$0xff]  ;;  %1102 = vst [vmem:[%s6311_s10 + $0xc78] sm:$0xff] %v1101_v55  ;;  %v1107_v58 = vld [vmem:[%s6306_s27 + $0x1910] sm:$0xff] }
 0x10f   : > { %1104 = vst [vmem:[%s6311_s10 + $0xc80] sm:$0xff] %v1103_v56  ;;  %1106 = vst [vmem:[%s6311_s10 + $0xc88] sm:$0xff] %v1105_v57  ;;  %v1109_v59 = vld [vmem:[%s6306_s27 + $0x1918] sm:$0xff]  ;;  %v1111_v60 = vld [vmem:[%s6306_s27 + $0x1940] sm:$0xff] }
 0x110   : > { %1108 = vst [vmem:[%s6311_s10 + $0xc90] sm:$0xff] %v1107_v58  ;;  %1110 = vst [vmem:[%s6311_s10 + $0xc98] sm:$0xff] %v1109_v59  ;;  %v1113_v61 = vld [vmem:[%s6306_s27 + $0x1948] sm:$0xff]  ;;  %v1115_v62 = vld [vmem:[%s6306_s27 + $0x1950] sm:$0xff] }
 0x111   : > { %1112 = vst [vmem:[%s6311_s10 + $0xca0] sm:$0xff] %v1111_v60  ;;  %v1117_v63 = vld [vmem:[%s6306_s27 + $0x1958] sm:$0xff]  ;;  %1114 = vst [vmem:[%s6311_s10 + $0xca8] sm:$0xff] %v1113_v61  ;;  %v1119_v0 = vld [vmem:[%s6306_s27 + $0x1980] sm:$0xff] }
 0x112   : > { %1116 = vst [vmem:[%s6311_s10 + $0xcb0] sm:$0xff] %v1115_v62  ;;  %1118 = vst [vmem:[%s6311_s10 + $0xcb8] sm:$0xff] %v1117_v63  ;;  %v1121_v1 = vld [vmem:[%s6306_s27 + $0x1988] sm:$0xff]  ;;  %v1123_v2 = vld [vmem:[%s6306_s27 + $0x1990] sm:$0xff] }
 0x113   : > { %1120 = vst [vmem:[%s6311_s10 + $0xcc0] sm:$0xff] %v1119_v0  ;;  %1122 = vst [vmem:[%s6311_s10 + $0xcc8] sm:$0xff] %v1121_v1  ;;  %v1125_v3 = vld [vmem:[%s6306_s27 + $0x1998] sm:$0xff]  ;;  %v1127_v4 = vld [vmem:[%s6306_s27 + $0x19c0] sm:$0xff] }
 0x114   : > { %1124 = vst [vmem:[%s6311_s10 + $0xcd0] sm:$0xff] %v1123_v2  ;;  %v1129_v5 = vld [vmem:[%s6306_s27 + $0x19c8] sm:$0xff]  ;;  %1126 = vst [vmem:[%s6311_s10 + $0xcd8] sm:$0xff] %v1125_v3  ;;  %v1131_v6 = vld [vmem:[%s6306_s27 + $0x19d0] sm:$0xff] }
 0x115   : > { %1128 = vst [vmem:[%s6311_s10 + $0xce0] sm:$0xff] %v1127_v4  ;;  %1130 = vst [vmem:[%s6311_s10 + $0xce8] sm:$0xff] %v1129_v5  ;;  %v1133_v7 = vld [vmem:[%s6306_s27 + $0x19d8] sm:$0xff]  ;;  %v1135_v8 = vld [vmem:[%s6306_s27 + $0x1a00] sm:$0xff] }
 0x116   : > { %1132 = vst [vmem:[%s6311_s10 + $0xcf0] sm:$0xff] %v1131_v6  ;;  %1134 = vst [vmem:[%s6311_s10 + $0xcf8] sm:$0xff] %v1133_v7  ;;  %v1137_v9 = vld [vmem:[%s6306_s27 + $0x1a08] sm:$0xff]  ;;  %v1139_v10 = vld [vmem:[%s6306_s27 + $0x1a10] sm:$0xff] }
 0x117   : > { %1136 = vst [vmem:[%s6311_s10 + $0xd00] sm:$0xff] %v1135_v8  ;;  %v1141_v11 = vld [vmem:[%s6306_s27 + $0x1a18] sm:$0xff]  ;;  %1138 = vst [vmem:[%s6311_s10 + $0xd08] sm:$0xff] %v1137_v9  ;;  %v1143_v12 = vld [vmem:[%s6306_s27 + $0x1a40] sm:$0xff] }
 0x118   : > { %1140 = vst [vmem:[%s6311_s10 + $0xd10] sm:$0xff] %v1139_v10  ;;  %1142 = vst [vmem:[%s6311_s10 + $0xd18] sm:$0xff] %v1141_v11  ;;  %v1145_v13 = vld [vmem:[%s6306_s27 + $0x1a48] sm:$0xff]  ;;  %v1147_v14 = vld [vmem:[%s6306_s27 + $0x1a50] sm:$0xff] }
 0x119   : > { %1144 = vst [vmem:[%s6311_s10 + $0xd20] sm:$0xff] %v1143_v12  ;;  %1146 = vst [vmem:[%s6311_s10 + $0xd28] sm:$0xff] %v1145_v13  ;;  %v1149_v15 = vld [vmem:[%s6306_s27 + $0x1a58] sm:$0xff]  ;;  %v1151_v16 = vld [vmem:[%s6306_s27 + $0x1a80] sm:$0xff] }
 0x11a   : > { %1148 = vst [vmem:[%s6311_s10 + $0xd30] sm:$0xff] %v1147_v14  ;;  %v1153_v17 = vld [vmem:[%s6306_s27 + $0x1a88] sm:$0xff]  ;;  %1150 = vst [vmem:[%s6311_s10 + $0xd38] sm:$0xff] %v1149_v15  ;;  %v1155_v18 = vld [vmem:[%s6306_s27 + $0x1a90] sm:$0xff] }
 0x11b   : > { %1152 = vst [vmem:[%s6311_s10 + $0xd40] sm:$0xff] %v1151_v16  ;;  %1154 = vst [vmem:[%s6311_s10 + $0xd48] sm:$0xff] %v1153_v17  ;;  %v1157_v19 = vld [vmem:[%s6306_s27 + $0x1a98] sm:$0xff]  ;;  %v1159_v20 = vld [vmem:[%s6306_s27 + $0x1ac0] sm:$0xff] }
 0x11c   : > { %1156 = vst [vmem:[%s6311_s10 + $0xd50] sm:$0xff] %v1155_v18  ;;  %1158 = vst [vmem:[%s6311_s10 + $0xd58] sm:$0xff] %v1157_v19  ;;  %v1161_v21 = vld [vmem:[%s6306_s27 + $0x1ac8] sm:$0xff]  ;;  %v1163_v22 = vld [vmem:[%s6306_s27 + $0x1ad0] sm:$0xff] }
 0x11d   : > { %1160 = vst [vmem:[%s6311_s10 + $0xd60] sm:$0xff] %v1159_v20  ;;  %v1165_v23 = vld [vmem:[%s6306_s27 + $0x1ad8] sm:$0xff]  ;;  %1162 = vst [vmem:[%s6311_s10 + $0xd68] sm:$0xff] %v1161_v21  ;;  %v1167_v24 = vld [vmem:[%s6306_s27 + $0x1b00] sm:$0xff] }
 0x11e   : > { %1164 = vst [vmem:[%s6311_s10 + $0xd70] sm:$0xff] %v1163_v22  ;;  %1166 = vst [vmem:[%s6311_s10 + $0xd78] sm:$0xff] %v1165_v23  ;;  %v1169_v25 = vld [vmem:[%s6306_s27 + $0x1b08] sm:$0xff]  ;;  %v1171_v26 = vld [vmem:[%s6306_s27 + $0x1b10] sm:$0xff] }
 0x11f   : > { %1168 = vst [vmem:[%s6311_s10 + $0xd80] sm:$0xff] %v1167_v24  ;;  %1170 = vst [vmem:[%s6311_s10 + $0xd88] sm:$0xff] %v1169_v25  ;;  %v1173_v27 = vld [vmem:[%s6306_s27 + $0x1b18] sm:$0xff]  ;;  %v1175_v28 = vld [vmem:[%s6306_s27 + $0x1b40] sm:$0xff] }
 0x120   : > { %1172 = vst [vmem:[%s6311_s10 + $0xd90] sm:$0xff] %v1171_v26  ;;  %v1177_v29 = vld [vmem:[%s6306_s27 + $0x1b48] sm:$0xff]  ;;  %1174 = vst [vmem:[%s6311_s10 + $0xd98] sm:$0xff] %v1173_v27  ;;  %v1179_v30 = vld [vmem:[%s6306_s27 + $0x1b50] sm:$0xff] }
 0x121   : > { %1176 = vst [vmem:[%s6311_s10 + $0xda0] sm:$0xff] %v1175_v28  ;;  %1178 = vst [vmem:[%s6311_s10 + $0xda8] sm:$0xff] %v1177_v29  ;;  %v1181_v31 = vld [vmem:[%s6306_s27 + $0x1b58] sm:$0xff]  ;;  %v1183_v32 = vld [vmem:[%s6306_s27 + $0x1b80] sm:$0xff] }
 0x122   : > { %1180 = vst [vmem:[%s6311_s10 + $0xdb0] sm:$0xff] %v1179_v30  ;;  %1182 = vst [vmem:[%s6311_s10 + $0xdb8] sm:$0xff] %v1181_v31  ;;  %v1185_v33 = vld [vmem:[%s6306_s27 + $0x1b88] sm:$0xff]  ;;  %v1187_v34 = vld [vmem:[%s6306_s27 + $0x1b90] sm:$0xff] }
 0x123   : > { %1184 = vst [vmem:[%s6311_s10 + $0xdc0] sm:$0xff] %v1183_v32  ;;  %v1189_v35 = vld [vmem:[%s6306_s27 + $0x1b98] sm:$0xff]  ;;  %1186 = vst [vmem:[%s6311_s10 + $0xdc8] sm:$0xff] %v1185_v33  ;;  %v1191_v36 = vld [vmem:[%s6306_s27 + $0x1bc0] sm:$0xff] }
 0x124   : > { %1188 = vst [vmem:[%s6311_s10 + $0xdd0] sm:$0xff] %v1187_v34  ;;  %1190 = vst [vmem:[%s6311_s10 + $0xdd8] sm:$0xff] %v1189_v35  ;;  %v1193_v37 = vld [vmem:[%s6306_s27 + $0x1bc8] sm:$0xff]  ;;  %v1195_v38 = vld [vmem:[%s6306_s27 + $0x1bd0] sm:$0xff] }
 0x125   : > { %1192 = vst [vmem:[%s6311_s10 + $0xde0] sm:$0xff] %v1191_v36  ;;  %1194 = vst [vmem:[%s6311_s10 + $0xde8] sm:$0xff] %v1193_v37  ;;  %v1197_v39 = vld [vmem:[%s6306_s27 + $0x1bd8] sm:$0xff]  ;;  %v1199_v40 = vld [vmem:[%s6306_s27 + $0x1c00] sm:$0xff] }
 0x126   : > { %1196 = vst [vmem:[%s6311_s10 + $0xdf0] sm:$0xff] %v1195_v38  ;;  %v1201_v41 = vld [vmem:[%s6306_s27 + $0x1c08] sm:$0xff]  ;;  %1198 = vst [vmem:[%s6311_s10 + $0xdf8] sm:$0xff] %v1197_v39  ;;  %v1203_v42 = vld [vmem:[%s6306_s27 + $0x1c10] sm:$0xff] }
 0x127   : > { %1200 = vst [vmem:[%s6311_s10 + $0xe00] sm:$0xff] %v1199_v40  ;;  %1202 = vst [vmem:[%s6311_s10 + $0xe08] sm:$0xff] %v1201_v41  ;;  %v1205_v43 = vld [vmem:[%s6306_s27 + $0x1c18] sm:$0xff]  ;;  %v1207_v44 = vld [vmem:[%s6306_s27 + $0x1c40] sm:$0xff] }
 0x128   : > { %1204 = vst [vmem:[%s6311_s10 + $0xe10] sm:$0xff] %v1203_v42  ;;  %1206 = vst [vmem:[%s6311_s10 + $0xe18] sm:$0xff] %v1205_v43  ;;  %v1209_v45 = vld [vmem:[%s6306_s27 + $0x1c48] sm:$0xff]  ;;  %v1211_v46 = vld [vmem:[%s6306_s27 + $0x1c50] sm:$0xff] }
 0x129   : > { %1208 = vst [vmem:[%s6311_s10 + $0xe20] sm:$0xff] %v1207_v44  ;;  %v1213_v47 = vld [vmem:[%s6306_s27 + $0x1c58] sm:$0xff]  ;;  %1210 = vst [vmem:[%s6311_s10 + $0xe28] sm:$0xff] %v1209_v45  ;;  %v1215_v48 = vld [vmem:[%s6306_s27 + $0x1c80] sm:$0xff] }
 0x12a   : > { %1212 = vst [vmem:[%s6311_s10 + $0xe30] sm:$0xff] %v1211_v46  ;;  %1214 = vst [vmem:[%s6311_s10 + $0xe38] sm:$0xff] %v1213_v47  ;;  %v1217_v49 = vld [vmem:[%s6306_s27 + $0x1c88] sm:$0xff]  ;;  %v1219_v50 = vld [vmem:[%s6306_s27 + $0x1c90] sm:$0xff] }
 0x12b   : > { %1216 = vst [vmem:[%s6311_s10 + $0xe40] sm:$0xff] %v1215_v48  ;;  %1218 = vst [vmem:[%s6311_s10 + $0xe48] sm:$0xff] %v1217_v49  ;;  %v1221_v51 = vld [vmem:[%s6306_s27 + $0x1c98] sm:$0xff]  ;;  %v1223_v52 = vld [vmem:[%s6306_s27 + $0x1cc0] sm:$0xff] }
 0x12c   : > { %1220 = vst [vmem:[%s6311_s10 + $0xe50] sm:$0xff] %v1219_v50  ;;  %v1225_v53 = vld [vmem:[%s6306_s27 + $0x1cc8] sm:$0xff]  ;;  %1222 = vst [vmem:[%s6311_s10 + $0xe58] sm:$0xff] %v1221_v51  ;;  %v1227_v54 = vld [vmem:[%s6306_s27 + $0x1cd0] sm:$0xff] }
 0x12d   : > { %1224 = vst [vmem:[%s6311_s10 + $0xe60] sm:$0xff] %v1223_v52  ;;  %1226 = vst [vmem:[%s6311_s10 + $0xe68] sm:$0xff] %v1225_v53  ;;  %v1229_v55 = vld [vmem:[%s6306_s27 + $0x1cd8] sm:$0xff]  ;;  %v1231_v56 = vld [vmem:[%s6306_s27 + $0x1d00] sm:$0xff] }
 0x12e   : > { %1228 = vst [vmem:[%s6311_s10 + $0xe70] sm:$0xff] %v1227_v54  ;;  %1230 = vst [vmem:[%s6311_s10 + $0xe78] sm:$0xff] %v1229_v55  ;;  %v1233_v57 = vld [vmem:[%s6306_s27 + $0x1d08] sm:$0xff]  ;;  %v1235_v58 = vld [vmem:[%s6306_s27 + $0x1d10] sm:$0xff] }
 0x12f   : > { %1232 = vst [vmem:[%s6311_s10 + $0xe80] sm:$0xff] %v1231_v56  ;;  %v1237_v59 = vld [vmem:[%s6306_s27 + $0x1d18] sm:$0xff]  ;;  %1234 = vst [vmem:[%s6311_s10 + $0xe88] sm:$0xff] %v1233_v57  ;;  %v1239_v60 = vld [vmem:[%s6306_s27 + $0x1d40] sm:$0xff] }
 0x130   : > { %1236 = vst [vmem:[%s6311_s10 + $0xe90] sm:$0xff] %v1235_v58  ;;  %1238 = vst [vmem:[%s6311_s10 + $0xe98] sm:$0xff] %v1237_v59  ;;  %v1241_v61 = vld [vmem:[%s6306_s27 + $0x1d48] sm:$0xff]  ;;  %v1243_v62 = vld [vmem:[%s6306_s27 + $0x1d50] sm:$0xff] }
 0x131   : > { %1240 = vst [vmem:[%s6311_s10 + $0xea0] sm:$0xff] %v1239_v60  ;;  %1242 = vst [vmem:[%s6311_s10 + $0xea8] sm:$0xff] %v1241_v61  ;;  %v1245_v63 = vld [vmem:[%s6306_s27 + $0x1d58] sm:$0xff]  ;;  %v1247_v0 = vld [vmem:[%s6306_s27 + $0x1d80] sm:$0xff] }
 0x132   : > { %1244 = vst [vmem:[%s6311_s10 + $0xeb0] sm:$0xff] %v1243_v62  ;;  %v1249_v1 = vld [vmem:[%s6306_s27 + $0x1d88] sm:$0xff]  ;;  %1246 = vst [vmem:[%s6311_s10 + $0xeb8] sm:$0xff] %v1245_v63  ;;  %v1251_v2 = vld [vmem:[%s6306_s27 + $0x1d90] sm:$0xff] }
 0x133   : > { %1248 = vst [vmem:[%s6311_s10 + $0xec0] sm:$0xff] %v1247_v0  ;;  %1250 = vst [vmem:[%s6311_s10 + $0xec8] sm:$0xff] %v1249_v1  ;;  %v1253_v3 = vld [vmem:[%s6306_s27 + $0x1d98] sm:$0xff]  ;;  %v1255_v4 = vld [vmem:[%s6306_s27 + $0x1dc0] sm:$0xff] }
 0x134   : > { %1252 = vst [vmem:[%s6311_s10 + $0xed0] sm:$0xff] %v1251_v2  ;;  %1254 = vst [vmem:[%s6311_s10 + $0xed8] sm:$0xff] %v1253_v3  ;;  %v1257_v5 = vld [vmem:[%s6306_s27 + $0x1dc8] sm:$0xff]  ;;  %v1259_v6 = vld [vmem:[%s6306_s27 + $0x1dd0] sm:$0xff] }
 0x135   : > { %1256 = vst [vmem:[%s6311_s10 + $0xee0] sm:$0xff] %v1255_v4  ;;  %v1261_v7 = vld [vmem:[%s6306_s27 + $0x1dd8] sm:$0xff]  ;;  %1258 = vst [vmem:[%s6311_s10 + $0xee8] sm:$0xff] %v1257_v5  ;;  %v1263_v8 = vld [vmem:[%s6306_s27 + $0x1e00] sm:$0xff] }
 0x136   : > { %1260 = vst [vmem:[%s6311_s10 + $0xef0] sm:$0xff] %v1259_v6  ;;  %1262 = vst [vmem:[%s6311_s10 + $0xef8] sm:$0xff] %v1261_v7  ;;  %v1265_v9 = vld [vmem:[%s6306_s27 + $0x1e08] sm:$0xff]  ;;  %v1267_v10 = vld [vmem:[%s6306_s27 + $0x1e10] sm:$0xff] }
 0x137   : > { %1264 = vst [vmem:[%s6311_s10 + $0xf00] sm:$0xff] %v1263_v8  ;;  %1266 = vst [vmem:[%s6311_s10 + $0xf08] sm:$0xff] %v1265_v9  ;;  %v1269_v11 = vld [vmem:[%s6306_s27 + $0x1e18] sm:$0xff]  ;;  %v1271_v12 = vld [vmem:[%s6306_s27 + $0x1e40] sm:$0xff] }
 0x138   : > { %1268 = vst [vmem:[%s6311_s10 + $0xf10] sm:$0xff] %v1267_v10  ;;  %v1273_v13 = vld [vmem:[%s6306_s27 + $0x1e48] sm:$0xff]  ;;  %1270 = vst [vmem:[%s6311_s10 + $0xf18] sm:$0xff] %v1269_v11  ;;  %v1275_v14 = vld [vmem:[%s6306_s27 + $0x1e50] sm:$0xff] }
 0x139   : > { %1272 = vst [vmem:[%s6311_s10 + $0xf20] sm:$0xff] %v1271_v12  ;;  %1274 = vst [vmem:[%s6311_s10 + $0xf28] sm:$0xff] %v1273_v13  ;;  %v1277_v15 = vld [vmem:[%s6306_s27 + $0x1e58] sm:$0xff]  ;;  %v1279_v16 = vld [vmem:[%s6306_s27 + $0x1e80] sm:$0xff] }
 0x13a   : > { %1276 = vst [vmem:[%s6311_s10 + $0xf30] sm:$0xff] %v1275_v14  ;;  %1278 = vst [vmem:[%s6311_s10 + $0xf38] sm:$0xff] %v1277_v15  ;;  %v1281_v17 = vld [vmem:[%s6306_s27 + $0x1e88] sm:$0xff]  ;;  %v1283_v18 = vld [vmem:[%s6306_s27 + $0x1e90] sm:$0xff] }
 0x13b   : > { %1280 = vst [vmem:[%s6311_s10 + $0xf40] sm:$0xff] %v1279_v16  ;;  %v1285_v19 = vld [vmem:[%s6306_s27 + $0x1e98] sm:$0xff]  ;;  %1282 = vst [vmem:[%s6311_s10 + $0xf48] sm:$0xff] %v1281_v17  ;;  %v1287_v20 = vld [vmem:[%s6306_s27 + $0x1ec0] sm:$0xff] }
 0x13c   : > { %1284 = vst [vmem:[%s6311_s10 + $0xf50] sm:$0xff] %v1283_v18  ;;  %1286 = vst [vmem:[%s6311_s10 + $0xf58] sm:$0xff] %v1285_v19  ;;  %v1289_v21 = vld [vmem:[%s6306_s27 + $0x1ec8] sm:$0xff]  ;;  %v1291_v22 = vld [vmem:[%s6306_s27 + $0x1ed0] sm:$0xff] }
 0x13d   : > { %1288 = vst [vmem:[%s6311_s10 + $0xf60] sm:$0xff] %v1287_v20  ;;  %1290 = vst [vmem:[%s6311_s10 + $0xf68] sm:$0xff] %v1289_v21  ;;  %v1293_v23 = vld [vmem:[%s6306_s27 + $0x1ed8] sm:$0xff]  ;;  %v1295_v24 = vld [vmem:[%s6306_s27 + $0x1f00] sm:$0xff] }
 0x13e   : > { %1292 = vst [vmem:[%s6311_s10 + $0xf70] sm:$0xff] %v1291_v22  ;;  %v1297_v25 = vld [vmem:[%s6306_s27 + $0x1f08] sm:$0xff]  ;;  %1294 = vst [vmem:[%s6311_s10 + $0xf78] sm:$0xff] %v1293_v23  ;;  %v1299_v26 = vld [vmem:[%s6306_s27 + $0x1f10] sm:$0xff] }
 0x13f   : > { %1296 = vst [vmem:[%s6311_s10 + $0xf80] sm:$0xff] %v1295_v24  ;;  %1298 = vst [vmem:[%s6311_s10 + $0xf88] sm:$0xff] %v1297_v25  ;;  %v1301_v27 = vld [vmem:[%s6306_s27 + $0x1f18] sm:$0xff]  ;;  %v1303_v28 = vld [vmem:[%s6306_s27 + $0x1f40] sm:$0xff] }
 0x140   : > { %1300 = vst [vmem:[%s6311_s10 + $0xf90] sm:$0xff] %v1299_v26  ;;  %1302 = vst [vmem:[%s6311_s10 + $0xf98] sm:$0xff] %v1301_v27  ;;  %v1305_v29 = vld [vmem:[%s6306_s27 + $0x1f48] sm:$0xff]  ;;  %v1307_v30 = vld [vmem:[%s6306_s27 + $0x1f50] sm:$0xff] }
 0x141   : > { %1304 = vst [vmem:[%s6311_s10 + $0xfa0] sm:$0xff] %v1303_v28  ;;  %v1309_v31 = vld [vmem:[%s6306_s27 + $0x1f58] sm:$0xff]  ;;  %1306 = vst [vmem:[%s6311_s10 + $0xfa8] sm:$0xff] %v1305_v29  ;;  %v1311_v32 = vld [vmem:[%s6306_s27 + $0x1f80] sm:$0xff] }
 0x142   : > { %1308 = vst [vmem:[%s6311_s10 + $0xfb0] sm:$0xff] %v1307_v30  ;;  %1310 = vst [vmem:[%s6311_s10 + $0xfb8] sm:$0xff] %v1309_v31  ;;  %v1313_v33 = vld [vmem:[%s6306_s27 + $0x1f88] sm:$0xff]  ;;  %v1315_v34 = vld [vmem:[%s6306_s27 + $0x1f90] sm:$0xff] }
 0x143   : > { %1312 = vst [vmem:[%s6311_s10 + $0xfc0] sm:$0xff] %v1311_v32  ;;  %1314 = vst [vmem:[%s6311_s10 + $0xfc8] sm:$0xff] %v1313_v33  ;;  %v1317_v35 = vld [vmem:[%s6306_s27 + $0x1f98] sm:$0xff]  ;;  %v1319_v36 = vld [vmem:[%s6306_s27 + $0x1fc0] sm:$0xff] }
 0x144   : > { %1316 = vst [vmem:[%s6311_s10 + $0xfd0] sm:$0xff] %v1315_v34  ;;  %v1321_v37 = vld [vmem:[%s6306_s27 + $0x1fc8] sm:$0xff]  ;;  %1318 = vst [vmem:[%s6311_s10 + $0xfd8] sm:$0xff] %v1317_v35  ;;  %v1323_v38 = vld [vmem:[%s6306_s27 + $0x1fd0] sm:$0xff] }
 0x145   : > { %1320 = vst [vmem:[%s6311_s10 + $0xfe0] sm:$0xff] %v1319_v36  ;;  %1322 = vst [vmem:[%s6311_s10 + $0xfe8] sm:$0xff] %v1321_v37  ;;  %v1325_v39 = vld [vmem:[%s6306_s27 + $0x1fd8] sm:$0xff]  ;;  %v1327_v40 = vld [vmem:[%s6306_s27 + $0x2000] sm:$0xff] }
 0x146   : > { %1324 = vst [vmem:[%s6311_s10 + $0xff0] sm:$0xff] %v1323_v38  ;;  %1326 = vst [vmem:[%s6311_s10 + $0xff8] sm:$0xff] %v1325_v39  ;;  %v1329_v41 = vld [vmem:[%s6306_s27 + $0x2008] sm:$0xff]  ;;  %v1331_v42 = vld [vmem:[%s6306_s27 + $0x2010] sm:$0xff] }
 0x147   : > { %1328 = vst [vmem:[%s6311_s10 + $0x1000] sm:$0xff] %v1327_v40  ;;  %v1333_v43 = vld [vmem:[%s6306_s27 + $0x2018] sm:$0xff]  ;;  %1330 = vst [vmem:[%s6311_s10 + $0x1008] sm:$0xff] %v1329_v41  ;;  %v1335_v44 = vld [vmem:[%s6306_s27 + $0x2040] sm:$0xff] }
 0x148   : > { %1332 = vst [vmem:[%s6311_s10 + $0x1010] sm:$0xff] %v1331_v42  ;;  %1334 = vst [vmem:[%s6311_s10 + $0x1018] sm:$0xff] %v1333_v43  ;;  %v1337_v45 = vld [vmem:[%s6306_s27 + $0x2048] sm:$0xff]  ;;  %v1339_v46 = vld [vmem:[%s6306_s27 + $0x2050] sm:$0xff] }
 0x149   : > { %1336 = vst [vmem:[%s6311_s10 + $0x1020] sm:$0xff] %v1335_v44  ;;  %1338 = vst [vmem:[%s6311_s10 + $0x1028] sm:$0xff] %v1337_v45  ;;  %v1341_v47 = vld [vmem:[%s6306_s27 + $0x2058] sm:$0xff]  ;;  %v1343_v48 = vld [vmem:[%s6306_s27 + $0x2080] sm:$0xff] }
 0x14a   : > { %1340 = vst [vmem:[%s6311_s10 + $0x1030] sm:$0xff] %v1339_v46  ;;  %v1345_v49 = vld [vmem:[%s6306_s27 + $0x2088] sm:$0xff]  ;;  %1342 = vst [vmem:[%s6311_s10 + $0x1038] sm:$0xff] %v1341_v47  ;;  %v1347_v50 = vld [vmem:[%s6306_s27 + $0x2090] sm:$0xff] }
 0x14b   : > { %1344 = vst [vmem:[%s6311_s10 + $0x1040] sm:$0xff] %v1343_v48  ;;  %1346 = vst [vmem:[%s6311_s10 + $0x1048] sm:$0xff] %v1345_v49  ;;  %v1349_v51 = vld [vmem:[%s6306_s27 + $0x2098] sm:$0xff]  ;;  %v1351_v52 = vld [vmem:[%s6306_s27 + $0x20c0] sm:$0xff] }
 0x14c   : > { %1348 = vst [vmem:[%s6311_s10 + $0x1050] sm:$0xff] %v1347_v50  ;;  %1350 = vst [vmem:[%s6311_s10 + $0x1058] sm:$0xff] %v1349_v51  ;;  %v1353_v53 = vld [vmem:[%s6306_s27 + $0x20c8] sm:$0xff]  ;;  %v1355_v54 = vld [vmem:[%s6306_s27 + $0x20d0] sm:$0xff] }
 0x14d   : > { %1352 = vst [vmem:[%s6311_s10 + $0x1060] sm:$0xff] %v1351_v52  ;;  %v1357_v55 = vld [vmem:[%s6306_s27 + $0x20d8] sm:$0xff]  ;;  %1354 = vst [vmem:[%s6311_s10 + $0x1068] sm:$0xff] %v1353_v53  ;;  %v1359_v56 = vld [vmem:[%s6306_s27 + $0x2100] sm:$0xff] }
 0x14e   : > { %1356 = vst [vmem:[%s6311_s10 + $0x1070] sm:$0xff] %v1355_v54  ;;  %1358 = vst [vmem:[%s6311_s10 + $0x1078] sm:$0xff] %v1357_v55  ;;  %v1361_v57 = vld [vmem:[%s6306_s27 + $0x2108] sm:$0xff]  ;;  %v1363_v58 = vld [vmem:[%s6306_s27 + $0x2110] sm:$0xff] }
 0x14f   : > { %1360 = vst [vmem:[%s6311_s10 + $0x1080] sm:$0xff] %v1359_v56  ;;  %1362 = vst [vmem:[%s6311_s10 + $0x1088] sm:$0xff] %v1361_v57  ;;  %v1365_v59 = vld [vmem:[%s6306_s27 + $0x2118] sm:$0xff]  ;;  %v1367_v60 = vld [vmem:[%s6306_s27 + $0x2140] sm:$0xff] }
 0x150   : > { %1364 = vst [vmem:[%s6311_s10 + $0x1090] sm:$0xff] %v1363_v58  ;;  %v1369_v61 = vld [vmem:[%s6306_s27 + $0x2148] sm:$0xff]  ;;  %1366 = vst [vmem:[%s6311_s10 + $0x1098] sm:$0xff] %v1365_v59  ;;  %v1371_v62 = vld [vmem:[%s6306_s27 + $0x2150] sm:$0xff] }
 0x151   : > { %1368 = vst [vmem:[%s6311_s10 + $0x10a0] sm:$0xff] %v1367_v60  ;;  %1370 = vst [vmem:[%s6311_s10 + $0x10a8] sm:$0xff] %v1369_v61  ;;  %v1373_v63 = vld [vmem:[%s6306_s27 + $0x2158] sm:$0xff]  ;;  %v1375_v0 = vld [vmem:[%s6306_s27 + $0x2180] sm:$0xff] }
 0x152   : > { %1372 = vst [vmem:[%s6311_s10 + $0x10b0] sm:$0xff] %v1371_v62  ;;  %1374 = vst [vmem:[%s6311_s10 + $0x10b8] sm:$0xff] %v1373_v63  ;;  %v1377_v1 = vld [vmem:[%s6306_s27 + $0x2188] sm:$0xff]  ;;  %v1379_v2 = vld [vmem:[%s6306_s27 + $0x2190] sm:$0xff] }
 0x153   : > { %1376 = vst [vmem:[%s6311_s10 + $0x10c0] sm:$0xff] %v1375_v0  ;;  %v1381_v3 = vld [vmem:[%s6306_s27 + $0x2198] sm:$0xff]  ;;  %1378 = vst [vmem:[%s6311_s10 + $0x10c8] sm:$0xff] %v1377_v1  ;;  %v1383_v4 = vld [vmem:[%s6306_s27 + $0x21c0] sm:$0xff] }
 0x154   : > { %1380 = vst [vmem:[%s6311_s10 + $0x10d0] sm:$0xff] %v1379_v2  ;;  %1382 = vst [vmem:[%s6311_s10 + $0x10d8] sm:$0xff] %v1381_v3  ;;  %v1385_v5 = vld [vmem:[%s6306_s27 + $0x21c8] sm:$0xff]  ;;  %v1387_v6 = vld [vmem:[%s6306_s27 + $0x21d0] sm:$0xff] }
 0x155   : > { %1384 = vst [vmem:[%s6311_s10 + $0x10e0] sm:$0xff] %v1383_v4  ;;  %1386 = vst [vmem:[%s6311_s10 + $0x10e8] sm:$0xff] %v1385_v5  ;;  %v1389_v7 = vld [vmem:[%s6306_s27 + $0x21d8] sm:$0xff]  ;;  %v1391_v8 = vld [vmem:[%s6306_s27 + $0x2200] sm:$0xff] }
 0x156   : > { %1388 = vst [vmem:[%s6311_s10 + $0x10f0] sm:$0xff] %v1387_v6  ;;  %v1393_v9 = vld [vmem:[%s6306_s27 + $0x2208] sm:$0xff]  ;;  %1390 = vst [vmem:[%s6311_s10 + $0x10f8] sm:$0xff] %v1389_v7  ;;  %v1395_v10 = vld [vmem:[%s6306_s27 + $0x2210] sm:$0xff] }
 0x157   : > { %1392 = vst [vmem:[%s6311_s10 + $0x1100] sm:$0xff] %v1391_v8  ;;  %1394 = vst [vmem:[%s6311_s10 + $0x1108] sm:$0xff] %v1393_v9  ;;  %v1397_v11 = vld [vmem:[%s6306_s27 + $0x2218] sm:$0xff]  ;;  %v1399_v12 = vld [vmem:[%s6306_s27 + $0x2240] sm:$0xff] }
 0x158   : > { %1396 = vst [vmem:[%s6311_s10 + $0x1110] sm:$0xff] %v1395_v10  ;;  %1398 = vst [vmem:[%s6311_s10 + $0x1118] sm:$0xff] %v1397_v11  ;;  %v1401_v13 = vld [vmem:[%s6306_s27 + $0x2248] sm:$0xff]  ;;  %v1403_v14 = vld [vmem:[%s6306_s27 + $0x2250] sm:$0xff] }
 0x159   : > { %1400 = vst [vmem:[%s6311_s10 + $0x1120] sm:$0xff] %v1399_v12  ;;  %v1405_v15 = vld [vmem:[%s6306_s27 + $0x2258] sm:$0xff]  ;;  %1402 = vst [vmem:[%s6311_s10 + $0x1128] sm:$0xff] %v1401_v13  ;;  %v1407_v16 = vld [vmem:[%s6306_s27 + $0x2280] sm:$0xff] }
 0x15a   : > { %1404 = vst [vmem:[%s6311_s10 + $0x1130] sm:$0xff] %v1403_v14  ;;  %1406 = vst [vmem:[%s6311_s10 + $0x1138] sm:$0xff] %v1405_v15  ;;  %v1409_v17 = vld [vmem:[%s6306_s27 + $0x2288] sm:$0xff]  ;;  %v1411_v18 = vld [vmem:[%s6306_s27 + $0x2290] sm:$0xff] }
 0x15b   : > { %1408 = vst [vmem:[%s6311_s10 + $0x1140] sm:$0xff] %v1407_v16  ;;  %1410 = vst [vmem:[%s6311_s10 + $0x1148] sm:$0xff] %v1409_v17  ;;  %v1413_v19 = vld [vmem:[%s6306_s27 + $0x2298] sm:$0xff]  ;;  %v1415_v20 = vld [vmem:[%s6306_s27 + $0x22c0] sm:$0xff] }
 0x15c   : > { %1412 = vst [vmem:[%s6311_s10 + $0x1150] sm:$0xff] %v1411_v18  ;;  %v1417_v21 = vld [vmem:[%s6306_s27 + $0x22c8] sm:$0xff]  ;;  %1414 = vst [vmem:[%s6311_s10 + $0x1158] sm:$0xff] %v1413_v19  ;;  %v1419_v22 = vld [vmem:[%s6306_s27 + $0x22d0] sm:$0xff] }
 0x15d   : > { %1416 = vst [vmem:[%s6311_s10 + $0x1160] sm:$0xff] %v1415_v20  ;;  %1418 = vst [vmem:[%s6311_s10 + $0x1168] sm:$0xff] %v1417_v21  ;;  %v1421_v23 = vld [vmem:[%s6306_s27 + $0x22d8] sm:$0xff]  ;;  %v1423_v24 = vld [vmem:[%s6306_s27 + $0x2300] sm:$0xff] }
 0x15e   : > { %1420 = vst [vmem:[%s6311_s10 + $0x1170] sm:$0xff] %v1419_v22  ;;  %1422 = vst [vmem:[%s6311_s10 + $0x1178] sm:$0xff] %v1421_v23  ;;  %v1425_v25 = vld [vmem:[%s6306_s27 + $0x2308] sm:$0xff]  ;;  %v1427_v26 = vld [vmem:[%s6306_s27 + $0x2310] sm:$0xff] }
 0x15f   : > { %1424 = vst [vmem:[%s6311_s10 + $0x1180] sm:$0xff] %v1423_v24  ;;  %v1429_v27 = vld [vmem:[%s6306_s27 + $0x2318] sm:$0xff]  ;;  %1426 = vst [vmem:[%s6311_s10 + $0x1188] sm:$0xff] %v1425_v25  ;;  %v1431_v28 = vld [vmem:[%s6306_s27 + $0x2340] sm:$0xff] }
 0x160   : > { %1428 = vst [vmem:[%s6311_s10 + $0x1190] sm:$0xff] %v1427_v26  ;;  %1430 = vst [vmem:[%s6311_s10 + $0x1198] sm:$0xff] %v1429_v27  ;;  %v1433_v29 = vld [vmem:[%s6306_s27 + $0x2348] sm:$0xff]  ;;  %v1435_v30 = vld [vmem:[%s6306_s27 + $0x2350] sm:$0xff] }
 0x161   : > { %1432 = vst [vmem:[%s6311_s10 + $0x11a0] sm:$0xff] %v1431_v28  ;;  %1434 = vst [vmem:[%s6311_s10 + $0x11a8] sm:$0xff] %v1433_v29  ;;  %v1437_v31 = vld [vmem:[%s6306_s27 + $0x2358] sm:$0xff]  ;;  %v1439_v32 = vld [vmem:[%s6306_s27 + $0x2380] sm:$0xff] }
 0x162   : > { %1436 = vst [vmem:[%s6311_s10 + $0x11b0] sm:$0xff] %v1435_v30  ;;  %v1441_v33 = vld [vmem:[%s6306_s27 + $0x2388] sm:$0xff]  ;;  %1438 = vst [vmem:[%s6311_s10 + $0x11b8] sm:$0xff] %v1437_v31  ;;  %v1443_v34 = vld [vmem:[%s6306_s27 + $0x2390] sm:$0xff] }
 0x163   : > { %1440 = vst [vmem:[%s6311_s10 + $0x11c0] sm:$0xff] %v1439_v32  ;;  %1442 = vst [vmem:[%s6311_s10 + $0x11c8] sm:$0xff] %v1441_v33  ;;  %v1445_v35 = vld [vmem:[%s6306_s27 + $0x2398] sm:$0xff]  ;;  %v1447_v36 = vld [vmem:[%s6306_s27 + $0x23c0] sm:$0xff] }
 0x164   : > { %1444 = vst [vmem:[%s6311_s10 + $0x11d0] sm:$0xff] %v1443_v34  ;;  %1446 = vst [vmem:[%s6311_s10 + $0x11d8] sm:$0xff] %v1445_v35  ;;  %v1449_v37 = vld [vmem:[%s6306_s27 + $0x23c8] sm:$0xff]  ;;  %v1451_v38 = vld [vmem:[%s6306_s27 + $0x23d0] sm:$0xff] }
 0x165   : > { %1448 = vst [vmem:[%s6311_s10 + $0x11e0] sm:$0xff] %v1447_v36  ;;  %v1453_v39 = vld [vmem:[%s6306_s27 + $0x23d8] sm:$0xff]  ;;  %1450 = vst [vmem:[%s6311_s10 + $0x11e8] sm:$0xff] %v1449_v37  ;;  %v1455_v40 = vld [vmem:[%s6306_s27 + $0x2400] sm:$0xff] }
 0x166   : > { %1452 = vst [vmem:[%s6311_s10 + $0x11f0] sm:$0xff] %v1451_v38  ;;  %1454 = vst [vmem:[%s6311_s10 + $0x11f8] sm:$0xff] %v1453_v39  ;;  %v1457_v41 = vld [vmem:[%s6306_s27 + $0x2408] sm:$0xff]  ;;  %v1459_v42 = vld [vmem:[%s6306_s27 + $0x2410] sm:$0xff] }
 0x167   : > { %1456 = vst [vmem:[%s6311_s10 + $0x1200] sm:$0xff] %v1455_v40  ;;  %1458 = vst [vmem:[%s6311_s10 + $0x1208] sm:$0xff] %v1457_v41  ;;  %v1461_v43 = vld [vmem:[%s6306_s27 + $0x2418] sm:$0xff]  ;;  %v1463_v44 = vld [vmem:[%s6306_s27 + $0x2440] sm:$0xff] }
 0x168   : > { %1460 = vst [vmem:[%s6311_s10 + $0x1210] sm:$0xff] %v1459_v42  ;;  %v1465_v45 = vld [vmem:[%s6306_s27 + $0x2448] sm:$0xff]  ;;  %1462 = vst [vmem:[%s6311_s10 + $0x1218] sm:$0xff] %v1461_v43  ;;  %v1467_v46 = vld [vmem:[%s6306_s27 + $0x2450] sm:$0xff] }
 0x169   : > { %1464 = vst [vmem:[%s6311_s10 + $0x1220] sm:$0xff] %v1463_v44  ;;  %1466 = vst [vmem:[%s6311_s10 + $0x1228] sm:$0xff] %v1465_v45  ;;  %v1469_v47 = vld [vmem:[%s6306_s27 + $0x2458] sm:$0xff]  ;;  %v1471_v48 = vld [vmem:[%s6306_s27 + $0x2480] sm:$0xff] }
 0x16a   : > { %1468 = vst [vmem:[%s6311_s10 + $0x1230] sm:$0xff] %v1467_v46  ;;  %1470 = vst [vmem:[%s6311_s10 + $0x1238] sm:$0xff] %v1469_v47  ;;  %v1473_v49 = vld [vmem:[%s6306_s27 + $0x2488] sm:$0xff]  ;;  %v1475_v50 = vld [vmem:[%s6306_s27 + $0x2490] sm:$0xff] }
 0x16b   : > { %1472 = vst [vmem:[%s6311_s10 + $0x1240] sm:$0xff] %v1471_v48  ;;  %v1477_v51 = vld [vmem:[%s6306_s27 + $0x2498] sm:$0xff]  ;;  %1474 = vst [vmem:[%s6311_s10 + $0x1248] sm:$0xff] %v1473_v49  ;;  %v1479_v52 = vld [vmem:[%s6306_s27 + $0x24c0] sm:$0xff] }
 0x16c   : > { %1476 = vst [vmem:[%s6311_s10 + $0x1250] sm:$0xff] %v1475_v50  ;;  %1478 = vst [vmem:[%s6311_s10 + $0x1258] sm:$0xff] %v1477_v51  ;;  %v1481_v53 = vld [vmem:[%s6306_s27 + $0x24c8] sm:$0xff]  ;;  %v1483_v54 = vld [vmem:[%s6306_s27 + $0x24d0] sm:$0xff] }
 0x16d   : > { %1480 = vst [vmem:[%s6311_s10 + $0x1260] sm:$0xff] %v1479_v52  ;;  %1482 = vst [vmem:[%s6311_s10 + $0x1268] sm:$0xff] %v1481_v53  ;;  %v1485_v55 = vld [vmem:[%s6306_s27 + $0x24d8] sm:$0xff]  ;;  %v1487_v56 = vld [vmem:[%s6306_s27 + $0x2500] sm:$0xff] }
 0x16e   : > { %1484 = vst [vmem:[%s6311_s10 + $0x1270] sm:$0xff] %v1483_v54  ;;  %v1489_v57 = vld [vmem:[%s6306_s27 + $0x2508] sm:$0xff]  ;;  %1486 = vst [vmem:[%s6311_s10 + $0x1278] sm:$0xff] %v1485_v55  ;;  %v1491_v58 = vld [vmem:[%s6306_s27 + $0x2510] sm:$0xff] }
 0x16f   : > { %1488 = vst [vmem:[%s6311_s10 + $0x1280] sm:$0xff] %v1487_v56  ;;  %1490 = vst [vmem:[%s6311_s10 + $0x1288] sm:$0xff] %v1489_v57  ;;  %v1493_v59 = vld [vmem:[%s6306_s27 + $0x2518] sm:$0xff]  ;;  %v1495_v60 = vld [vmem:[%s6306_s27 + $0x2540] sm:$0xff] }
 0x170   : > { %1492 = vst [vmem:[%s6311_s10 + $0x1290] sm:$0xff] %v1491_v58  ;;  %1494 = vst [vmem:[%s6311_s10 + $0x1298] sm:$0xff] %v1493_v59  ;;  %v1497_v61 = vld [vmem:[%s6306_s27 + $0x2548] sm:$0xff]  ;;  %v1499_v62 = vld [vmem:[%s6306_s27 + $0x2550] sm:$0xff] }
 0x171   : > { %1496 = vst [vmem:[%s6311_s10 + $0x12a0] sm:$0xff] %v1495_v60  ;;  %v1501_v63 = vld [vmem:[%s6306_s27 + $0x2558] sm:$0xff]  ;;  %1498 = vst [vmem:[%s6311_s10 + $0x12a8] sm:$0xff] %v1497_v61  ;;  %v1503_v0 = vld [vmem:[%s6306_s27 + $0x2580] sm:$0xff] }
 0x172   : > { %1500 = vst [vmem:[%s6311_s10 + $0x12b0] sm:$0xff] %v1499_v62  ;;  %1502 = vst [vmem:[%s6311_s10 + $0x12b8] sm:$0xff] %v1501_v63  ;;  %v1505_v1 = vld [vmem:[%s6306_s27 + $0x2588] sm:$0xff]  ;;  %v1507_v2 = vld [vmem:[%s6306_s27 + $0x2590] sm:$0xff] }
 0x173   : > { %1504 = vst [vmem:[%s6311_s10 + $0x12c0] sm:$0xff] %v1503_v0  ;;  %1506 = vst [vmem:[%s6311_s10 + $0x12c8] sm:$0xff] %v1505_v1  ;;  %v1509_v3 = vld [vmem:[%s6306_s27 + $0x2598] sm:$0xff]  ;;  %v1511_v4 = vld [vmem:[%s6306_s27 + $0x25c0] sm:$0xff] }
 0x174   : > { %1508 = vst [vmem:[%s6311_s10 + $0x12d0] sm:$0xff] %v1507_v2  ;;  %v1513_v5 = vld [vmem:[%s6306_s27 + $0x25c8] sm:$0xff]  ;;  %1510 = vst [vmem:[%s6311_s10 + $0x12d8] sm:$0xff] %v1509_v3  ;;  %v1515_v6 = vld [vmem:[%s6306_s27 + $0x25d0] sm:$0xff] }
 0x175   : > { %1512 = vst [vmem:[%s6311_s10 + $0x12e0] sm:$0xff] %v1511_v4  ;;  %1514 = vst [vmem:[%s6311_s10 + $0x12e8] sm:$0xff] %v1513_v5  ;;  %v1517_v7 = vld [vmem:[%s6306_s27 + $0x25d8] sm:$0xff]  ;;  %v1519_v8 = vld [vmem:[%s6306_s27 + $0x2600] sm:$0xff] }
 0x176   : > { %1516 = vst [vmem:[%s6311_s10 + $0x12f0] sm:$0xff] %v1515_v6  ;;  %1518 = vst [vmem:[%s6311_s10 + $0x12f8] sm:$0xff] %v1517_v7  ;;  %v1521_v9 = vld [vmem:[%s6306_s27 + $0x2608] sm:$0xff]  ;;  %v1523_v10 = vld [vmem:[%s6306_s27 + $0x2610] sm:$0xff] }
 0x177   : > { %1520 = vst [vmem:[%s6311_s10 + $0x1300] sm:$0xff] %v1519_v8  ;;  %v1525_v11 = vld [vmem:[%s6306_s27 + $0x2618] sm:$0xff]  ;;  %1522 = vst [vmem:[%s6311_s10 + $0x1308] sm:$0xff] %v1521_v9  ;;  %v1527_v12 = vld [vmem:[%s6306_s27 + $0x2640] sm:$0xff] }
 0x178   : > { %1524 = vst [vmem:[%s6311_s10 + $0x1310] sm:$0xff] %v1523_v10  ;;  %1526 = vst [vmem:[%s6311_s10 + $0x1318] sm:$0xff] %v1525_v11  ;;  %v1529_v13 = vld [vmem:[%s6306_s27 + $0x2648] sm:$0xff]  ;;  %v1531_v14 = vld [vmem:[%s6306_s27 + $0x2650] sm:$0xff] }
 0x179   : > { %1528 = vst [vmem:[%s6311_s10 + $0x1320] sm:$0xff] %v1527_v12  ;;  %1530 = vst [vmem:[%s6311_s10 + $0x1328] sm:$0xff] %v1529_v13  ;;  %v1533_v15 = vld [vmem:[%s6306_s27 + $0x2658] sm:$0xff]  ;;  %v1535_v16 = vld [vmem:[%s6306_s27 + $0x2680] sm:$0xff] }
 0x17a   : > { %1532 = vst [vmem:[%s6311_s10 + $0x1330] sm:$0xff] %v1531_v14  ;;  %v1537_v17 = vld [vmem:[%s6306_s27 + $0x2688] sm:$0xff]  ;;  %1534 = vst [vmem:[%s6311_s10 + $0x1338] sm:$0xff] %v1533_v15  ;;  %v1539_v18 = vld [vmem:[%s6306_s27 + $0x2690] sm:$0xff] }
 0x17b   : > { %1536 = vst [vmem:[%s6311_s10 + $0x1340] sm:$0xff] %v1535_v16  ;;  %1538 = vst [vmem:[%s6311_s10 + $0x1348] sm:$0xff] %v1537_v17  ;;  %v1541_v19 = vld [vmem:[%s6306_s27 + $0x2698] sm:$0xff]  ;;  %v1543_v20 = vld [vmem:[%s6306_s27 + $0x26c0] sm:$0xff] }
 0x17c   : > { %1540 = vst [vmem:[%s6311_s10 + $0x1350] sm:$0xff] %v1539_v18  ;;  %1542 = vst [vmem:[%s6311_s10 + $0x1358] sm:$0xff] %v1541_v19  ;;  %v1545_v21 = vld [vmem:[%s6306_s27 + $0x26c8] sm:$0xff]  ;;  %v1547_v22 = vld [vmem:[%s6306_s27 + $0x26d0] sm:$0xff] }
 0x17d   : > { %1544 = vst [vmem:[%s6311_s10 + $0x1360] sm:$0xff] %v1543_v20  ;;  %v1549_v23 = vld [vmem:[%s6306_s27 + $0x26d8] sm:$0xff]  ;;  %1546 = vst [vmem:[%s6311_s10 + $0x1368] sm:$0xff] %v1545_v21  ;;  %v1551_v24 = vld [vmem:[%s6306_s27 + $0x2700] sm:$0xff] }
 0x17e   : > { %1548 = vst [vmem:[%s6311_s10 + $0x1370] sm:$0xff] %v1547_v22  ;;  %1550 = vst [vmem:[%s6311_s10 + $0x1378] sm:$0xff] %v1549_v23  ;;  %v1553_v25 = vld [vmem:[%s6306_s27 + $0x2708] sm:$0xff]  ;;  %v1555_v26 = vld [vmem:[%s6306_s27 + $0x2710] sm:$0xff] }
 0x17f   : > { %1552 = vst [vmem:[%s6311_s10 + $0x1380] sm:$0xff] %v1551_v24  ;;  %1554 = vst [vmem:[%s6311_s10 + $0x1388] sm:$0xff] %v1553_v25  ;;  %v1557_v27 = vld [vmem:[%s6306_s27 + $0x2718] sm:$0xff]  ;;  %v1559_v28 = vld [vmem:[%s6306_s27 + $0x2740] sm:$0xff] }
 0x180   : > { %1556 = vst [vmem:[%s6311_s10 + $0x1390] sm:$0xff] %v1555_v26  ;;  %v1561_v29 = vld [vmem:[%s6306_s27 + $0x2748] sm:$0xff]  ;;  %1558 = vst [vmem:[%s6311_s10 + $0x1398] sm:$0xff] %v1557_v27  ;;  %v1563_v30 = vld [vmem:[%s6306_s27 + $0x2750] sm:$0xff] }
 0x181   : > { %1560 = vst [vmem:[%s6311_s10 + $0x13a0] sm:$0xff] %v1559_v28  ;;  %1562 = vst [vmem:[%s6311_s10 + $0x13a8] sm:$0xff] %v1561_v29  ;;  %v1565_v31 = vld [vmem:[%s6306_s27 + $0x2758] sm:$0xff]  ;;  %v1567_v32 = vld [vmem:[%s6306_s27 + $0x2780] sm:$0xff] }
 0x182   : > { %1564 = vst [vmem:[%s6311_s10 + $0x13b0] sm:$0xff] %v1563_v30  ;;  %1566 = vst [vmem:[%s6311_s10 + $0x13b8] sm:$0xff] %v1565_v31  ;;  %v1569_v33 = vld [vmem:[%s6306_s27 + $0x2788] sm:$0xff]  ;;  %v1571_v34 = vld [vmem:[%s6306_s27 + $0x2790] sm:$0xff] }
 0x183   : > { %1568 = vst [vmem:[%s6311_s10 + $0x13c0] sm:$0xff] %v1567_v32  ;;  %v1573_v35 = vld [vmem:[%s6306_s27 + $0x2798] sm:$0xff]  ;;  %1570 = vst [vmem:[%s6311_s10 + $0x13c8] sm:$0xff] %v1569_v33  ;;  %v1575_v36 = vld [vmem:[%s6306_s27 + $0x27c0] sm:$0xff] }
 0x184   : > { %1572 = vst [vmem:[%s6311_s10 + $0x13d0] sm:$0xff] %v1571_v34  ;;  %1574 = vst [vmem:[%s6311_s10 + $0x13d8] sm:$0xff] %v1573_v35  ;;  %v1577_v37 = vld [vmem:[%s6306_s27 + $0x27c8] sm:$0xff]  ;;  %v1579_v38 = vld [vmem:[%s6306_s27 + $0x27d0] sm:$0xff] }
 0x185   : > { %1576 = vst [vmem:[%s6311_s10 + $0x13e0] sm:$0xff] %v1575_v36  ;;  %1578 = vst [vmem:[%s6311_s10 + $0x13e8] sm:$0xff] %v1577_v37  ;;  %v1581_v39 = vld [vmem:[%s6306_s27 + $0x27d8] sm:$0xff] }
 0x186   : > { %1580 = vst [vmem:[%s6311_s10 + $0x13f0] sm:$0xff] %v1579_v38  ;;  %1582 = vst [vmem:[%s6311_s10 + $0x13f8] sm:$0xff] %v1581_v39 }
 0x187 PF: > { %p5839_p0 = scmp.ge.s32.totalorder %s6080_s25, 1  ;;  %p1603_p1 = scmp.lt.s32.totalorder %s6080_s25, 5 }
 0x189   : > { %p1604_p2 = pnand %p5839_p0, %p1603_p1 }
 0x18b   : > { %1607 = sbr.rel (%p1604_p2) target bundleno = 1933 (0x78d), region = 74 }
 0x190   : > { %s1610_s0 = sand.u32 1, %s6056_s19   ;;  %s1617_s28 = sand.u32 1, %s6048_s17  }
 0x191   : > { %s5903_s11 = smul.u32 320, %s1610_s0  ;;  %s1650_s26 = sand.u32 1, %s6040_s15  }
 0x192   : > { %s5904_s5 = smul.u32 5120, %s1617_s28  ;;  %s5840_s29 = sshll.u32 %s1650_s26, 5 }
 0x193   : > { %s5841_s27 = sshll.u32 %s6068_s22, 2  ;;  %s7606_s19 = scalar_lea.vmem [#allocation3], %s5903_s11 }
 0x194   : > { %p1657_p3 = scmp.lt.s32.totalorder %s5841_s27, 7  ;;  %s7608_s17 = scalar_lea.vmem [#allocation4], %s5904_s5 }
 0x195   : > { %s7610_s15 = scalar_lea.vmem [#allocation5], %s5840_s29  ;;  %p5843_p4 = scmp.ne.s32.totalorder %s6064_s21, 0 }
 0x196   : > { %s8979_s27 = smov (!%p1657_p3, %s5841_s27), 7 }
 0x197   : > { %s1659_s6 = scalar_lea.vmem %s8856_s2, %s8979_s27  ;;  %s1664_s1 = scalar_lea.vmem %s8857_s3, %s8979_s27 }
 0x198   : > { %1670 = sbr.rel (%p5843_p4) target bundleno = 418 (0x1a2), region = 86 }
 0x19d   : > { %v6082_v40 = vmov 0.0  }
 0x19e   : > { %1671 = vst [vmem:[#allocation2 + $0x30] sm:$0xff] %v6082_v40  ;;  %1672 = vst [vmem:[#allocation2] sm:$0xff] %v6082_v40 }
 0x19f   : > { %1673 = vst [vmem:[#allocation2 + $0x18] sm:$0xff] %v6082_v40  ;;  %1674 = vst [vmem:[#allocation2 + $0x10] sm:$0xff] %v6082_v40 }
 0x1a0   : > { %1675 = vst [vmem:[#allocation2 + $0x8] sm:$0xff] %v6082_v40  ;;  %1676 = vst [vmem:[#allocation2 + $0x20] sm:$0xff] %v6082_v40 }
 0x1a1   : > { %1677 = vst [vmem:[#allocation2 + $0x28] sm:$0xff] %v6082_v40  ;;  %1678 = vst [vmem:[#allocation2 + $0x38] sm:$0xff] %v6082_v40 }
 0x1a2 PF: > { %v1740_v41 = vld [vmem:[%s7608_s17 + $0x68] sm:$0xff]  ;;  %v1739_v43 = vld [vmem:[%s7608_s17 + $0x60] sm:$0xff]  ;;  %p5884_p5 = scmp.ne.s32.totalorder %s6064_s21, 1 }
 0x1a3   : > { %v1772_v42 = vld [vmem:[%s7608_s17 + $0x168] sm:$0xff]  ;;  %v2392_v44 = vunpack.c.l.s8.bf16 %v1740_v41  ;;  %v2396_v45 = vunpack.c.h.s8.bf16 %v1740_v41  ;;  %v1771_v48 = vld [vmem:[%s7608_s17 + $0x160] sm:$0xff]  ;;  %v2395_v49 = vunpack.c.h.s8.bf16 %v1739_v43  ;;  %v2391_v53 = vunpack.c.l.s8.bf16 %v1739_v43 }
 0x1a4   : > { %v2456_v46 = vunpack.c.l.s8.bf16 %v1772_v42  ;;  %v2460_v47 = vunpack.c.h.s8.bf16 %v1772_v42  ;;  %v2459_v50 = vunpack.c.h.s8.bf16 %v1771_v48  ;;  %v1736_v51 = vld [vmem:[%s7608_s17 + $0x48] sm:$0xff]  ;;  %v2455_v54 = vunpack.c.l.s8.bf16 %v1771_v48  ;;  %v1735_v57 = vld [vmem:[%s7608_s17 + $0x40] sm:$0xff] }
 0x1a5   : > { %v1768_v52 = vld [vmem:[%s7608_s17 + $0x148] sm:$0xff]  ;;  %3847 = vmatprep.subr.bf16.mxu0 %v2396_v45  ;;  %v2388_v55 = vunpack.c.h.s8.bf16 %v1736_v51  ;;  %v1767_v58 = vld [vmem:[%s7608_s17 + $0x140] sm:$0xff]  ;;  %v2387_v59 = vunpack.c.h.s8.bf16 %v1735_v57  ;;  %v2384_v61 = vunpack.c.l.s8.bf16 %v1736_v51  ;;  %v2383_v1 = vunpack.c.l.s8.bf16 %v1735_v57 }
 0x1a6   : > { %3890 = vmatprep.subr.bf16.mxu1 %v2460_v47  ;;  %3848 = vmatpush1.bf16.msra.mxu0 %v2395_v49  ;;  %v2452_v56 = vunpack.c.h.s8.bf16 %v1768_v52  ;;  %v2451_v60 = vunpack.c.h.s8.bf16 %v1767_v58  ;;  %v2448_v62 = vunpack.c.l.s8.bf16 %v1768_v52  ;;  %v1732_v63 = vld [vmem:[%s7608_s17 + $0x28] sm:$0xff]  ;;  %v2447_v2 = vunpack.c.l.s8.bf16 %v1767_v58  ;;  %v1731_v5 = vld [vmem:[%s7608_s17 + $0x20] sm:$0xff] }
 0x1a7   : > { %3891 = vmatpush1.bf16.msra.mxu1 %v2459_v50  ;;  %3849 = vmatprep.subr.bf16.mxu0 %v2392_v44  ;;  %v1764_v0 = vld [vmem:[%s7608_s17 + $0x128] sm:$0xff]  ;;  %v2380_v3 = vunpack.c.h.s8.bf16 %v1732_v63  ;;  %v1763_v6 = vld [vmem:[%s7608_s17 + $0x120] sm:$0xff]  ;;  %v2379_v11 = vunpack.c.h.s8.bf16 %v1731_v5  ;;  %v2376_v13 = vunpack.c.l.s8.bf16 %v1732_v63  ;;  %v2375_v19 = vunpack.c.l.s8.bf16 %v1731_v5 }
 0x1a8   : > { %3892 = vmatprep.subr.bf16.mxu1 %v2456_v46  ;;  %v2444_v4 = vunpack.c.h.s8.bf16 %v1764_v0  ;;  %v7626_v7 = vld [vmem:[%s7606_s19] sm:$0xff]  ;;  %v7632_v9 = vld [vmem:[%s7606_s19 + $0x8] sm:$0xff]  ;;  %v2443_v12 = vunpack.c.h.s8.bf16 %v1763_v6  ;;  %v2440_v14 = vunpack.c.l.s8.bf16 %v1764_v0  ;;  %v2439_v20 = vunpack.c.l.s8.bf16 %v1763_v6 }
 0x1a9   : > { %v7629_v8 = vld [vmem:[%s7606_s19 + $0xa0] sm:$0xff]  ;;  %v7635_v10 = vld [vmem:[%s7606_s19 + $0xa8] sm:$0xff] }
 0x1aa   : > { %3850 = vmatpush1.bf16.msra.mxu0 %v2391_v53  ;;  %v7639_v15 = vcombine.high %v7626_v7, %v7629_v8  ;;  %v1728_v16 = vld [vmem:[%s7608_s17 + $0x8] sm:$0xff]  ;;  %v7645_v18 = vcombine.high %v7632_v9, %v7635_v10  ;;  %v1727_v23 = vld [vmem:[%s7608_s17] sm:$0xff] }
 0x1ab   : > { %3893 = vmatpush1.bf16.msra.mxu1 %v2455_v54  ;;  %3851 = vmatprep.subr.bf16.mxu0 %v2388_v55  ;;  %v1760_v17 = vld [vmem:[%s7608_s17 + $0x108] sm:$0xff]  ;;  %v2372_v21 = vunpack.c.h.s8.bf16 %v1728_v16  ;;  %v1759_v24 = vld [vmem:[%s7608_s17 + $0x100] sm:$0xff]  ;;  %v2371_v25 = vunpack.c.h.s8.bf16 %v1727_v23  ;;  %v2368_v27 = vunpack.c.l.s8.bf16 %v1728_v16  ;;  %v2367_v31 = vunpack.c.l.s8.bf16 %v1727_v23 }
 0x1ac   : > { %3894 = vmatprep.subr.bf16.mxu1 %v2452_v56  ;;  %3879 = vmatprep.mubr.bf16.mxu0 %v7639_v15  ;;  %v2436_v22 = vunpack.c.h.s8.bf16 %v1760_v17  ;;  %v2435_v26 = vunpack.c.h.s8.bf16 %v1759_v24  ;;  %v2432_v28 = vunpack.c.l.s8.bf16 %v1760_v17  ;;  %v1756_v29 = vld [vmem:[%s7608_s17 + $0xe8] sm:$0xff]  ;;  %v2431_v32 = vunpack.c.l.s8.bf16 %v1759_v24  ;;  %v1755_v35 = vld [vmem:[%s7608_s17 + $0xe0] sm:$0xff] }
 0x1ad   : > { %3922 = vmatprep.mubr.bf16.mxu1 %v7645_v18  ;;  %v1788_v30 = vld [vmem:[%s7608_s17 + $0x1e8] sm:$0xff]  ;;  %v2428_v33 = vunpack.c.h.s8.bf16 %v1756_v29  ;;  %v1787_v36 = vld [vmem:[%s7608_s17 + $0x1e0] sm:$0xff]  ;;  %v2427_v37 = vunpack.c.h.s8.bf16 %v1755_v35  ;;  %v2424_v39 = vunpack.c.l.s8.bf16 %v1756_v29  ;;  %v2423_v43 = vunpack.c.l.s8.bf16 %v1755_v35 }
 0x1ae   : > { %3852 = vmatpush1.bf16.msra.mxu0 %v2387_v59  ;;  %v2492_v34 = vunpack.c.h.s8.bf16 %v1788_v30  ;;  %v2491_v38 = vunpack.c.h.s8.bf16 %v1787_v36  ;;  %v2488_v40 = vunpack.c.l.s8.bf16 %v1788_v30  ;;  %v1752_v41 = vld [vmem:[%s7608_s17 + $0xc8] sm:$0xff]  ;;  %v2487_v44 = vunpack.c.l.s8.bf16 %v1787_v36  ;;  %v1751_v47 = vld [vmem:[%s7608_s17 + $0xc0] sm:$0xff]  ;;  %v7683_v30 = vld [vmem:[%s7606_s19 + $0xb0] sm:$0xff] }
 0x1af   : > { %3895 = vmatpush1.bf16.msra.mxu1 %v2451_v60  ;;  %3853 = vmatprep.subr.bf16.mxu0 %v2384_v61  ;;  %v1784_v42 = vld [vmem:[%s7608_s17 + $0x1c8] sm:$0xff]  ;;  %v2420_v45 = vunpack.c.h.s8.bf16 %v1752_v41  ;;  %v1783_v48 = vld [vmem:[%s7608_s17 + $0x1c0] sm:$0xff]  ;;  %v2419_v49 = vunpack.c.h.s8.bf16 %v1751_v47  ;;  %v2416_v51 = vunpack.c.l.s8.bf16 %v1752_v41  ;;  %v2415_v55 = vunpack.c.l.s8.bf16 %v1751_v47 }
 0x1b0   : > { %3896 = vmatprep.subr.bf16.mxu1 %v2448_v62  ;;  %v2484_v46 = vunpack.c.h.s8.bf16 %v1784_v42  ;;  %v2483_v50 = vunpack.c.h.s8.bf16 %v1783_v48  ;;  %v2480_v52 = vunpack.c.l.s8.bf16 %v1784_v42  ;;  %v1748_v53 = vld [vmem:[%s7608_s17 + $0xa8] sm:$0xff]  ;;  %v2479_v56 = vunpack.c.l.s8.bf16 %v1783_v48  ;;  %v1747_v59 = vld [vmem:[%s7608_s17 + $0xa0] sm:$0xff] }
 0x1b1   : > { %v1780_v54 = vld [vmem:[%s7608_s17 + $0x1a8] sm:$0xff]  ;;  %v2412_v57 = vunpack.c.h.s8.bf16 %v1748_v53  ;;  %v1779_v60 = vld [vmem:[%s7608_s17 + $0x1a0] sm:$0xff]  ;;  %v2411_v61 = vunpack.c.h.s8.bf16 %v1747_v59  ;;  %v2408_v63 = vunpack.c.l.s8.bf16 %v1748_v53  ;;  %v7680_v29 = vcombine.low %v7632_v9, %v7635_v10 }
 0x1b2   : > { %3854 = vmatpush1.bf16.msra.mxu0 %v2383_v1  ;;  %v2476_v58 = vunpack.c.h.s8.bf16 %v1780_v54  ;;  %v2475_v62 = vunpack.c.h.s8.bf16 %v1779_v60  ;;  %v2472_v0 = vunpack.c.l.s8.bf16 %v1780_v54  ;;  %v1744_v1 = vld [vmem:[%s7608_s17 + $0x88] sm:$0xff]  ;;  %v1799_v41 = vld [vmem:[%s7608_s17 + $0x240] sm:$0xff] }
 0x1b3   : > { %3897 = vmatpush1.bf16.msra.mxu1 %v2447_v2  ;;  %3855 = vmatprep.subr.bf16.mxu0 %v2380_v3  ;;  %v1776_v2 = vld [vmem:[%s7608_s17 + $0x188] sm:$0xff]  ;;  %v2407_v3 = vunpack.c.l.s8.bf16 %v1747_v59  ;;  %v2404_v5 = vunpack.c.h.s8.bf16 %v1744_v1  ;;  %v2400_v16 = vunpack.c.l.s8.bf16 %v1744_v1  ;;  %v1831_v42 = vld [vmem:[%s7608_s17 + $0x340] sm:$0xff] }
 0x1b4   : > { %3898 = vmatprep.subr.bf16.mxu1 %v2444_v4  ;;  %v2471_v4 = vunpack.c.l.s8.bf16 %v1779_v60  ;;  %v2468_v6 = vunpack.c.h.s8.bf16 %v1776_v2  ;;  %v2464_v17 = vunpack.c.l.s8.bf16 %v1776_v2  ;;  %v1832_v36 = vld [vmem:[%s7608_s17 + $0x348] sm:$0xff]  ;;  %v1795_v53 = vld [vmem:[%s7608_s17 + $0x220] sm:$0xff] }
 0x1b5   : > { %v1796_v47 = vld [vmem:[%s7608_s17 + $0x228] sm:$0xff]  ;;  %v1827_v54 = vld [vmem:[%s7608_s17 + $0x320] sm:$0xff] }
 0x1b6   : > { %3856 = vmatpush1.bf16.msra.mxu0 %v2379_v11  ;;  %v1743_v11 = vld [vmem:[%s7608_s17 + $0x80] sm:$0xff]  ;;  %v1828_v48 = vld [vmem:[%s7608_s17 + $0x328] sm:$0xff] }
 0x1b7   : > { %3899 = vmatpush1.bf16.msra.mxu1 %v2443_v12  ;;  %3857 = vmatprep.subr.bf16.mxu0 %v2376_v13  ;;  %v1775_v12 = vld [vmem:[%s7608_s17 + $0x180] sm:$0xff]  ;;  %v2403_v13 = vunpack.c.h.s8.bf16 %v1743_v11  ;;  %v1792_v59 = vld [vmem:[%s7608_s17 + $0x208] sm:$0xff] }
 0x1b8   : > { %3900 = vmatprep.subr.bf16.mxu1 %v2440_v14  ;;  %v2467_v14 = vunpack.c.h.s8.bf16 %v1775_v12  ;;  %v1824_v60 = vld [vmem:[%s7608_s17 + $0x308] sm:$0xff]  ;;  %v1791_v1 = vld [vmem:[%s7608_s17 + $0x200] sm:$0xff] }
 0x1b9   : > { %v1823_v2 = vld [vmem:[%s7608_s17 + $0x300] sm:$0xff] }
 0x1ba   : > { %3858 = vmatpush1.bf16.msra.mxu0 %v2375_v19  ;;  %v1804_v19 = vld [vmem:[%s7608_s17 + $0x268] sm:$0xff] }
 0x1bb   : > { %3901 = vmatpush1.bf16.msra.mxu1 %v2439_v20  ;;  %3859 = vmatprep.subr.bf16.mxu0 %v2372_v21  ;;  %v1836_v20 = vld [vmem:[%s7608_s17 + $0x368] sm:$0xff]  ;;  %v2399_v21 = vunpack.c.l.s8.bf16 %v1743_v11  ;;  %v2524_v23 = vunpack.c.h.s8.bf16 %v1804_v19  ;;  %v2520_v35 = vunpack.c.l.s8.bf16 %v1804_v19  ;;  %v1819_v19 = vld [vmem:[%s7608_s17 + $0x2e0] sm:$0xff] }
 0x1bc   : > { %3902 = vmatprep.subr.bf16.mxu1 %v2436_v22  ;;  %v2463_v22 = vunpack.c.l.s8.bf16 %v1775_v12  ;;  %v2588_v24 = vunpack.c.h.s8.bf16 %v1836_v20  ;;  %v1820_v11 = vld [vmem:[%s7608_s17 + $0x2e8] sm:$0xff] }
 0x1bd   : > { %v1852_v12 = vld [vmem:[%s7608_s17 + $0x3e8] sm:$0xff] }
 0x1be   : > { %3860 = vmatpush1.bf16.msra.mxu0 %v2371_v25  ;;  %v1803_v25 = vld [vmem:[%s7608_s17 + $0x260] sm:$0xff] }
 0x1bf   : > { %3903 = vmatpush1.bf16.msra.mxu1 %v2435_v26  ;;  %3861 = vmatprep.subr.bf16.mxu0 %v2368_v27  ;;  %v1835_v26 = vld [vmem:[%s7608_s17 + $0x360] sm:$0xff]  ;;  %v7672_v27 = vld [vmem:[%s7606_s19 + $0x10] sm:$0xff] }
 0x1c0   : > { %3904 = vmatprep.subr.bf16.mxu1 %v2432_v28  ;;  %v7676_v28 = vcombine.low %v7626_v7, %v7629_v8  ;;  %v2584_v7 = vunpack.c.l.s8.bf16 %v1836_v20  ;;  %v1800_v8 = vld [vmem:[%s7608_s17 + $0x248] sm:$0xff]  ;;  %v7695_v9 = vcombine.high %v7672_v27, %v7683_v30  ;;  %v1851_v20 = vld [vmem:[%s7608_s17 + $0x3e0] sm:$0xff] }
 0x1c2   : > { %3862 = vmatpush1.bf16.msra.mxu0 %v2367_v31  ;;  %v7686_v31 = vld [vmem:[%s7606_s19 + $0x18] sm:$0xff] }
 0x1c3   : > { %3905 = vmatpush1.bf16.msra.mxu1 %v2431_v32  ;;  %3863 = vmatprep.subr.bf16.mxu0 %v2428_v33  ;;  %v7689_v32 = vld [vmem:[%s7606_s19 + $0xb8] sm:$0xff]  ;;  %v2523_v33 = vunpack.c.h.s8.bf16 %v1803_v25 }
 0x1c4   : > { %3906 = vmatprep.subr.bf16.mxu1 %v2492_v34  ;;  %v2587_v34 = vunpack.c.h.s8.bf16 %v1835_v26  ;;  %v7699_v10 = vcombine.high %v7686_v31, %v7689_v32 }
 0x1c6   : > { %3864 = vmatpush2.bf16.msra.mxu0 %v2427_v37  ;;  %v2519_v37 = vunpack.c.l.s8.bf16 %v1803_v25  ;;  %v1816_v25 = vld [vmem:[%s7608_s17 + $0x2c8] sm:$0xff] }
 0x1c7   : > { %3907 = vmatpush2.bf16.msra.mxu1 %v2491_v38  ;;  %3865 = vmatprep.subr.bf16.mxu0 %v2424_v39  ;;  %v2583_v38 = vunpack.c.l.s8.bf16 %v1835_v26  ;;  %v2516_v39 = vunpack.c.h.s8.bf16 %v1800_v8  ;;  %v1848_v26 = vld [vmem:[%s7608_s17 + $0x3c8] sm:$0xff] }
 0x1c8   : > { %3908 = vmatprep.subr.bf16.mxu1 %v2488_v40  ;;  %v2580_v40 = vunpack.c.h.s8.bf16 %v1832_v36 }
 0x1ca   : > { %3866 = vmatpush2.bf16.msra.mxu0 %v2423_v43  ;;  %v2515_v43 = vunpack.c.h.s8.bf16 %v1799_v41 }
 0x1cb   : > { %3909 = vmatpush2.bf16.msra.mxu1 %v2487_v44  ;;  %3867 = vmatprep.subr.bf16.mxu0 %v2420_v45  ;;  %v2579_v44 = vunpack.c.h.s8.bf16 %v1831_v42  ;;  %v2512_v45 = vunpack.c.l.s8.bf16 %v1800_v8  ;;  %v1815_v8 = vld [vmem:[%s7608_s17 + $0x2c0] sm:$0xff] }
 0x1cc   : > { %3910 = vmatprep.subr.bf16.mxu1 %v2484_v46  ;;  %v2576_v46 = vunpack.c.l.s8.bf16 %v1832_v36  ;;  %v1847_v36 = vld [vmem:[%s7608_s17 + $0x3c0] sm:$0xff] }
 0x1ce   : > { %3868 = vmatpush2.bf16.msra.mxu0 %v2419_v49  ;;  %v2511_v49 = vunpack.c.l.s8.bf16 %v1799_v41  ;;  %v1812_v41 = vld [vmem:[%s7608_s17 + $0x2a8] sm:$0xff] }
 0x1cf   : > { %3911 = vmatpush2.bf16.msra.mxu1 %v2483_v50  ;;  %3869 = vmatprep.subr.bf16.mxu0 %v2416_v51  ;;  %v2575_v50 = vunpack.c.l.s8.bf16 %v1831_v42  ;;  %v2508_v51 = vunpack.c.h.s8.bf16 %v1796_v47  ;;  %v1844_v42 = vld [vmem:[%s7608_s17 + $0x3a8] sm:$0xff] }
 0x1d0   : > { %3912 = vmatprep.subr.bf16.mxu1 %v2480_v52  ;;  %v2572_v52 = vunpack.c.h.s8.bf16 %v1828_v48 }
 0x1d2   : > { %3870 = vmatpush2.bf16.msra.mxu0 %v2415_v55  ;;  %v2507_v55 = vunpack.c.h.s8.bf16 %v1795_v53 }
 0x1d3   : > { %3913 = vmatpush2.bf16.msra.mxu1 %v2479_v56  ;;  %3871 = vmatprep.subr.bf16.mxu0 %v2412_v57  ;;  %v2571_v56 = vunpack.c.h.s8.bf16 %v1827_v54  ;;  %v2504_v57 = vunpack.c.l.s8.bf16 %v1796_v47  ;;  %v1811_v47 = vld [vmem:[%s7608_s17 + $0x2a0] sm:$0xff] }
 0x1d4   : > { %3914 = vmatprep.subr.bf16.mxu1 %v2476_v58  ;;  %v2568_v58 = vunpack.c.l.s8.bf16 %v1828_v48  ;;  %v1843_v48 = vld [vmem:[%s7608_s17 + $0x3a0] sm:$0xff] }
 0x1d6   : > { %3872 = vmatpush2.bf16.msra.mxu0 %v2411_v61  ;;  %v2503_v61 = vunpack.c.l.s8.bf16 %v1795_v53  ;;  %v1808_v53 = vld [vmem:[%s7608_s17 + $0x288] sm:$0xff] }
 0x1d7   : > { %3915 = vmatpush2.bf16.msra.mxu1 %v2475_v62  ;;  %3873 = vmatprep.subr.bf16.mxu0 %v2408_v63  ;;  %v2567_v62 = vunpack.c.l.s8.bf16 %v1827_v54  ;;  %v2500_v63 = vunpack.c.h.s8.bf16 %v1792_v59  ;;  %v1840_v54 = vld [vmem:[%s7608_s17 + $0x388] sm:$0xff] }
 0x1d8   : > { %3916 = vmatprep.subr.bf16.mxu1 %v2472_v0  ;;  %v2564_v0 = vunpack.c.h.s8.bf16 %v1824_v60 }
 0x1da   : > { %3874 = vmatpush2.bf16.msra.mxu0 %v2407_v3  ;;  %v2499_v3 = vunpack.c.h.s8.bf16 %v1791_v1 }
 0x1db   : > { %3917 = vmatpush2.bf16.msra.mxu1 %v2471_v4  ;;  %3875 = vmatprep.subr.bf16.mxu0 %v2404_v5  ;;  %v2563_v4 = vunpack.c.h.s8.bf16 %v1823_v2  ;;  %v2496_v5 = vunpack.c.l.s8.bf16 %v1792_v59  ;;  %v1807_v59 = vld [vmem:[%s7608_s17 + $0x280] sm:$0xff] }
 0x1dc   : > { %3918 = vmatprep.subr.bf16.mxu1 %v2468_v6  ;;  %v2560_v6 = vunpack.c.l.s8.bf16 %v1824_v60  ;;  %v1839_v60 = vld [vmem:[%s7608_s17 + $0x380] sm:$0xff] }
 0x1de   : > { %3876 = vmatpush2.bf16.msra.mxu0 %v2403_v13  ;;  %v2495_v13 = vunpack.c.l.s8.bf16 %v1791_v1  ;;  %v1868_v1 = vld [vmem:[%s7608_s17 + $0x468] sm:$0xff] }
 0x1df   : > { %3919 = vmatpush2.bf16.msra.mxu1 %v2467_v14  ;;  %3877 = vmatprep.subr.bf16.mxu0 %v2400_v16  ;;  %v2559_v14 = vunpack.c.l.s8.bf16 %v1823_v2  ;;  %v2556_v16 = vunpack.c.h.s8.bf16 %v1820_v11  ;;  %v1900_v2 = vld [vmem:[%s7608_s17 + $0x568] sm:$0xff] }
 0x1e0   : > { %3920 = vmatprep.subr.bf16.mxu1 %v2464_v17  ;;  %v2620_v17 = vunpack.c.h.s8.bf16 %v1852_v12 }
 0x1e2   : > { %3878 = vmatpush2.bf16.msra.mxu0 %v2399_v21  ;;  %v2555_v21 = vunpack.c.h.s8.bf16 %v1819_v19 }
 0x1e3   : > { %3921 = vmatpush2.bf16.msra.mxu1 %v2463_v22  ;;  %3933 = vmatprep.subr.bf16.mxu0 %v2524_v23  ;;  %v2619_v22 = vunpack.c.h.s8.bf16 %v1851_v20  ;;  %v2552_v23 = vunpack.c.l.s8.bf16 %v1820_v11  ;;  %v1867_v11 = vld [vmem:[%s7608_s17 + $0x460] sm:$0xff] }
 0x1e4   : > { %3976 = vmatprep.subr.bf16.mxu1 %v2588_v24  ;;  %v2616_v24 = vunpack.c.l.s8.bf16 %v1852_v12  ;;  %v1899_v12 = vld [vmem:[%s7608_s17 + $0x560] sm:$0xff] }
 0x1e5   : > { %3880 = vmatmul.mubr.bf16.vlgmr.msra.gmra.mxu0 %v7676_v28 }
 0x1e6   : > { %3923 = vmatmul.mubr.bf16.vlgmr.msra.gmra.mxu1 %v7680_v29  ;;  %3934 = vmatpush1.bf16.msra.mxu0 %v2523_v33  ;;  %v2551_v33 = vunpack.c.l.s8.bf16 %v1819_v19  ;;  %v7750_v19 = vld [vmem:[%s7606_s19 + $0x28] sm:$0xff] }
 0x1e7   : > { %3977 = vmatpush1.bf16.msra.mxu1 %v2587_v34  ;;  %3935 = vmatprep.subr.bf16.mxu0 %v2520_v35  ;;  %v2615_v34 = vunpack.c.l.s8.bf16 %v1851_v20  ;;  %v2548_v35 = vunpack.c.h.s8.bf16 %v1816_v25  ;;  %v7753_v20 = vld [vmem:[%s7606_s19 + $0xc8] sm:$0xff] }
 0x1e8   : > { %3978 = vmatprep.subr.bf16.mxu1 %v2584_v7  ;;  %3965 = vmatprep.mubr.bf16.mxu0 %v7695_v9  ;;  %v2612_v7 = vunpack.c.h.s8.bf16 %v1848_v26 }
 0x1e9   : > { %4008 = vmatprep.mubr.bf16.mxu1 %v7699_v10 }
 0x1ea   : > { %3936 = vmatpush1.bf16.msra.mxu0 %v2519_v37  ;;  %v2547_v37 = vunpack.c.h.s8.bf16 %v1815_v8 }
 0x1eb   : > { %3979 = vmatpush1.bf16.msra.mxu1 %v2583_v38  ;;  %3937 = vmatprep.subr.bf16.mxu0 %v2516_v39  ;;  %v2611_v38 = vunpack.c.h.s8.bf16 %v1847_v36  ;;  %v2544_v39 = vunpack.c.l.s8.bf16 %v1816_v25  ;;  %v2647_v25 = vunpack.c.l.s8.bf16 %v1867_v11 }
 0x1ec   : > { %3980 = vmatprep.subr.bf16.mxu1 %v2580_v40  ;;  %v2608_v40 = vunpack.c.l.s8.bf16 %v1848_v26  ;;  %v2711_v26 = vunpack.c.l.s8.bf16 %v1899_v12 }
 0x1ee   : > { %3938 = vmatpush1.bf16.msra.mxu0 %v2515_v43  ;;  %v2543_v43 = vunpack.c.l.s8.bf16 %v1815_v8 }
 0x1ef   : > { %3981 = vmatpush1.bf16.msra.mxu1 %v2579_v44  ;;  %3939 = vmatprep.subr.bf16.mxu0 %v2512_v45  ;;  %v2607_v44 = vunpack.c.l.s8.bf16 %v1847_v36  ;;  %v2540_v45 = vunpack.c.h.s8.bf16 %v1812_v41 }
 0x1f0   : > { %3982 = vmatprep.subr.bf16.mxu1 %v2576_v46  ;;  %v2604_v46 = vunpack.c.h.s8.bf16 %v1844_v42 }
 0x1f2   : > { %3940 = vmatpush1.bf16.msra.mxu0 %v2511_v49  ;;  %v2539_v49 = vunpack.c.h.s8.bf16 %v1811_v47 }
 0x1f3   : > { %3983 = vmatpush1.bf16.msra.mxu1 %v2575_v50  ;;  %3941 = vmatprep.subr.bf16.mxu0 %v2508_v51  ;;  %v2603_v50 = vunpack.c.h.s8.bf16 %v1843_v48  ;;  %v2536_v51 = vunpack.c.l.s8.bf16 %v1812_v41 }
 0x1f4   : > { %3984 = vmatprep.subr.bf16.mxu1 %v2572_v52  ;;  %v2600_v52 = vunpack.c.l.s8.bf16 %v1844_v42 }
 0x1f6   : > { %3942 = vmatpush1.bf16.msra.mxu0 %v2507_v55  ;;  %v2535_v55 = vunpack.c.l.s8.bf16 %v1811_v47 }
 0x1f7   : > { %3985 = vmatpush1.bf16.msra.mxu1 %v2571_v56  ;;  %3943 = vmatprep.subr.bf16.mxu0 %v2504_v57  ;;  %v2599_v56 = vunpack.c.l.s8.bf16 %v1843_v48  ;;  %v2532_v57 = vunpack.c.h.s8.bf16 %v1808_v53 }
 0x1f8   : > { %3986 = vmatprep.subr.bf16.mxu1 %v2568_v58  ;;  %v2596_v58 = vunpack.c.h.s8.bf16 %v1840_v54 }
 0x1fa   : > { %3944 = vmatpush1.bf16.msra.mxu0 %v2503_v61  ;;  %v2531_v61 = vunpack.c.h.s8.bf16 %v1807_v59 }
 0x1fb   : > { %3987 = vmatpush1.bf16.msra.mxu1 %v2567_v62  ;;  %3945 = vmatprep.subr.bf16.mxu0 %v2500_v63  ;;  %v2595_v62 = vunpack.c.h.s8.bf16 %v1839_v60  ;;  %v2528_v63 = vunpack.c.l.s8.bf16 %v1808_v53 }
 0x1fc   : > { %3988 = vmatprep.subr.bf16.mxu1 %v2564_v0  ;;  %v2592_v0 = vunpack.c.l.s8.bf16 %v1840_v54 }
 0x1fe   : > { %3946 = vmatpush1.bf16.msra.mxu0 %v2499_v3  ;;  %v2527_v3 = vunpack.c.l.s8.bf16 %v1807_v59 }
 0x1ff   : > { %3989 = vmatpush1.bf16.msra.mxu1 %v2563_v4  ;;  %3947 = vmatprep.subr.bf16.mxu0 %v2496_v5  ;;  %v2591_v4 = vunpack.c.l.s8.bf16 %v1839_v60  ;;  %v2652_v5 = vunpack.c.h.s8.bf16 %v1868_v1 }
 0x200   : > { %3990 = vmatprep.subr.bf16.mxu1 %v2560_v6  ;;  %v2716_v6 = vunpack.c.h.s8.bf16 %v1900_v2 }
 0x202   : > { %3948 = vmatpush1.bf16.msra.mxu0 %v2495_v13  ;;  %v7736_v13 = vld [vmem:[%s7606_s19 + $0x20] sm:$0xff] }
 0x203   : > { %3991 = vmatpush1.bf16.msra.mxu1 %v2559_v14  ;;  %3949 = vmatprep.subr.bf16.mxu0 %v2556_v16  ;;  %v7740_v14 = vcombine.low %v7672_v27, %v7683_v30  ;;  %v7744_v16 = vcombine.low %v7686_v31, %v7689_v32  ;;  %v2712_v27 = vunpack.c.l.s8.bf16 %v1900_v2  ;;  %v1864_v30 = vld [vmem:[%s7608_s17 + $0x448] sm:$0xff]  ;;  %v7763_v32 = vcombine.high %v7750_v19, %v7753_v20 }
 0x204   : > { %3992 = vmatprep.subr.bf16.mxu1 %v2620_v17  ;;  %v7747_v17 = vld [vmem:[%s7606_s19 + $0xc0] sm:$0xff] }
 0x205   : > { %v7759_v31 = vcombine.high %v7736_v13, %v7747_v17 }
 0x206   : > { %3950 = vmatpush2.bf16.msra.mxu0 %v2555_v21  ;;  %v2651_v21 = vunpack.c.h.s8.bf16 %v1867_v11 }
 0x207   : > { %3993 = vmatpush2.bf16.msra.mxu1 %v2619_v22  ;;  %3951 = vmatprep.subr.bf16.mxu0 %v2552_v23  ;;  %v2715_v22 = vunpack.c.h.s8.bf16 %v1899_v12  ;;  %v2648_v23 = vunpack.c.l.s8.bf16 %v1868_v1 }
 0x208   : > { %3994 = vmatprep.subr.bf16.mxu1 %v2616_v24  ;;  %v1896_v24 = vld [vmem:[%s7608_s17 + $0x548] sm:$0xff] }
 0x20a   : > { %3952 = vmatpush2.bf16.msra.mxu0 %v2551_v33  ;;  %v2644_v33 = vunpack.c.h.s8.bf16 %v1864_v30 }
 0x20b   : > { %3995 = vmatpush2.bf16.msra.mxu1 %v2615_v34  ;;  %3953 = vmatprep.subr.bf16.mxu0 %v2548_v35  ;;  %v2708_v34 = vunpack.c.h.s8.bf16 %v1896_v24  ;;  %v1863_v35 = vld [vmem:[%s7608_s17 + $0x440] sm:$0xff] }
 0x20c   : > { %3996 = vmatprep.subr.bf16.mxu1 %v2612_v7  ;;  %v1895_v7 = vld [vmem:[%s7608_s17 + $0x540] sm:$0xff]  ;;  %v2643_v8 = vunpack.c.h.s8.bf16 %v1863_v35  ;;  %v2639_v41 = vunpack.c.l.s8.bf16 %v1863_v35 }
 0x20d   : > { %v2707_v36 = vunpack.c.h.s8.bf16 %v1895_v7  ;;  %v2703_v42 = vunpack.c.l.s8.bf16 %v1895_v7 }
 0x20e   : > { %3954 = vmatpush2.bf16.msra.mxu0 %v2547_v37  ;;  %v2640_v37 = vunpack.c.l.s8.bf16 %v1864_v30 }
 0x20f   : > { %3997 = vmatpush2.bf16.msra.mxu1 %v2611_v38  ;;  %3955 = vmatprep.subr.bf16.mxu0 %v2544_v39  ;;  %v2704_v38 = vunpack.c.l.s8.bf16 %v1896_v24  ;;  %v1860_v39 = vld [vmem:[%s7608_s17 + $0x428] sm:$0xff] }
 0x210   : > { %3998 = vmatprep.subr.bf16.mxu1 %v2608_v40  ;;  %v1892_v40 = vld [vmem:[%s7608_s17 + $0x528] sm:$0xff] }
 0x212   : > { %3956 = vmatpush2.bf16.msra.mxu0 %v2543_v43  ;;  %v2636_v43 = vunpack.c.h.s8.bf16 %v1860_v39 }
 0x213   : > { %3999 = vmatpush2.bf16.msra.mxu1 %v2607_v44  ;;  %3957 = vmatprep.subr.bf16.mxu0 %v2540_v45  ;;  %v2700_v44 = vunpack.c.h.s8.bf16 %v1892_v40  ;;  %v1859_v45 = vld [vmem:[%s7608_s17 + $0x420] sm:$0xff] }
 0x214   : > { %4000 = vmatprep.subr.bf16.mxu1 %v2604_v46  ;;  %v1891_v46 = vld [vmem:[%s7608_s17 + $0x520] sm:$0xff]  ;;  %v2635_v47 = vunpack.c.h.s8.bf16 %v1859_v45  ;;  %v2631_v53 = vunpack.c.l.s8.bf16 %v1859_v45 }
 0x215   : > { %v2699_v48 = vunpack.c.h.s8.bf16 %v1891_v46  ;;  %v2695_v54 = vunpack.c.l.s8.bf16 %v1891_v46 }
 0x216   : > { %3958 = vmatpush2.bf16.msra.mxu0 %v2539_v49  ;;  %v2632_v49 = vunpack.c.l.s8.bf16 %v1860_v39 }
 0x217   : > { %4001 = vmatpush2.bf16.msra.mxu1 %v2603_v50  ;;  %3959 = vmatprep.subr.bf16.mxu0 %v2536_v51  ;;  %v2696_v50 = vunpack.c.l.s8.bf16 %v1892_v40  ;;  %v1856_v51 = vld [vmem:[%s7608_s17 + $0x408] sm:$0xff] }
 0x218   : > { %4002 = vmatprep.subr.bf16.mxu1 %v2600_v52  ;;  %v1888_v52 = vld [vmem:[%s7608_s17 + $0x508] sm:$0xff] }
 0x21a   : > { %3960 = vmatpush2.bf16.msra.mxu0 %v2535_v55  ;;  %v2628_v55 = vunpack.c.h.s8.bf16 %v1856_v51 }
 0x21b   : > { %4003 = vmatpush2.bf16.msra.mxu1 %v2599_v56  ;;  %3961 = vmatprep.subr.bf16.mxu0 %v2532_v57  ;;  %v2692_v56 = vunpack.c.h.s8.bf16 %v1888_v52  ;;  %v1855_v57 = vld [vmem:[%s7608_s17 + $0x400] sm:$0xff] }
 0x21c   : > { %4004 = vmatprep.subr.bf16.mxu1 %v2596_v58  ;;  %v1887_v58 = vld [vmem:[%s7608_s17 + $0x500] sm:$0xff]  ;;  %v2627_v59 = vunpack.c.h.s8.bf16 %v1855_v57  ;;  %v2623_v1 = vunpack.c.l.s8.bf16 %v1855_v57 }
 0x21d   : > { %v2691_v60 = vunpack.c.h.s8.bf16 %v1887_v58  ;;  %v2687_v2 = vunpack.c.l.s8.bf16 %v1887_v58 }
 0x21e   : > { %3962 = vmatpush2.bf16.msra.mxu0 %v2531_v61  ;;  %v2624_v61 = vunpack.c.l.s8.bf16 %v1856_v51 }
 0x21f   : > { %4005 = vmatpush2.bf16.msra.mxu1 %v2595_v62  ;;  %3963 = vmatprep.subr.bf16.mxu0 %v2528_v63  ;;  %v2688_v62 = vunpack.c.l.s8.bf16 %v1888_v52  ;;  %v1884_v63 = vld [vmem:[%s7608_s17 + $0x4e8] sm:$0xff] }
 0x220   : > { %4006 = vmatprep.subr.bf16.mxu1 %v2592_v0  ;;  %v1916_v0 = vld [vmem:[%s7608_s17 + $0x5e8] sm:$0xff] }
 0x222   : > { %3964 = vmatpush2.bf16.msra.mxu0 %v2527_v3  ;;  %v2684_v3 = vunpack.c.h.s8.bf16 %v1884_v63 }
 0x223   : > { %4007 = vmatpush2.bf16.msra.mxu1 %v2591_v4  ;;  %4019 = vmatprep.subr.bf16.mxu0 %v2652_v5  ;;  %v2748_v4 = vunpack.c.h.s8.bf16 %v1916_v0  ;;  %v1883_v5 = vld [vmem:[%s7608_s17 + $0x4e0] sm:$0xff] }
 0x224   : > { %4062 = vmatprep.subr.bf16.mxu1 %v2716_v6  ;;  %v1915_v6 = vld [vmem:[%s7608_s17 + $0x5e0] sm:$0xff]  ;;  %v2683_v11 = vunpack.c.h.s8.bf16 %v1883_v5  ;;  %v2679_v30 = vunpack.c.l.s8.bf16 %v1883_v5  ;;  %v7800_v5 = vld [vmem:[%s7606_s19 + $0x30] sm:$0xff] }
 0x225   : > { %3966 = vmatmul.mubr.bf16.vlgmr.msra.gmra.mxu0 %v7740_v14  ;;  %v2747_v12 = vunpack.c.h.s8.bf16 %v1915_v6  ;;  %v2743_v24 = vunpack.c.l.s8.bf16 %v1915_v6  ;;  %v7804_v6 = vcombine.low %v7736_v13, %v7747_v17  ;;  %v1928_v17 = vld [vmem:[%s7608_s17 + $0x648] sm:$0xff] }
 0x226   : > { %4009 = vmatmul.mubr.bf16.vlgmr.msra.gmra.mxu1 %v7744_v16  ;;  %4020 = vmatpush1.bf16.msra.mxu0 %v2651_v21  ;;  %v2680_v21 = vunpack.c.l.s8.bf16 %v1884_v63 }
 0x227   : > { %4063 = vmatpush1.bf16.msra.mxu1 %v2715_v22  ;;  %4021 = vmatprep.subr.bf16.mxu0 %v2648_v23  ;;  %v2744_v22 = vunpack.c.l.s8.bf16 %v1916_v0  ;;  %v1880_v23 = vld [vmem:[%s7608_s17 + $0x4c8] sm:$0xff]  ;;  %8900 = vst [vmem:[#allocation8_spill] sm:$0xff] %v7804_v6 }
 0x228   : > { %4064 = vmatprep.subr.bf16.mxu1 %v2712_v27  ;;  %4051 = vmatprep.mubr.bf16.mxu0 %v7759_v31  ;;  %v1912_v27 = vld [vmem:[%s7608_s17 + $0x5c8] sm:$0xff] }
 0x229   : > { %4094 = vmatprep.mubr.bf16.mxu1 %v7763_v32 }
 0x22a   : > { %4022 = vmatpush1.bf16.msra.mxu0 %v2647_v25  ;;  %v2676_v25 = vunpack.c.h.s8.bf16 %v1880_v23 }
 0x22b   : > { %4065 = vmatpush1.bf16.msra.mxu1 %v2711_v26  ;;  %4023 = vmatprep.subr.bf16.mxu0 %v2644_v33  ;;  %v2740_v26 = vunpack.c.h.s8.bf16 %v1912_v27  ;;  %v1879_v33 = vld [vmem:[%s7608_s17 + $0x4c0] sm:$0xff] }
 0x22c   : > { %4066 = vmatprep.subr.bf16.mxu1 %v2708_v34  ;;  %v1911_v34 = vld [vmem:[%s7608_s17 + $0x5c0] sm:$0xff]  ;;  %v2675_v35 = vunpack.c.h.s8.bf16 %v1879_v33  ;;  %v2671_v39 = vunpack.c.l.s8.bf16 %v1879_v33  ;;  %v2772_v33 = vunpack.c.h.s8.bf16 %v1928_v17 }
 0x22d   : > { %v2739_v7 = vunpack.c.h.s8.bf16 %v1911_v34  ;;  %v2735_v40 = vunpack.c.l.s8.bf16 %v1911_v34 }
 0x22e   : > { %4024 = vmatpush1.bf16.msra.mxu0 %v2643_v8  ;;  %v2672_v8 = vunpack.c.l.s8.bf16 %v1880_v23 }
 0x22f   : > { %4067 = vmatpush1.bf16.msra.mxu1 %v2707_v36  ;;  %4025 = vmatprep.subr.bf16.mxu0 %v2640_v37  ;;  %v2736_v36 = vunpack.c.l.s8.bf16 %v1912_v27  ;;  %v1876_v37 = vld [vmem:[%s7608_s17 + $0x4a8] sm:$0xff] }
 0x230   : > { %4068 = vmatprep.subr.bf16.mxu1 %v2704_v38  ;;  %v1908_v38 = vld [vmem:[%s7608_s17 + $0x5a8] sm:$0xff] }
 0x232   : > { %4026 = vmatpush1.bf16.msra.mxu0 %v2639_v41  ;;  %v2668_v41 = vunpack.c.h.s8.bf16 %v1876_v37 }
 0x233   : > { %4069 = vmatpush1.bf16.msra.mxu1 %v2703_v42  ;;  %4027 = vmatprep.subr.bf16.mxu0 %v2636_v43  ;;  %v2732_v42 = vunpack.c.h.s8.bf16 %v1908_v38  ;;  %v1875_v43 = vld [vmem:[%s7608_s17 + $0x4a0] sm:$0xff] }
 0x234   : > { %4070 = vmatprep.subr.bf16.mxu1 %v2700_v44  ;;  %v1907_v44 = vld [vmem:[%s7608_s17 + $0x5a0] sm:$0xff]  ;;  %v2667_v45 = vunpack.c.h.s8.bf16 %v1875_v43  ;;  %v2663_v51 = vunpack.c.l.s8.bf16 %v1875_v43 }
 0x235   : > { %v2731_v46 = vunpack.c.h.s8.bf16 %v1907_v44  ;;  %v2727_v52 = vunpack.c.l.s8.bf16 %v1907_v44 }
 0x236   : > { %4028 = vmatpush1.bf16.msra.mxu0 %v2635_v47  ;;  %v2664_v47 = vunpack.c.l.s8.bf16 %v1876_v37  ;;  %v2768_v37 = vunpack.c.l.s8.bf16 %v1928_v17 }
 0x237   : > { %4071 = vmatpush1.bf16.msra.mxu1 %v2699_v48  ;;  %4029 = vmatprep.subr.bf16.mxu0 %v2632_v49  ;;  %v2728_v48 = vunpack.c.l.s8.bf16 %v1908_v38  ;;  %v1872_v49 = vld [vmem:[%s7608_s17 + $0x488] sm:$0xff] }
 0x238   : > { %4072 = vmatprep.subr.bf16.mxu1 %v2696_v50  ;;  %v1904_v50 = vld [vmem:[%s7608_s17 + $0x588] sm:$0xff] }
 0x23a   : > { %4030 = vmatpush1.bf16.msra.mxu0 %v2631_v53  ;;  %v2660_v53 = vunpack.c.h.s8.bf16 %v1872_v49 }
 0x23b   : > { %4073 = vmatpush1.bf16.msra.mxu1 %v2695_v54  ;;  %4031 = vmatprep.subr.bf16.mxu0 %v2628_v55  ;;  %v2724_v54 = vunpack.c.h.s8.bf16 %v1904_v50  ;;  %v1871_v55 = vld [vmem:[%s7608_s17 + $0x480] sm:$0xff] }
 0x23c   : > { %4074 = vmatprep.subr.bf16.mxu1 %v2692_v56  ;;  %v1903_v56 = vld [vmem:[%s7608_s17 + $0x580] sm:$0xff]  ;;  %v2659_v57 = vunpack.c.h.s8.bf16 %v1871_v55  ;;  %v2655_v63 = vunpack.c.l.s8.bf16 %v1871_v55 }
 0x23d   : > { %v2723_v58 = vunpack.c.h.s8.bf16 %v1903_v56  ;;  %v2719_v0 = vunpack.c.l.s8.bf16 %v1903_v56 }
 0x23e   : > { %4032 = vmatpush1.bf16.msra.mxu0 %v2627_v59  ;;  %v2656_v59 = vunpack.c.l.s8.bf16 %v1872_v49 }
 0x23f   : > { %4075 = vmatpush1.bf16.msra.mxu1 %v2691_v60  ;;  %4033 = vmatprep.subr.bf16.mxu0 %v2624_v61  ;;  %v2720_v60 = vunpack.c.l.s8.bf16 %v1904_v50  ;;  %v1932_v61 = vld [vmem:[%s7608_s17 + $0x668] sm:$0xff] }
 0x240   : > { %4076 = vmatprep.subr.bf16.mxu1 %v2688_v62  ;;  %v1964_v62 = vld [vmem:[%s7608_s17 + $0x768] sm:$0xff] }
 0x241   : > { %v2840_v13 = vunpack.c.l.s8.bf16 %v1964_v62 }
 0x242   : > { %4034 = vmatpush1.bf16.msra.mxu0 %v2623_v1  ;;  %v2780_v1 = vunpack.c.h.s8.bf16 %v1932_v61 }
 0x243   : > { %4077 = vmatpush1.bf16.msra.mxu1 %v2687_v2  ;;  %4035 = vmatprep.subr.bf16.mxu0 %v2684_v3  ;;  %v2844_v2 = vunpack.c.h.s8.bf16 %v1964_v62  ;;  %v1931_v3 = vld [vmem:[%s7608_s17 + $0x660] sm:$0xff] }
 0x244   : > { %4078 = vmatprep.subr.bf16.mxu1 %v2748_v4  ;;  %v1963_v4 = vld [vmem:[%s7608_s17 + $0x760] sm:$0xff]  ;;  %v2779_v23 = vunpack.c.h.s8.bf16 %v1931_v3 }
 0x245   : > { %v2843_v27 = vunpack.c.h.s8.bf16 %v1963_v4 }
 0x246   : > { %4036 = vmatpush2.bf16.msra.mxu0 %v2683_v11  ;;  %v7808_v11 = vcombine.low %v7750_v19, %v7753_v20 }
 0x247   : > { %4079 = vmatpush2.bf16.msra.mxu1 %v2747_v12  ;;  %4037 = vmatprep.subr.bf16.mxu0 %v2680_v21  ;;  %v7811_v12 = vld [vmem:[%s7606_s19 + $0xd0] sm:$0xff]  ;;  %v7814_v21 = vld [vmem:[%s7606_s19 + $0x38] sm:$0xff] }
 0x248   : > { %4080 = vmatprep.subr.bf16.mxu1 %v2744_v22  ;;  %8901 = vst [vmem:[#allocation9_spill] sm:$0xff] %v7808_v11  ;;  %v7817_v22 = vld [vmem:[%s7606_s19 + $0xd8] sm:$0xff]  ;;  %v7823_v19 = vcombine.high %v7800_v5, %v7811_v12 }
 0x249   : > { %v7827_v20 = vcombine.high %v7814_v21, %v7817_v22 }
 0x24a   : > { %4038 = vmatpush2.bf16.msra.mxu0 %v2679_v30  ;;  %v2776_v30 = vunpack.c.l.s8.bf16 %v1932_v61  ;;  %8902 = vst [vmem:[#allocation10_spill] sm:$0xff] %v7823_v19 }
 0x24b   : > { %4081 = vmatpush2.bf16.msra.mxu1 %v2743_v24  ;;  %4039 = vmatprep.subr.bf16.mxu0 %v2676_v25  ;;  %v1960_v24 = vld [vmem:[%s7608_s17 + $0x748] sm:$0xff]  ;;  %8903 = vst [vmem:[#allocation11_spill] sm:$0xff] %v7827_v20  ;;  %v2775_v25 = vunpack.c.l.s8.bf16 %v1931_v3 }
 0x24c   : > { %4082 = vmatprep.subr.bf16.mxu1 %v2740_v26  ;;  %v2839_v26 = vunpack.c.l.s8.bf16 %v1963_v4  ;;  %v2836_v34 = vunpack.c.h.s8.bf16 %v1960_v24  ;;  %v2832_v38 = vunpack.c.l.s8.bf16 %v1960_v24 }
 0x24e   : > { %4040 = vmatpush2.bf16.msra.mxu0 %v2675_v35  ;;  %v1927_v35 = vld [vmem:[%s7608_s17 + $0x640] sm:$0xff] }
 0x24f   : > { %4083 = vmatpush2.bf16.msra.mxu1 %v2739_v7  ;;  %4041 = vmatprep.subr.bf16.mxu0 %v2672_v8  ;;  %v1959_v7 = vld [vmem:[%s7608_s17 + $0x740] sm:$0xff]  ;;  %v2771_v8 = vunpack.c.h.s8.bf16 %v1927_v35 }
 0x250   : > { %4084 = vmatprep.subr.bf16.mxu1 %v2736_v36  ;;  %v2835_v36 = vunpack.c.h.s8.bf16 %v1959_v7 }
 0x252   : > { %4042 = vmatpush2.bf16.msra.mxu0 %v2671_v39  ;;  %v1924_v39 = vld [vmem:[%s7608_s17 + $0x628] sm:$0xff] }
 0x253   : > { %4085 = vmatpush2.bf16.msra.mxu1 %v2735_v40  ;;  %4043 = vmatprep.subr.bf16.mxu0 %v2668_v41  ;;  %v1956_v40 = vld [vmem:[%s7608_s17 + $0x728] sm:$0xff]  ;;  %v2767_v41 = vunpack.c.l.s8.bf16 %v1927_v35  ;;  %v2764_v43 = vunpack.c.h.s8.bf16 %v1924_v39  ;;  %v2760_v49 = vunpack.c.l.s8.bf16 %v1924_v39 }
 0x254   : > { %4086 = vmatprep.subr.bf16.mxu1 %v2732_v42  ;;  %v2831_v42 = vunpack.c.l.s8.bf16 %v1959_v7  ;;  %v2828_v44 = vunpack.c.h.s8.bf16 %v1956_v40  ;;  %v2824_v50 = vunpack.c.l.s8.bf16 %v1956_v40 }
 0x256   : > { %4044 = vmatpush2.bf16.msra.mxu0 %v2667_v45  ;;  %v1923_v45 = vld [vmem:[%s7608_s17 + $0x620] sm:$0xff] }
 0x257   : > { %4087 = vmatpush2.bf16.msra.mxu1 %v2731_v46  ;;  %4045 = vmatprep.subr.bf16.mxu0 %v2664_v47  ;;  %v1955_v46 = vld [vmem:[%s7608_s17 + $0x720] sm:$0xff]  ;;  %v2763_v47 = vunpack.c.h.s8.bf16 %v1923_v45 }
 0x258   : > { %4088 = vmatprep.subr.bf16.mxu1 %v2728_v48  ;;  %v2827_v48 = vunpack.c.h.s8.bf16 %v1955_v46 }
 0x25a   : > { %4046 = vmatpush2.bf16.msra.mxu0 %v2663_v51  ;;  %v1920_v51 = vld [vmem:[%s7608_s17 + $0x608] sm:$0xff] }
 0x25b   : > { %4089 = vmatpush2.bf16.msra.mxu1 %v2727_v52  ;;  %4047 = vmatprep.subr.bf16.mxu0 %v2660_v53  ;;  %v1952_v52 = vld [vmem:[%s7608_s17 + $0x708] sm:$0xff]  ;;  %v2759_v53 = vunpack.c.l.s8.bf16 %v1923_v45  ;;  %v2756_v55 = vunpack.c.h.s8.bf16 %v1920_v51  ;;  %v2752_v61 = vunpack.c.l.s8.bf16 %v1920_v51 }
 0x25c   : > { %4090 = vmatprep.subr.bf16.mxu1 %v2724_v54  ;;  %v2823_v54 = vunpack.c.l.s8.bf16 %v1955_v46  ;;  %v2820_v56 = vunpack.c.h.s8.bf16 %v1952_v52  ;;  %v2816_v62 = vunpack.c.l.s8.bf16 %v1952_v52 }
 0x25e   : > { %4048 = vmatpush2.bf16.msra.mxu0 %v2659_v57  ;;  %v1919_v57 = vld [vmem:[%s7608_s17 + $0x600] sm:$0xff] }
 0x25f   : > { %4091 = vmatpush2.bf16.msra.mxu1 %v2723_v58  ;;  %4049 = vmatprep.subr.bf16.mxu0 %v2656_v59  ;;  %v1951_v58 = vld [vmem:[%s7608_s17 + $0x700] sm:$0xff]  ;;  %v2755_v59 = vunpack.c.h.s8.bf16 %v1919_v57 }
 0x260   : > { %4092 = vmatprep.subr.bf16.mxu1 %v2720_v60  ;;  %v2819_v60 = vunpack.c.h.s8.bf16 %v1951_v58 }
 0x262   : > { %4050 = vmatpush2.bf16.msra.mxu0 %v2655_v63  ;;  %v1948_v63 = vld [vmem:[%s7608_s17 + $0x6e8] sm:$0xff] }
 0x263   : > { %4093 = vmatpush2.bf16.msra.mxu1 %v2719_v0  ;;  %4105 = vmatprep.subr.bf16.mxu0 %v2780_v1  ;;  %v1980_v0 = vld [vmem:[%s7608_s17 + $0x7e8] sm:$0xff]  ;;  %v2751_v1 = vunpack.c.l.s8.bf16 %v1919_v57  ;;  %v2812_v3 = vunpack.c.h.s8.bf16 %v1948_v63  ;;  %v2808_v17 = vunpack.c.l.s8.bf16 %v1948_v63 }
 0x264   : > { %4148 = vmatprep.subr.bf16.mxu1 %v2844_v2  ;;  %v2815_v2 = vunpack.c.l.s8.bf16 %v1951_v58  ;;  %v2876_v4 = vunpack.c.h.s8.bf16 %v1980_v0  ;;  %v2872_v24 = vunpack.c.l.s8.bf16 %v1980_v0 }
 0x265   : > { %4052 = vmatmul.mubr.bf16.vlgmr.msra.gmra.mxu0 %v7804_v6 }
 0x266   : > { %4095 = vmatmul.mubr.bf16.vlgmr.msra.gmra.mxu1 %v7808_v11  ;;  %4106 = vmatpush1.bf16.msra.mxu0 %v2779_v23  ;;  %v1947_v23 = vld [vmem:[%s7608_s17 + $0x6e0] sm:$0xff] }
 0x267   : > { %4149 = vmatpush1.bf16.msra.mxu1 %v2843_v27  ;;  %4107 = vmatprep.subr.bf16.mxu0 %v2776_v30  ;;  %v1979_v27 = vld [vmem:[%s7608_s17 + $0x7e0] sm:$0xff]  ;;  %v2811_v30 = vunpack.c.h.s8.bf16 %v1947_v23 }
 0x268   : > { %4150 = vmatprep.subr.bf16.mxu1 %v2840_v13  ;;  %4137 = vmatprep.mubr.bf16.mxu0 %v7823_v19  ;;  %v2875_v13 = vunpack.c.h.s8.bf16 %v1979_v27 }
 0x269   : > { %4180 = vmatprep.mubr.bf16.mxu1 %v7827_v20 }
 0x26a   : > { %4108 = vmatpush1.bf16.msra.mxu0 %v2775_v25  ;;  %v1944_v25 = vld [vmem:[%s7608_s17 + $0x6c8] sm:$0xff] }
 0x26b   : > { %4151 = vmatpush1.bf16.msra.mxu1 %v2839_v26  ;;  %4109 = vmatprep.subr.bf16.mxu0 %v2772_v33  ;;  %v1976_v26 = vld [vmem:[%s7608_s17 + $0x7c8] sm:$0xff]  ;;  %v2807_v33 = vunpack.c.l.s8.bf16 %v1947_v23  ;;  %v2804_v35 = vunpack.c.h.s8.bf16 %v1944_v25  ;;  %v2800_v39 = vunpack.c.l.s8.bf16 %v1944_v25  ;;  %v7872_v25 = vcombine.low %v7814_v21, %v7817_v22 }
 0x26c   : > { %4152 = vmatprep.subr.bf16.mxu1 %v2836_v34  ;;  %v2871_v34 = vunpack.c.l.s8.bf16 %v1979_v27  ;;  %v2868_v7 = vunpack.c.h.s8.bf16 %v1976_v26  ;;  %v2864_v40 = vunpack.c.l.s8.bf16 %v1976_v26  ;;  %v7875_v26 = vld [vmem:[%s7606_s19 + $0xe0] sm:$0xff] }
 0x26d   : > { %8905 = vst [vmem:[#allocation13_spill] sm:$0xff] %v7872_v25 }
 0x26e   : > { %4110 = vmatpush1.bf16.msra.mxu0 %v2771_v8  ;;  %v1943_v8 = vld [vmem:[%s7608_s17 + $0x6c0] sm:$0xff] }
 0x26f   : > { %4153 = vmatpush1.bf16.msra.mxu1 %v2835_v36  ;;  %4111 = vmatprep.subr.bf16.mxu0 %v2768_v37  ;;  %v1975_v36 = vld [vmem:[%s7608_s17 + $0x7c0] sm:$0xff]  ;;  %v2803_v37 = vunpack.c.h.s8.bf16 %v1943_v8 }
 0x270   : > { %4154 = vmatprep.subr.bf16.mxu1 %v2832_v38  ;;  %v2867_v38 = vunpack.c.h.s8.bf16 %v1975_v36 }
 0x272   : > { %4112 = vmatpush1.bf16.msra.mxu0 %v2767_v41  ;;  %v1940_v41 = vld [vmem:[%s7608_s17 + $0x6a8] sm:$0xff] }
 0x273   : > { %4155 = vmatpush1.bf16.msra.mxu1 %v2831_v42  ;;  %4113 = vmatprep.subr.bf16.mxu0 %v2764_v43  ;;  %v1972_v42 = vld [vmem:[%s7608_s17 + $0x7a8] sm:$0xff]  ;;  %v2799_v43 = vunpack.c.l.s8.bf16 %v1943_v8  ;;  %v2796_v45 = vunpack.c.h.s8.bf16 %v1940_v41  ;;  %v2792_v51 = vunpack.c.l.s8.bf16 %v1940_v41  ;;  %v1991_v41 = vld [vmem:[%s7608_s17 + $0x840] sm:$0xff] }
 0x274   : > { %4156 = vmatprep.subr.bf16.mxu1 %v2828_v44  ;;  %v2863_v44 = vunpack.c.l.s8.bf16 %v1975_v36  ;;  %v2860_v46 = vunpack.c.h.s8.bf16 %v1972_v42  ;;  %v2856_v52 = vunpack.c.l.s8.bf16 %v1972_v42  ;;  %v2024_v36 = vld [vmem:[%s7608_s17 + $0x948] sm:$0xff]  ;;  %v2023_v42 = vld [vmem:[%s7608_s17 + $0x940] sm:$0xff] }
 0x276   : > { %4114 = vmatpush1.bf16.msra.mxu0 %v2763_v47  ;;  %v1939_v47 = vld [vmem:[%s7608_s17 + $0x6a0] sm:$0xff] }
 0x277   : > { %4157 = vmatpush1.bf16.msra.mxu1 %v2827_v48  ;;  %4115 = vmatprep.subr.bf16.mxu0 %v2760_v49  ;;  %v1971_v48 = vld [vmem:[%s7608_s17 + $0x7a0] sm:$0xff]  ;;  %v2795_v49 = vunpack.c.h.s8.bf16 %v1939_v47 }
 0x278   : > { %4158 = vmatprep.subr.bf16.mxu1 %v2824_v50  ;;  %v2859_v50 = vunpack.c.h.s8.bf16 %v1971_v48 }
 0x27a   : > { %4116 = vmatpush1.bf16.msra.mxu0 %v2759_v53  ;;  %v1936_v53 = vld [vmem:[%s7608_s17 + $0x688] sm:$0xff] }
 0x27b   : > { %4159 = vmatpush1.bf16.msra.mxu1 %v2823_v54  ;;  %4117 = vmatprep.subr.bf16.mxu0 %v2756_v55  ;;  %v1968_v54 = vld [vmem:[%s7608_s17 + $0x788] sm:$0xff]  ;;  %v2791_v55 = vunpack.c.l.s8.bf16 %v1939_v47  ;;  %v2788_v57 = vunpack.c.h.s8.bf16 %v1936_v53  ;;  %v2784_v63 = vunpack.c.l.s8.bf16 %v1936_v53  ;;  %v1987_v53 = vld [vmem:[%s7608_s17 + $0x820] sm:$0xff] }
 0x27c   : > { %4160 = vmatprep.subr.bf16.mxu1 %v2820_v56  ;;  %v2855_v56 = vunpack.c.l.s8.bf16 %v1971_v48  ;;  %v2852_v58 = vunpack.c.h.s8.bf16 %v1968_v54  ;;  %v2848_v0 = vunpack.c.l.s8.bf16 %v1968_v54  ;;  %v1988_v47 = vld [vmem:[%s7608_s17 + $0x828] sm:$0xff]  ;;  %v2019_v54 = vld [vmem:[%s7608_s17 + $0x920] sm:$0xff] }
 0x27d   : > { %v2020_v48 = vld [vmem:[%s7608_s17 + $0x928] sm:$0xff] }
 0x27e   : > { %4118 = vmatpush1.bf16.msra.mxu0 %v2755_v59  ;;  %v1935_v59 = vld [vmem:[%s7608_s17 + $0x680] sm:$0xff] }
 0x27f   : > { %4161 = vmatpush1.bf16.msra.mxu1 %v2819_v60  ;;  %4119 = vmatprep.subr.bf16.mxu0 %v2752_v61  ;;  %v1967_v60 = vld [vmem:[%s7608_s17 + $0x780] sm:$0xff]  ;;  %v2787_v61 = vunpack.c.h.s8.bf16 %v1935_v59 }
 0x280   : > { %4162 = vmatprep.subr.bf16.mxu1 %v2816_v62  ;;  %v2851_v62 = vunpack.c.h.s8.bf16 %v1967_v60 }
 0x282   : > { %4120 = vmatpush1.bf16.msra.mxu0 %v2751_v1  ;;  %v1996_v1 = vld [vmem:[%s7608_s17 + $0x868] sm:$0xff] }
 0x283   : > { %4163 = vmatpush1.bf16.msra.mxu1 %v2815_v2  ;;  %4121 = vmatprep.subr.bf16.mxu0 %v2812_v3  ;;  %v2028_v2 = vld [vmem:[%s7608_s17 + $0x968] sm:$0xff]  ;;  %v2783_v3 = vunpack.c.l.s8.bf16 %v1935_v59  ;;  %v2908_v23 = vunpack.c.h.s8.bf16 %v1996_v1  ;;  %v2904_v8 = vunpack.c.l.s8.bf16 %v1996_v1  ;;  %v1983_v1 = vld [vmem:[%s7608_s17 + $0x800] sm:$0xff] }
 0x284   : > { %4164 = vmatprep.subr.bf16.mxu1 %v2876_v4  ;;  %v2847_v4 = vunpack.c.l.s8.bf16 %v1967_v60  ;;  %v2972_v27 = vunpack.c.h.s8.bf16 %v2028_v2  ;;  %v1984_v59 = vld [vmem:[%s7608_s17 + $0x808] sm:$0xff] }
 0x285   : > { %v2016_v60 = vld [vmem:[%s7608_s17 + $0x908] sm:$0xff] }
 0x286   : > { %4122 = vmatpush2.bf16.msra.mxu0 %v2811_v30  ;;  %v1995_v30 = vld [vmem:[%s7608_s17 + $0x860] sm:$0xff] }
 0x287   : > { %4165 = vmatpush2.bf16.msra.mxu1 %v2875_v13  ;;  %4123 = vmatprep.subr.bf16.mxu0 %v2808_v17  ;;  %v2027_v13 = vld [vmem:[%s7608_s17 + $0x960] sm:$0xff] }
 0x288   : > { %4166 = vmatprep.subr.bf16.mxu1 %v2872_v24  ;;  %v7864_v17 = vld [vmem:[%s7606_s19 + $0x40] sm:$0xff]  ;;  %v7868_v24 = vcombine.low %v7800_v5, %v7811_v12  ;;  %v2968_v5 = vunpack.c.l.s8.bf16 %v2028_v2  ;;  %v1992_v12 = vld [vmem:[%s7608_s17 + $0x848] sm:$0xff] }
 0x289   : > { %v7887_v21 = vcombine.high %v7864_v17, %v7875_v26  ;;  %v2015_v2 = vld [vmem:[%s7608_s17 + $0x900] sm:$0xff] }
 0x28a   : > { %4124 = vmatpush2.bf16.msra.mxu0 %v2807_v33  ;;  %8904 = vst [vmem:[#allocation12_spill] sm:$0xff] %v7868_v24  ;;  %v7878_v33 = vld [vmem:[%s7606_s19 + $0x48] sm:$0xff] }
 0x28b   : > { %4167 = vmatpush2.bf16.msra.mxu1 %v2871_v34  ;;  %4125 = vmatprep.subr.bf16.mxu0 %v2804_v35  ;;  %v7881_v34 = vld [vmem:[%s7606_s19 + $0xe8] sm:$0xff]  ;;  %v2907_v35 = vunpack.c.h.s8.bf16 %v1995_v30  ;;  %8906 = vst [vmem:[#allocation14_spill] sm:$0xff] %v7887_v21 }
 0x28c   : > { %4168 = vmatprep.subr.bf16.mxu1 %v2868_v7  ;;  %v2971_v7 = vunpack.c.h.s8.bf16 %v2027_v13  ;;  %v7891_v22 = vcombine.high %v7878_v33, %v7881_v34 }
 0x28e   : > { %4126 = vmatpush2.bf16.msra.mxu0 %v2803_v37  ;;  %8907 = vst [vmem:[#allocation15_spill] sm:$0xff] %v7891_v22  ;;  %v2903_v37 = vunpack.c.l.s8.bf16 %v1995_v30  ;;  %v2012_v30 = vld [vmem:[%s7608_s17 + $0x8e8] sm:$0xff] }
 0x28f   : > { %4169 = vmatpush2.bf16.msra.mxu1 %v2867_v38  ;;  %4127 = vmatprep.subr.bf16.mxu0 %v2800_v39  ;;  %v2967_v38 = vunpack.c.l.s8.bf16 %v2027_v13  ;;  %v2900_v39 = vunpack.c.h.s8.bf16 %v1992_v12  ;;  %v2044_v13 = vld [vmem:[%s7608_s17 + $0x9e8] sm:$0xff] }
 0x290   : > { %4170 = vmatprep.subr.bf16.mxu1 %v2864_v40  ;;  %v2964_v40 = vunpack.c.h.s8.bf16 %v2024_v36 }
 0x292   : > { %4128 = vmatpush2.bf16.msra.mxu0 %v2799_v43  ;;  %v2899_v43 = vunpack.c.h.s8.bf16 %v1991_v41 }
 0x293   : > { %4171 = vmatpush2.bf16.msra.mxu1 %v2863_v44  ;;  %4129 = vmatprep.subr.bf16.mxu0 %v2796_v45  ;;  %v2963_v44 = vunpack.c.h.s8.bf16 %v2023_v42  ;;  %v2896_v45 = vunpack.c.l.s8.bf16 %v1992_v12  ;;  %v2011_v12 = vld [vmem:[%s7608_s17 + $0x8e0] sm:$0xff] }
 0x294   : > { %4172 = vmatprep.subr.bf16.mxu1 %v2860_v46  ;;  %v2960_v46 = vunpack.c.l.s8.bf16 %v2024_v36  ;;  %v2043_v36 = vld [vmem:[%s7608_s17 + $0x9e0] sm:$0xff] }
 0x296   : > { %4130 = vmatpush2.bf16.msra.mxu0 %v2795_v49  ;;  %v2895_v49 = vunpack.c.l.s8.bf16 %v1991_v41  ;;  %v2008_v41 = vld [vmem:[%s7608_s17 + $0x8c8] sm:$0xff] }
 0x297   : > { %4173 = vmatpush2.bf16.msra.mxu1 %v2859_v50  ;;  %4131 = vmatprep.subr.bf16.mxu0 %v2792_v51  ;;  %v2959_v50 = vunpack.c.l.s8.bf16 %v2023_v42  ;;  %v2892_v51 = vunpack.c.h.s8.bf16 %v1988_v47  ;;  %v2040_v42 = vld [vmem:[%s7608_s17 + $0x9c8] sm:$0xff] }
 0x298   : > { %4174 = vmatprep.subr.bf16.mxu1 %v2856_v52  ;;  %v2956_v52 = vunpack.c.h.s8.bf16 %v2020_v48 }
 0x29a   : > { %4132 = vmatpush2.bf16.msra.mxu0 %v2791_v55  ;;  %v2891_v55 = vunpack.c.h.s8.bf16 %v1987_v53 }
 0x29b   : > { %4175 = vmatpush2.bf16.msra.mxu1 %v2855_v56  ;;  %4133 = vmatprep.subr.bf16.mxu0 %v2788_v57  ;;  %v2955_v56 = vunpack.c.h.s8.bf16 %v2019_v54  ;;  %v2888_v57 = vunpack.c.l.s8.bf16 %v1988_v47  ;;  %v2007_v47 = vld [vmem:[%s7608_s17 + $0x8c0] sm:$0xff] }
 0x29c   : > { %4176 = vmatprep.subr.bf16.mxu1 %v2852_v58  ;;  %v2952_v58 = vunpack.c.l.s8.bf16 %v2020_v48  ;;  %v2039_v48 = vld [vmem:[%s7608_s17 + $0x9c0] sm:$0xff] }
 0x29e   : > { %4134 = vmatpush2.bf16.msra.mxu0 %v2787_v61  ;;  %v2887_v61 = vunpack.c.l.s8.bf16 %v1987_v53  ;;  %v2004_v53 = vld [vmem:[%s7608_s17 + $0x8a8] sm:$0xff] }
 0x29f   : > { %4177 = vmatpush2.bf16.msra.mxu1 %v2851_v62  ;;  %4135 = vmatprep.subr.bf16.mxu0 %v2784_v63  ;;  %v2951_v62 = vunpack.c.l.s8.bf16 %v2019_v54  ;;  %v2884_v63 = vunpack.c.h.s8.bf16 %v1984_v59  ;;  %v2036_v54 = vld [vmem:[%s7608_s17 + $0x9a8] sm:$0xff] }
 0x2a0   : > { %4178 = vmatprep.subr.bf16.mxu1 %v2848_v0  ;;  %v2948_v0 = vunpack.c.h.s8.bf16 %v2016_v60 }
 0x2a2   : > { %4136 = vmatpush2.bf16.msra.mxu0 %v2783_v3  ;;  %v2883_v3 = vunpack.c.h.s8.bf16 %v1983_v1 }
 0x2a3   : > { %4179 = vmatpush2.bf16.msra.mxu1 %v2847_v4  ;;  %4191 = vmatprep.subr.bf16.mxu0 %v2908_v23  ;;  %v2947_v4 = vunpack.c.h.s8.bf16 %v2015_v2  ;;  %v2880_v23 = vunpack.c.l.s8.bf16 %v1984_v59  ;;  %v2003_v59 = vld [vmem:[%s7608_s17 + $0x8a0] sm:$0xff] }
 0x2a4   : > { %4234 = vmatprep.subr.bf16.mxu1 %v2972_v27  ;;  %v2944_v27 = vunpack.c.l.s8.bf16 %v2016_v60  ;;  %v2035_v60 = vld [vmem:[%s7608_s17 + $0x9a0] sm:$0xff] }
 0x2a5   : > { %4138 = vmatmul.mubr.bf16.vlgmr.msra.gmra.mxu0 %v7868_v24 }
 0x2a6   : > { %4181 = vmatmul.mubr.bf16.vlgmr.msra.gmra.mxu1 %v7872_v25  ;;  %4192 = vmatpush1.bf16.msra.mxu0 %v2907_v35  ;;  %v2879_v35 = vunpack.c.l.s8.bf16 %v1983_v1  ;;  %v2000_v1 = vld [vmem:[%s7608_s17 + $0x888] sm:$0xff] }
 0x2a7   : > { %4235 = vmatpush1.bf16.msra.mxu1 %v2971_v7  ;;  %4193 = vmatprep.subr.bf16.mxu0 %v2904_v8  ;;  %v2943_v7 = vunpack.c.l.s8.bf16 %v2015_v2  ;;  %v2940_v8 = vunpack.c.h.s8.bf16 %v2012_v30  ;;  %v2032_v2 = vld [vmem:[%s7608_s17 + $0x988] sm:$0xff] }
 0x2a8   : > { %4236 = vmatprep.subr.bf16.mxu1 %v2968_v5  ;;  %4223 = vmatprep.mubr.bf16.mxu0 %v7887_v21  ;;  %v3004_v5 = vunpack.c.h.s8.bf16 %v2044_v13  ;;  %v1893_v21 = vld [vmem:[%s7608_s17 + $0x530] sm:$0xff] }
 0x2a9   : > { %4266 = vmatprep.mubr.bf16.mxu1 %v7891_v22  ;;  %v2701_v24 = vunpack.c.h.s8.bf16 %v1893_v21 }
 0x2aa   : > { %4194 = vmatpush1.bf16.msra.mxu0 %v2903_v37  ;;  %v2939_v37 = vunpack.c.h.s8.bf16 %v2011_v12 }
 0x2ab   : > { %4237 = vmatpush1.bf16.msra.mxu1 %v2967_v38  ;;  %4195 = vmatprep.subr.bf16.mxu0 %v2900_v39  ;;  %v3003_v38 = vunpack.c.h.s8.bf16 %v2043_v36  ;;  %v2936_v39 = vunpack.c.l.s8.bf16 %v2012_v30  ;;  %v1999_v30 = vld [vmem:[%s7608_s17 + $0x880] sm:$0xff] }
 0x2ac   : > { %4238 = vmatprep.subr.bf16.mxu1 %v2964_v40  ;;  %v3000_v40 = vunpack.c.l.s8.bf16 %v2044_v13  ;;  %v2031_v13 = vld [vmem:[%s7608_s17 + $0x980] sm:$0xff] }
 0x2ae   : > { %4196 = vmatpush1.bf16.msra.mxu0 %v2899_v43  ;;  %v2935_v43 = vunpack.c.l.s8.bf16 %v2011_v12  ;;  %v2060_v12 = vld [vmem:[%s7608_s17 + $0xa68] sm:$0xff] }
 0x2af   : > { %4239 = vmatpush1.bf16.msra.mxu1 %v2963_v44  ;;  %4197 = vmatprep.subr.bf16.mxu0 %v2896_v45  ;;  %v2999_v44 = vunpack.c.l.s8.bf16 %v2043_v36  ;;  %v2932_v45 = vunpack.c.h.s8.bf16 %v2008_v41  ;;  %v2092_v36 = vld [vmem:[%s7608_s17 + $0xb68] sm:$0xff] }
 0x2b0   : > { %4240 = vmatprep.subr.bf16.mxu1 %v2960_v46  ;;  %v2996_v46 = vunpack.c.h.s8.bf16 %v2040_v42 }
 0x2b2   : > { %4198 = vmatpush1.bf16.msra.mxu0 %v2895_v49  ;;  %v2931_v49 = vunpack.c.h.s8.bf16 %v2007_v47 }
 0x2b3   : > { %4241 = vmatpush1.bf16.msra.mxu1 %v2959_v50  ;;  %4199 = vmatprep.subr.bf16.mxu0 %v2892_v51  ;;  %v2995_v50 = vunpack.c.h.s8.bf16 %v2039_v48  ;;  %v2928_v51 = vunpack.c.l.s8.bf16 %v2008_v41  ;;  %v2059_v41 = vld [vmem:[%s7608_s17 + $0xa60] sm:$0xff] }
 0x2b4   : > { %4242 = vmatprep.subr.bf16.mxu1 %v2956_v52  ;;  %v2992_v52 = vunpack.c.l.s8.bf16 %v2040_v42  ;;  %v2091_v42 = vld [vmem:[%s7608_s17 + $0xb60] sm:$0xff] }
 0x2b6   : > { %4200 = vmatpush1.bf16.msra.mxu0 %v2891_v55  ;;  %v2927_v55 = vunpack.c.l.s8.bf16 %v2007_v47  ;;  %v7942_v47 = vld [vmem:[%s7606_s19 + $0x58] sm:$0xff] }
 0x2b7   : > { %4243 = vmatpush1.bf16.msra.mxu1 %v2955_v56  ;;  %4201 = vmatprep.subr.bf16.mxu0 %v2888_v57  ;;  %v2991_v56 = vunpack.c.l.s8.bf16 %v2039_v48  ;;  %v2924_v57 = vunpack.c.h.s8.bf16 %v2004_v53  ;;  %v7945_v48 = vld [vmem:[%s7606_s19 + $0xf8] sm:$0xff] }
 0x2b8   : > { %4244 = vmatprep.subr.bf16.mxu1 %v2952_v58  ;;  %v2988_v58 = vunpack.c.h.s8.bf16 %v2036_v54 }
 0x2ba   : > { %4202 = vmatpush1.bf16.msra.mxu0 %v2887_v61  ;;  %v2923_v61 = vunpack.c.h.s8.bf16 %v2003_v59 }
 0x2bb   : > { %4245 = vmatpush1.bf16.msra.mxu1 %v2951_v62  ;;  %4203 = vmatprep.subr.bf16.mxu0 %v2884_v63  ;;  %v2987_v62 = vunpack.c.h.s8.bf16 %v2035_v60  ;;  %v2920_v63 = vunpack.c.l.s8.bf16 %v2004_v53  ;;  %v3031_v53 = vunpack.c.l.s8.bf16 %v2059_v41 }
 0x2bc   : > { %4246 = vmatprep.subr.bf16.mxu1 %v2948_v0  ;;  %v2984_v0 = vunpack.c.l.s8.bf16 %v2036_v54  ;;  %v3095_v54 = vunpack.c.l.s8.bf16 %v2091_v42 }
 0x2be   : > { %4204 = vmatpush1.bf16.msra.mxu0 %v2883_v3  ;;  %v2919_v3 = vunpack.c.l.s8.bf16 %v2003_v59 }
 0x2bf   : > { %4247 = vmatpush1.bf16.msra.mxu1 %v2947_v4  ;;  %4205 = vmatprep.subr.bf16.mxu0 %v2880_v23  ;;  %v2983_v4 = vunpack.c.l.s8.bf16 %v2035_v60  ;;  %v2916_v23 = vunpack.c.h.s8.bf16 %v2000_v1 }
 0x2c0   : > { %4248 = vmatprep.subr.bf16.mxu1 %v2944_v27  ;;  %v2980_v27 = vunpack.c.h.s8.bf16 %v2032_v2 }
 0x2c2   : > { %4206 = vmatpush1.bf16.msra.mxu0 %v2879_v35  ;;  %v2915_v35 = vunpack.c.h.s8.bf16 %v1999_v30 }
 0x2c3   : > { %4249 = vmatpush1.bf16.msra.mxu1 %v2943_v7  ;;  %4207 = vmatprep.subr.bf16.mxu0 %v2940_v8  ;;  %v2979_v7 = vunpack.c.h.s8.bf16 %v2031_v13  ;;  %v2912_v8 = vunpack.c.l.s8.bf16 %v2000_v1 }
 0x2c4   : > { %4250 = vmatprep.subr.bf16.mxu1 %v3004_v5  ;;  %v2976_v5 = vunpack.c.l.s8.bf16 %v2032_v2 }
 0x2c6   : > { %4208 = vmatpush2.bf16.msra.mxu0 %v2939_v37  ;;  %v2911_v37 = vunpack.c.l.s8.bf16 %v1999_v30 }
 0x2c7   : > { %4251 = vmatpush2.bf16.msra.mxu1 %v3003_v38  ;;  %4209 = vmatprep.subr.bf16.mxu0 %v2936_v39  ;;  %v2975_v38 = vunpack.c.l.s8.bf16 %v2031_v13  ;;  %v3036_v39 = vunpack.c.h.s8.bf16 %v2060_v12 }
 0x2c8   : > { %4252 = vmatprep.subr.bf16.mxu1 %v3000_v40  ;;  %v3100_v40 = vunpack.c.h.s8.bf16 %v2092_v36 }
 0x2ca   : > { %4210 = vmatpush2.bf16.msra.mxu0 %v2935_v43  ;;  %v7928_v43 = vld [vmem:[%s7606_s19 + $0x50] sm:$0xff] }
 0x2cb   : > { %4253 = vmatpush2.bf16.msra.mxu1 %v2999_v44  ;;  %4211 = vmatprep.subr.bf16.mxu0 %v2932_v45  ;;  %v7932_v44 = vcombine.low %v7864_v17, %v7875_v26  ;;  %v7936_v45 = vcombine.low %v7878_v33, %v7881_v34  ;;  %v3096_v17 = vunpack.c.l.s8.bf16 %v2092_v36  ;;  %v2056_v26 = vld [vmem:[%s7608_s17 + $0xa48] sm:$0xff]  ;;  %v7955_v34 = vcombine.high %v7942_v47, %v7945_v48 }
 0x2cc   : > { %4254 = vmatprep.subr.bf16.mxu1 %v2996_v46  ;;  %v7939_v46 = vld [vmem:[%s7606_s19 + $0xf0] sm:$0xff] }
 0x2cd   : > { %8908 = vst [vmem:[#allocation16_spill] sm:$0xff] %v7932_v44  ;;  %8909 = vst [vmem:[#allocation17_spill] sm:$0xff] %v7936_v45  ;;  %v7951_v33 = vcombine.high %v7928_v43, %v7939_v46 }
 0x2ce   : > { %4212 = vmatpush2.bf16.msra.mxu0 %v2931_v49  ;;  %v3035_v49 = vunpack.c.h.s8.bf16 %v2059_v41  ;;  %8911 = vst [vmem:[#allocation19_spill] sm:$0xff] %v7955_v34 }
 0x2cf   : > { %4255 = vmatpush2.bf16.msra.mxu1 %v2995_v50  ;;  %4213 = vmatprep.subr.bf16.mxu0 %v2928_v51  ;;  %v3099_v50 = vunpack.c.h.s8.bf16 %v2091_v42  ;;  %v3032_v51 = vunpack.c.l.s8.bf16 %v2060_v12  ;;  %8910 = vst [vmem:[#allocation18_spill] sm:$0xff] %v7951_v33 }
 0x2d0   : > { %4256 = vmatprep.subr.bf16.mxu1 %v2992_v52  ;;  %v2088_v52 = vld [vmem:[%s7608_s17 + $0xb48] sm:$0xff] }
 0x2d2   : > { %4214 = vmatpush2.bf16.msra.mxu0 %v2927_v55  ;;  %v3028_v55 = vunpack.c.h.s8.bf16 %v2056_v26 }
 0x2d3   : > { %4257 = vmatpush2.bf16.msra.mxu1 %v2991_v56  ;;  %4215 = vmatprep.subr.bf16.mxu0 %v2924_v57  ;;  %v3092_v56 = vunpack.c.h.s8.bf16 %v2088_v52  ;;  %v2055_v57 = vld [vmem:[%s7608_s17 + $0xa40] sm:$0xff] }
 0x2d4   : > { %4258 = vmatprep.subr.bf16.mxu1 %v2988_v58  ;;  %v2087_v58 = vld [vmem:[%s7608_s17 + $0xb40] sm:$0xff]  ;;  %v3027_v59 = vunpack.c.h.s8.bf16 %v2055_v57  ;;  %v3023_v1 = vunpack.c.l.s8.bf16 %v2055_v57 }
 0x2d5   : > { %v3091_v60 = vunpack.c.h.s8.bf16 %v2087_v58  ;;  %v3087_v2 = vunpack.c.l.s8.bf16 %v2087_v58 }
 0x2d6   : > { %4216 = vmatpush2.bf16.msra.mxu0 %v2923_v61  ;;  %v3024_v61 = vunpack.c.l.s8.bf16 %v2056_v26 }
 0x2d7   : > { %4259 = vmatpush2.bf16.msra.mxu1 %v2987_v62  ;;  %4217 = vmatprep.subr.bf16.mxu0 %v2920_v63  ;;  %v3088_v62 = vunpack.c.l.s8.bf16 %v2088_v52  ;;  %v2052_v63 = vld [vmem:[%s7608_s17 + $0xa28] sm:$0xff] }
 0x2d8   : > { %4260 = vmatprep.subr.bf16.mxu1 %v2984_v0  ;;  %v2084_v0 = vld [vmem:[%s7608_s17 + $0xb28] sm:$0xff] }
 0x2da   : > { %4218 = vmatpush2.bf16.msra.mxu0 %v2919_v3  ;;  %v3020_v3 = vunpack.c.h.s8.bf16 %v2052_v63 }
 0x2db   : > { %4261 = vmatpush2.bf16.msra.mxu1 %v2983_v4  ;;  %4219 = vmatprep.subr.bf16.mxu0 %v2916_v23  ;;  %v3084_v4 = vunpack.c.h.s8.bf16 %v2084_v0  ;;  %v2051_v23 = vld [vmem:[%s7608_s17 + $0xa20] sm:$0xff] }
 0x2dc   : > { %4262 = vmatprep.subr.bf16.mxu1 %v2980_v27  ;;  %v2083_v27 = vld [vmem:[%s7608_s17 + $0xb20] sm:$0xff]  ;;  %v3019_v30 = vunpack.c.h.s8.bf16 %v2051_v23  ;;  %v3015_v12 = vunpack.c.l.s8.bf16 %v2051_v23 }
 0x2dd   : > { %v3083_v13 = vunpack.c.h.s8.bf16 %v2083_v27  ;;  %v3079_v36 = vunpack.c.l.s8.bf16 %v2083_v27 }
 0x2de   : > { %4220 = vmatpush2.bf16.msra.mxu0 %v2915_v35  ;;  %v3016_v35 = vunpack.c.l.s8.bf16 %v2052_v63 }
 0x2df   : > { %4263 = vmatpush2.bf16.msra.mxu1 %v2979_v7  ;;  %4221 = vmatprep.subr.bf16.mxu0 %v2912_v8  ;;  %v3080_v7 = vunpack.c.l.s8.bf16 %v2084_v0  ;;  %v2048_v8 = vld [vmem:[%s7608_s17 + $0xa08] sm:$0xff] }
 0x2e0   : > { %4264 = vmatprep.subr.bf16.mxu1 %v2976_v5  ;;  %v2080_v5 = vld [vmem:[%s7608_s17 + $0xb08] sm:$0xff] }
 0x2e2   : > { %4222 = vmatpush2.bf16.msra.mxu0 %v2911_v37  ;;  %v3012_v37 = vunpack.c.h.s8.bf16 %v2048_v8 }
 0x2e3   : > { %4265 = vmatpush2.bf16.msra.mxu1 %v2975_v38  ;;  %4277 = vmatprep.subr.bf16.mxu0 %v3036_v39  ;;  %v3076_v38 = vunpack.c.h.s8.bf16 %v2080_v5  ;;  %v2047_v39 = vld [vmem:[%s7608_s17 + $0xa00] sm:$0xff] }
 0x2e4   : > { %4320 = vmatprep.subr.bf16.mxu1 %v3100_v40  ;;  %v2079_v40 = vld [vmem:[%s7608_s17 + $0xb00] sm:$0xff]  ;;  %v3011_v41 = vunpack.c.h.s8.bf16 %v2047_v39  ;;  %v3007_v26 = vunpack.c.l.s8.bf16 %v2047_v39 }
 0x2e5   : > { %4224 = vmatmul.mubr.bf16.vlgmr.msra.gmra.mxu0 %v7932_v44  ;;  %v3075_v42 = vunpack.c.h.s8.bf16 %v2079_v40  ;;  %v3071_v52 = vunpack.c.l.s8.bf16 %v2079_v40 }
 0x2e6   : > { %4267 = vmatmul.mubr.bf16.vlgmr.msra.gmra.mxu1 %v7936_v45  ;;  %4278 = vmatpush1.bf16.msra.mxu0 %v3035_v49  ;;  %v3008_v49 = vunpack.c.l.s8.bf16 %v2048_v8 }
 0x2e7   : > { %4321 = vmatpush1.bf16.msra.mxu1 %v3099_v50  ;;  %4279 = vmatprep.subr.bf16.mxu0 %v3032_v51  ;;  %v3072_v50 = vunpack.c.l.s8.bf16 %v2080_v5  ;;  %v2076_v51 = vld [vmem:[%s7608_s17 + $0xae8] sm:$0xff] }
 0x2e8   : > { %4322 = vmatprep.subr.bf16.mxu1 %v3096_v17  ;;  %4309 = vmatprep.mubr.bf16.mxu0 %v7951_v33  ;;  %v2108_v17 = vld [vmem:[%s7608_s17 + $0xbe8] sm:$0xff] }
 0x2e9   : > { %4352 = vmatprep.mubr.bf16.mxu1 %v7955_v34 }
 0x2ea   : > { %4280 = vmatpush1.bf16.msra.mxu0 %v3031_v53  ;;  %v3068_v53 = vunpack.c.h.s8.bf16 %v2076_v51 }
 0x2eb   : > { %4323 = vmatpush1.bf16.msra.mxu1 %v3095_v54  ;;  %4281 = vmatprep.subr.bf16.mxu0 %v3028_v55  ;;  %v3132_v54 = vunpack.c.h.s8.bf16 %v2108_v17  ;;  %v2075_v55 = vld [vmem:[%s7608_s17 + $0xae0] sm:$0xff] }
 0x2ec   : > { %4324 = vmatprep.subr.bf16.mxu1 %v3092_v56  ;;  %v2107_v56 = vld [vmem:[%s7608_s17 + $0xbe0] sm:$0xff]  ;;  %v3067_v57 = vunpack.c.h.s8.bf16 %v2075_v55  ;;  %v3063_v63 = vunpack.c.l.s8.bf16 %v2075_v55 }
 0x2ed   : > { %v3131_v58 = vunpack.c.h.s8.bf16 %v2107_v56  ;;  %v3127_v0 = vunpack.c.l.s8.bf16 %v2107_v56 }
 0x2ee   : > { %4282 = vmatpush1.bf16.msra.mxu0 %v3027_v59  ;;  %v3064_v59 = vunpack.c.l.s8.bf16 %v2076_v51 }
 0x2ef   : > { %4325 = vmatpush1.bf16.msra.mxu1 %v3091_v60  ;;  %4283 = vmatprep.subr.bf16.mxu0 %v3024_v61  ;;  %v3128_v60 = vunpack.c.l.s8.bf16 %v2108_v17  ;;  %v2072_v61 = vld [vmem:[%s7608_s17 + $0xac8] sm:$0xff] }
 0x2f0   : > { %4326 = vmatprep.subr.bf16.mxu1 %v3088_v62  ;;  %v2104_v62 = vld [vmem:[%s7608_s17 + $0xbc8] sm:$0xff] }
 0x2f2   : > { %4284 = vmatpush1.bf16.msra.mxu0 %v3023_v1  ;;  %v3060_v1 = vunpack.c.h.s8.bf16 %v2072_v61 }
 0x2f3   : > { %4327 = vmatpush1.bf16.msra.mxu1 %v3087_v2  ;;  %4285 = vmatprep.subr.bf16.mxu0 %v3020_v3  ;;  %v3124_v2 = vunpack.c.h.s8.bf16 %v2104_v62  ;;  %v2071_v3 = vld [vmem:[%s7608_s17 + $0xac0] sm:$0xff] }
 0x2f4   : > { %4328 = vmatprep.subr.bf16.mxu1 %v3084_v4  ;;  %v2103_v4 = vld [vmem:[%s7608_s17 + $0xbc0] sm:$0xff]  ;;  %v3059_v23 = vunpack.c.h.s8.bf16 %v2071_v3  ;;  %v3055_v8 = vunpack.c.l.s8.bf16 %v2071_v3 }
 0x2f5   : > { %v3123_v27 = vunpack.c.h.s8.bf16 %v2103_v4  ;;  %v3119_v5 = vunpack.c.l.s8.bf16 %v2103_v4  ;;  %v7992_v3 = vld [vmem:[%s7606_s19 + $0x60] sm:$0xff]  ;;  %v7996_v4 = vcombine.low %v7928_v43, %v7939_v46  ;;  %v2120_v46 = vld [vmem:[%s7608_s17 + $0xc48] sm:$0xff] }
 0x2f6   : > { %4286 = vmatpush1.bf16.msra.mxu0 %v3019_v30  ;;  %v3056_v30 = vunpack.c.l.s8.bf16 %v2072_v61 }
 0x2f7   : > { %4329 = vmatpush1.bf16.msra.mxu1 %v3083_v13  ;;  %4287 = vmatprep.subr.bf16.mxu0 %v3016_v35  ;;  %v3120_v13 = vunpack.c.l.s8.bf16 %v2104_v62  ;;  %v2068_v35 = vld [vmem:[%s7608_s17 + $0xaa8] sm:$0xff]  ;;  %8912 = vst [vmem:[#allocation20_spill] sm:$0xff] %v7996_v4 }
 0x2f8   : > { %4330 = vmatprep.subr.bf16.mxu1 %v3080_v7  ;;  %v2100_v7 = vld [vmem:[%s7608_s17 + $0xba8] sm:$0xff] }
 0x2fa   : > { %4288 = vmatpush1.bf16.msra.mxu0 %v3015_v12  ;;  %v3052_v12 = vunpack.c.h.s8.bf16 %v2068_v35 }
 0x2fb   : > { %4331 = vmatpush1.bf16.msra.mxu1 %v3079_v36  ;;  %4289 = vmatprep.subr.bf16.mxu0 %v3012_v37  ;;  %v3116_v36 = vunpack.c.h.s8.bf16 %v2100_v7  ;;  %v2067_v37 = vld [vmem:[%s7608_s17 + $0xaa0] sm:$0xff] }
 0x2fc   : > { %4332 = vmatprep.subr.bf16.mxu1 %v3076_v38  ;;  %v2099_v38 = vld [vmem:[%s7608_s17 + $0xba0] sm:$0xff]  ;;  %v3051_v39 = vunpack.c.h.s8.bf16 %v2067_v37  ;;  %v3047_v51 = vunpack.c.l.s8.bf16 %v2067_v37  ;;  %v3156_v37 = vunpack.c.h.s8.bf16 %v2120_v46 }
 0x2fd   : > { %v3115_v40 = vunpack.c.h.s8.bf16 %v2099_v38  ;;  %v3111_v17 = vunpack.c.l.s8.bf16 %v2099_v38 }
 0x2fe   : > { %4290 = vmatpush1.bf16.msra.mxu0 %v3011_v41  ;;  %v3048_v41 = vunpack.c.l.s8.bf16 %v2068_v35 }
 0x2ff   : > { %4333 = vmatpush1.bf16.msra.mxu1 %v3075_v42  ;;  %4291 = vmatprep.subr.bf16.mxu0 %v3008_v49  ;;  %v3112_v42 = vunpack.c.l.s8.bf16 %v2100_v7  ;;  %v2064_v49 = vld [vmem:[%s7608_s17 + $0xa88] sm:$0xff] }
 0x300   : > { %4334 = vmatprep.subr.bf16.mxu1 %v3072_v50  ;;  %v2096_v50 = vld [vmem:[%s7608_s17 + $0xb88] sm:$0xff] }
 0x302   : > { %4292 = vmatpush1.bf16.msra.mxu0 %v3007_v26  ;;  %v3044_v26 = vunpack.c.h.s8.bf16 %v2064_v49 }
 0x303   : > { %4335 = vmatpush1.bf16.msra.mxu1 %v3071_v52  ;;  %4293 = vmatprep.subr.bf16.mxu0 %v3068_v53  ;;  %v3108_v52 = vunpack.c.h.s8.bf16 %v2096_v50  ;;  %v2063_v53 = vld [vmem:[%s7608_s17 + $0xa80] sm:$0xff] }
 0x304   : > { %4336 = vmatprep.subr.bf16.mxu1 %v3132_v54  ;;  %v2095_v54 = vld [vmem:[%s7608_s17 + $0xb80] sm:$0xff]  ;;  %v3043_v55 = vunpack.c.h.s8.bf16 %v2063_v53  ;;  %v3039_v61 = vunpack.c.l.s8.bf16 %v2063_v53 }
 0x305   : > { %v3107_v56 = vunpack.c.h.s8.bf16 %v2095_v54  ;;  %v3103_v62 = vunpack.c.l.s8.bf16 %v2095_v54 }
 0x306   : > { %4294 = vmatpush2.bf16.msra.mxu0 %v3067_v57  ;;  %v3040_v57 = vunpack.c.l.s8.bf16 %v2064_v49  ;;  %v3152_v49 = vunpack.c.l.s8.bf16 %v2120_v46 }
 0x307   : > { %4337 = vmatpush2.bf16.msra.mxu1 %v3131_v58  ;;  %4295 = vmatprep.subr.bf16.mxu0 %v3064_v59  ;;  %v3104_v58 = vunpack.c.l.s8.bf16 %v2096_v50  ;;  %v2124_v59 = vld [vmem:[%s7608_s17 + $0xc68] sm:$0xff] }
 0x308   : > { %4338 = vmatprep.subr.bf16.mxu1 %v3128_v60  ;;  %v2156_v60 = vld [vmem:[%s7608_s17 + $0xd68] sm:$0xff] }
 0x309   : > { %v3224_v43 = vunpack.c.l.s8.bf16 %v2156_v60 }
 0x30a   : > { %4296 = vmatpush2.bf16.msra.mxu0 %v3063_v63  ;;  %v3164_v63 = vunpack.c.h.s8.bf16 %v2124_v59 }
 0x30b   : > { %4339 = vmatpush2.bf16.msra.mxu1 %v3127_v0  ;;  %4297 = vmatprep.subr.bf16.mxu0 %v3060_v1  ;;  %v3228_v0 = vunpack.c.h.s8.bf16 %v2156_v60  ;;  %v2123_v1 = vld [vmem:[%s7608_s17 + $0xc60] sm:$0xff] }
 0x30c   : > { %4340 = vmatprep.subr.bf16.mxu1 %v3124_v2  ;;  %v2155_v2 = vld [vmem:[%s7608_s17 + $0xd60] sm:$0xff]  ;;  %v3163_v35 = vunpack.c.h.s8.bf16 %v2123_v1 }
 0x30d   : > { %v3227_v7 = vunpack.c.h.s8.bf16 %v2155_v2 }
 0x30e   : > { %4298 = vmatpush2.bf16.msra.mxu0 %v3059_v23  ;;  %v8000_v23 = vcombine.low %v7942_v47, %v7945_v48 }
 0x30f   : > { %4341 = vmatpush2.bf16.msra.mxu1 %v3123_v27  ;;  %4299 = vmatprep.subr.bf16.mxu0 %v3056_v30  ;;  %v8003_v27 = vld [vmem:[%s7606_s19 + $0x100] sm:$0xff]  ;;  %v8006_v30 = vld [vmem:[%s7606_s19 + $0x68] sm:$0xff] }
 0x310   : > { %4342 = vmatprep.subr.bf16.mxu1 %v3120_v13  ;;  %8913 = vst [vmem:[#allocation21_spill] sm:$0xff] %v8000_v23  ;;  %v8009_v13 = vld [vmem:[%s7606_s19 + $0x108] sm:$0xff]  ;;  %v8015_v47 = vcombine.high %v7992_v3, %v8003_v27 }
 0x311   : > { %v8019_v48 = vcombine.high %v8006_v30, %v8009_v13 }
 0x312   : > { %4300 = vmatpush2.bf16.msra.mxu0 %v3055_v8  ;;  %v3160_v8 = vunpack.c.l.s8.bf16 %v2124_v59  ;;  %8914 = vst [vmem:[#allocation22_spill] sm:$0xff] %v8015_v47 }
 0x313   : > { %4343 = vmatpush2.bf16.msra.mxu1 %v3119_v5  ;;  %4301 = vmatprep.subr.bf16.mxu0 %v3052_v12  ;;  %v2152_v5 = vld [vmem:[%s7608_s17 + $0xd48] sm:$0xff]  ;;  %8915 = vst [vmem:[#allocation23_spill] sm:$0xff] %v8019_v48  ;;  %v3159_v12 = vunpack.c.l.s8.bf16 %v2123_v1 }
 0x314   : > { %4344 = vmatprep.subr.bf16.mxu1 %v3116_v36  ;;  %v3223_v36 = vunpack.c.l.s8.bf16 %v2155_v2  ;;  %v3220_v38 = vunpack.c.h.s8.bf16 %v2152_v5  ;;  %v3216_v50 = vunpack.c.l.s8.bf16 %v2152_v5 }
 0x316   : > { %4302 = vmatpush2.bf16.msra.mxu0 %v3051_v39  ;;  %v2119_v39 = vld [vmem:[%s7608_s17 + $0xc40] sm:$0xff] }
 0x317   : > { %4345 = vmatpush2.bf16.msra.mxu1 %v3115_v40  ;;  %4303 = vmatprep.subr.bf16.mxu0 %v3048_v41  ;;  %v2151_v40 = vld [vmem:[%s7608_s17 + $0xd40] sm:$0xff]  ;;  %v3155_v41 = vunpack.c.h.s8.bf16 %v2119_v39 }
 0x318   : > { %4346 = vmatprep.subr.bf16.mxu1 %v3112_v42  ;;  %v3219_v42 = vunpack.c.h.s8.bf16 %v2151_v40 }
 0x31a   : > { %4304 = vmatpush2.bf16.msra.mxu0 %v3047_v51  ;;  %v2116_v51 = vld [vmem:[%s7608_s17 + $0xc28] sm:$0xff] }
 0x31b   : > { %4347 = vmatpush2.bf16.msra.mxu1 %v3111_v17  ;;  %4305 = vmatprep.subr.bf16.mxu0 %v3044_v26  ;;  %v2148_v17 = vld [vmem:[%s7608_s17 + $0xd28] sm:$0xff]  ;;  %v3151_v26 = vunpack.c.l.s8.bf16 %v2119_v39  ;;  %v3148_v53 = vunpack.c.h.s8.bf16 %v2116_v51  ;;  %v3144_v59 = vunpack.c.l.s8.bf16 %v2116_v51 }
 0x31c   : > { %4348 = vmatprep.subr.bf16.mxu1 %v3108_v52  ;;  %v3215_v52 = vunpack.c.l.s8.bf16 %v2151_v40  ;;  %v3212_v54 = vunpack.c.h.s8.bf16 %v2148_v17  ;;  %v3208_v60 = vunpack.c.l.s8.bf16 %v2148_v17 }
 0x31e   : > { %4306 = vmatpush2.bf16.msra.mxu0 %v3043_v55  ;;  %v2115_v55 = vld [vmem:[%s7608_s17 + $0xc20] sm:$0xff] }
 0x31f   : > { %4349 = vmatpush2.bf16.msra.mxu1 %v3107_v56  ;;  %4307 = vmatprep.subr.bf16.mxu0 %v3040_v57  ;;  %v2147_v56 = vld [vmem:[%s7608_s17 + $0xd20] sm:$0xff]  ;;  %v3147_v57 = vunpack.c.h.s8.bf16 %v2115_v55 }
 0x320   : > { %4350 = vmatprep.subr.bf16.mxu1 %v3104_v58  ;;  %v3211_v58 = vunpack.c.h.s8.bf16 %v2147_v56 }
 0x322   : > { %4308 = vmatpush2.bf16.msra.mxu0 %v3039_v61  ;;  %v2112_v61 = vld [vmem:[%s7608_s17 + $0xc08] sm:$0xff] }
 0x323   : > { %4351 = vmatpush2.bf16.msra.mxu1 %v3103_v62  ;;  %4363 = vmatprep.subr.bf16.mxu0 %v3164_v63  ;;  %v2144_v62 = vld [vmem:[%s7608_s17 + $0xd08] sm:$0xff]  ;;  %v3143_v63 = vunpack.c.l.s8.bf16 %v2115_v55  ;;  %v3140_v1 = vunpack.c.h.s8.bf16 %v2112_v61  ;;  %v3136_v46 = vunpack.c.l.s8.bf16 %v2112_v61 }
 0x324   : > { %4406 = vmatprep.subr.bf16.mxu1 %v3228_v0  ;;  %v3207_v0 = vunpack.c.l.s8.bf16 %v2147_v56  ;;  %v3204_v2 = vunpack.c.h.s8.bf16 %v2144_v62  ;;  %v3200_v5 = vunpack.c.l.s8.bf16 %v2144_v62 }
 0x325   : > { %4310 = vmatmul.mubr.bf16.vlgmr.msra.gmra.mxu0 %v7996_v4 }
 0x326   : > { %4353 = vmatmul.mubr.bf16.vlgmr.msra.gmra.mxu1 %v8000_v23  ;;  %4364 = vmatpush1.bf16.msra.mxu0 %v3163_v35  ;;  %v2111_v35 = vld [vmem:[%s7608_s17 + $0xc00] sm:$0xff] }
 0x327   : > { %4407 = vmatpush1.bf16.msra.mxu1 %v3227_v7  ;;  %4365 = vmatprep.subr.bf16.mxu0 %v3160_v8  ;;  %v2143_v7 = vld [vmem:[%s7608_s17 + $0xd00] sm:$0xff]  ;;  %v3139_v8 = vunpack.c.h.s8.bf16 %v2111_v35 }
 0x328   : > { %4408 = vmatprep.subr.bf16.mxu1 %v3224_v43  ;;  %4395 = vmatprep.mubr.bf16.mxu0 %v8015_v47  ;;  %v3203_v43 = vunpack.c.h.s8.bf16 %v2143_v7 }
 0x329   : > { %4438 = vmatprep.mubr.bf16.mxu1 %v8019_v48 }
 0x32a   : > { %4366 = vmatpush1.bf16.msra.mxu0 %v3159_v12  ;;  %v2140_v12 = vld [vmem:[%s7608_s17 + $0xce8] sm:$0xff] }
 0x32b   : > { %4409 = vmatpush1.bf16.msra.mxu1 %v3223_v36  ;;  %4367 = vmatprep.subr.bf16.mxu0 %v3156_v37  ;;  %v2172_v36 = vld [vmem:[%s7608_s17 + $0xde8] sm:$0xff]  ;;  %v3135_v37 = vunpack.c.l.s8.bf16 %v2111_v35  ;;  %v3196_v39 = vunpack.c.h.s8.bf16 %v2140_v12  ;;  %v3192_v51 = vunpack.c.l.s8.bf16 %v2140_v12 }
 0x32c   : > { %4410 = vmatprep.subr.bf16.mxu1 %v3220_v38  ;;  %v3199_v38 = vunpack.c.l.s8.bf16 %v2143_v7  ;;  %v3260_v40 = vunpack.c.h.s8.bf16 %v2172_v36  ;;  %v3256_v17 = vunpack.c.l.s8.bf16 %v2172_v36 }
 0x32e   : > { %4368 = vmatpush1.bf16.msra.mxu0 %v3155_v41  ;;  %v2139_v41 = vld [vmem:[%s7608_s17 + $0xce0] sm:$0xff] }
 0x32f   : > { %4411 = vmatpush1.bf16.msra.mxu1 %v3219_v42  ;;  %4369 = vmatprep.subr.bf16.mxu0 %v3152_v49  ;;  %v2171_v42 = vld [vmem:[%s7608_s17 + $0xde0] sm:$0xff]  ;;  %v3195_v49 = vunpack.c.h.s8.bf16 %v2139_v41 }
 0x330   : > { %4412 = vmatprep.subr.bf16.mxu1 %v3216_v50  ;;  %v3259_v50 = vunpack.c.h.s8.bf16 %v2171_v42 }
 0x332   : > { %4370 = vmatpush1.bf16.msra.mxu0 %v3151_v26  ;;  %v2136_v26 = vld [vmem:[%s7608_s17 + $0xcc8] sm:$0xff] }
 0x333   : > { %4413 = vmatpush1.bf16.msra.mxu1 %v3215_v52  ;;  %4371 = vmatprep.subr.bf16.mxu0 %v3148_v53  ;;  %v2168_v52 = vld [vmem:[%s7608_s17 + $0xdc8] sm:$0xff]  ;;  %v3191_v53 = vunpack.c.l.s8.bf16 %v2139_v41  ;;  %v3188_v55 = vunpack.c.h.s8.bf16 %v2136_v26  ;;  %v3184_v61 = vunpack.c.l.s8.bf16 %v2136_v26 }
 0x334   : > { %4414 = vmatprep.subr.bf16.mxu1 %v3212_v54  ;;  %v3255_v54 = vunpack.c.l.s8.bf16 %v2171_v42  ;;  %v3252_v56 = vunpack.c.h.s8.bf16 %v2168_v52  ;;  %v3248_v62 = vunpack.c.l.s8.bf16 %v2168_v52 }
 0x336   : > { %4372 = vmatpush1.bf16.msra.mxu0 %v3147_v57  ;;  %v2135_v57 = vld [vmem:[%s7608_s17 + $0xcc0] sm:$0xff] }
 0x337   : > { %4415 = vmatpush1.bf16.msra.mxu1 %v3211_v58  ;;  %4373 = vmatprep.subr.bf16.mxu0 %v3144_v59  ;;  %v2167_v58 = vld [vmem:[%s7608_s17 + $0xdc0] sm:$0xff]  ;;  %v3187_v59 = vunpack.c.h.s8.bf16 %v2135_v57 }
 0x338   : > { %4416 = vmatprep.subr.bf16.mxu1 %v3208_v60  ;;  %v3251_v60 = vunpack.c.h.s8.bf16 %v2167_v58 }
 0x33a   : > { %4374 = vmatpush1.bf16.msra.mxu0 %v3143_v63  ;;  %v2132_v63 = vld [vmem:[%s7608_s17 + $0xca8] sm:$0xff] }
 0x33b   : > { %4417 = vmatpush1.bf16.msra.mxu1 %v3207_v0  ;;  %4375 = vmatprep.subr.bf16.mxu0 %v3140_v1  ;;  %v2164_v0 = vld [vmem:[%s7608_s17 + $0xda8] sm:$0xff]  ;;  %v3183_v1 = vunpack.c.l.s8.bf16 %v2135_v57  ;;  %v3180_v35 = vunpack.c.h.s8.bf16 %v2132_v63  ;;  %v3176_v12 = vunpack.c.l.s8.bf16 %v2132_v63  ;;  %v8064_v63 = vcombine.low %v8006_v30, %v8009_v13 }
 0x33c   : > { %4418 = vmatprep.subr.bf16.mxu1 %v3204_v2  ;;  %v3247_v2 = vunpack.c.l.s8.bf16 %v2167_v58  ;;  %v3244_v7 = vunpack.c.h.s8.bf16 %v2164_v0  ;;  %v3240_v36 = vunpack.c.l.s8.bf16 %v2164_v0  ;;  %v8067_v0 = vld [vmem:[%s7606_s19 + $0x110] sm:$0xff] }
 0x33d   : > { %8917 = vst [vmem:[#allocation25_spill] sm:$0xff] %v8064_v63 }
 0x33e   : > { %4376 = vmatpush1.bf16.msra.mxu0 %v3139_v8  ;;  %v2131_v8 = vld [vmem:[%s7608_s17 + $0xca0] sm:$0xff] }
 0x33f   : > { %4419 = vmatpush1.bf16.msra.mxu1 %v3203_v43  ;;  %4377 = vmatprep.subr.bf16.mxu0 %v3136_v46  ;;  %v2163_v43 = vld [vmem:[%s7608_s17 + $0xda0] sm:$0xff]  ;;  %v3179_v46 = vunpack.c.h.s8.bf16 %v2131_v8 }
 0x340   : > { %4420 = vmatprep.subr.bf16.mxu1 %v3200_v5  ;;  %v3243_v5 = vunpack.c.h.s8.bf16 %v2163_v43 }
 0x342   : > { %4378 = vmatpush1.bf16.msra.mxu0 %v3135_v37  ;;  %v2128_v37 = vld [vmem:[%s7608_s17 + $0xc88] sm:$0xff] }
 0x343   : > { %4421 = vmatpush1.bf16.msra.mxu1 %v3199_v38  ;;  %4379 = vmatprep.subr.bf16.mxu0 %v3196_v39  ;;  %v2160_v38 = vld [vmem:[%s7608_s17 + $0xd88] sm:$0xff]  ;;  %v3175_v39 = vunpack.c.l.s8.bf16 %v2131_v8  ;;  %v3172_v41 = vunpack.c.h.s8.bf16 %v2128_v37  ;;  %v3168_v26 = vunpack.c.l.s8.bf16 %v2128_v37  ;;  %v2183_v37 = vld [vmem:[%s7608_s17 + $0xe40] sm:$0xff] }
 0x344   : > { %4422 = vmatprep.subr.bf16.mxu1 %v3260_v40  ;;  %v3239_v40 = vunpack.c.l.s8.bf16 %v2163_v43  ;;  %v3236_v42 = vunpack.c.h.s8.bf16 %v2160_v38  ;;  %v3232_v52 = vunpack.c.l.s8.bf16 %v2160_v38  ;;  %v2216_v43 = vld [vmem:[%s7608_s17 + $0xf48] sm:$0xff]  ;;  %v2215_v38 = vld [vmem:[%s7608_s17 + $0xf40] sm:$0xff] }
 0x346   : > { %4380 = vmatpush2.bf16.msra.mxu0 %v3195_v49  ;;  %v2127_v49 = vld [vmem:[%s7608_s17 + $0xc80] sm:$0xff] }
 0x347   : > { %4423 = vmatpush2.bf16.msra.mxu1 %v3259_v50  ;;  %4381 = vmatprep.subr.bf16.mxu0 %v3192_v51  ;;  %v2159_v50 = vld [vmem:[%s7608_s17 + $0xd80] sm:$0xff]  ;;  %v3171_v51 = vunpack.c.h.s8.bf16 %v2127_v49 }
 0x348   : > { %4424 = vmatprep.subr.bf16.mxu1 %v3256_v17  ;;  %v3235_v17 = vunpack.c.h.s8.bf16 %v2159_v50 }
 0x34a   : > { %4382 = vmatpush2.bf16.msra.mxu0 %v3191_v53  ;;  %v2188_v53 = vld [vmem:[%s7608_s17 + $0xe68] sm:$0xff] }
 0x34b   : > { %4425 = vmatpush2.bf16.msra.mxu1 %v3255_v54  ;;  %4383 = vmatprep.subr.bf16.mxu0 %v3188_v55  ;;  %v2220_v54 = vld [vmem:[%s7608_s17 + $0xf68] sm:$0xff]  ;;  %v3167_v55 = vunpack.c.l.s8.bf16 %v2127_v49  ;;  %v3292_v57 = vunpack.c.h.s8.bf16 %v2188_v53  ;;  %v3288_v8 = vunpack.c.l.s8.bf16 %v2188_v53  ;;  %v2179_v53 = vld [vmem:[%s7608_s17 + $0xe20] sm:$0xff] }
 0x34c   : > { %4426 = vmatprep.subr.bf16.mxu1 %v3252_v56  ;;  %v3231_v56 = vunpack.c.l.s8.bf16 %v2159_v50  ;;  %v3356_v58 = vunpack.c.h.s8.bf16 %v2220_v54  ;;  %v2180_v49 = vld [vmem:[%s7608_s17 + $0xe28] sm:$0xff] }
 0x34d   : > { %v2212_v50 = vld [vmem:[%s7608_s17 + $0xf28] sm:$0xff] }
 0x34e   : > { %4384 = vmatpush2.bf16.msra.mxu0 %v3187_v59  ;;  %v2187_v59 = vld [vmem:[%s7608_s17 + $0xe60] sm:$0xff] }
 0x34f   : > { %4427 = vmatpush2.bf16.msra.mxu1 %v3251_v60  ;;  %4385 = vmatprep.subr.bf16.mxu0 %v3184_v61  ;;  %v2219_v60 = vld [vmem:[%s7608_s17 + $0xf60] sm:$0xff]  ;;  %v8056_v61 = vld [vmem:[%s7606_s19 + $0x70] sm:$0xff] }
 0x350   : > { %4428 = vmatprep.subr.bf16.mxu1 %v3248_v62  ;;  %v8060_v62 = vcombine.low %v7992_v3, %v8003_v27  ;;  %v3352_v3 = vunpack.c.l.s8.bf16 %v2220_v54  ;;  %v2184_v27 = vld [vmem:[%s7608_s17 + $0xe48] sm:$0xff]  ;;  %v8079_v30 = vcombine.high %v8056_v61, %v8067_v0  ;;  %v2211_v54 = vld [vmem:[%s7608_s17 + $0xf20] sm:$0xff] }
 0x352   : > { %4386 = vmatpush2.bf16.msra.mxu0 %v3183_v1  ;;  %8916 = vst [vmem:[#allocation24_spill] sm:$0xff] %v8060_v62  ;;  %v8070_v1 = vld [vmem:[%s7606_s19 + $0x78] sm:$0xff]  ;;  %8918 = vst [vmem:[#allocation26_spill] sm:$0xff] %v8079_v30 }
 0x353   : > { %4429 = vmatpush2.bf16.msra.mxu1 %v3247_v2  ;;  %4387 = vmatprep.subr.bf16.mxu0 %v3180_v35  ;;  %v8073_v2 = vld [vmem:[%s7606_s19 + $0x118] sm:$0xff]  ;;  %v3291_v35 = vunpack.c.h.s8.bf16 %v2187_v59 }
 0x354   : > { %4430 = vmatprep.subr.bf16.mxu1 %v3244_v7  ;;  %v3355_v7 = vunpack.c.h.s8.bf16 %v2219_v60  ;;  %v8083_v13 = vcombine.high %v8070_v1, %v8073_v2 }
 0x356   : > { %4388 = vmatpush2.bf16.msra.mxu0 %v3179_v46  ;;  %8919 = vst [vmem:[#allocation27_spill] sm:$0xff] %v8083_v13  ;;  %v3287_v46 = vunpack.c.l.s8.bf16 %v2187_v59  ;;  %v2176_v59 = vld [vmem:[%s7608_s17 + $0xe08] sm:$0xff] }
 0x357   : > { %4431 = vmatpush2.bf16.msra.mxu1 %v3243_v5  ;;  %4389 = vmatprep.subr.bf16.mxu0 %v3176_v12  ;;  %v3351_v5 = vunpack.c.l.s8.bf16 %v2219_v60  ;;  %v3284_v12 = vunpack.c.h.s8.bf16 %v2184_v27  ;;  %v2208_v60 = vld [vmem:[%s7608_s17 + $0xf08] sm:$0xff] }
 0x358   : > { %4432 = vmatprep.subr.bf16.mxu1 %v3240_v36  ;;  %v3348_v36 = vunpack.c.h.s8.bf16 %v2216_v43 }
 0x35a   : > { %4390 = vmatpush2.bf16.msra.mxu0 %v3175_v39  ;;  %v3283_v39 = vunpack.c.h.s8.bf16 %v2183_v37 }
 0x35b   : > { %4433 = vmatpush2.bf16.msra.mxu1 %v3239_v40  ;;  %4391 = vmatprep.subr.bf16.mxu0 %v3172_v41  ;;  %v3347_v40 = vunpack.c.h.s8.bf16 %v2215_v38  ;;  %v3280_v41 = vunpack.c.l.s8.bf16 %v2184_v27  ;;  %v2175_v27 = vld [vmem:[%s7608_s17 + $0xe00] sm:$0xff] }
 0x35c   : > { %4434 = vmatprep.subr.bf16.mxu1 %v3236_v42  ;;  %v3344_v42 = vunpack.c.l.s8.bf16 %v2216_v43  ;;  %v2207_v43 = vld [vmem:[%s7608_s17 + $0xf00] sm:$0xff] }
 0x35e   : > { %4392 = vmatpush2.bf16.msra.mxu0 %v3171_v51  ;;  %v3279_v51 = vunpack.c.l.s8.bf16 %v2183_v37  ;;  %v2204_v37 = vld [vmem:[%s7608_s17 + $0xee8] sm:$0xff] }
 0x35f   : > { %4435 = vmatpush2.bf16.msra.mxu1 %v3235_v17  ;;  %4393 = vmatprep.subr.bf16.mxu0 %v3168_v26  ;;  %v3343_v17 = vunpack.c.l.s8.bf16 %v2215_v38  ;;  %v3276_v26 = vunpack.c.h.s8.bf16 %v2180_v49  ;;  %v2236_v38 = vld [vmem:[%s7608_s17 + $0xfe8] sm:$0xff] }
 0x360   : > { %4436 = vmatprep.subr.bf16.mxu1 %v3232_v52  ;;  %v3340_v52 = vunpack.c.h.s8.bf16 %v2212_v50 }
 0x362   : > { %4394 = vmatpush2.bf16.msra.mxu0 %v3167_v55  ;;  %v3275_v55 = vunpack.c.h.s8.bf16 %v2179_v53 }
 0x363   : > { %4437 = vmatpush2.bf16.msra.mxu1 %v3231_v56  ;;  %4449 = vmatprep.subr.bf16.mxu0 %v3292_v57  ;;  %v3339_v56 = vunpack.c.h.s8.bf16 %v2211_v54  ;;  %v3272_v57 = vunpack.c.l.s8.bf16 %v2180_v49  ;;  %v2203_v49 = vld [vmem:[%s7608_s17 + $0xee0] sm:$0xff] }
 0x364   : > { %4492 = vmatprep.subr.bf16.mxu1 %v3356_v58  ;;  %v3336_v58 = vunpack.c.l.s8.bf16 %v2212_v50  ;;  %v2235_v50 = vld [vmem:[%s7608_s17 + $0xfe0] sm:$0xff] }
 0x365   : > { %4396 = vmatmul.mubr.bf16.vlgmr.msra.gmra.mxu0 %v8060_v62 }
 0x366   : > { %4439 = vmatmul.mubr.bf16.vlgmr.msra.gmra.mxu1 %v8064_v63  ;;  %4450 = vmatpush1.bf16.msra.mxu0 %v3291_v35  ;;  %v3271_v35 = vunpack.c.l.s8.bf16 %v2179_v53  ;;  %v2200_v53 = vld [vmem:[%s7608_s17 + $0xec8] sm:$0xff] }
 0x367   : > { %4493 = vmatpush1.bf16.msra.mxu1 %v3355_v7  ;;  %4451 = vmatprep.subr.bf16.mxu0 %v3288_v8  ;;  %v3335_v7 = vunpack.c.l.s8.bf16 %v2211_v54  ;;  %v3268_v8 = vunpack.c.h.s8.bf16 %v2176_v59  ;;  %v2232_v54 = vld [vmem:[%s7608_s17 + $0xfc8] sm:$0xff] }
 0x368   : > { %4494 = vmatprep.subr.bf16.mxu1 %v3352_v3  ;;  %4481 = vmatprep.mubr.bf16.mxu0 %v8079_v30  ;;  %v3332_v3 = vunpack.c.h.s8.bf16 %v2208_v60 }
 0x369   : > { %4524 = vmatprep.mubr.bf16.mxu1 %v8083_v13  ;;  %v1842_v13 = vld [vmem:[%s7608_s17 + $0x398] sm:$0xff] }
 0x36a   : > { %4452 = vmatpush1.bf16.msra.mxu0 %v3287_v46  ;;  %v3267_v46 = vunpack.c.h.s8.bf16 %v2175_v27 }
 0x36b   : > { %4495 = vmatpush1.bf16.msra.mxu1 %v3351_v5  ;;  %4453 = vmatprep.subr.bf16.mxu0 %v3284_v12  ;;  %v3331_v5 = vunpack.c.h.s8.bf16 %v2207_v43  ;;  %v3264_v12 = vunpack.c.l.s8.bf16 %v2176_v59  ;;  %v2199_v59 = vld [vmem:[%s7608_s17 + $0xec0] sm:$0xff] }
 0x36c   : > { %4496 = vmatprep.subr.bf16.mxu1 %v3348_v36  ;;  %v3328_v36 = vunpack.c.l.s8.bf16 %v2208_v60  ;;  %v2231_v60 = vld [vmem:[%s7608_s17 + $0xfc0] sm:$0xff] }
 0x36e   : > { %4454 = vmatpush1.bf16.msra.mxu0 %v3283_v39  ;;  %v3263_v39 = vunpack.c.l.s8.bf16 %v2175_v27  ;;  %v2196_v27 = vld [vmem:[%s7608_s17 + $0xea8] sm:$0xff] }
 0x36f   : > { %4497 = vmatpush1.bf16.msra.mxu1 %v3347_v40  ;;  %4455 = vmatprep.subr.bf16.mxu0 %v3280_v41  ;;  %v3327_v40 = vunpack.c.l.s8.bf16 %v2207_v43  ;;  %v3324_v41 = vunpack.c.h.s8.bf16 %v2204_v37  ;;  %v2228_v43 = vld [vmem:[%s7608_s17 + $0xfa8] sm:$0xff] }
 0x370   : > { %4498 = vmatprep.subr.bf16.mxu1 %v3344_v42  ;;  %v3388_v42 = vunpack.c.h.s8.bf16 %v2236_v38 }
 0x372   : > { %4456 = vmatpush1.bf16.msra.mxu0 %v3279_v51  ;;  %v3323_v51 = vunpack.c.h.s8.bf16 %v2203_v49 }
 0x373   : > { %4499 = vmatpush1.bf16.msra.mxu1 %v3343_v17  ;;  %4457 = vmatprep.subr.bf16.mxu0 %v3276_v26  ;;  %v3387_v17 = vunpack.c.h.s8.bf16 %v2235_v50  ;;  %v3320_v26 = vunpack.c.l.s8.bf16 %v2204_v37  ;;  %v2195_v37 = vld [vmem:[%s7608_s17 + $0xea0] sm:$0xff] }
 0x374   : > { %4500 = vmatprep.subr.bf16.mxu1 %v3340_v52  ;;  %v3384_v52 = vunpack.c.l.s8.bf16 %v2236_v38  ;;  %v2227_v38 = vld [vmem:[%s7608_s17 + $0xfa0] sm:$0xff] }
 0x376   : > { %4458 = vmatpush1.bf16.msra.mxu0 %v3275_v55  ;;  %v3319_v55 = vunpack.c.l.s8.bf16 %v2203_v49  ;;  %v2192_v49 = vld [vmem:[%s7608_s17 + $0xe88] sm:$0xff] }
 0x377   : > { %4501 = vmatpush1.bf16.msra.mxu1 %v3339_v56  ;;  %4459 = vmatprep.subr.bf16.mxu0 %v3272_v57  ;;  %v3383_v56 = vunpack.c.l.s8.bf16 %v2235_v50  ;;  %v3316_v57 = vunpack.c.h.s8.bf16 %v2200_v53  ;;  %v2224_v50 = vld [vmem:[%s7608_s17 + $0xf88] sm:$0xff] }
 0x378   : > { %4502 = vmatprep.subr.bf16.mxu1 %v3336_v58  ;;  %v3380_v58 = vunpack.c.h.s8.bf16 %v2232_v54 }
 0x37a   : > { %4460 = vmatpush1.bf16.msra.mxu0 %v3271_v35  ;;  %v3315_v35 = vunpack.c.h.s8.bf16 %v2199_v59 }
 0x37b   : > { %4503 = vmatpush1.bf16.msra.mxu1 %v3335_v7  ;;  %4461 = vmatprep.subr.bf16.mxu0 %v3268_v8  ;;  %v3379_v7 = vunpack.c.h.s8.bf16 %v2231_v60  ;;  %v3312_v8 = vunpack.c.l.s8.bf16 %v2200_v53  ;;  %v2191_v53 = vld [vmem:[%s7608_s17 + $0xe80] sm:$0xff] }
 0x37c   : > { %4504 = vmatprep.subr.bf16.mxu1 %v3332_v3  ;;  %v3376_v3 = vunpack.c.l.s8.bf16 %v2232_v54  ;;  %v2223_v54 = vld [vmem:[%s7608_s17 + $0xf80] sm:$0xff] }
 0x37e   : > { %4462 = vmatpush1.bf16.msra.mxu0 %v3267_v46  ;;  %v3311_v46 = vunpack.c.l.s8.bf16 %v2199_v59  ;;  %v2252_v59 = vld [vmem:[%s7608_s17 + $0x1068] sm:$0xff] }
 0x37f   : > { %4505 = vmatpush1.bf16.msra.mxu1 %v3331_v5  ;;  %4463 = vmatprep.subr.bf16.mxu0 %v3264_v12  ;;  %v3375_v5 = vunpack.c.l.s8.bf16 %v2231_v60  ;;  %v3308_v12 = vunpack.c.h.s8.bf16 %v2196_v27  ;;  %v2284_v60 = vld [vmem:[%s7608_s17 + $0x1168] sm:$0xff] }
 0x380   : > { %4506 = vmatprep.subr.bf16.mxu1 %v3328_v36  ;;  %v3372_v36 = vunpack.c.h.s8.bf16 %v2228_v43 }
 0x382   : > { %4464 = vmatpush1.bf16.msra.mxu0 %v3263_v39  ;;  %v3307_v39 = vunpack.c.h.s8.bf16 %v2195_v37 }
 0x383   : > { %4507 = vmatpush1.bf16.msra.mxu1 %v3327_v40  ;;  %4465 = vmatprep.subr.bf16.mxu0 %v3324_v41  ;;  %v3371_v40 = vunpack.c.h.s8.bf16 %v2227_v38  ;;  %v3304_v41 = vunpack.c.l.s8.bf16 %v2196_v27  ;;  %v2251_v27 = vld [vmem:[%s7608_s17 + $0x1060] sm:$0xff] }
 0x384   : > { %4508 = vmatprep.subr.bf16.mxu1 %v3388_v42  ;;  %v3368_v42 = vunpack.c.l.s8.bf16 %v2228_v43  ;;  %v2283_v43 = vld [vmem:[%s7608_s17 + $0x1160] sm:$0xff] }
 0x386   : > { %4466 = vmatpush2.bf16.msra.mxu0 %v3323_v51  ;;  %v3303_v51 = vunpack.c.l.s8.bf16 %v2195_v37  ;;  %v8134_v37 = vld [vmem:[%s7606_s19 + $0x88] sm:$0xff] }
 0x387   : > { %4509 = vmatpush2.bf16.msra.mxu1 %v3387_v17  ;;  %4467 = vmatprep.subr.bf16.mxu0 %v3320_v26  ;;  %v3367_v17 = vunpack.c.l.s8.bf16 %v2227_v38  ;;  %v3300_v26 = vunpack.c.h.s8.bf16 %v2192_v49  ;;  %v8137_v38 = vld [vmem:[%s7606_s19 + $0x128] sm:$0xff] }
 0x388   : > { %4510 = vmatprep.subr.bf16.mxu1 %v3384_v52  ;;  %v3364_v52 = vunpack.c.h.s8.bf16 %v2224_v50 }
 0x38a   : > { %4468 = vmatpush2.bf16.msra.mxu0 %v3319_v55  ;;  %v3299_v55 = vunpack.c.h.s8.bf16 %v2191_v53 }
 0x38b   : > { %4511 = vmatpush2.bf16.msra.mxu1 %v3383_v56  ;;  %4469 = vmatprep.subr.bf16.mxu0 %v3316_v57  ;;  %v3363_v56 = vunpack.c.h.s8.bf16 %v2223_v54  ;;  %v3296_v57 = vunpack.c.l.s8.bf16 %v2192_v49  ;;  %v3415_v49 = vunpack.c.l.s8.bf16 %v2251_v27 }
 0x38c   : > { %4512 = vmatprep.subr.bf16.mxu1 %v3380_v58  ;;  %v3360_v58 = vunpack.c.l.s8.bf16 %v2224_v50  ;;  %v3479_v50 = vunpack.c.l.s8.bf16 %v2283_v43 }
 0x38e   : > { %4470 = vmatpush2.bf16.msra.mxu0 %v3315_v35  ;;  %v3295_v35 = vunpack.c.l.s8.bf16 %v2191_v53 }
 0x38f   : > { %4513 = vmatpush2.bf16.msra.mxu1 %v3379_v7  ;;  %4471 = vmatprep.subr.bf16.mxu0 %v3312_v8  ;;  %v3359_v7 = vunpack.c.l.s8.bf16 %v2223_v54  ;;  %v3420_v8 = vunpack.c.h.s8.bf16 %v2252_v59 }
 0x390   : > { %4514 = vmatprep.subr.bf16.mxu1 %v3376_v3  ;;  %v3484_v3 = vunpack.c.h.s8.bf16 %v2284_v60 }
 0x392   : > { %4472 = vmatpush2.bf16.msra.mxu0 %v3311_v46  ;;  %v8120_v46 = vld [vmem:[%s7606_s19 + $0x80] sm:$0xff] }
 0x393   : > { %4515 = vmatpush2.bf16.msra.mxu1 %v3375_v5  ;;  %4473 = vmatprep.subr.bf16.mxu0 %v3308_v12  ;;  %v8124_v5 = vcombine.low %v8056_v61, %v8067_v0  ;;  %v8128_v12 = vcombine.low %v8070_v1, %v8073_v2  ;;  %v3480_v61 = vunpack.c.l.s8.bf16 %v2284_v60  ;;  %v2248_v0 = vld [vmem:[%s7608_s17 + $0x1048] sm:$0xff]  ;;  %v8147_v2 = vcombine.high %v8134_v37, %v8137_v38 }
 0x394   : > { %4516 = vmatprep.subr.bf16.mxu1 %v3372_v36  ;;  %v8131_v36 = vld [vmem:[%s7606_s19 + $0x120] sm:$0xff] }
 0x395   : > { %8920 = vst [vmem:[#allocation28_spill] sm:$0xff] %v8124_v5  ;;  %8921 = vst [vmem:[#allocation29_spill] sm:$0xff] %v8128_v12  ;;  %v8143_v1 = vcombine.high %v8120_v46, %v8131_v36 }
 0x396   : > { %4474 = vmatpush2.bf16.msra.mxu0 %v3307_v39  ;;  %v3419_v39 = vunpack.c.h.s8.bf16 %v2251_v27  ;;  %8923 = vst [vmem:[#allocation31_spill] sm:$0xff] %v8147_v2 }
 0x397   : > { %4517 = vmatpush2.bf16.msra.mxu1 %v3371_v40  ;;  %4475 = vmatprep.subr.bf16.mxu0 %v3304_v41  ;;  %v3483_v40 = vunpack.c.h.s8.bf16 %v2283_v43  ;;  %v3416_v41 = vunpack.c.l.s8.bf16 %v2252_v59  ;;  %8922 = vst [vmem:[#allocation30_spill] sm:$0xff] %v8143_v1 }
 0x398   : > { %4518 = vmatprep.subr.bf16.mxu1 %v3368_v42  ;;  %v2280_v42 = vld [vmem:[%s7608_s17 + $0x1148] sm:$0xff] }
 0x39a   : > { %4476 = vmatpush2.bf16.msra.mxu0 %v3303_v51  ;;  %v3412_v51 = vunpack.c.h.s8.bf16 %v2248_v0 }
 0x39b   : > { %4519 = vmatpush2.bf16.msra.mxu1 %v3367_v17  ;;  %4477 = vmatprep.subr.bf16.mxu0 %v3300_v26  ;;  %v3476_v17 = vunpack.c.h.s8.bf16 %v2280_v42  ;;  %v2247_v26 = vld [vmem:[%s7608_s17 + $0x1040] sm:$0xff] }
 0x39c   : > { %4520 = vmatprep.subr.bf16.mxu1 %v3364_v52  ;;  %v2279_v52 = vld [vmem:[%s7608_s17 + $0x1140] sm:$0xff]  ;;  %v3411_v53 = vunpack.c.h.s8.bf16 %v2247_v26  ;;  %v3407_v59 = vunpack.c.l.s8.bf16 %v2247_v26 }
 0x39d   : > { %v3475_v54 = vunpack.c.h.s8.bf16 %v2279_v52  ;;  %v3471_v60 = vunpack.c.l.s8.bf16 %v2279_v52 }
 0x39e   : > { %4478 = vmatpush2.bf16.msra.mxu0 %v3299_v55  ;;  %v3408_v55 = vunpack.c.l.s8.bf16 %v2248_v0 }
 0x39f   : > { %4521 = vmatpush2.bf16.msra.mxu1 %v3363_v56  ;;  %4479 = vmatprep.subr.bf16.mxu0 %v3296_v57  ;;  %v3472_v56 = vunpack.c.l.s8.bf16 %v2280_v42  ;;  %v2244_v57 = vld [vmem:[%s7608_s17 + $0x1028] sm:$0xff] }
 0x3a0   : > { %4522 = vmatprep.subr.bf16.mxu1 %v3360_v58  ;;  %v2276_v58 = vld [vmem:[%s7608_s17 + $0x1128] sm:$0xff] }
 0x3a2   : > { %4480 = vmatpush2.bf16.msra.mxu0 %v3295_v35  ;;  %v3404_v35 = vunpack.c.h.s8.bf16 %v2244_v57 }
 0x3a3   : > { %4523 = vmatpush2.bf16.msra.mxu1 %v3359_v7  ;;  %4535 = vmatprep.subr.bf16.mxu0 %v3420_v8  ;;  %v3468_v7 = vunpack.c.h.s8.bf16 %v2276_v58  ;;  %v2243_v8 = vld [vmem:[%s7608_s17 + $0x1020] sm:$0xff] }
 0x3a4   : > { %4578 = vmatprep.subr.bf16.mxu1 %v3484_v3  ;;  %v2275_v3 = vld [vmem:[%s7608_s17 + $0x1120] sm:$0xff]  ;;  %v3403_v27 = vunpack.c.h.s8.bf16 %v2243_v8  ;;  %v3399_v0 = vunpack.c.l.s8.bf16 %v2243_v8 }
 0x3a5   : > { %4482 = vmatmul.mubr.bf16.vlgmr.msra.gmra.mxu0 %v8124_v5  ;;  %v3467_v43 = vunpack.c.h.s8.bf16 %v2275_v3  ;;  %v3463_v42 = vunpack.c.l.s8.bf16 %v2275_v3  ;;  %v1845_v5 = vld [vmem:[%s7608_s17 + $0x3b0] sm:$0xff] }
 0x3a6   : > { %4525 = vmatmul.mubr.bf16.vlgmr.msra.gmra.mxu1 %v8128_v12  ;;  %4536 = vmatpush1.bf16.msra.mxu0 %v3419_v39  ;;  %v3400_v39 = vunpack.c.l.s8.bf16 %v2244_v57  ;;  %v2601_v62 = vunpack.c.l.s8.bf16 %v1845_v5 }
 0x3a7   : > { %4579 = vmatpush1.bf16.msra.mxu1 %v3483_v40  ;;  %4537 = vmatprep.subr.bf16.mxu0 %v3416_v41  ;;  %v3464_v40 = vunpack.c.l.s8.bf16 %v2276_v58  ;;  %v2240_v41 = vld [vmem:[%s7608_s17 + $0x1008] sm:$0xff] }
 0x3a8   : > { %4580 = vmatprep.subr.bf16.mxu1 %v3480_v61  ;;  %4567 = vmatprep.mubr.bf16.mxu0 %v8143_v1  ;;  %v2272_v61 = vld [vmem:[%s7608_s17 + $0x1108] sm:$0xff] }
 0x3a9   : > { %4610 = vmatprep.mubr.bf16.mxu1 %v8147_v2 }
 0x3aa   : > { %4538 = vmatpush1.bf16.msra.mxu0 %v3415_v49  ;;  %v3396_v49 = vunpack.c.h.s8.bf16 %v2240_v41 }
 0x3ab   : > { %4581 = vmatpush1.bf16.msra.mxu1 %v3479_v50  ;;  %4539 = vmatprep.subr.bf16.mxu0 %v3412_v51  ;;  %v3460_v50 = vunpack.c.h.s8.bf16 %v2272_v61  ;;  %v2239_v51 = vld [vmem:[%s7608_s17 + $0x1000] sm:$0xff] }
 0x3ac   : > { %4582 = vmatprep.subr.bf16.mxu1 %v3476_v17  ;;  %v2271_v17 = vld [vmem:[%s7608_s17 + $0x1100] sm:$0xff]  ;;  %v3395_v26 = vunpack.c.h.s8.bf16 %v2239_v51  ;;  %v3391_v57 = vunpack.c.l.s8.bf16 %v2239_v51 }
 0x3ad   : > { %v3459_v52 = vunpack.c.h.s8.bf16 %v2271_v17  ;;  %v3455_v58 = vunpack.c.l.s8.bf16 %v2271_v17 }
 0x3ae   : > { %4540 = vmatpush1.bf16.msra.mxu0 %v3411_v53  ;;  %v3392_v53 = vunpack.c.l.s8.bf16 %v2240_v41 }
 0x3af   : > { %4583 = vmatpush1.bf16.msra.mxu1 %v3475_v54  ;;  %4541 = vmatprep.subr.bf16.mxu0 %v3408_v55  ;;  %v3456_v54 = vunpack.c.l.s8.bf16 %v2272_v61  ;;  %v2268_v55 = vld [vmem:[%s7608_s17 + $0x10e8] sm:$0xff] }
 0x3b0   : > { %4584 = vmatprep.subr.bf16.mxu1 %v3472_v56  ;;  %v2300_v56 = vld [vmem:[%s7608_s17 + $0x11e8] sm:$0xff] }
 0x3b2   : > { %4542 = vmatpush1.bf16.msra.mxu0 %v3407_v59  ;;  %v3452_v59 = vunpack.c.h.s8.bf16 %v2268_v55 }
 0x3b3   : > { %4585 = vmatpush1.bf16.msra.mxu1 %v3471_v60  ;;  %4543 = vmatprep.subr.bf16.mxu0 %v3404_v35  ;;  %v3516_v60 = vunpack.c.h.s8.bf16 %v2300_v56  ;;  %v2267_v35 = vld [vmem:[%s7608_s17 + $0x10e0] sm:$0xff] }
 0x3b4   : > { %4586 = vmatprep.subr.bf16.mxu1 %v3468_v7  ;;  %v2299_v7 = vld [vmem:[%s7608_s17 + $0x11e0] sm:$0xff]  ;;  %v3451_v8 = vunpack.c.h.s8.bf16 %v2267_v35  ;;  %v3447_v41 = vunpack.c.l.s8.bf16 %v2267_v35 }
 0x3b5   : > { %v3515_v3 = vunpack.c.h.s8.bf16 %v2299_v7  ;;  %v3511_v61 = vunpack.c.l.s8.bf16 %v2299_v7 }
 0x3b6   : > { %4544 = vmatpush1.bf16.msra.mxu0 %v3403_v27  ;;  %v3448_v27 = vunpack.c.l.s8.bf16 %v2268_v55 }
 0x3b7   : > { %4587 = vmatpush1.bf16.msra.mxu1 %v3467_v43  ;;  %4545 = vmatprep.subr.bf16.mxu0 %v3400_v39  ;;  %v3512_v43 = vunpack.c.l.s8.bf16 %v2300_v56  ;;  %v2264_v39 = vld [vmem:[%s7608_s17 + $0x10c8] sm:$0xff] }
 0x3b8   : > { %4588 = vmatprep.subr.bf16.mxu1 %v3464_v40  ;;  %v2296_v40 = vld [vmem:[%s7608_s17 + $0x11c8] sm:$0xff] }
 0x3ba   : > { %4546 = vmatpush1.bf16.msra.mxu0 %v3399_v0  ;;  %v3444_v0 = vunpack.c.h.s8.bf16 %v2264_v39 }
 0x3bb   : > { %4589 = vmatpush1.bf16.msra.mxu1 %v3463_v42  ;;  %4547 = vmatprep.subr.bf16.mxu0 %v3396_v49  ;;  %v3508_v42 = vunpack.c.h.s8.bf16 %v2296_v40  ;;  %v2263_v49 = vld [vmem:[%s7608_s17 + $0x10c0] sm:$0xff] }
 0x3bc   : > { %4590 = vmatprep.subr.bf16.mxu1 %v3460_v50  ;;  %v2295_v50 = vld [vmem:[%s7608_s17 + $0x11c0] sm:$0xff]  ;;  %v3443_v51 = vunpack.c.h.s8.bf16 %v2263_v49  ;;  %v3439_v55 = vunpack.c.l.s8.bf16 %v2263_v49 }
 0x3bd   : > { %v3507_v17 = vunpack.c.h.s8.bf16 %v2295_v50  ;;  %v3503_v56 = vunpack.c.l.s8.bf16 %v2295_v50 }
 0x3be   : > { %4548 = vmatpush1.bf16.msra.mxu0 %v3395_v26  ;;  %v3440_v26 = vunpack.c.l.s8.bf16 %v2264_v39 }
 0x3bf   : > { %4591 = vmatpush1.bf16.msra.mxu1 %v3459_v52  ;;  %4549 = vmatprep.subr.bf16.mxu0 %v3392_v53  ;;  %v3504_v52 = vunpack.c.l.s8.bf16 %v2296_v40  ;;  %v2260_v53 = vld [vmem:[%s7608_s17 + $0x10a8] sm:$0xff] }
 0x3c0   : > { %4592 = vmatprep.subr.bf16.mxu1 %v3456_v54  ;;  %v2292_v54 = vld [vmem:[%s7608_s17 + $0x11a8] sm:$0xff] }
 0x3c2   : > { %4550 = vmatpush1.bf16.msra.mxu0 %v3391_v57  ;;  %v3436_v57 = vunpack.c.h.s8.bf16 %v2260_v53 }
 0x3c3   : > { %4593 = vmatpush1.bf16.msra.mxu1 %v3455_v58  ;;  %4551 = vmatprep.subr.bf16.mxu0 %v3452_v59  ;;  %v3500_v58 = vunpack.c.h.s8.bf16 %v2292_v54  ;;  %v2259_v59 = vld [vmem:[%s7608_s17 + $0x10a0] sm:$0xff] }
 0x3c4   : > { %4594 = vmatprep.subr.bf16.mxu1 %v3516_v60  ;;  %v2291_v60 = vld [vmem:[%s7608_s17 + $0x11a0] sm:$0xff]  ;;  %v3435_v35 = vunpack.c.h.s8.bf16 %v2259_v59  ;;  %v3431_v39 = vunpack.c.l.s8.bf16 %v2259_v59  ;;  %v8184_v59 = vld [vmem:[%s7606_s19 + $0x90] sm:$0xff] }
 0x3c5   : > { %v3499_v7 = vunpack.c.h.s8.bf16 %v2291_v60  ;;  %v3495_v40 = vunpack.c.l.s8.bf16 %v2291_v60  ;;  %v8188_v60 = vcombine.low %v8120_v46, %v8131_v36  ;;  %v2312_v36 = vld [vmem:[%s7608_s17 + $0x1248] sm:$0xff] }
 0x3c6   : > { %4552 = vmatpush2.bf16.msra.mxu0 %v3451_v8  ;;  %v3432_v8 = vunpack.c.l.s8.bf16 %v2260_v53 }
 0x3c7   : > { %4595 = vmatpush2.bf16.msra.mxu1 %v3515_v3  ;;  %4553 = vmatprep.subr.bf16.mxu0 %v3448_v27  ;;  %v3496_v3 = vunpack.c.l.s8.bf16 %v2292_v54  ;;  %v2256_v27 = vld [vmem:[%s7608_s17 + $0x1088] sm:$0xff]  ;;  %8924 = vst [vmem:[#allocation32_spill] sm:$0xff] %v8188_v60 }
 0x3c8   : > { %4596 = vmatprep.subr.bf16.mxu1 %v3512_v43  ;;  %v2288_v43 = vld [vmem:[%s7608_s17 + $0x1188] sm:$0xff] }
 0x3ca   : > { %4554 = vmatpush2.bf16.msra.mxu0 %v3447_v41  ;;  %v3428_v41 = vunpack.c.h.s8.bf16 %v2256_v27 }
 0x3cb   : > { %4597 = vmatpush2.bf16.msra.mxu1 %v3511_v61  ;;  %4555 = vmatprep.subr.bf16.mxu0 %v3444_v0  ;;  %v3492_v61 = vunpack.c.h.s8.bf16 %v2288_v43  ;;  %v2255_v0 = vld [vmem:[%s7608_s17 + $0x1080] sm:$0xff] }
 0x3cc   : > { %4598 = vmatprep.subr.bf16.mxu1 %v3508_v42  ;;  %v2287_v42 = vld [vmem:[%s7608_s17 + $0x1180] sm:$0xff]  ;;  %v3427_v49 = vunpack.c.h.s8.bf16 %v2255_v0  ;;  %v3423_v53 = vunpack.c.l.s8.bf16 %v2255_v0  ;;  %v3540_v0 = vunpack.c.h.s8.bf16 %v2312_v36 }
 0x3cd   : > { %v3491_v50 = vunpack.c.h.s8.bf16 %v2287_v42  ;;  %v3487_v54 = vunpack.c.l.s8.bf16 %v2287_v42 }
 0x3ce   : > { %4556 = vmatpush2.bf16.msra.mxu0 %v3443_v51  ;;  %v3424_v51 = vunpack.c.l.s8.bf16 %v2256_v27 }
 0x3cf   : > { %4599 = vmatpush2.bf16.msra.mxu1 %v3507_v17  ;;  %4557 = vmatprep.subr.bf16.mxu0 %v3440_v26  ;;  %v3488_v17 = vunpack.c.l.s8.bf16 %v2288_v43  ;;  %v2316_v26 = vld [vmem:[%s7608_s17 + $0x1268] sm:$0xff] }
 0x3d0   : > { %4600 = vmatprep.subr.bf16.mxu1 %v3504_v52  ;;  %v2348_v52 = vld [vmem:[%s7608_s17 + $0x1368] sm:$0xff] }
 0x3d1   : > { %v3608_v46 = vunpack.c.l.s8.bf16 %v2348_v52 }
 0x3d2   : > { %4558 = vmatpush2.bf16.msra.mxu0 %v3439_v55  ;;  %v3548_v55 = vunpack.c.h.s8.bf16 %v2316_v26 }
 0x3d3   : > { %4601 = vmatpush2.bf16.msra.mxu1 %v3503_v56  ;;  %4559 = vmatprep.subr.bf16.mxu0 %v3436_v57  ;;  %v3612_v56 = vunpack.c.h.s8.bf16 %v2348_v52  ;;  %v2315_v57 = vld [vmem:[%s7608_s17 + $0x1260] sm:$0xff] }
 0x3d4   : > { %4602 = vmatprep.subr.bf16.mxu1 %v3500_v58  ;;  %v2347_v58 = vld [vmem:[%s7608_s17 + $0x1360] sm:$0xff]  ;;  %v3547_v27 = vunpack.c.h.s8.bf16 %v2315_v57 }
 0x3d5   : > { %v3611_v43 = vunpack.c.h.s8.bf16 %v2347_v58 }
 0x3d6   : > { %4560 = vmatpush2.bf16.msra.mxu0 %v3435_v35  ;;  %v8192_v35 = vcombine.low %v8134_v37, %v8137_v38 }
 0x3d7   : > { %4603 = vmatpush2.bf16.msra.mxu1 %v3499_v7  ;;  %4561 = vmatprep.subr.bf16.mxu0 %v3432_v8  ;;  %v8195_v7 = vld [vmem:[%s7606_s19 + $0x130] sm:$0xff]  ;;  %v8198_v8 = vld [vmem:[%s7606_s19 + $0x98] sm:$0xff] }
 0x3d8   : > { %4604 = vmatprep.subr.bf16.mxu1 %v3496_v3  ;;  %8925 = vst [vmem:[#allocation33_spill] sm:$0xff] %v8192_v35  ;;  %v8201_v3 = vld [vmem:[%s7606_s19 + $0x138] sm:$0xff]  ;;  %v8207_v37 = vcombine.high %v8184_v59, %v8195_v7 }
 0x3d9   : > { %v8211_v38 = vcombine.high %v8198_v8, %v8201_v3 }
 0x3da   : > { %4562 = vmatpush2.bf16.msra.mxu0 %v3431_v39  ;;  %v3544_v39 = vunpack.c.l.s8.bf16 %v2316_v26  ;;  %8926 = vst [vmem:[#allocation34_spill] sm:$0xff] %v8207_v37  ;;  %v3536_v26 = vunpack.c.l.s8.bf16 %v2312_v36 }
 0x3db   : > { %4605 = vmatpush2.bf16.msra.mxu1 %v3495_v40  ;;  %4563 = vmatprep.subr.bf16.mxu0 %v3428_v41  ;;  %v2344_v40 = vld [vmem:[%s7608_s17 + $0x1348] sm:$0xff]  ;;  %8927 = vst [vmem:[#allocation35_spill] sm:$0xff] %v8211_v38  ;;  %v3543_v41 = vunpack.c.l.s8.bf16 %v2315_v57 }
 0x3dc   : > { %4606 = vmatprep.subr.bf16.mxu1 %v3492_v61  ;;  %v3607_v61 = vunpack.c.l.s8.bf16 %v2347_v58  ;;  %v3604_v42 = vunpack.c.h.s8.bf16 %v2344_v40  ;;  %v3600_v52 = vunpack.c.l.s8.bf16 %v2344_v40 }
 0x3de   : > { %4564 = vmatpush2.bf16.msra.mxu0 %v3427_v49  ;;  %v2311_v49 = vld [vmem:[%s7608_s17 + $0x1240] sm:$0xff] }
 0x3df   : > { %4607 = vmatpush2.bf16.msra.mxu1 %v3491_v50  ;;  %4565 = vmatprep.subr.bf16.mxu0 %v3424_v51  ;;  %v2343_v50 = vld [vmem:[%s7608_s17 + $0x1340] sm:$0xff]  ;;  %v3539_v51 = vunpack.c.h.s8.bf16 %v2311_v49 }
 0x3e0   : > { %4608 = vmatprep.subr.bf16.mxu1 %v3488_v17  ;;  %v3603_v17 = vunpack.c.h.s8.bf16 %v2343_v50 }
 0x3e2   : > { %4566 = vmatpush2.bf16.msra.mxu0 %v3423_v53  ;;  %v2308_v53 = vld [vmem:[%s7608_s17 + $0x1228] sm:$0xff] }
 0x3e3   : > { %4609 = vmatpush2.bf16.msra.mxu1 %v3487_v54  ;;  %4621 = vmatprep.subr.bf16.mxu0 %v3548_v55  ;;  %v2340_v54 = vld [vmem:[%s7608_s17 + $0x1328] sm:$0xff]  ;;  %v3535_v55 = vunpack.c.l.s8.bf16 %v2311_v49  ;;  %v3532_v57 = vunpack.c.h.s8.bf16 %v2308_v53  ;;  %v3528_v36 = vunpack.c.l.s8.bf16 %v2308_v53 }
 0x3e4   : > { %4664 = vmatprep.subr.bf16.mxu1 %v3612_v56  ;;  %v3599_v56 = vunpack.c.l.s8.bf16 %v2343_v50  ;;  %v3596_v58 = vunpack.c.h.s8.bf16 %v2340_v54  ;;  %v3592_v40 = vunpack.c.l.s8.bf16 %v2340_v54 }
 0x3e5   : > { %4568 = vmatmul.mubr.bf16.vlgmr.msra.gmra.mxu0 %v8188_v60  ;;  %v1849_v60 = vld [vmem:[%s7608_s17 + $0x3d0] sm:$0xff] }
 0x3e6   : > { %4611 = vmatmul.mubr.bf16.vlgmr.msra.gmra.mxu1 %v8192_v35  ;;  %4622 = vmatpush1.bf16.msra.mxu0 %v3547_v27  ;;  %v2307_v27 = vld [vmem:[%s7608_s17 + $0x1220] sm:$0xff]  ;;  %v2613_v2 = vunpack.c.h.s8.bf16 %v1849_v60  ;;  %v2609_v12 = vunpack.c.l.s8.bf16 %v1849_v60 }
 0x3e7   : > { %4665 = vmatpush1.bf16.msra.mxu1 %v3611_v43  ;;  %4623 = vmatprep.subr.bf16.mxu0 %v3544_v39  ;;  %v2339_v43 = vld [vmem:[%s7608_s17 + $0x1320] sm:$0xff]  ;;  %v3531_v39 = vunpack.c.h.s8.bf16 %v2307_v27 }
 0x3e8   : > { %4666 = vmatprep.subr.bf16.mxu1 %v3608_v46  ;;  %4653 = vmatprep.mubr.bf16.mxu0 %v8207_v37  ;;  %v3595_v46 = vunpack.c.h.s8.bf16 %v2339_v43 }
 0x3e9   : > { %4696 = vmatprep.mubr.bf16.mxu1 %v8211_v38 }
 0x3ea   : > { %4624 = vmatpush1.bf16.msra.mxu0 %v3543_v41  ;;  %v2304_v41 = vld [vmem:[%s7608_s17 + $0x1208] sm:$0xff] }
 0x3eb   : > { %4667 = vmatpush1.bf16.msra.mxu1 %v3607_v61  ;;  %4625 = vmatprep.subr.bf16.mxu0 %v3540_v0  ;;  %v2336_v61 = vld [vmem:[%s7608_s17 + $0x1308] sm:$0xff]  ;;  %v3527_v0 = vunpack.c.l.s8.bf16 %v2307_v27  ;;  %v3524_v49 = vunpack.c.h.s8.bf16 %v2304_v41  ;;  %v3520_v53 = vunpack.c.l.s8.bf16 %v2304_v41 }
 0x3ec   : > { %4668 = vmatprep.subr.bf16.mxu1 %v3604_v42  ;;  %v3591_v42 = vunpack.c.l.s8.bf16 %v2339_v43  ;;  %v3588_v50 = vunpack.c.h.s8.bf16 %v2336_v61  ;;  %v3584_v54 = vunpack.c.l.s8.bf16 %v2336_v61 }
 0x3ee   : > { %4626 = vmatpush1.bf16.msra.mxu0 %v3539_v51  ;;  %v2303_v51 = vld [vmem:[%s7608_s17 + $0x1200] sm:$0xff] }
 0x3ef   : > { %4669 = vmatpush1.bf16.msra.mxu1 %v3603_v17  ;;  %4627 = vmatprep.subr.bf16.mxu0 %v3536_v26  ;;  %v2335_v17 = vld [vmem:[%s7608_s17 + $0x1300] sm:$0xff]  ;;  %v3523_v26 = vunpack.c.h.s8.bf16 %v2303_v51 }
 0x3f0   : > { %4670 = vmatprep.subr.bf16.mxu1 %v3600_v52  ;;  %v3587_v52 = vunpack.c.h.s8.bf16 %v2335_v17 }
 0x3f2   : > { %4628 = vmatpush1.bf16.msra.mxu0 %v3535_v55  ;;  %v2332_v55 = vld [vmem:[%s7608_s17 + $0x12e8] sm:$0xff] }
 0x3f3   : > { %4671 = vmatpush1.bf16.msra.mxu1 %v3599_v56  ;;  %4629 = vmatprep.subr.bf16.mxu0 %v3532_v57  ;;  %v2364_v56 = vld [vmem:[%s7608_s17 + $0x13e8] sm:$0xff]  ;;  %v3519_v57 = vunpack.c.l.s8.bf16 %v2303_v51  ;;  %v3580_v27 = vunpack.c.h.s8.bf16 %v2332_v55  ;;  %v3576_v41 = vunpack.c.l.s8.bf16 %v2332_v55 }
 0x3f4   : > { %4672 = vmatprep.subr.bf16.mxu1 %v3596_v58  ;;  %v3583_v58 = vunpack.c.l.s8.bf16 %v2335_v17  ;;  %v3644_v43 = vunpack.c.h.s8.bf16 %v2364_v56  ;;  %v3640_v61 = vunpack.c.l.s8.bf16 %v2364_v56 }
 0x3f6   : > { %4630 = vmatpush1.bf16.msra.mxu0 %v3531_v39  ;;  %v2331_v39 = vld [vmem:[%s7608_s17 + $0x12e0] sm:$0xff] }
 0x3f7   : > { %4673 = vmatpush1.bf16.msra.mxu1 %v3595_v46  ;;  %4631 = vmatprep.subr.bf16.mxu0 %v3528_v36  ;;  %v2363_v46 = vld [vmem:[%s7608_s17 + $0x13e0] sm:$0xff]  ;;  %v3579_v36 = vunpack.c.h.s8.bf16 %v2331_v39 }
 0x3f8   : > { %4674 = vmatprep.subr.bf16.mxu1 %v3592_v40  ;;  %v3643_v40 = vunpack.c.h.s8.bf16 %v2363_v46 }
 0x3fa   : > { %4632 = vmatpush1.bf16.msra.mxu0 %v3527_v0  ;;  %v2328_v0 = vld [vmem:[%s7608_s17 + $0x12c8] sm:$0xff] }
 0x3fb   : > { %4675 = vmatpush1.bf16.msra.mxu1 %v3591_v42  ;;  %4633 = vmatprep.subr.bf16.mxu0 %v3524_v49  ;;  %v2360_v42 = vld [vmem:[%s7608_s17 + $0x13c8] sm:$0xff]  ;;  %v3575_v49 = vunpack.c.l.s8.bf16 %v2331_v39  ;;  %v3572_v51 = vunpack.c.h.s8.bf16 %v2328_v0  ;;  %v3568_v55 = vunpack.c.l.s8.bf16 %v2328_v0 }
 0x3fc   : > { %4676 = vmatprep.subr.bf16.mxu1 %v3588_v50  ;;  %v3639_v50 = vunpack.c.l.s8.bf16 %v2363_v46  ;;  %v3636_v17 = vunpack.c.h.s8.bf16 %v2360_v42  ;;  %v3632_v56 = vunpack.c.l.s8.bf16 %v2360_v42 }
 0x3fe   : > { %4634 = vmatpush1.bf16.msra.mxu0 %v3523_v26  ;;  %v2327_v26 = vld [vmem:[%s7608_s17 + $0x12c0] sm:$0xff] }
 0x3ff   : > { %4677 = vmatpush1.bf16.msra.mxu1 %v3587_v52  ;;  %4635 = vmatprep.subr.bf16.mxu0 %v3520_v53  ;;  %v2359_v52 = vld [vmem:[%s7608_s17 + $0x13c0] sm:$0xff]  ;;  %v3571_v53 = vunpack.c.h.s8.bf16 %v2327_v26 }
 0x400   : > { %4678 = vmatprep.subr.bf16.mxu1 %v3584_v54  ;;  %v3635_v54 = vunpack.c.h.s8.bf16 %v2359_v52 }
 0x402   : > { %4636 = vmatpush1.bf16.msra.mxu0 %v3519_v57  ;;  %v2324_v57 = vld [vmem:[%s7608_s17 + $0x12a8] sm:$0xff] }
 0x403   : > { %4679 = vmatpush1.bf16.msra.mxu1 %v3583_v58  ;;  %4637 = vmatprep.subr.bf16.mxu0 %v3580_v27  ;;  %v2356_v58 = vld [vmem:[%s7608_s17 + $0x13a8] sm:$0xff]  ;;  %v3567_v27 = vunpack.c.l.s8.bf16 %v2327_v26  ;;  %v3564_v39 = vunpack.c.h.s8.bf16 %v2324_v57  ;;  %v3560_v0 = vunpack.c.l.s8.bf16 %v2324_v57 }
 0x404   : > { %4680 = vmatprep.subr.bf16.mxu1 %v3644_v43  ;;  %v3631_v43 = vunpack.c.l.s8.bf16 %v2359_v52  ;;  %v3628_v46 = vunpack.c.h.s8.bf16 %v2356_v58  ;;  %v3624_v42 = vunpack.c.l.s8.bf16 %v2356_v58 }
 0x406   : > { %4638 = vmatpush2.bf16.msra.mxu0 %v3579_v36  ;;  %v2323_v36 = vld [vmem:[%s7608_s17 + $0x12a0] sm:$0xff] }
 0x407   : > { %4681 = vmatpush2.bf16.msra.mxu1 %v3643_v40  ;;  %4639 = vmatprep.subr.bf16.mxu0 %v3576_v41  ;;  %v2355_v40 = vld [vmem:[%s7608_s17 + $0x13a0] sm:$0xff]  ;;  %v3563_v41 = vunpack.c.h.s8.bf16 %v2323_v36 }
 0x408   : > { %4682 = vmatprep.subr.bf16.mxu1 %v3640_v61  ;;  %v3627_v61 = vunpack.c.h.s8.bf16 %v2355_v40 }
 0x40a   : > { %4640 = vmatpush2.bf16.msra.mxu0 %v3575_v49  ;;  %v2320_v49 = vld [vmem:[%s7608_s17 + $0x1288] sm:$0xff] }
 0x40b   : > { %4683 = vmatpush2.bf16.msra.mxu1 %v3639_v50  ;;  %4641 = vmatprep.subr.bf16.mxu0 %v3572_v51  ;;  %v2352_v50 = vld [vmem:[%s7608_s17 + $0x1388] sm:$0xff]  ;;  %v3559_v51 = vunpack.c.l.s8.bf16 %v2323_v36  ;;  %v3556_v26 = vunpack.c.h.s8.bf16 %v2320_v49  ;;  %v3552_v57 = vunpack.c.l.s8.bf16 %v2320_v49 }
 0x40c   : > { %4684 = vmatprep.subr.bf16.mxu1 %v3636_v17  ;;  %v3623_v17 = vunpack.c.l.s8.bf16 %v2355_v40  ;;  %v3620_v52 = vunpack.c.h.s8.bf16 %v2352_v50  ;;  %v3616_v58 = vunpack.c.l.s8.bf16 %v2352_v50 }
 0x40e   : > { %4642 = vmatpush2.bf16.msra.mxu0 %v3571_v53  ;;  %v2319_v53 = vld [vmem:[%s7608_s17 + $0x1280] sm:$0xff] }
 0x40f   : > { %4685 = vmatpush2.bf16.msra.mxu1 %v3635_v54  ;;  %4643 = vmatprep.subr.bf16.mxu0 %v3568_v55  ;;  %v2351_v54 = vld [vmem:[%s7608_s17 + $0x1380] sm:$0xff]  ;;  %v3555_v55 = vunpack.c.h.s8.bf16 %v2319_v53 }
 0x410   : > { %4686 = vmatprep.subr.bf16.mxu1 %v3632_v56  ;;  %v3619_v56 = vunpack.c.h.s8.bf16 %v2351_v54 }
 0x412   : > { %4644 = vmatpush2.bf16.msra.mxu0 %v3567_v27  ;;  %v1742_v27 = vld [vmem:[%s7608_s17 + $0x78] sm:$0xff] }
 0x413   : > { %4687 = vmatpush2.bf16.msra.mxu1 %v3631_v43  ;;  %4645 = vmatprep.subr.bf16.mxu0 %v3564_v39  ;;  %v1774_v43 = vld [vmem:[%s7608_s17 + $0x178] sm:$0xff]  ;;  %v3551_v39 = vunpack.c.l.s8.bf16 %v2319_v53  ;;  %v2398_v36 = vunpack.c.h.s8.bf16 %v1742_v27  ;;  %v1737_v53 = vld [vmem:[%s7608_s17 + $0x50] sm:$0xff] }
 0x414   : > { %4688 = vmatprep.subr.bf16.mxu1 %v3628_v46  ;;  %v3615_v46 = vunpack.c.l.s8.bf16 %v2351_v54  ;;  %v2462_v40 = vunpack.c.h.s8.bf16 %v1774_v43  ;;  %v1769_v54 = vld [vmem:[%s7608_s17 + $0x150] sm:$0xff] }
 0x416   : > { %4646 = vmatpush2.bf16.msra.mxu0 %v3563_v41  ;;  %v1741_v41 = vld [vmem:[%s7608_s17 + $0x70] sm:$0xff] }
 0x417   : > { %4689 = vmatpush2.bf16.msra.mxu1 %v3627_v61  ;;  %4647 = vmatprep.subr.bf16.mxu0 %v3560_v0  ;;  %v1773_v61 = vld [vmem:[%s7608_s17 + $0x170] sm:$0xff]  ;;  %v8249_v0 = vcombine.low %v8184_v59, %v8195_v7  ;;  %v2397_v49 = vunpack.c.h.s8.bf16 %v1741_v41  ;;  %v2393_v59 = vunpack.c.l.s8.bf16 %v1741_v41 }
 0x418   : > { %4690 = vmatprep.subr.bf16.mxu1 %v3624_v42  ;;  %v8253_v42 = vcombine.low %v8198_v8, %v8201_v3  ;;  %v2461_v50 = vunpack.c.h.s8.bf16 %v1773_v61  ;;  %v2457_v7 = vunpack.c.l.s8.bf16 %v1773_v61 }
 0x419   : > { %8928 = vst [vmem:[#allocation36_spill] sm:$0xff] %v8249_v0 }
 0x41a   : > { %4648 = vmatpush2.bf16.msra.mxu0 %v3559_v51  ;;  %8929 = vst [vmem:[#allocation37_spill] sm:$0xff] %v8253_v42  ;;  %v2394_v51 = vunpack.c.l.s8.bf16 %v1742_v27  ;;  %v1734_v27 = vld [vmem:[%s7608_s17 + $0x38] sm:$0xff] }
 0x41b   : > { %4691 = vmatpush2.bf16.msra.mxu1 %v3623_v17  ;;  %4649 = vmatprep.subr.bf16.mxu0 %v3556_v26  ;;  %v2458_v17 = vunpack.c.l.s8.bf16 %v1774_v43  ;;  %v1738_v26 = vld [vmem:[%s7608_s17 + $0x58] sm:$0xff] }
 0x41c   : > { %4692 = vmatprep.subr.bf16.mxu1 %v3620_v52  ;;  %v1770_v52 = vld [vmem:[%s7608_s17 + $0x158] sm:$0xff]  ;;  %v2390_v8 = vunpack.c.h.s8.bf16 %v1738_v26 }
 0x41d   : > { %v2454_v3 = vunpack.c.h.s8.bf16 %v1770_v52  ;;  %v1766_v43 = vld [vmem:[%s7608_s17 + $0x138] sm:$0xff] }
 0x41e   : > { %4650 = vmatpush2.bf16.msra.mxu0 %v3555_v55  ;;  %v2389_v55 = vunpack.c.h.s8.bf16 %v1737_v53 }
 0x41f   : > { %4693 = vmatpush2.bf16.msra.mxu1 %v3619_v56  ;;  %4651 = vmatprep.subr.bf16.mxu0 %v3552_v57  ;;  %v2453_v56 = vunpack.c.h.s8.bf16 %v1769_v54  ;;  %v2386_v57 = vunpack.c.l.s8.bf16 %v1738_v26 }
 0x420   : > { %4694 = vmatprep.subr.bf16.mxu1 %v3616_v58  ;;  %v2450_v58 = vunpack.c.l.s8.bf16 %v1770_v52 }
 0x422   : > { %4652 = vmatpush2.bf16.msra.mxu0 %v3551_v39  ;;  %v2385_v39 = vunpack.c.l.s8.bf16 %v1737_v53 }
 0x423   : > { %4695 = vmatpush2.bf16.msra.mxu1 %v3615_v46  ;;  %4707 = vmatprep.subr.bf16.mxu0 %v2398_v36  ;;  %v2449_v46 = vunpack.c.l.s8.bf16 %v1769_v54  ;;  %v1733_v36 = vld [vmem:[%s7608_s17 + $0x30] sm:$0xff] }
 0x424   : > { %4750 = vmatprep.subr.bf16.mxu1 %v2462_v40  ;;  %v1765_v40 = vld [vmem:[%s7608_s17 + $0x130] sm:$0xff]  ;;  %v2381_v41 = vunpack.c.h.s8.bf16 %v1733_v36  ;;  %v2377_v26 = vunpack.c.l.s8.bf16 %v1733_v36 }
 0x425   : > { %4654 = vmatmul.mubr.bf16.vlgmr.msra.gmra.mxu0 %v8249_v0  ;;  %v2445_v61 = vunpack.c.h.s8.bf16 %v1765_v40  ;;  %v2441_v52 = vunpack.c.l.s8.bf16 %v1765_v40  ;;  %v1850_v0 = vld [vmem:[%s7608_s17 + $0x3d8] sm:$0xff] }
 0x426   : > { %4697 = vmatmul.mubr.bf16.vlgmr.msra.gmra.mxu1 %v8253_v42  ;;  %4708 = vmatpush1.bf16.msra.mxu0 %v2397_v49  ;;  %v2378_v49 = vunpack.c.l.s8.bf16 %v1734_v27 }
 0x427   : > { %4751 = vmatpush1.bf16.msra.mxu1 %v2461_v50  ;;  %4709 = vmatprep.subr.bf16.mxu0 %v2394_v51  ;;  %v2442_v50 = vunpack.c.l.s8.bf16 %v1766_v43  ;;  %v1730_v51 = vld [vmem:[%s7608_s17 + $0x18] sm:$0xff] }
 0x428   : > { %4752 = vmatprep.subr.bf16.mxu1 %v2458_v17  ;;  %4739 = vmatprep.mubr.bf16.mxu0 %v7639_v15  ;;  %v2382_v15 = vunpack.c.h.s8.bf16 %v1734_v27  ;;  %v1762_v17 = vld [vmem:[%s7608_s17 + $0x118] sm:$0xff] }
 0x429   : > { %4782 = vmatprep.mubr.bf16.mxu1 %v7645_v18  ;;  %v2446_v18 = vunpack.c.h.s8.bf16 %v1766_v43 }
 0x42a   : > { %4710 = vmatpush1.bf16.msra.mxu0 %v2393_v59  ;;  %v2374_v59 = vunpack.c.h.s8.bf16 %v1730_v51 }
 0x42b   : > { %4753 = vmatpush1.bf16.msra.mxu1 %v2457_v7  ;;  %4711 = vmatprep.subr.bf16.mxu0 %v2390_v8  ;;  %v2438_v7 = vunpack.c.h.s8.bf16 %v1762_v17  ;;  %v1729_v8 = vld [vmem:[%s7608_s17 + $0x10] sm:$0xff] }
 0x42c   : > { %4754 = vmatprep.subr.bf16.mxu1 %v2454_v3  ;;  %v1761_v3 = vld [vmem:[%s7608_s17 + $0x110] sm:$0xff]  ;;  %v2373_v53 = vunpack.c.h.s8.bf16 %v1729_v8  ;;  %v2369_v27 = vunpack.c.l.s8.bf16 %v1729_v8 }
 0x42d   : > { %v2437_v54 = vunpack.c.h.s8.bf16 %v1761_v3  ;;  %v2433_v43 = vunpack.c.l.s8.bf16 %v1761_v3 }
 0x42e   : > { %4712 = vmatpush1.bf16.msra.mxu0 %v2389_v55  ;;  %v2370_v55 = vunpack.c.l.s8.bf16 %v1730_v51 }
 0x42f   : > { %4755 = vmatpush1.bf16.msra.mxu1 %v2453_v56  ;;  %4713 = vmatprep.subr.bf16.mxu0 %v2386_v57  ;;  %v2434_v56 = vunpack.c.l.s8.bf16 %v1762_v17  ;;  %v1758_v57 = vld [vmem:[%s7608_s17 + $0xf8] sm:$0xff] }
 0x430   : > { %4756 = vmatprep.subr.bf16.mxu1 %v2450_v58  ;;  %v1790_v58 = vld [vmem:[%s7608_s17 + $0x1f8] sm:$0xff] }
 0x432   : > { %4714 = vmatpush1.bf16.msra.mxu0 %v2385_v39  ;;  %v2430_v39 = vunpack.c.h.s8.bf16 %v1758_v57 }
 0x433   : > { %4757 = vmatpush1.bf16.msra.mxu1 %v2449_v46  ;;  %4715 = vmatprep.subr.bf16.mxu0 %v2382_v15  ;;  %v2494_v46 = vunpack.c.h.s8.bf16 %v1790_v58  ;;  %v1757_v15 = vld [vmem:[%s7608_s17 + $0xf0] sm:$0xff] }
 0x434   : > { %4758 = vmatprep.subr.bf16.mxu1 %v2446_v18  ;;  %v1789_v18 = vld [vmem:[%s7608_s17 + $0x1f0] sm:$0xff]  ;;  %v2429_v36 = vunpack.c.h.s8.bf16 %v1757_v15  ;;  %v2425_v51 = vunpack.c.l.s8.bf16 %v1757_v15 }
 0x435   : > { %v2493_v40 = vunpack.c.h.s8.bf16 %v1789_v18  ;;  %v2489_v17 = vunpack.c.l.s8.bf16 %v1789_v18 }
 0x436   : > { %4716 = vmatpush1.bf16.msra.mxu0 %v2381_v41  ;;  %v2426_v41 = vunpack.c.l.s8.bf16 %v1758_v57 }
 0x437   : > { %4759 = vmatpush1.bf16.msra.mxu1 %v2445_v61  ;;  %4717 = vmatprep.subr.bf16.mxu0 %v2378_v49  ;;  %v2490_v61 = vunpack.c.l.s8.bf16 %v1790_v58  ;;  %v1754_v49 = vld [vmem:[%s7608_s17 + $0xd8] sm:$0xff] }
 0x438   : > { %4760 = vmatprep.subr.bf16.mxu1 %v2442_v50  ;;  %v1786_v50 = vld [vmem:[%s7608_s17 + $0x1d8] sm:$0xff] }
 0x43a   : > { %4718 = vmatpush1.bf16.msra.mxu0 %v2377_v26  ;;  %v2422_v26 = vunpack.c.h.s8.bf16 %v1754_v49 }
 0x43b   : > { %4761 = vmatpush1.bf16.msra.mxu1 %v2441_v52  ;;  %4719 = vmatprep.subr.bf16.mxu0 %v2374_v59  ;;  %v2486_v52 = vunpack.c.h.s8.bf16 %v1786_v50  ;;  %v1753_v59 = vld [vmem:[%s7608_s17 + $0xd0] sm:$0xff] }
 0x43c   : > { %4762 = vmatprep.subr.bf16.mxu1 %v2438_v7  ;;  %v1785_v7 = vld [vmem:[%s7608_s17 + $0x1d0] sm:$0xff]  ;;  %v2421_v8 = vunpack.c.h.s8.bf16 %v1753_v59  ;;  %v2417_v57 = vunpack.c.l.s8.bf16 %v1753_v59 }
 0x43d   : > { %v2485_v3 = vunpack.c.h.s8.bf16 %v1785_v7  ;;  %v2481_v58 = vunpack.c.l.s8.bf16 %v1785_v7 }
 0x43e   : > { %4720 = vmatpush1.bf16.msra.mxu0 %v2373_v53  ;;  %v2418_v53 = vunpack.c.l.s8.bf16 %v1754_v49 }
 0x43f   : > { %4763 = vmatpush1.bf16.msra.mxu1 %v2437_v54  ;;  %4721 = vmatprep.subr.bf16.mxu0 %v2370_v55  ;;  %v2482_v54 = vunpack.c.l.s8.bf16 %v1786_v50  ;;  %v1750_v55 = vld [vmem:[%s7608_s17 + $0xb8] sm:$0xff] }
 0x440   : > { %4764 = vmatprep.subr.bf16.mxu1 %v2434_v56  ;;  %v1782_v56 = vld [vmem:[%s7608_s17 + $0x1b8] sm:$0xff] }
 0x442   : > { %4722 = vmatpush1.bf16.msra.mxu0 %v2369_v27  ;;  %v2414_v27 = vunpack.c.h.s8.bf16 %v1750_v55 }
 0x443   : > { %4765 = vmatpush1.bf16.msra.mxu1 %v2433_v43  ;;  %4723 = vmatprep.subr.bf16.mxu0 %v2430_v39  ;;  %v2478_v43 = vunpack.c.h.s8.bf16 %v1782_v56  ;;  %v1749_v39 = vld [vmem:[%s7608_s17 + $0xb0] sm:$0xff] }
 0x444   : > { %4766 = vmatprep.subr.bf16.mxu1 %v2494_v46  ;;  %v1781_v46 = vld [vmem:[%s7608_s17 + $0x1b0] sm:$0xff]  ;;  %v2413_v15 = vunpack.c.h.s8.bf16 %v1749_v39  ;;  %v2409_v49 = vunpack.c.l.s8.bf16 %v1749_v39 }
 0x445   : > { %v2477_v18 = vunpack.c.h.s8.bf16 %v1781_v46  ;;  %v2473_v50 = vunpack.c.l.s8.bf16 %v1781_v46 }
 0x446   : > { %4724 = vmatpush2.bf16.msra.mxu0 %v2429_v36  ;;  %v2410_v36 = vunpack.c.l.s8.bf16 %v1750_v55 }
 0x447   : > { %4767 = vmatpush2.bf16.msra.mxu1 %v2493_v40  ;;  %4725 = vmatprep.subr.bf16.mxu0 %v2426_v41  ;;  %v2474_v40 = vunpack.c.l.s8.bf16 %v1782_v56  ;;  %v1746_v41 = vld [vmem:[%s7608_s17 + $0x98] sm:$0xff] }
 0x448   : > { %4768 = vmatprep.subr.bf16.mxu1 %v2490_v61  ;;  %v1778_v61 = vld [vmem:[%s7608_s17 + $0x198] sm:$0xff] }
 0x44a   : > { %4726 = vmatpush2.bf16.msra.mxu0 %v2425_v51  ;;  %v2406_v51 = vunpack.c.h.s8.bf16 %v1746_v41 }
 0x44b   : > { %4769 = vmatpush2.bf16.msra.mxu1 %v2489_v17  ;;  %4727 = vmatprep.subr.bf16.mxu0 %v2422_v26  ;;  %v2470_v17 = vunpack.c.h.s8.bf16 %v1778_v61  ;;  %v1745_v26 = vld [vmem:[%s7608_s17 + $0x90] sm:$0xff] }
 0x44c   : > { %4770 = vmatprep.subr.bf16.mxu1 %v2486_v52  ;;  %v1777_v52 = vld [vmem:[%s7608_s17 + $0x190] sm:$0xff]  ;;  %v2405_v59 = vunpack.c.h.s8.bf16 %v1745_v26  ;;  %v2401_v55 = vunpack.c.l.s8.bf16 %v1745_v26 }
 0x44d   : > { %v2469_v7 = vunpack.c.h.s8.bf16 %v1777_v52  ;;  %v2465_v56 = vunpack.c.l.s8.bf16 %v1777_v52  ;;  %v1801_v26 = vld [vmem:[%s7608_s17 + $0x250] sm:$0xff] }
 0x44e   : > { %4728 = vmatpush2.bf16.msra.mxu0 %v2421_v8  ;;  %v2402_v8 = vunpack.c.l.s8.bf16 %v1746_v41  ;;  %v8295_v41 = vpop.f32.mrf.mxu0  ;;  %v1833_v52 = vld [vmem:[%s7608_s17 + $0x350] sm:$0xff] }
 0x44f   : > { %4771 = vmatpush2.bf16.msra.mxu1 %v2485_v3  ;;  %4729 = vmatprep.subr.bf16.mxu0 %v2418_v53  ;;  %v2466_v3 = vunpack.c.l.s8.bf16 %v1778_v61  ;;  %v1806_v53 = vld [vmem:[%s7608_s17 + $0x278] sm:$0xff] }
 0x450   : > { %4772 = vmatprep.subr.bf16.mxu1 %v2482_v54  ;;  %v1838_v54 = vld [vmem:[%s7608_s17 + $0x378] sm:$0xff] }
 0x452   : > { %4730 = vmatpush2.bf16.msra.mxu0 %v2417_v57  ;;  %v2526_v57 = vunpack.c.h.s8.bf16 %v1806_v53 }
 0x453   : > { %4773 = vmatpush2.bf16.msra.mxu1 %v2481_v58  ;;  %4731 = vmatprep.subr.bf16.mxu0 %v2414_v27  ;;  %v2590_v58 = vunpack.c.h.s8.bf16 %v1838_v54  ;;  %v1805_v27 = vld [vmem:[%s7608_s17 + $0x270] sm:$0xff] }
 0x454   : > { %4774 = vmatprep.subr.bf16.mxu1 %v2478_v43  ;;  %v1837_v43 = vld [vmem:[%s7608_s17 + $0x370] sm:$0xff]  ;;  %v2525_v39 = vunpack.c.h.s8.bf16 %v1805_v27  ;;  %v2521_v61 = vunpack.c.l.s8.bf16 %v1805_v27 }
 0x455   : > { %v2589_v46 = vunpack.c.h.s8.bf16 %v1837_v43  ;;  %v1797_v27 = vld [vmem:[%s7608_s17 + $0x230] sm:$0xff] }
 0x456   : > { %4732 = vmatpush2.bf16.msra.mxu0 %v2413_v15  ;;  %v2522_v15 = vunpack.c.l.s8.bf16 %v1806_v53  ;;  %v1798_v53 = vld [vmem:[%s7608_s17 + $0x238] sm:$0xff] }
 0x457   : > { %4775 = vmatpush2.bf16.msra.mxu1 %v2477_v18  ;;  %4733 = vmatprep.subr.bf16.mxu0 %v2410_v36  ;;  %v2586_v18 = vunpack.c.l.s8.bf16 %v1838_v54  ;;  %v1802_v36 = vld [vmem:[%s7608_s17 + $0x258] sm:$0xff] }
 0x458   : > { %4776 = vmatprep.subr.bf16.mxu1 %v2474_v40  ;;  %v1834_v40 = vld [vmem:[%s7608_s17 + $0x358] sm:$0xff] }
 0x459   : > { %v1830_v54 = vld [vmem:[%s7608_s17 + $0x338] sm:$0xff] }
 0x45a   : > { %4734 = vmatpush2.bf16.msra.mxu0 %v2409_v49  ;;  %v2585_v49 = vunpack.c.l.s8.bf16 %v1837_v43  ;;  %v1829_v43 = vld [vmem:[%s7608_s17 + $0x330] sm:$0xff] }
 0x45b   : > { %4777 = vmatpush2.bf16.msra.mxu1 %v2473_v50  ;;  %4735 = vmatprep.subr.bf16.mxu0 %v2406_v51  ;;  %v8297_v50 = vpop.f32.mrf.mxu1  ;;  %v2518_v51 = vunpack.c.h.s8.bf16 %v1802_v36 }
 0x45c   : > { %4778 = vmatprep.subr.bf16.mxu1 %v2470_v17  ;;  %v2582_v17 = vunpack.c.h.s8.bf16 %v1834_v40 }
 0x45e   : > { %4736 = vmatpush2.bf16.msra.mxu0 %v2405_v59  ;;  %v2581_v59 = vunpack.c.h.s8.bf16 %v1833_v52 }
 0x45f   : > { %4779 = vmatpush2.bf16.msra.mxu1 %v2469_v7  ;;  %4737 = vmatprep.subr.bf16.mxu0 %v2402_v8  ;;  %v8305_v7 = vpop.f32.mrf.mxu1  ;;  %v2514_v8 = vunpack.c.l.s8.bf16 %v1802_v36  ;;  %v2506_v36 = vunpack.c.l.s8.bf16 %v1798_v53 }
 0x460   : > { %4780 = vmatprep.subr.bf16.mxu1 %v2466_v3  ;;  %v2578_v3 = vunpack.c.l.s8.bf16 %v1834_v40  ;;  %v2570_v40 = vunpack.c.l.s8.bf16 %v1830_v54 }
 0x462   : > { %4738 = vmatpush2.bf16.msra.mxu0 %v2401_v55 }
 0x463   : > { %4781 = vmatpush2.bf16.msra.mxu1 %v2465_v56  ;;  %4793 = vmatprep.subr.bf16.mxu0 %v2526_v57  ;;  %v8311_v56 = vpop.f32.mrf.mxu1  ;;  %v2510_v57 = vunpack.c.h.s8.bf16 %v1798_v53 }
 0x464   : > { %4836 = vmatprep.subr.bf16.mxu1 %v2590_v58  ;;  %v2574_v58 = vunpack.c.h.s8.bf16 %v1830_v54 }
 0x465   : > { %4740 = vmatmul.mubr.bf16.vlgmr.msra.gmra.mxu0 %v7676_v28  ;;  %v8303_v28 = vpop.f32.mrf.mxu0 }
 0x466   : > { %4783 = vmatmul.mubr.bf16.vlgmr.msra.gmra.mxu1 %v7680_v29  ;;  %4794 = vmatpush1.bf16.msra.mxu0 %v2525_v39  ;;  %v2517_v29 = vunpack.c.h.s8.bf16 %v1801_v26 }
 0x467   : > { %4837 = vmatpush1.bf16.msra.mxu1 %v2589_v46  ;;  %4795 = vmatprep.subr.bf16.mxu0 %v2522_v15  ;;  %v8309_v55 = vpop.f32.mrf.mxu0  ;;  %v2509_v46 = vunpack.c.h.s8.bf16 %v1797_v27  ;;  %v2573_v15 = vunpack.c.h.s8.bf16 %v1829_v43 }
 0x468   : > { %4838 = vmatprep.subr.bf16.mxu1 %v2586_v18  ;;  %4825 = vmatprep.mubr.bf16.mxu0 %v7695_v9  ;;  %v2513_v9 = vunpack.c.l.s8.bf16 %v1801_v26  ;;  %v8317_v18 = vpop.f32.mrf.mxu1  ;;  %v2505_v26 = vunpack.c.l.s8.bf16 %v1797_v27  ;;  %v3929_v19 = vadd.f32 %v8311_v56, %v8309_v55 }
 0x469   : > { %4868 = vmatprep.mubr.bf16.mxu1 %v7699_v10  ;;  %v2577_v10 = vunpack.c.l.s8.bf16 %v1833_v52  ;;  %v8315_v39 = vpop.f32.mrf.mxu0  ;;  %v2569_v52 = vunpack.c.l.s8.bf16 %v1829_v43  ;;  %v1822_v43 = vld [vmem:[%s7608_s17 + $0x2f8] sm:$0xff] }
 0x46a   : > { %4796 = vmatpush1.bf16.msra.mxu0 %v2521_v61 }
 0x46b   : > { %4839 = vmatpush1.bf16.msra.mxu1 %v2585_v49  ;;  %4797 = vmatprep.subr.bf16.mxu0 %v2518_v51  ;;  %v8319_v61 = vpop.f32.mrf.mxu0  ;;  %v1794_v49 = vld [vmem:[%s7608_s17 + $0x218] sm:$0xff] }
 0x46c   : > { %4840 = vmatprep.subr.bf16.mxu1 %v2582_v17  ;;  %v1826_v51 = vld [vmem:[%s7608_s17 + $0x318] sm:$0xff]  ;;  %v8323_v17 = vpop.f32.mrf.mxu1 }
 0x46d   : > { %v8327_v53 = vpop.f32.mrf.mxu0 }
 0x46e   : > { %4798 = vmatpush1.bf16.msra.mxu0 %v2517_v29  ;;  %v2502_v29 = vunpack.c.h.s8.bf16 %v1794_v49  ;;  %v8329_v54 = vpop.f32.mrf.mxu1 }
 0x46f   : > { %4841 = vmatpush1.bf16.msra.mxu1 %v2581_v59  ;;  %4799 = vmatprep.subr.bf16.mxu0 %v2514_v8  ;;  %v2566_v59 = vunpack.c.h.s8.bf16 %v1826_v51  ;;  %v1793_v8 = vld [vmem:[%s7608_s17 + $0x210] sm:$0xff]  ;;  %v8331_v27 = vpop.f32.mrf.mxu0 }
 0x470   : > { %4842 = vmatprep.subr.bf16.mxu1 %v2578_v3  ;;  %v1825_v3 = vld [vmem:[%s7608_s17 + $0x310] sm:$0xff] }
 0x472   : > { %4800 = vmatpush1.bf16.msra.mxu0 %v2513_v9  ;;  %v2501_v9 = vunpack.c.h.s8.bf16 %v1793_v8 }
 0x473   : > { %4843 = vmatpush1.bf16.msra.mxu1 %v2577_v10  ;;  %4801 = vmatprep.subr.bf16.mxu0 %v2510_v57  ;;  %v2565_v10 = vunpack.c.h.s8.bf16 %v1825_v3  ;;  %v2498_v57 = vunpack.c.l.s8.bf16 %v1794_v49  ;;  %v8339_v49 = vpop.f32.mrf.mxu0 }
 0x474   : > { %4844 = vmatprep.subr.bf16.mxu1 %v2574_v58  ;;  %v2562_v58 = vunpack.c.l.s8.bf16 %v1826_v51 }
 0x475   : > { %v8343_v42 = vpop.f32.mrf.mxu0 }
 0x476   : > { %4802 = vmatpush1.bf16.msra.mxu0 %v2509_v46  ;;  %v1854_v46 = vld [vmem:[%s7608_s17 + $0x3f8] sm:$0xff] }
 0x477   : > { %4845 = vmatpush1.bf16.msra.mxu1 %v2573_v15  ;;  %4803 = vmatprep.subr.bf16.mxu0 %v2506_v36  ;;  %v8335_v15 = vpop.f32.mrf.mxu1  ;;  %v2497_v36 = vunpack.c.l.s8.bf16 %v1793_v8  ;;  %v8349_v38 = vpop.f32.mrf.mxu0 }
 0x478   : > { %4846 = vmatprep.subr.bf16.mxu1 %v2570_v40  ;;  %v2561_v40 = vunpack.c.l.s8.bf16 %v1825_v3  ;;  %v2554_v3 = vunpack.c.l.s8.bf16 %v1822_v43 }
 0x479   : > { %v8341_v51 = vpop.f32.mrf.mxu1 }
 0x47a   : > { %4804 = vmatpush1.bf16.msra.mxu0 %v2505_v26  ;;  %v2558_v26 = vunpack.c.h.s8.bf16 %v1822_v43  ;;  %v8355_v43 = vpop.f32.mrf.mxu0 }
 0x47b   : > { %4847 = vmatpush1.bf16.msra.mxu1 %v2569_v52  ;;  %4805 = vmatprep.subr.bf16.mxu0 %v2502_v29  ;;  %v2622_v52 = vunpack.c.h.s8.bf16 %v1854_v46  ;;  %v1821_v29 = vld [vmem:[%s7608_s17 + $0x2f0] sm:$0xff]  ;;  %v8345_v8 = vpop.f32.mrf.mxu1 }
 0x47c   : > { %4848 = vmatprep.subr.bf16.mxu1 %v2566_v59  ;;  %v1853_v59 = vld [vmem:[%s7608_s17 + $0x3f0] sm:$0xff]  ;;  %v2553_v37 = vunpack.c.l.s8.bf16 %v1821_v29 }
 0x47d   : > { %v2617_v35 = vunpack.c.l.s8.bf16 %v1853_v59 }
 0x47e   : > { %4806 = vmatpush1.bf16.msra.mxu0 %v2501_v9  ;;  %v2557_v9 = vunpack.c.h.s8.bf16 %v1821_v29 }
 0x47f   : > { %4849 = vmatpush1.bf16.msra.mxu1 %v2565_v10  ;;  %4807 = vmatprep.subr.bf16.mxu0 %v2498_v57  ;;  %v2621_v10 = vunpack.c.h.s8.bf16 %v1853_v59  ;;  %v2618_v57 = vunpack.c.l.s8.bf16 %v1854_v46  ;;  %v2610_v59 = vunpack.c.l.s8.bf16 %v1850_v0 }
 0x480   : > { %4850 = vmatprep.subr.bf16.mxu1 %v2562_v58  ;;  %v1818_v58 = vld [vmem:[%s7608_s17 + $0x2d8] sm:$0xff] }
 0x481   : > { %v2546_v29 = vunpack.c.l.s8.bf16 %v1818_v58 }
 0x482   : > { %4808 = vmatpush1.bf16.msra.mxu0 %v2497_v36  ;;  %v8351_v36 = vpop.f32.mrf.mxu1 }
 0x483   : > { %4851 = vmatpush1.bf16.msra.mxu1 %v2561_v40  ;;  %4809 = vmatprep.subr.bf16.mxu0 %v2558_v26  ;;  %v2550_v40 = vunpack.c.h.s8.bf16 %v1818_v58  ;;  %v2614_v26 = vunpack.c.h.s8.bf16 %v1850_v0 }
 0x484   : > { %4852 = vmatprep.subr.bf16.mxu1 %v2622_v52  ;;  %v1817_v52 = vld [vmem:[%s7608_s17 + $0x2d0] sm:$0xff] }
 0x485   : > { %v2549_v46 = vunpack.c.h.s8.bf16 %v1817_v52  ;;  %v2545_v1 = vunpack.c.l.s8.bf16 %v1817_v52 }
 0x486   : > { %4810 = vmatpush2.bf16.msra.mxu0 %v2557_v9  ;;  %v8357_v9 = vpop.f32.mrf.mxu1 }
 0x487   : > { %4853 = vmatpush2.bf16.msra.mxu1 %v2621_v10  ;;  %4811 = vmatprep.subr.bf16.mxu0 %v2554_v3  ;;  %v1814_v10 = vld [vmem:[%s7608_s17 + $0x2b8] sm:$0xff] }
 0x488   : > { %4854 = vmatprep.subr.bf16.mxu1 %v2618_v57  ;;  %v1846_v3 = vld [vmem:[%s7608_s17 + $0x3b8] sm:$0xff]  ;;  %v8361_v57 = vpop.f32.mrf.mxu0  ;;  %v2538_v60 = vunpack.c.l.s8.bf16 %v1814_v10 }
 0x489   : > { %v2602_v52 = vunpack.c.l.s8.bf16 %v1846_v3 }
 0x48a   : > { %4812 = vmatpush2.bf16.msra.mxu0 %v2553_v37  ;;  %v8363_v37 = vpop.f32.mrf.mxu1  ;;  %v8367_v58 = vpop.f32.mrf.mxu0 }
 0x48b   : > { %4855 = vmatpush2.bf16.msra.mxu1 %v2617_v35  ;;  %4813 = vmatprep.subr.bf16.mxu0 %v2550_v40  ;;  %v2542_v35 = vunpack.c.h.s8.bf16 %v1814_v10  ;;  %v2606_v40 = vunpack.c.h.s8.bf16 %v1846_v3 }
 0x48c   : > { %4856 = vmatprep.subr.bf16.mxu1 %v2614_v26  ;;  %v1813_v26 = vld [vmem:[%s7608_s17 + $0x2b0] sm:$0xff]  ;;  %v8369_v0 = vpop.f32.mrf.mxu1 }
 0x48d   : > { %v2537_v63 = vunpack.c.l.s8.bf16 %v1813_v26 }
 0x48e   : > { %4814 = vmatpush2.bf16.msra.mxu0 %v2549_v46  ;;  %v2541_v46 = vunpack.c.h.s8.bf16 %v1813_v26  ;;  %v8375_v30 = vpop.f32.mrf.mxu1 }
 0x48f   : > { %4857 = vmatpush2.bf16.msra.mxu1 %v2613_v2  ;;  %4815 = vmatprep.subr.bf16.mxu0 %v2546_v29  ;;  %v2605_v2 = vunpack.c.h.s8.bf16 %v1845_v5  ;;  %v8371_v29 = vpop.f32.mrf.mxu0  ;;  %v2594_v5 = vunpack.c.l.s8.bf16 %v1842_v13 }
 0x490   : > { %4858 = vmatprep.subr.bf16.mxu1 %v2610_v59  ;;  %v1810_v59 = vld [vmem:[%s7608_s17 + $0x298] sm:$0xff]  ;;  %v8381_v3 = vpop.f32.mrf.mxu1 }
 0x491   : > { %v8379_v10 = vpop.f32.mrf.mxu0  ;;  %v2530_v26 = vunpack.c.l.s8.bf16 %v1810_v59 }
 0x492   : > { %4816 = vmatpush2.bf16.msra.mxu0 %v2545_v1  ;;  %v2598_v1 = vunpack.c.h.s8.bf16 %v1842_v13 }
 0x493   : > { %4859 = vmatpush2.bf16.msra.mxu1 %v2609_v12  ;;  %4817 = vmatprep.subr.bf16.mxu0 %v2542_v35  ;;  %v2534_v12 = vunpack.c.h.s8.bf16 %v1810_v59  ;;  %v1809_v35 = vld [vmem:[%s7608_s17 + $0x290] sm:$0xff] }
 0x494   : > { %4860 = vmatprep.subr.bf16.mxu1 %v2606_v40  ;;  %v1841_v40 = vld [vmem:[%s7608_s17 + $0x390] sm:$0xff]  ;;  %v2533_v48 = vunpack.c.h.s8.bf16 %v1809_v35 }
 0x495   : > { %v2597_v47 = vunpack.c.h.s8.bf16 %v1841_v40 }
 0x496   : > { %4818 = vmatpush2.bf16.msra.mxu0 %v2541_v46  ;;  %v8383_v46 = vpop.f32.mrf.mxu0 }
 0x497   : > { %4861 = vmatpush2.bf16.msra.mxu1 %v2605_v2  ;;  %4819 = vmatprep.subr.bf16.mxu0 %v2538_v60  ;;  %v1870_v2 = vld [vmem:[%s7608_s17 + $0x478] sm:$0xff] }
 0x498   : > { %4862 = vmatprep.subr.bf16.mxu1 %v2602_v52  ;;  %v1902_v60 = vld [vmem:[%s7608_s17 + $0x578] sm:$0xff]  ;;  %v8387_v52 = vpop.f32.mrf.mxu1  ;;  %v8389_v23 = vpop.f32.mrf.mxu0  ;;  %v2654_v13 = vunpack.c.h.s8.bf16 %v1870_v2 }
 0x499   : > { %v2718_v59 = vunpack.c.h.s8.bf16 %v1902_v60 }
 0x49a   : > { %4820 = vmatpush2.bf16.msra.mxu0 %v2537_v63  ;;  %v2529_v63 = vunpack.c.l.s8.bf16 %v1809_v35  ;;  %v8391_v4 = vpop.f32.mrf.mxu1  ;;  %v8395_v34 = vpop.f32.mrf.mxu0  ;;  %v2714_v35 = vunpack.c.l.s8.bf16 %v1902_v60  ;;  %v1865_v60 = vld [vmem:[%s7608_s17 + $0x450] sm:$0xff] }
 0x49b   : > { %4863 = vmatpush2.bf16.msra.mxu1 %v2601_v62  ;;  %4821 = vmatprep.subr.bf16.mxu0 %v2534_v12  ;;  %v2593_v62 = vunpack.c.l.s8.bf16 %v1841_v40  ;;  %v1869_v12 = vld [vmem:[%s7608_s17 + $0x470] sm:$0xff]  ;;  %v1866_v40 = vld [vmem:[%s7608_s17 + $0x458] sm:$0xff] }
 0x49c   : > { %4864 = vmatprep.subr.bf16.mxu1 %v2598_v1  ;;  %v1901_v1 = vld [vmem:[%s7608_s17 + $0x570] sm:$0xff]  ;;  %v2653_v33 = vunpack.c.h.s8.bf16 %v1869_v12 }
 0x49d   : > { %v2717_v45 = vunpack.c.h.s8.bf16 %v1901_v1 }
 0x49e   : > { %4822 = vmatpush2.bf16.msra.mxu0 %v2533_v48  ;;  %v8397_v48 = vpop.f32.mrf.mxu1 }
 0x49f   : > { %4865 = vmatpush2.bf16.msra.mxu1 %v2597_v47  ;;  %4823 = vmatprep.subr.bf16.mxu0 %v2530_v26  ;;  %v2650_v47 = vunpack.c.l.s8.bf16 %v1870_v2  ;;  %v1898_v26 = vld [vmem:[%s7608_s17 + $0x558] sm:$0xff]  ;;  %v2646_v2 = vunpack.c.h.s8.bf16 %v1866_v40 }
 0x4a0   : > { %4866 = vmatprep.subr.bf16.mxu1 %v2594_v5  ;;  %v8403_v5 = vpop.f32.mrf.mxu0  ;;  %v8405_v44 = vpop.f32.mrf.mxu1 }
 0x4a2   : > { %4824 = vmatpush2.bf16.msra.mxu0 %v2529_v63  ;;  %v2649_v63 = vunpack.c.l.s8.bf16 %v1869_v12  ;;  %v2642_v12 = vunpack.c.l.s8.bf16 %v1866_v40 }
 0x4a3   : > { %4867 = vmatpush2.bf16.msra.mxu1 %v2593_v62  ;;  %4879 = vmatprep.subr.bf16.mxu0 %v2654_v13  ;;  %v2713_v62 = vunpack.c.l.s8.bf16 %v1901_v1  ;;  %v2710_v13 = vunpack.c.h.s8.bf16 %v1898_v26  ;;  %v2706_v1 = vunpack.c.l.s8.bf16 %v1898_v26 }
 0x4a4   : > { %4922 = vmatprep.subr.bf16.mxu1 %v2718_v59  ;;  %v1897_v59 = vld [vmem:[%s7608_s17 + $0x550] sm:$0xff] }
 0x4a5   : > { %4826 = vmatmul.mubr.bf16.vlgmr.msra.gmra.mxu0 %v7740_v14  ;;  %v8411_v14 = vpop.f32.mrf.mxu0 }
 0x4a6   : > { %4869 = vmatmul.mubr.bf16.vlgmr.msra.gmra.mxu1 %v7744_v16  ;;  %4880 = vmatpush1.bf16.msra.mxu0 %v2653_v33  ;;  %v2645_v16 = vunpack.c.h.s8.bf16 %v1865_v60  ;;  %v8413_v33 = vpop.f32.mrf.mxu1 }
 0x4a7   : > { %4923 = vmatpush1.bf16.msra.mxu1 %v2717_v45  ;;  %4881 = vmatprep.subr.bf16.mxu0 %v2650_v47  ;;  %v2709_v45 = vunpack.c.h.s8.bf16 %v1897_v59  ;;  %v8415_v47 = vpop.f32.mrf.mxu0 }
 0x4a8   : > { %4924 = vmatprep.subr.bf16.mxu1 %v2714_v35  ;;  %4911 = vmatprep.mubr.bf16.mxu0 %v7759_v31  ;;  %v1862_v35 = vld [vmem:[%s7608_s17 + $0x438] sm:$0xff]  ;;  %v8419_v22 = vpop.f32.mrf.mxu1 }
 0x4a9   : > { %4954 = vmatprep.mubr.bf16.mxu1 %v7763_v32  ;;  %v1894_v31 = vld [vmem:[%s7608_s17 + $0x538] sm:$0xff]  ;;  %v2641_v32 = vunpack.c.l.s8.bf16 %v1865_v60  ;;  %v8423_v40 = vpop.f32.mrf.mxu0  ;;  %v2634_v60 = vunpack.c.l.s8.bf16 %v1862_v35 }
 0x4aa   : > { %4882 = vmatpush1.bf16.msra.mxu0 %v2649_v63  ;;  %v2705_v63 = vunpack.c.l.s8.bf16 %v1897_v59  ;;  %v8425_v26 = vpop.f32.mrf.mxu1  ;;  %v2698_v59 = vunpack.c.l.s8.bf16 %v1894_v31 }
 0x4ab   : > { %4925 = vmatpush1.bf16.msra.mxu1 %v2713_v62  ;;  %4883 = vmatprep.subr.bf16.mxu0 %v2646_v2  ;;  %v2638_v62 = vunpack.c.h.s8.bf16 %v1862_v35  ;;  %v2702_v2 = vunpack.c.h.s8.bf16 %v1894_v31  ;;  %v2697_v31 = vunpack.c.l.s8.bf16 %v1893_v21  ;;  %v3972_v21 = vadd.f32 %v8331_v27, %v3929_v19  ;;  %v1886_v19 = vld [vmem:[%s7608_s17 + $0x4f8] sm:$0xff] }
 0x4ac   : > { %4926 = vmatprep.subr.bf16.mxu1 %v2710_v13  ;;  %v1861_v13 = vld [vmem:[%s7608_s17 + $0x430] sm:$0xff]  ;;  %v8433_v20 = vpop.f32.mrf.mxu1  ;;  %v1918_v27 = vld [vmem:[%s7608_s17 + $0x5f8] sm:$0xff] }
 0x4ad   : > { %v2637_v25 = vunpack.c.h.s8.bf16 %v1861_v13  ;;  %v2633_v35 = vunpack.c.l.s8.bf16 %v1861_v13 }
 0x4ae   : > { %4884 = vmatpush1.bf16.msra.mxu0 %v2645_v16  ;;  %v3925_v16 = vadd.f32 %v8297_v50, %v8295_v41  ;;  %v1857_v50 = vld [vmem:[%s7608_s17 + $0x410] sm:$0xff] }
 0x4af   : > { %4927 = vmatpush1.bf16.msra.mxu1 %v2709_v45  ;;  %4885 = vmatprep.subr.bf16.mxu0 %v2642_v12  ;;  %v8429_v45 = vpop.f32.mrf.mxu0  ;;  %v1858_v12 = vld [vmem:[%s7608_s17 + $0x418] sm:$0xff]  ;;  %v2629_v55 = vunpack.c.h.s8.bf16 %v1857_v50 }
 0x4b0   : > { %4928 = vmatprep.subr.bf16.mxu1 %v2706_v1  ;;  %v1890_v1 = vld [vmem:[%s7608_s17 + $0x518] sm:$0xff] }
 0x4b1   : > { %v2694_v41 = vunpack.c.h.s8.bf16 %v1890_v1  ;;  %v8443_v6 = vpop.f32.mrf.mxu0 }
 0x4b2   : > { %4886 = vmatpush1.bf16.msra.mxu0 %v2641_v32  ;;  %v3927_v32 = vadd.f32 %v8305_v7, %v8303_v28  ;;  %v3931_v28 = vadd.f32 %v8317_v18, %v8315_v39  ;;  %v2626_v39 = vunpack.c.l.s8.bf16 %v1858_v12  ;;  %v2690_v18 = vunpack.c.l.s8.bf16 %v1890_v1 }
 0x4b3   : > { %4929 = vmatpush1.bf16.msra.mxu1 %v2705_v63  ;;  %4887 = vmatprep.subr.bf16.mxu0 %v2638_v62  ;;  %v3968_v63 = vadd.f32 %v8319_v61, %v3925_v16  ;;  %v2630_v62 = vunpack.c.h.s8.bf16 %v1858_v12  ;;  %v8451_v7 = vpop.f32.mrf.mxu0 }
 0x4b4   : > { %4930 = vmatprep.subr.bf16.mxu1 %v2702_v2  ;;  %v1889_v2 = vld [vmem:[%s7608_s17 + $0x510] sm:$0xff]  ;;  %v3970_v11 = vadd.f32 %v8327_v53, %v3927_v32  ;;  %v3974_v61 = vadd.f32 %v8339_v49, %v3931_v28  ;;  %v2625_v49 = vunpack.c.l.s8.bf16 %v1857_v50 }
 0x4b5   : > { %v2693_v56 = vunpack.c.h.s8.bf16 %v1889_v2  ;;  %v8462_v16 = vpop.f32.mrf.mxu0  ;;  %v2689_v32 = vunpack.c.l.s8.bf16 %v1889_v2 }
 0x4b6   : > { %4888 = vmatpush1.bf16.msra.mxu0 %v2637_v25  ;;  %v8447_v25 = vpop.f32.mrf.mxu1  ;;  %v4013_v13 = vadd.f32 %v8329_v54, %v3970_v11  ;;  %v4017_v12 = vadd.f32 %v8341_v51, %v3974_v61  ;;  %v2686_v11 = vunpack.c.h.s8.bf16 %v1886_v19  ;;  %v1885_v54 = vld [vmem:[%s7608_s17 + $0x4f0] sm:$0xff] }
 0x4b7   : > { %4931 = vmatpush1.bf16.msra.mxu1 %v2701_v24  ;;  %4889 = vmatprep.subr.bf16.mxu0 %v2634_v60  ;;  %v4011_v24 = vadd.f32 %v8323_v17, %v3968_v63  ;;  %v4015_v60 = vadd.f32 %v8335_v15, %v3972_v21  ;;  %v1917_v63 = vld [vmem:[%s7608_s17 + $0x5f0] sm:$0xff]  ;;  %v2681_v61 = vunpack.c.l.s8.bf16 %v1885_v54 }
 0x4b8   : > { %4932 = vmatprep.subr.bf16.mxu1 %v2698_v59  ;;  %v8454_v53 = vpop.f32.mrf.mxu1  ;;  %v4056_v59 = vadd.f32 %v8349_v38, %v4013_v13  ;;  %v2749_v50 = vunpack.c.h.s8.bf16 %v1917_v63 }
 0x4b9   : > { %v4054_v17 = vadd.f32 %v8343_v42, %v4011_v24  ;;  %v2750_v42 = vunpack.c.h.s8.bf16 %v1918_v27  ;;  %v4058_v38 = vadd.f32 %v8355_v43, %v4015_v60  ;;  %v2746_v43 = vunpack.c.l.s8.bf16 %v1918_v27  ;;  %v1882_v24 = vld [vmem:[%s7608_s17 + $0x4d8] sm:$0xff] }
 0x4ba   : > { %4890 = vmatpush1.bf16.msra.mxu0 %v2633_v35  ;;  %v8465_v1 = vpop.f32.mrf.mxu1  ;;  %v4060_v35 = vadd.f32 %v8361_v57, %v4017_v12 }
 0x4bb   : > { %4933 = vmatpush1.bf16.msra.mxu1 %v2697_v31  ;;  %4891 = vmatprep.subr.bf16.mxu0 %v2630_v62  ;;  %v4097_v15 = vadd.f32 %v8345_v8, %v4054_v17  ;;  %v4099_v31 = vadd.f32 %v8351_v36, %v4056_v59  ;;  %v8474_v62 = vpop.f32.mrf.mxu0  ;;  %v2682_v8 = vunpack.c.l.s8.bf16 %v1886_v19  ;;  %v4101_v28 = vadd.f32 %v8357_v9, %v4058_v38  ;;  %v1914_v36 = vld [vmem:[%s7608_s17 + $0x5d8] sm:$0xff]  ;;  %v1881_v17 = vld [vmem:[%s7608_s17 + $0x4d0] sm:$0xff] }
 0x4bc   : > { %4934 = vmatprep.subr.bf16.mxu1 %v2694_v41  ;;  %v2685_v41 = vunpack.c.h.s8.bf16 %v1885_v54  ;;  %v8476_v2 = vpop.f32.mrf.mxu1  ;;  %v2742_v13 = vunpack.c.h.s8.bf16 %v1914_v36  ;;  %v2677_v59 = vunpack.c.h.s8.bf16 %v1881_v17  ;;  %v2673_v38 = vunpack.c.l.s8.bf16 %v1881_v17  ;;  %v1873_v17 = vld [vmem:[%s7608_s17 + $0x490] sm:$0xff] }
 0x4bd   : > { %v4140_v51 = vadd.f32 %v8367_v58, %v4097_v15  ;;  %v4142_v57 = vadd.f32 %v8371_v29, %v4099_v31  ;;  %v4103_v58 = vadd.f32 %v8363_v37, %v4060_v35  ;;  %v2678_v29 = vunpack.c.h.s8.bf16 %v1882_v24  ;;  %v1913_v37 = vld [vmem:[%s7608_s17 + $0x5d0] sm:$0xff] }
 0x4be   : > { %4892 = vmatpush1.bf16.msra.mxu0 %v2629_v55  ;;  %v4144_v55 = vadd.f32 %v8379_v10, %v4101_v28  ;;  %v1877_v31 = vld [vmem:[%s7608_s17 + $0x4b0] sm:$0xff] }
 0x4bf   : > { %4935 = vmatpush1.bf16.msra.mxu1 %v2693_v56  ;;  %4893 = vmatprep.subr.bf16.mxu0 %v2626_v39  ;;  %v4183_v21 = vadd.f32 %v8369_v0, %v4140_v51  ;;  %v8485_v56 = vpop.f32.mrf.mxu0  ;;  %v2745_v39 = vunpack.c.l.s8.bf16 %v1917_v63  ;;  %v4146_v9 = vadd.f32 %v8383_v46, %v4103_v58  ;;  %v4185_v0 = vadd.f32 %v8375_v30, %v4142_v57  ;;  %v1909_v51 = vld [vmem:[%s7608_s17 + $0x5b0] sm:$0xff] }
 0x4c0   : > { %4936 = vmatprep.subr.bf16.mxu1 %v2690_v18  ;;  %v8488_v18 = vpop.f32.mrf.mxu1  ;;  %v4187_v46 = vadd.f32 %v8381_v3, %v4144_v55  ;;  %v2674_v30 = vunpack.c.l.s8.bf16 %v1882_v24  ;;  %v1878_v3 = vld [vmem:[%s7608_s17 + $0x4b8] sm:$0xff]  ;;  %v2669_v28 = vunpack.c.h.s8.bf16 %v1877_v31  ;;  %v2733_v57 = vunpack.c.h.s8.bf16 %v1909_v51 }
 0x4c1   : > { %v4226_v10 = vadd.f32 %v8389_v23, %v4183_v21  ;;  %v8494_v19 = vpop.f32.mrf.mxu0  ;;  %v4228_v60 = vadd.f32 %v8395_v34, %v4185_v0  ;;  %v2738_v23 = vunpack.c.l.s8.bf16 %v1914_v36  ;;  %v1910_v34 = vld [vmem:[%s7608_s17 + $0x5b8] sm:$0xff] }
 0x4c2   : > { %4894 = vmatpush1.bf16.msra.mxu0 %v2625_v49  ;;  %v8496_v27 = vpop.f32.mrf.mxu1  ;;  %v2741_v49 = vunpack.c.h.s8.bf16 %v1913_v37  ;;  %v2734_v35 = vunpack.c.h.s8.bf16 %v1910_v34  ;;  %v1874_v21 = vld [vmem:[%s7608_s17 + $0x498] sm:$0xff] }
 0x4c3   : > { %4937 = vmatpush1.bf16.msra.mxu1 %v2689_v32  ;;  %4895 = vmatprep.subr.bf16.mxu0 %v2686_v11  ;;  %v4189_v32 = vadd.f32 %v8387_v52, %v4146_v9  ;;  %v4269_v12 = vadd.f32 %v8391_v4, %v4226_v10  ;;  %v4230_v11 = vadd.f32 %v8403_v5, %v4187_v46  ;;  %v2737_v4 = vunpack.c.l.s8.bf16 %v1913_v37  ;;  %v1905_v37 = vld [vmem:[%s7608_s17 + $0x590] sm:$0xff] }
 0x4c4   : > { %4938 = vmatprep.subr.bf16.mxu1 %v2750_v42  ;;  %v8503_v42 = vpop.f32.mrf.mxu0  ;;  %v8508_v63 = vpop.f32.mrf.mxu1  ;;  %v4271_v52 = vadd.f32 %v8397_v48, %v4228_v60  ;;  %v2670_v5 = vunpack.c.h.s8.bf16 %v1878_v3  ;;  %v2729_v9 = vunpack.c.l.s8.bf16 %v1909_v51  ;;  %v2661_v60 = vunpack.c.h.s8.bf16 %v1873_v17 }
 0x4c5   : > { %v4232_v54 = vadd.f32 %v8411_v14, %v4189_v32  ;;  %v4312_v15 = vadd.f32 %v8415_v47, %v4269_v12  ;;  %v2658_v32 = vunpack.c.l.s8.bf16 %v1874_v21 }
 0x4c6   : > { %4896 = vmatpush2.bf16.msra.mxu0 %v2685_v41  ;;  %v4273_v41 = vadd.f32 %v8405_v44, %v4230_v11  ;;  %v4314_v14 = vadd.f32 %v8423_v40, %v4271_v52  ;;  %v8517_v48 = vpop.f32.mrf.mxu1  ;;  %v2666_v44 = vunpack.c.l.s8.bf16 %v1878_v3  ;;  %v2730_v40 = vunpack.c.l.s8.bf16 %v1910_v34 }
 0x4c7   : > { %4939 = vmatpush2.bf16.msra.mxu1 %v2749_v50  ;;  %4897 = vmatprep.subr.bf16.mxu0 %v2682_v8  ;;  %v4487_v50 = vpop.f32.mrf.mxu0  ;;  %v4275_v8 = vadd.f32 %v8413_v33, %v4232_v54  ;;  %v4355_v47 = vadd.f32 %v8419_v22, %v4312_v15  ;;  %v1906_v22 = vld [vmem:[%s7608_s17 + $0x598] sm:$0xff]  ;;  %v2657_v3 = vunpack.c.l.s8.bf16 %v1873_v17  ;;  %v2721_v34 = vunpack.c.l.s8.bf16 %v1905_v37  ;;  %v1933_v15 = vld [vmem:[%s7608_s17 + $0x670] sm:$0xff] }
 0x4c8   : > { %4940 = vmatprep.subr.bf16.mxu1 %v2746_v43  ;;  %v4316_v43 = vadd.f32 %v8429_v45, %v4273_v41  ;;  %v4357_v33 = vadd.f32 %v8425_v26, %v4314_v14  ;;  %v4532_v45 = vpop.f32.mrf.mxu1  ;;  %v8933_v17 = vld [vmem:[#allocation11_spill] sm:$0xff] }
 0x4c9   : > { %v4318_v24 = vadd.f32 %v8443_v6, %v4275_v8  ;;  %v4398_v36 = vadd.f32 %v8451_v7, %v4355_v47  ;;  %v4489_v58 = vpop.f32.mrf.mxu0  ;;  %v2665_v6 = vunpack.c.l.s8.bf16 %v1877_v31  ;;  %v2662_v7 = vunpack.c.h.s8.bf16 %v1874_v21 }
 0x4ca   : > { %4898 = vmatpush2.bf16.msra.mxu0 %v2681_v61  ;;  %v4359_v55 = vadd.f32 %v8433_v20, %v4316_v43  ;;  %v4400_v61 = vadd.f32 %v8462_v16, %v4357_v33  ;;  %v4612_v26 = vpop.f32.mrf.mxu1  ;;  %v2781_v31 = vunpack.c.h.s8.bf16 %v1933_v15  ;;  %v1930_v43 = vld [vmem:[%s7608_s17 + $0x658] sm:$0xff] }
 0x4cb   : > { %4941 = vmatpush2.bf16.msra.mxu1 %v2745_v39  ;;  %4899 = vmatprep.subr.bf16.mxu0 %v2678_v29  ;;  %v4569_v39 = vpop.f32.mrf.mxu0  ;;  %v4361_v29 = vadd.f32 %v8447_v25, %v4318_v24  ;;  %v4441_v0 = vadd.f32 %v8454_v53, %v4398_v36  ;;  %v2722_v53 = vunpack.c.l.s8.bf16 %v1906_v22 }
 0x4cc   : > { %4942 = vmatprep.subr.bf16.mxu1 %v2742_v13  ;;  %v2726_v13 = vunpack.c.h.s8.bf16 %v1906_v22  ;;  %v4402_v20 = vadd.f32 %v8474_v62, %v4359_v55  ;;  %v4443_v10 = vadd.f32 %v8465_v1, %v4400_v61  ;;  %v1929_v22 = vld [vmem:[%s7608_s17 + $0x650] sm:$0xff] }
 0x4cd   : > { %v4404_v16 = vadd.f32 %v8485_v56, %v4361_v29  ;;  %v4484_v46 = vadd.f32 %v8494_v19, %v4441_v0  ;;  %v4571_v25 = vpop.f32.mrf.mxu0  ;;  %v1934_v56 = vld [vmem:[%s7608_s17 + $0x678] sm:$0xff]  ;;  %v1680_v0 = vld [vmem:[#allocation2] sm:$0xff] }
 0x4ce   : > { %4900 = vmatpush2.bf16.msra.mxu0 %v2677_v59  ;;  %v2725_v59 = vunpack.c.h.s8.bf16 %v1905_v37  ;;  %v4445_v62 = vadd.f32 %v8476_v2, %v4402_v20  ;;  %v2782_v2 = vunpack.c.h.s8.bf16 %v1934_v56 }
 0x4cf   : > { %4943 = vmatpush2.bf16.msra.mxu1 %v2741_v49  ;;  %4901 = vmatprep.subr.bf16.mxu0 %v2674_v30  ;;  %v4614_v49 = vpop.f32.mrf.mxu1  ;;  %v4486_v30 = vadd.f32 %v8503_v42, %v4443_v10  ;;  %v4447_v1 = vadd.f32 %v8488_v18, %v4404_v16  ;;  %v4527_v19 = vadd.f32 %v8496_v27, %v4484_v46  ;;  %v4573_v11 = vpop.f32.mrf.mxu0  ;;  %v2773_v10 = vunpack.c.h.s8.bf16 %v1929_v22 }
 0x4d0   : > { %4944 = vmatprep.subr.bf16.mxu1 %v2738_v23  ;;  %v1966_v23 = vld [vmem:[%s7608_s17 + $0x778] sm:$0xff]  ;;  %v4488_v12 = vadd.f32 %v4487_v50, %v4445_v62  ;;  %v2778_v50 = vunpack.c.l.s8.bf16 %v1934_v56 }
 0x4d1   : > { %v4490_v54 = vadd.f32 %v4489_v58, %v4447_v1  ;;  %v4616_v52 = vpop.f32.mrf.mxu1  ;;  %v2846_v42 = vunpack.c.h.s8.bf16 %v1966_v23  ;;  %v2842_v8 = vunpack.c.l.s8.bf16 %v1966_v23  ;;  %v2777_v58 = vunpack.c.l.s8.bf16 %v1933_v15  ;;  %v1926_v1 = vld [vmem:[%s7608_s17 + $0x638] sm:$0xff]  ;;  %v1925_v15 = vld [vmem:[%s7608_s17 + $0x630] sm:$0xff] }
 0x4d2   : > { %4902 = vmatpush2.bf16.msra.mxu0 %v2673_v38  ;;  %v1965_v38 = vld [vmem:[%s7608_s17 + $0x770] sm:$0xff]  ;;  %v4531_v18 = vadd.f32 %v8517_v48, %v4488_v12  ;;  %v1684_v12 = vld [vmem:[#allocation2 + $0x20] sm:$0xff] }
 0x4d3   : > { %4945 = vmatpush2.bf16.msra.mxu1 %v2737_v4  ;;  %4903 = vmatprep.subr.bf16.mxu0 %v2670_v5  ;;  %v4529_v4 = vadd.f32 %v8508_v63, %v4486_v30  ;;  %v4570_v5 = vadd.f32 %v4569_v39, %v4527_v19  ;;  %v2845_v51 = vunpack.c.h.s8.bf16 %v1965_v38  ;;  %v4533_v41 = vadd.f32 %v4532_v45, %v4490_v54  ;;  %v4618_v14 = vpop.f32.mrf.mxu1  ;;  %v1679_v45 = vld [vmem:[#allocation2 + $0x30] sm:$0xff]  ;;  %v1958_v19 = vld [vmem:[%s7608_s17 + $0x738] sm:$0xff] }
 0x4d4   : > { %4946 = vmatprep.subr.bf16.mxu1 %v2734_v35  ;;  %v4575_v35 = vpop.f32.mrf.mxu0  ;;  %v4574_v63 = vadd.f32 %v4573_v11, %v4531_v18  ;;  %v2841_v21 = vunpack.c.l.s8.bf16 %v1965_v38  ;;  %v2774_v39 = vunpack.c.h.s8.bf16 %v1930_v43  ;;  %v2769_v54 = vunpack.c.l.s8.bf16 %v1929_v22  ;;  %v1957_v38 = vld [vmem:[%s7608_s17 + $0x730] sm:$0xff] }
 0x4d5   : > { %v4572_v27 = vadd.f32 %v4571_v25, %v4529_v4  ;;  %v4613_v47 = vadd.f32 %v4612_v26, %v4570_v5  ;;  %v2765_v5 = vunpack.c.h.s8.bf16 %v1925_v15  ;;  %v2829_v18 = vunpack.c.h.s8.bf16 %v1957_v38  ;;  %v1981_v22 = vld [vmem:[%s7608_s17 + $0x7f0] sm:$0xff] }
 0x4d6   : > { %4904 = vmatpush2.bf16.msra.mxu0 %v2669_v28  ;;  %v1962_v28 = vld [vmem:[%s7608_s17 + $0x758] sm:$0xff]  ;;  %v4617_v29 = vadd.f32 %v4616_v52, %v4574_v63  ;;  %v1953_v63 = vld [vmem:[%s7608_s17 + $0x710] sm:$0xff] }
 0x4d7   : > { %4947 = vmatpush2.bf16.msra.mxu1 %v2733_v57  ;;  %4905 = vmatprep.subr.bf16.mxu0 %v2666_v44  ;;  %v4576_v57 = vadd.f32 %v4575_v35, %v4533_v41  ;;  %v8930_v44 = vld [vmem:[#allocation8_spill] sm:$0xff]  ;;  %v4615_v33 = vadd.f32 %v4614_v49, %v4572_v27  ;;  %v1683_v49 = vld [vmem:[#allocation2 + $0x8] sm:$0xff]  ;;  %v2834_v62 = vunpack.c.l.s8.bf16 %v1962_v28  ;;  %v2762_v27 = vunpack.c.l.s8.bf16 %v1926_v1 }
 0x4d8   : > { %4948 = vmatprep.subr.bf16.mxu1 %v2730_v40  ;;  %v8931_v40 = vld [vmem:[#allocation9_spill] sm:$0xff]  ;;  %v2826_v35 = vunpack.c.l.s8.bf16 %v1958_v19  ;;  %v2761_v41 = vunpack.c.l.s8.bf16 %v1925_v15 }
 0x4d9   : > { %v4619_v37 = vadd.f32 %v4618_v14, %v4576_v57  ;;  %v2825_v14 = vunpack.c.l.s8.bf16 %v1957_v38 }
 0x4da   : > { %4906 = vmatpush2.bf16.msra.mxu0 %v2665_v6  ;;  %v2838_v6 = vunpack.c.h.s8.bf16 %v1962_v28  ;;  %v2821_v28 = vunpack.c.h.s8.bf16 %v1953_v63 }
 0x4db   : > { %4949 = vmatpush2.bf16.msra.mxu1 %v2729_v9  ;;  %4907 = vmatprep.subr.bf16.mxu0 %v2662_v7  ;;  %v1961_v9 = vld [vmem:[%s7608_s17 + $0x750] sm:$0xff] }
 0x4dc   : > { %4950 = vmatprep.subr.bf16.mxu1 %v2726_v13  ;;  %v8932_v13 = vld [vmem:[#allocation10_spill] sm:$0xff]  ;;  %v2833_v52 = vunpack.c.l.s8.bf16 %v1961_v9 }
 0x4de   : > { %4908 = vmatpush2.bf16.msra.mxu0 %v2661_v60 }
 0x4df   : > { %4951 = vmatpush2.bf16.msra.mxu1 %v2725_v59  ;;  %4909 = vmatprep.subr.bf16.mxu0 %v2658_v32  ;;  %v2837_v59 = vunpack.c.h.s8.bf16 %v1961_v9  ;;  %v1978_v9 = vld [vmem:[%s7608_s17 + $0x7d8] sm:$0xff] }
 0x4e0   : > { %4952 = vmatprep.subr.bf16.mxu1 %v2722_v53  ;;  %v2770_v53 = vunpack.c.l.s8.bf16 %v1930_v43 }
 0x4e2   : > { %4910 = vmatpush2.bf16.msra.mxu0 %v2657_v3 }
 0x4e3   : > { %4953 = vmatpush2.bf16.msra.mxu1 %v2721_v34  ;;  %4965 = vmatprep.subr.bf16.mxu0 %v2782_v2  ;;  %v2766_v2 = vunpack.c.h.s8.bf16 %v1926_v1 }
 0x4e4   : > { %5008 = vmatprep.subr.bf16.mxu1 %v2846_v42  ;;  %v2830_v42 = vunpack.c.h.s8.bf16 %v1958_v19  ;;  %v1938_v19 = vld [vmem:[%s7608_s17 + $0x698] sm:$0xff] }
 0x4e5   : > { %v4655_v48 = vpop.f32.mrf.mxu0  ;;  %4912 = vmatmul.mubr.bf16.vlgmr.msra.gmra.mxu0 %v8930_v44  ;;  %v1982_v44 = vld [vmem:[%s7608_s17 + $0x7f8] sm:$0xff]  ;;  %v2786_v38 = vunpack.c.l.s8.bf16 %v1938_v19 }
 0x4e6   : > { %v4698_v24 = vpop.f32.mrf.mxu1  ;;  %4955 = vmatmul.mubr.bf16.vlgmr.msra.gmra.mxu1 %v8931_v40  ;;  %v4656_v36 = vadd.f32 %v4655_v48, %v4613_v47  ;;  %4966 = vmatpush1.bf16.msra.mxu0 %v2781_v31  ;;  %v1922_v31 = vld [vmem:[%s7608_s17 + $0x618] sm:$0xff]  ;;  %v1921_v47 = vld [vmem:[%s7608_s17 + $0x610] sm:$0xff] }
 0x4e7   : > { %5009 = vmatpush1.bf16.msra.mxu1 %v2845_v51  ;;  %v4657_v55 = vpop.f32.mrf.mxu0  ;;  %4967 = vmatprep.subr.bf16.mxu0 %v2778_v50  ;;  %v1954_v51 = vld [vmem:[%s7608_s17 + $0x718] sm:$0xff]  ;;  %v2758_v50 = vunpack.c.h.s8.bf16 %v1922_v31  ;;  %v2757_v43 = vunpack.c.h.s8.bf16 %v1921_v47  ;;  %v2754_v57 = vunpack.c.l.s8.bf16 %v1922_v31  ;;  %v2753_v40 = vunpack.c.l.s8.bf16 %v1921_v47 }
 0x4e8   : > { %v4700_v61 = vpop.f32.mrf.mxu1  ;;  %5010 = vmatprep.subr.bf16.mxu1 %v2842_v8  ;;  %v4699_v26 = vadd.f32 %v4698_v24, %v4656_v36  ;;  %v4658_v7 = vadd.f32 %v4657_v55, %v4615_v33  ;;  %4997 = vmatprep.mubr.bf16.mxu0 %v8932_v13  ;;  %v2822_v8 = vunpack.c.h.s8.bf16 %v1954_v51  ;;  %v2818_v48 = vunpack.c.l.s8.bf16 %v1954_v51  ;;  %v1950_v24 = vld [vmem:[%s7608_s17 + $0x6f8] sm:$0xff] }
 0x4e9   : > { %5040 = vmatprep.mubr.bf16.mxu1 %v8933_v17  ;;  %v4659_v20 = vpop.f32.mrf.mxu0  ;;  %v2817_v33 = vunpack.c.l.s8.bf16 %v1953_v63  ;;  %v2814_v36 = vunpack.c.h.s8.bf16 %v1950_v24  ;;  %v2877_v55 = vunpack.c.h.s8.bf16 %v1981_v22  ;;  %v2870_v13 = vunpack.c.h.s8.bf16 %v1978_v9  ;;  %v1945_v17 = vld [vmem:[%s7608_s17 + $0x6d0] sm:$0xff] }
 0x4ea   : > { %v4702_v16 = vpop.f32.mrf.mxu1  ;;  %v5567_v46 = vadd.f32 %v4699_v26, %v1679_v45  ;;  %v4701_v25 = vadd.f32 %v4700_v61, %v4658_v7  ;;  %v4660_v60 = vadd.f32 %v4659_v20, %v4617_v29  ;;  %4968 = vmatpush1.bf16.msra.mxu0 %v2777_v58  ;;  %v2878_v58 = vunpack.c.h.s8.bf16 %v1982_v44 }
 0x4eb   : > { %5011 = vmatpush1.bf16.msra.mxu1 %v2841_v21  ;;  %v4661_v32 = vpop.f32.mrf.mxu0  ;;  %4969 = vmatprep.subr.bf16.mxu0 %v2774_v39  ;;  %v1949_v21 = vld [vmem:[%s7608_s17 + $0x6f0] sm:$0xff]  ;;  %v2810_v61 = vunpack.c.l.s8.bf16 %v1950_v24  ;;  %v2874_v39 = vunpack.c.l.s8.bf16 %v1982_v44  ;;  %v2873_v26 = vunpack.c.l.s8.bf16 %v1981_v22  ;;  %v8937_v22 = vld [vmem:[#allocation15_spill] sm:$0xff] }
 0x4ec   : > { %5012 = vmatprep.subr.bf16.mxu1 %v2838_v6  ;;  %5575 = vst [vmem:[#allocation2 + $0x30] sm:$0xff] %v5567_v46  ;;  %v5568_v30 = vadd.f32 %v4701_v25, %v1680_v0  ;;  %v4703_v56 = vadd.f32 %v4702_v16, %v4660_v60  ;;  %v4662_v23 = vadd.f32 %v4661_v32, %v4619_v37  ;;  %v4704_v11 = vpop.f32.mrf.mxu1  ;;  %v2813_v45 = vunpack.c.h.s8.bf16 %v1949_v21  ;;  %v1946_v6 = vld [vmem:[%s7608_s17 + $0x6d8] sm:$0xff]  ;;  %v1977_v37 = vld [vmem:[%s7608_s17 + $0x7d0] sm:$0xff] }
 0x4ed   : > { %v2809_v29 = vunpack.c.l.s8.bf16 %v1949_v21  ;;  %v2806_v7 = vunpack.c.h.s8.bf16 %v1946_v6  ;;  %v2805_v0 = vunpack.c.h.s8.bf16 %v1945_v17  ;;  %v2869_v20 = vunpack.c.h.s8.bf16 %v1977_v37  ;;  %v1942_v46 = vld [vmem:[%s7608_s17 + $0x6b8] sm:$0xff]  ;;  %v8936_v21 = vld [vmem:[#allocation14_spill] sm:$0xff] }
 0x4ee   : > { %5576 = vst [vmem:[#allocation2] sm:$0xff] %v5568_v30  ;;  %v5571_v3 = vadd.f32 %v4703_v56, %v1683_v49  ;;  %v4705_v34 = vadd.f32 %v4704_v11, %v4662_v23  ;;  %4970 = vmatpush1.bf16.msra.mxu0 %v2773_v10  ;;  %v2802_v16 = vunpack.c.l.s8.bf16 %v1946_v6  ;;  %v2866_v10 = vunpack.c.l.s8.bf16 %v1978_v9  ;;  %v1974_v25 = vld [vmem:[%s7608_s17 + $0x7b8] sm:$0xff] }
 0x4ef   : > { %5013 = vmatpush1.bf16.msra.mxu1 %v2837_v59  ;;  %4971 = vmatprep.subr.bf16.mxu0 %v2770_v53  ;;  %v2801_v60 = vunpack.c.l.s8.bf16 %v1945_v17  ;;  %v2865_v59 = vunpack.c.l.s8.bf16 %v1977_v37  ;;  %v2798_v49 = vunpack.c.h.s8.bf16 %v1942_v46  ;;  %v2862_v32 = vunpack.c.h.s8.bf16 %v1974_v25  ;;  %v1941_v53 = vld [vmem:[%s7608_s17 + $0x6b0] sm:$0xff]  ;;  %v1990_v6 = vld [vmem:[%s7608_s17 + $0x838] sm:$0xff] }
 0x4f0   : > { %5014 = vmatprep.subr.bf16.mxu1 %v2834_v62  ;;  %5579 = vst [vmem:[#allocation2 + $0x8] sm:$0xff] %v5571_v3  ;;  %v5572_v4 = vadd.f32 %v4705_v34, %v1684_v12  ;;  %v1973_v62 = vld [vmem:[%s7608_s17 + $0x7b0] sm:$0xff]  ;;  %v2797_v30 = vunpack.c.h.s8.bf16 %v1941_v53  ;;  %v2794_v23 = vunpack.c.l.s8.bf16 %v1942_v46  ;;  %v2858_v1 = vunpack.c.l.s8.bf16 %v1974_v25  ;;  %v1970_v12 = vld [vmem:[%s7608_s17 + $0x798] sm:$0xff] }
 0x4f1   : > { %v2861_v56 = vunpack.c.h.s8.bf16 %v1973_v62  ;;  %v2793_v11 = vunpack.c.l.s8.bf16 %v1941_v53  ;;  %v2857_v3 = vunpack.c.l.s8.bf16 %v1973_v62  ;;  %v2790_v34 = vunpack.c.h.s8.bf16 %v1938_v19  ;;  %v2022_v9 = vld [vmem:[%s7608_s17 + $0x938] sm:$0xff]  ;;  %v1989_v17 = vld [vmem:[%s7608_s17 + $0x830] sm:$0xff] }
 0x4f2   : > { %5580 = vst [vmem:[#allocation2 + $0x20] sm:$0xff] %v5572_v4  ;;  %4972 = vmatpush1.bf16.msra.mxu0 %v2769_v54  ;;  %v2854_v54 = vunpack.c.h.s8.bf16 %v1970_v12  ;;  %v2850_v4 = vunpack.c.l.s8.bf16 %v1970_v12  ;;  %v2021_v37 = vld [vmem:[%s7608_s17 + $0x930] sm:$0xff]  ;;  %v1986_v46 = vld [vmem:[%s7608_s17 + $0x818] sm:$0xff] }
 0x4f3   : > { %5015 = vmatpush1.bf16.msra.mxu1 %v2833_v52  ;;  %4973 = vmatprep.subr.bf16.mxu0 %v2766_v2  ;;  %v1937_v52 = vld [vmem:[%s7608_s17 + $0x690] sm:$0xff]  ;;  %v2018_v25 = vld [vmem:[%s7608_s17 + $0x918] sm:$0xff] }
 0x4f4   : > { %5016 = vmatprep.subr.bf16.mxu1 %v2830_v42  ;;  %v1969_v2 = vld [vmem:[%s7608_s17 + $0x790] sm:$0xff]  ;;  %v2789_v42 = vunpack.c.h.s8.bf16 %v1937_v52  ;;  %v2014_v19 = vld [vmem:[%s7608_s17 + $0x8f8] sm:$0xff] }
 0x4f5   : > { %v2853_v15 = vunpack.c.h.s8.bf16 %v1969_v2  ;;  %v1985_v53 = vld [vmem:[%s7608_s17 + $0x810] sm:$0xff]  ;;  %v2046_v12 = vld [vmem:[%s7608_s17 + $0x9f8] sm:$0xff] }
 0x4f6   : > { %4974 = vmatpush1.bf16.msra.mxu0 %v2765_v5  ;;  %v1998_v5 = vld [vmem:[%s7608_s17 + $0x878] sm:$0xff]  ;;  %v2017_v62 = vld [vmem:[%s7608_s17 + $0x910] sm:$0xff] }
 0x4f7   : > { %5017 = vmatpush1.bf16.msra.mxu1 %v2829_v18  ;;  %4975 = vmatprep.subr.bf16.mxu0 %v2762_v27  ;;  %v2030_v18 = vld [vmem:[%s7608_s17 + $0x978] sm:$0xff]  ;;  %v2785_v27 = vunpack.c.l.s8.bf16 %v1937_v52  ;;  %v2910_v31 = vunpack.c.h.s8.bf16 %v1998_v5  ;;  %v2906_v47 = vunpack.c.l.s8.bf16 %v1998_v5  ;;  %v2013_v52 = vld [vmem:[%s7608_s17 + $0x8f0] sm:$0xff] }
 0x4f8   : > { %5018 = vmatprep.subr.bf16.mxu1 %v2826_v35  ;;  %v2849_v35 = vunpack.c.l.s8.bf16 %v1969_v2  ;;  %v2974_v51 = vunpack.c.h.s8.bf16 %v2030_v18  ;;  %v2970_v63 = vunpack.c.l.s8.bf16 %v2030_v18  ;;  %v2045_v2 = vld [vmem:[%s7608_s17 + $0x9f0] sm:$0xff]  ;;  %v2010_v5 = vld [vmem:[%s7608_s17 + $0x8d8] sm:$0xff] }
 0x4f9   : > { %v2042_v18 = vld [vmem:[%s7608_s17 + $0x9d8] sm:$0xff] }
 0x4fa   : > { %4976 = vmatpush1.bf16.msra.mxu0 %v2761_v41  ;;  %v1997_v41 = vld [vmem:[%s7608_s17 + $0x870] sm:$0xff] }
 0x4fb   : > { %5019 = vmatpush1.bf16.msra.mxu1 %v2825_v14  ;;  %4977 = vmatprep.subr.bf16.mxu0 %v2758_v50  ;;  %v2029_v14 = vld [vmem:[%s7608_s17 + $0x970] sm:$0xff]  ;;  %v2909_v50 = vunpack.c.h.s8.bf16 %v1997_v41  ;;  %v2905_v24 = vunpack.c.l.s8.bf16 %v1997_v41 }
 0x4fc   : > { %5020 = vmatprep.subr.bf16.mxu1 %v2822_v8  ;;  %v2973_v8 = vunpack.c.h.s8.bf16 %v2029_v14  ;;  %v2969_v44 = vunpack.c.l.s8.bf16 %v2029_v14  ;;  %v2009_v41 = vld [vmem:[%s7608_s17 + $0x8d0] sm:$0xff] }
 0x4fd   : > { %v2041_v14 = vld [vmem:[%s7608_s17 + $0x9d0] sm:$0xff] }
 0x4fe   : > { %4978 = vmatpush1.bf16.msra.mxu0 %v2757_v43  ;;  %v1994_v43 = vld [vmem:[%s7608_s17 + $0x858] sm:$0xff] }
 0x4ff   : > { %5021 = vmatpush1.bf16.msra.mxu1 %v2821_v28  ;;  %4979 = vmatprep.subr.bf16.mxu0 %v2754_v57  ;;  %v2026_v28 = vld [vmem:[%s7608_s17 + $0x958] sm:$0xff]  ;;  %v8934_v57 = vld [vmem:[#allocation12_spill] sm:$0xff] }
 0x500   : > { %5022 = vmatprep.subr.bf16.mxu1 %v2818_v48  ;;  %v8935_v48 = vld [vmem:[#allocation13_spill] sm:$0xff] }
 0x502   : > { %4980 = vmatpush1.bf16.msra.mxu0 %v2753_v40  ;;  %v2902_v40 = vunpack.c.h.s8.bf16 %v1994_v43 }
 0x503   : > { %5023 = vmatpush1.bf16.msra.mxu1 %v2817_v33  ;;  %4981 = vmatprep.subr.bf16.mxu0 %v2814_v36  ;;  %v2966_v33 = vunpack.c.h.s8.bf16 %v2026_v28  ;;  %v1993_v36 = vld [vmem:[%s7608_s17 + $0x850] sm:$0xff] }
 0x504   : > { %5024 = vmatprep.subr.bf16.mxu1 %v2878_v58  ;;  %v2025_v58 = vld [vmem:[%s7608_s17 + $0x950] sm:$0xff] }
 0x506   : > { %4982 = vmatpush2.bf16.msra.mxu0 %v2813_v45  ;;  %v2901_v45 = vunpack.c.h.s8.bf16 %v1993_v36 }
 0x507   : > { %5025 = vmatpush2.bf16.msra.mxu1 %v2877_v55  ;;  %4983 = vmatprep.subr.bf16.mxu0 %v2810_v61  ;;  %v2965_v55 = vunpack.c.h.s8.bf16 %v2025_v58  ;;  %v2898_v61 = vunpack.c.l.s8.bf16 %v1994_v43  ;;  %v2006_v43 = vld [vmem:[%s7608_s17 + $0x8b8] sm:$0xff] }
 0x508   : > { %5026 = vmatprep.subr.bf16.mxu1 %v2874_v39  ;;  %v2962_v39 = vunpack.c.l.s8.bf16 %v2026_v28  ;;  %v2038_v28 = vld [vmem:[%s7608_s17 + $0x9b8] sm:$0xff] }
 0x50a   : > { %4984 = vmatpush2.bf16.msra.mxu0 %v2809_v29  ;;  %v2897_v29 = vunpack.c.l.s8.bf16 %v1993_v36 }
 0x50b   : > { %5027 = vmatpush2.bf16.msra.mxu1 %v2873_v26  ;;  %4985 = vmatprep.subr.bf16.mxu0 %v2806_v7  ;;  %v2961_v26 = vunpack.c.l.s8.bf16 %v2025_v58  ;;  %v2894_v7 = vunpack.c.h.s8.bf16 %v1990_v6 }
 0x50c   : > { %5028 = vmatprep.subr.bf16.mxu1 %v2870_v13  ;;  %v2958_v13 = vunpack.c.h.s8.bf16 %v2022_v9 }
 0x50e   : > { %4986 = vmatpush2.bf16.msra.mxu0 %v2805_v0  ;;  %v2893_v0 = vunpack.c.h.s8.bf16 %v1989_v17 }
 0x50f   : > { %5029 = vmatpush2.bf16.msra.mxu1 %v2869_v20  ;;  %4987 = vmatprep.subr.bf16.mxu0 %v2802_v16  ;;  %v2957_v20 = vunpack.c.h.s8.bf16 %v2021_v37  ;;  %v2890_v16 = vunpack.c.l.s8.bf16 %v1990_v6 }
 0x510   : > { %5030 = vmatprep.subr.bf16.mxu1 %v2866_v10  ;;  %v2954_v10 = vunpack.c.l.s8.bf16 %v2022_v9 }
 0x512   : > { %4988 = vmatpush2.bf16.msra.mxu0 %v2801_v60  ;;  %v2889_v60 = vunpack.c.l.s8.bf16 %v1989_v17 }
 0x513   : > { %5031 = vmatpush2.bf16.msra.mxu1 %v2865_v59  ;;  %4989 = vmatprep.subr.bf16.mxu0 %v2798_v49  ;;  %v2953_v59 = vunpack.c.l.s8.bf16 %v2021_v37  ;;  %v2886_v49 = vunpack.c.h.s8.bf16 %v1986_v46 }
 0x514   : > { %5032 = vmatprep.subr.bf16.mxu1 %v2862_v32  ;;  %v2950_v32 = vunpack.c.h.s8.bf16 %v2018_v25 }
 0x516   : > { %4990 = vmatpush2.bf16.msra.mxu0 %v2797_v30  ;;  %v2885_v30 = vunpack.c.h.s8.bf16 %v1985_v53 }
 0x517   : > { %5033 = vmatpush2.bf16.msra.mxu1 %v2861_v56  ;;  %4991 = vmatprep.subr.bf16.mxu0 %v2794_v23  ;;  %v2949_v56 = vunpack.c.h.s8.bf16 %v2017_v62  ;;  %v2882_v23 = vunpack.c.l.s8.bf16 %v1986_v46 }
 0x518   : > { %5034 = vmatprep.subr.bf16.mxu1 %v2858_v1  ;;  %v2946_v1 = vunpack.c.l.s8.bf16 %v2018_v25 }
 0x51a   : > { %4992 = vmatpush2.bf16.msra.mxu0 %v2793_v11  ;;  %v2881_v11 = vunpack.c.l.s8.bf16 %v1985_v53 }
 0x51b   : > { %5035 = vmatpush2.bf16.msra.mxu1 %v2857_v3  ;;  %4993 = vmatprep.subr.bf16.mxu0 %v2790_v34  ;;  %v2945_v3 = vunpack.c.l.s8.bf16 %v2017_v62  ;;  %v2942_v34 = vunpack.c.h.s8.bf16 %v2014_v19 }
 0x51c   : > { %5036 = vmatprep.subr.bf16.mxu1 %v2854_v54  ;;  %v3006_v54 = vunpack.c.h.s8.bf16 %v2046_v12 }
 0x51e   : > { %4994 = vmatpush2.bf16.msra.mxu0 %v2789_v42  ;;  %v2941_v42 = vunpack.c.h.s8.bf16 %v2013_v52 }
 0x51f   : > { %5037 = vmatpush2.bf16.msra.mxu1 %v2853_v15  ;;  %4995 = vmatprep.subr.bf16.mxu0 %v2786_v38  ;;  %v3005_v15 = vunpack.c.h.s8.bf16 %v2045_v2  ;;  %v2938_v38 = vunpack.c.l.s8.bf16 %v2014_v19 }
 0x520   : > { %5038 = vmatprep.subr.bf16.mxu1 %v2850_v4  ;;  %v3002_v4 = vunpack.c.l.s8.bf16 %v2046_v12 }
 0x522   : > { %4996 = vmatpush2.bf16.msra.mxu0 %v2785_v27  ;;  %v2937_v27 = vunpack.c.l.s8.bf16 %v2013_v52  ;;  %v8940_v52 = vld [vmem:[#allocation18_spill] sm:$0xff] }
 0x523   : > { %5039 = vmatpush2.bf16.msra.mxu1 %v2849_v35  ;;  %5051 = vmatprep.subr.bf16.mxu0 %v2910_v31  ;;  %v3001_v35 = vunpack.c.l.s8.bf16 %v2045_v2  ;;  %v2934_v31 = vunpack.c.h.s8.bf16 %v2010_v5  ;;  %v8941_v2 = vld [vmem:[#allocation19_spill] sm:$0xff] }
 0x524   : > { %5094 = vmatprep.subr.bf16.mxu1 %v2974_v51  ;;  %v2998_v51 = vunpack.c.h.s8.bf16 %v2042_v18 }
 0x525   : > { %4998 = vmatmul.mubr.bf16.vlgmr.msra.gmra.mxu0 %v8934_v57  ;;  %v2929_v57 = vunpack.c.l.s8.bf16 %v2009_v41 }
 0x526   : > { %5041 = vmatmul.mubr.bf16.vlgmr.msra.gmra.mxu1 %v8935_v48  ;;  %5052 = vmatpush1.bf16.msra.mxu0 %v2909_v50  ;;  %v2933_v50 = vunpack.c.h.s8.bf16 %v2009_v41  ;;  %v2993_v48 = vunpack.c.l.s8.bf16 %v2041_v14  ;;  %v2053_v41 = vld [vmem:[%s7608_s17 + $0xa30] sm:$0xff] }
 0x527   : > { %5095 = vmatpush1.bf16.msra.mxu1 %v2973_v8  ;;  %5053 = vmatprep.subr.bf16.mxu0 %v2906_v47  ;;  %v2997_v8 = vunpack.c.h.s8.bf16 %v2041_v14  ;;  %v2930_v47 = vunpack.c.l.s8.bf16 %v2010_v5  ;;  %v2054_v5 = vld [vmem:[%s7608_s17 + $0xa38] sm:$0xff]  ;;  %v2085_v14 = vld [vmem:[%s7608_s17 + $0xb30] sm:$0xff] }
 0x528   : > { %5096 = vmatprep.subr.bf16.mxu1 %v2970_v63  ;;  %5083 = vmatprep.mubr.bf16.mxu0 %v8936_v21  ;;  %v2994_v63 = vunpack.c.l.s8.bf16 %v2042_v18  ;;  %v2922_v21 = vunpack.c.l.s8.bf16 %v2006_v43  ;;  %v2086_v18 = vld [vmem:[%s7608_s17 + $0xb38] sm:$0xff] }
 0x529   : > { %5126 = vmatprep.mubr.bf16.mxu1 %v8937_v22  ;;  %v2986_v22 = vunpack.c.l.s8.bf16 %v2038_v28 }
 0x52a   : > { %5054 = vmatpush1.bf16.msra.mxu0 %v2905_v24  ;;  %v2926_v24 = vunpack.c.h.s8.bf16 %v2006_v43  ;;  %v2050_v43 = vld [vmem:[%s7608_s17 + $0xa18] sm:$0xff] }
 0x52b   : > { %5097 = vmatpush1.bf16.msra.mxu1 %v2969_v44  ;;  %5055 = vmatprep.subr.bf16.mxu0 %v2902_v40  ;;  %v2990_v44 = vunpack.c.h.s8.bf16 %v2038_v28  ;;  %v2005_v40 = vld [vmem:[%s7608_s17 + $0x8b0] sm:$0xff]  ;;  %v2082_v28 = vld [vmem:[%s7608_s17 + $0xb18] sm:$0xff] }
 0x52c   : > { %5098 = vmatprep.subr.bf16.mxu1 %v2966_v33  ;;  %v2037_v33 = vld [vmem:[%s7608_s17 + $0x9b0] sm:$0xff]  ;;  %v2925_v36 = vunpack.c.h.s8.bf16 %v2005_v40 }
 0x52d   : > { %v2989_v58 = vunpack.c.h.s8.bf16 %v2037_v33 }
 0x52e   : > { %5056 = vmatpush1.bf16.msra.mxu0 %v2901_v45  ;;  %v2002_v45 = vld [vmem:[%s7608_s17 + $0x898] sm:$0xff] }
 0x52f   : > { %5099 = vmatpush1.bf16.msra.mxu1 %v2965_v55  ;;  %5057 = vmatprep.subr.bf16.mxu0 %v2898_v61  ;;  %v2034_v55 = vld [vmem:[%s7608_s17 + $0x998] sm:$0xff]  ;;  %v2921_v61 = vunpack.c.l.s8.bf16 %v2005_v40  ;;  %v2918_v6 = vunpack.c.h.s8.bf16 %v2002_v45  ;;  %v2914_v17 = vunpack.c.l.s8.bf16 %v2002_v45  ;;  %v2049_v40 = vld [vmem:[%s7608_s17 + $0xa10] sm:$0xff] }
 0x530   : > { %5100 = vmatprep.subr.bf16.mxu1 %v2962_v39  ;;  %v2985_v39 = vunpack.c.l.s8.bf16 %v2037_v33  ;;  %v2982_v9 = vunpack.c.h.s8.bf16 %v2034_v55  ;;  %v2978_v37 = vunpack.c.l.s8.bf16 %v2034_v55  ;;  %v2081_v33 = vld [vmem:[%s7608_s17 + $0xb10] sm:$0xff]  ;;  %v2078_v45 = vld [vmem:[%s7608_s17 + $0xaf8] sm:$0xff] }
 0x531   : > { %v2110_v55 = vld [vmem:[%s7608_s17 + $0xbf8] sm:$0xff] }
 0x532   : > { %5058 = vmatpush1.bf16.msra.mxu0 %v2897_v29  ;;  %v2001_v29 = vld [vmem:[%s7608_s17 + $0x890] sm:$0xff] }
 0x533   : > { %5101 = vmatpush1.bf16.msra.mxu1 %v2961_v26  ;;  %5059 = vmatprep.subr.bf16.mxu0 %v2894_v7  ;;  %v2033_v26 = vld [vmem:[%s7608_s17 + $0x990] sm:$0xff]  ;;  %v2917_v7 = vunpack.c.h.s8.bf16 %v2001_v29 }
 0x534   : > { %5102 = vmatprep.subr.bf16.mxu1 %v2958_v13  ;;  %v2981_v13 = vunpack.c.h.s8.bf16 %v2033_v26 }
 0x536   : > { %5060 = vmatpush1.bf16.msra.mxu0 %v2893_v0  ;;  %v2062_v0 = vld [vmem:[%s7608_s17 + $0xa78] sm:$0xff] }
 0x537   : > { %5103 = vmatpush1.bf16.msra.mxu1 %v2957_v20  ;;  %5061 = vmatprep.subr.bf16.mxu0 %v2890_v16  ;;  %v2094_v20 = vld [vmem:[%s7608_s17 + $0xb78] sm:$0xff]  ;;  %v2913_v16 = vunpack.c.l.s8.bf16 %v2001_v29  ;;  %v3038_v46 = vunpack.c.h.s8.bf16 %v2062_v0  ;;  %v3034_v53 = vunpack.c.l.s8.bf16 %v2062_v0  ;;  %v2077_v29 = vld [vmem:[%s7608_s17 + $0xaf0] sm:$0xff] }
 0x538   : > { %5104 = vmatprep.subr.bf16.mxu1 %v2954_v10  ;;  %v2977_v10 = vunpack.c.l.s8.bf16 %v2033_v26  ;;  %v3102_v25 = vunpack.c.h.s8.bf16 %v2094_v20  ;;  %v3098_v62 = vunpack.c.l.s8.bf16 %v2094_v20  ;;  %v2109_v26 = vld [vmem:[%s7608_s17 + $0xbf0] sm:$0xff]  ;;  %v2074_v0 = vld [vmem:[%s7608_s17 + $0xad8] sm:$0xff] }
 0x539   : > { %v2106_v20 = vld [vmem:[%s7608_s17 + $0xbd8] sm:$0xff] }
 0x53a   : > { %5062 = vmatpush1.bf16.msra.mxu0 %v2889_v60  ;;  %v2061_v60 = vld [vmem:[%s7608_s17 + $0xa70] sm:$0xff] }
 0x53b   : > { %5105 = vmatpush1.bf16.msra.mxu1 %v2953_v59  ;;  %5063 = vmatprep.subr.bf16.mxu0 %v2886_v49  ;;  %v2093_v59 = vld [vmem:[%s7608_s17 + $0xb70] sm:$0xff]  ;;  %v3037_v49 = vunpack.c.h.s8.bf16 %v2061_v60  ;;  %v3033_v19 = vunpack.c.l.s8.bf16 %v2061_v60 }
 0x53c   : > { %5106 = vmatprep.subr.bf16.mxu1 %v2950_v32  ;;  %v3101_v32 = vunpack.c.h.s8.bf16 %v2093_v59  ;;  %v3097_v12 = vunpack.c.l.s8.bf16 %v2093_v59  ;;  %v2073_v60 = vld [vmem:[%s7608_s17 + $0xad0] sm:$0xff] }
 0x53d   : > { %v2105_v59 = vld [vmem:[%s7608_s17 + $0xbd0] sm:$0xff] }
 0x53e   : > { %5064 = vmatpush1.bf16.msra.mxu0 %v2885_v30  ;;  %v2058_v30 = vld [vmem:[%s7608_s17 + $0xa58] sm:$0xff] }
 0x53f   : > { %5107 = vmatpush1.bf16.msra.mxu1 %v2949_v56  ;;  %5065 = vmatprep.subr.bf16.mxu0 %v2882_v23  ;;  %v2090_v56 = vld [vmem:[%s7608_s17 + $0xb58] sm:$0xff]  ;;  %v8938_v23 = vld [vmem:[#allocation16_spill] sm:$0xff] }
 0x540   : > { %5108 = vmatprep.subr.bf16.mxu1 %v2946_v1  ;;  %v8939_v1 = vld [vmem:[#allocation17_spill] sm:$0xff] }
 0x542   : > { %5066 = vmatpush1.bf16.msra.mxu0 %v2881_v11  ;;  %v3030_v11 = vunpack.c.h.s8.bf16 %v2058_v30 }
 0x543   : > { %5109 = vmatpush1.bf16.msra.mxu1 %v2945_v3  ;;  %5067 = vmatprep.subr.bf16.mxu0 %v2942_v34  ;;  %v3094_v3 = vunpack.c.h.s8.bf16 %v2090_v56  ;;  %v2057_v34 = vld [vmem:[%s7608_s17 + $0xa50] sm:$0xff] }
 0x544   : > { %5110 = vmatprep.subr.bf16.mxu1 %v3006_v54  ;;  %v2089_v54 = vld [vmem:[%s7608_s17 + $0xb50] sm:$0xff] }
 0x546   : > { %5068 = vmatpush2.bf16.msra.mxu0 %v2941_v42  ;;  %v3029_v42 = vunpack.c.h.s8.bf16 %v2057_v34 }
 0x547   : > { %5111 = vmatpush2.bf16.msra.mxu1 %v3005_v15  ;;  %5069 = vmatprep.subr.bf16.mxu0 %v2938_v38  ;;  %v3093_v15 = vunpack.c.h.s8.bf16 %v2089_v54  ;;  %v3026_v38 = vunpack.c.l.s8.bf16 %v2058_v30  ;;  %v2070_v30 = vld [vmem:[%s7608_s17 + $0xab8] sm:$0xff] }
 0x548   : > { %5112 = vmatprep.subr.bf16.mxu1 %v3002_v4  ;;  %v3090_v4 = vunpack.c.l.s8.bf16 %v2090_v56  ;;  %v2102_v56 = vld [vmem:[%s7608_s17 + $0xbb8] sm:$0xff] }
 0x54a   : > { %5070 = vmatpush2.bf16.msra.mxu0 %v2937_v27  ;;  %v3025_v27 = vunpack.c.l.s8.bf16 %v2057_v34 }
 0x54b   : > { %5113 = vmatpush2.bf16.msra.mxu1 %v3001_v35  ;;  %5071 = vmatprep.subr.bf16.mxu0 %v2934_v31  ;;  %v3089_v35 = vunpack.c.l.s8.bf16 %v2089_v54  ;;  %v3022_v31 = vunpack.c.h.s8.bf16 %v2054_v5 }
 0x54c   : > { %5114 = vmatprep.subr.bf16.mxu1 %v2998_v51  ;;  %v3086_v51 = vunpack.c.h.s8.bf16 %v2086_v18 }
 0x54e   : > { %5072 = vmatpush2.bf16.msra.mxu0 %v2933_v50  ;;  %v3021_v50 = vunpack.c.h.s8.bf16 %v2053_v41 }
 0x54f   : > { %5115 = vmatpush2.bf16.msra.mxu1 %v2997_v8  ;;  %5073 = vmatprep.subr.bf16.mxu0 %v2930_v47  ;;  %v3085_v8 = vunpack.c.h.s8.bf16 %v2085_v14  ;;  %v3018_v47 = vunpack.c.l.s8.bf16 %v2054_v5 }
 0x550   : > { %5116 = vmatprep.subr.bf16.mxu1 %v2994_v63  ;;  %v3082_v63 = vunpack.c.l.s8.bf16 %v2086_v18 }
 0x552   : > { %5074 = vmatpush2.bf16.msra.mxu0 %v2929_v57  ;;  %v3017_v57 = vunpack.c.l.s8.bf16 %v2053_v41 }
 0x553   : > { %5117 = vmatpush2.bf16.msra.mxu1 %v2993_v48  ;;  %5075 = vmatprep.subr.bf16.mxu0 %v2926_v24  ;;  %v3081_v48 = vunpack.c.l.s8.bf16 %v2085_v14  ;;  %v3014_v24 = vunpack.c.h.s8.bf16 %v2050_v43 }
 0x554   : > { %5118 = vmatprep.subr.bf16.mxu1 %v2990_v44  ;;  %v3078_v44 = vunpack.c.h.s8.bf16 %v2082_v28 }
 0x556   : > { %5076 = vmatpush2.bf16.msra.mxu0 %v2925_v36  ;;  %v3013_v36 = vunpack.c.h.s8.bf16 %v2049_v40 }
 0x557   : > { %5119 = vmatpush2.bf16.msra.mxu1 %v2989_v58  ;;  %5077 = vmatprep.subr.bf16.mxu0 %v2922_v21  ;;  %v3077_v58 = vunpack.c.h.s8.bf16 %v2081_v33  ;;  %v3010_v21 = vunpack.c.l.s8.bf16 %v2050_v43 }
 0x558   : > { %5120 = vmatprep.subr.bf16.mxu1 %v2986_v22  ;;  %v3074_v22 = vunpack.c.l.s8.bf16 %v2082_v28 }
 0x55a   : > { %5078 = vmatpush2.bf16.msra.mxu0 %v2921_v61  ;;  %v3009_v61 = vunpack.c.l.s8.bf16 %v2049_v40 }
 0x55b   : > { %5121 = vmatpush2.bf16.msra.mxu1 %v2985_v39  ;;  %5079 = vmatprep.subr.bf16.mxu0 %v2918_v6  ;;  %v3073_v39 = vunpack.c.l.s8.bf16 %v2081_v33  ;;  %v3070_v6 = vunpack.c.h.s8.bf16 %v2078_v45 }
 0x55c   : > { %5122 = vmatprep.subr.bf16.mxu1 %v2982_v9  ;;  %v3134_v9 = vunpack.c.h.s8.bf16 %v2110_v55 }
 0x55e   : > { %5080 = vmatpush2.bf16.msra.mxu0 %v2917_v7  ;;  %v3069_v7 = vunpack.c.h.s8.bf16 %v2077_v29 }
 0x55f   : > { %5123 = vmatpush2.bf16.msra.mxu1 %v2981_v13  ;;  %5081 = vmatprep.subr.bf16.mxu0 %v2914_v17  ;;  %v3133_v13 = vunpack.c.h.s8.bf16 %v2109_v26  ;;  %v3066_v17 = vunpack.c.l.s8.bf16 %v2078_v45 }
 0x560   : > { %5124 = vmatprep.subr.bf16.mxu1 %v2978_v37  ;;  %v3130_v37 = vunpack.c.l.s8.bf16 %v2110_v55 }
 0x562   : > { %5082 = vmatpush2.bf16.msra.mxu0 %v2913_v16  ;;  %v3065_v16 = vunpack.c.l.s8.bf16 %v2077_v29  ;;  %v8944_v29 = vld [vmem:[#allocation22_spill] sm:$0xff] }
 0x563   : > { %5125 = vmatpush2.bf16.msra.mxu1 %v2977_v10  ;;  %5137 = vmatprep.subr.bf16.mxu0 %v3038_v46  ;;  %v3129_v10 = vunpack.c.l.s8.bf16 %v2109_v26  ;;  %v3062_v46 = vunpack.c.h.s8.bf16 %v2074_v0  ;;  %v8945_v26 = vld [vmem:[#allocation23_spill] sm:$0xff] }
 0x564   : > { %5180 = vmatprep.subr.bf16.mxu1 %v3102_v25  ;;  %v3126_v25 = vunpack.c.h.s8.bf16 %v2106_v20 }
 0x565   : > { %5084 = vmatmul.mubr.bf16.vlgmr.msra.gmra.mxu0 %v8938_v23  ;;  %v3057_v23 = vunpack.c.l.s8.bf16 %v2073_v60 }
 0x566   : > { %5127 = vmatmul.mubr.bf16.vlgmr.msra.gmra.mxu1 %v8939_v1  ;;  %5138 = vmatpush1.bf16.msra.mxu0 %v3037_v49  ;;  %v3061_v49 = vunpack.c.h.s8.bf16 %v2073_v60  ;;  %v3121_v1 = vunpack.c.l.s8.bf16 %v2105_v59  ;;  %v2117_v60 = vld [vmem:[%s7608_s17 + $0xc30] sm:$0xff] }
 0x567   : > { %5181 = vmatpush1.bf16.msra.mxu1 %v3101_v32  ;;  %5139 = vmatprep.subr.bf16.mxu0 %v3034_v53  ;;  %v3125_v32 = vunpack.c.h.s8.bf16 %v2105_v59  ;;  %v3058_v53 = vunpack.c.l.s8.bf16 %v2074_v0  ;;  %v2118_v0 = vld [vmem:[%s7608_s17 + $0xc38] sm:$0xff]  ;;  %v2149_v59 = vld [vmem:[%s7608_s17 + $0xd30] sm:$0xff] }
 0x568   : > { %5182 = vmatprep.subr.bf16.mxu1 %v3098_v62  ;;  %5169 = vmatprep.mubr.bf16.mxu0 %v8940_v52  ;;  %v3122_v62 = vunpack.c.l.s8.bf16 %v2106_v20  ;;  %v3050_v52 = vunpack.c.l.s8.bf16 %v2070_v30  ;;  %v2150_v20 = vld [vmem:[%s7608_s17 + $0xd38] sm:$0xff] }
 0x569   : > { %5212 = vmatprep.mubr.bf16.mxu1 %v8941_v2  ;;  %v3114_v2 = vunpack.c.l.s8.bf16 %v2102_v56 }
 0x56a   : > { %5140 = vmatpush1.bf16.msra.mxu0 %v3033_v19  ;;  %v3054_v19 = vunpack.c.h.s8.bf16 %v2070_v30  ;;  %v2114_v30 = vld [vmem:[%s7608_s17 + $0xc18] sm:$0xff] }
 0x56b   : > { %5183 = vmatpush1.bf16.msra.mxu1 %v3097_v12  ;;  %5141 = vmatprep.subr.bf16.mxu0 %v3030_v11  ;;  %v3118_v12 = vunpack.c.h.s8.bf16 %v2102_v56  ;;  %v2069_v11 = vld [vmem:[%s7608_s17 + $0xab0] sm:$0xff]  ;;  %v2146_v56 = vld [vmem:[%s7608_s17 + $0xd18] sm:$0xff] }
 0x56c   : > { %5184 = vmatprep.subr.bf16.mxu1 %v3094_v3  ;;  %v2101_v3 = vld [vmem:[%s7608_s17 + $0xbb0] sm:$0xff]  ;;  %v3053_v34 = vunpack.c.h.s8.bf16 %v2069_v11 }
 0x56d   : > { %v3117_v54 = vunpack.c.h.s8.bf16 %v2101_v3 }
 0x56e   : > { %5142 = vmatpush1.bf16.msra.mxu0 %v3029_v42  ;;  %v2066_v42 = vld [vmem:[%s7608_s17 + $0xa98] sm:$0xff] }
 0x56f   : > { %5185 = vmatpush1.bf16.msra.mxu1 %v3093_v15  ;;  %5143 = vmatprep.subr.bf16.mxu0 %v3026_v38  ;;  %v2098_v15 = vld [vmem:[%s7608_s17 + $0xb98] sm:$0xff]  ;;  %v3049_v38 = vunpack.c.l.s8.bf16 %v2069_v11  ;;  %v3046_v5 = vunpack.c.h.s8.bf16 %v2066_v42  ;;  %v3042_v41 = vunpack.c.l.s8.bf16 %v2066_v42  ;;  %v2113_v11 = vld [vmem:[%s7608_s17 + $0xc10] sm:$0xff] }
 0x570   : > { %5186 = vmatprep.subr.bf16.mxu1 %v3090_v4  ;;  %v3113_v4 = vunpack.c.l.s8.bf16 %v2101_v3  ;;  %v3110_v18 = vunpack.c.h.s8.bf16 %v2098_v15  ;;  %v3106_v14 = vunpack.c.l.s8.bf16 %v2098_v15  ;;  %v2145_v3 = vld [vmem:[%s7608_s17 + $0xd10] sm:$0xff]  ;;  %v2142_v42 = vld [vmem:[%s7608_s17 + $0xcf8] sm:$0xff] }
 0x571   : > { %v2174_v15 = vld [vmem:[%s7608_s17 + $0xdf8] sm:$0xff] }
 0x572   : > { %5144 = vmatpush1.bf16.msra.mxu0 %v3025_v27  ;;  %v2065_v27 = vld [vmem:[%s7608_s17 + $0xa90] sm:$0xff] }
 0x573   : > { %5187 = vmatpush1.bf16.msra.mxu1 %v3089_v35  ;;  %5145 = vmatprep.subr.bf16.mxu0 %v3022_v31  ;;  %v2097_v35 = vld [vmem:[%s7608_s17 + $0xb90] sm:$0xff]  ;;  %v3045_v31 = vunpack.c.h.s8.bf16 %v2065_v27 }
 0x574   : > { %5188 = vmatprep.subr.bf16.mxu1 %v3086_v51  ;;  %v3109_v51 = vunpack.c.h.s8.bf16 %v2097_v35 }
 0x576   : > { %5146 = vmatpush1.bf16.msra.mxu0 %v3021_v50  ;;  %v2126_v50 = vld [vmem:[%s7608_s17 + $0xc78] sm:$0xff] }
 0x577   : > { %5189 = vmatpush1.bf16.msra.mxu1 %v3085_v8  ;;  %5147 = vmatprep.subr.bf16.mxu0 %v3018_v47  ;;  %v2158_v8 = vld [vmem:[%s7608_s17 + $0xd78] sm:$0xff]  ;;  %v3041_v47 = vunpack.c.l.s8.bf16 %v2065_v27  ;;  %v3166_v43 = vunpack.c.h.s8.bf16 %v2126_v50  ;;  %v3162_v40 = vunpack.c.l.s8.bf16 %v2126_v50  ;;  %v2141_v27 = vld [vmem:[%s7608_s17 + $0xcf0] sm:$0xff] }
 0x578   : > { %5190 = vmatprep.subr.bf16.mxu1 %v3082_v63  ;;  %v3105_v63 = vunpack.c.l.s8.bf16 %v2097_v35  ;;  %v3230_v28 = vunpack.c.h.s8.bf16 %v2158_v8  ;;  %v3226_v33 = vunpack.c.l.s8.bf16 %v2158_v8  ;;  %v2173_v35 = vld [vmem:[%s7608_s17 + $0xdf0] sm:$0xff]  ;;  %v2138_v50 = vld [vmem:[%s7608_s17 + $0xcd8] sm:$0xff] }
 0x579   : > { %v2170_v8 = vld [vmem:[%s7608_s17 + $0xdd8] sm:$0xff] }
 0x57a   : > { %5148 = vmatpush1.bf16.msra.mxu0 %v3017_v57  ;;  %v2125_v57 = vld [vmem:[%s7608_s17 + $0xc70] sm:$0xff] }
 0x57b   : > { %5191 = vmatpush1.bf16.msra.mxu1 %v3081_v48  ;;  %5149 = vmatprep.subr.bf16.mxu0 %v3014_v24  ;;  %v2157_v48 = vld [vmem:[%s7608_s17 + $0xd70] sm:$0xff]  ;;  %v3165_v24 = vunpack.c.h.s8.bf16 %v2125_v57  ;;  %v3161_v45 = vunpack.c.l.s8.bf16 %v2125_v57 }
 0x57c   : > { %5192 = vmatprep.subr.bf16.mxu1 %v3078_v44  ;;  %v3229_v44 = vunpack.c.h.s8.bf16 %v2157_v48  ;;  %v3225_v55 = vunpack.c.l.s8.bf16 %v2157_v48  ;;  %v2137_v57 = vld [vmem:[%s7608_s17 + $0xcd0] sm:$0xff] }
 0x57d   : > { %v2169_v48 = vld [vmem:[%s7608_s17 + $0xdd0] sm:$0xff] }
 0x57e   : > { %5150 = vmatpush1.bf16.msra.mxu0 %v3013_v36  ;;  %v2122_v36 = vld [vmem:[%s7608_s17 + $0xc58] sm:$0xff] }
 0x57f   : > { %5193 = vmatpush1.bf16.msra.mxu1 %v3077_v58  ;;  %5151 = vmatprep.subr.bf16.mxu0 %v3010_v21  ;;  %v2154_v58 = vld [vmem:[%s7608_s17 + $0xd58] sm:$0xff]  ;;  %v8942_v21 = vld [vmem:[#allocation20_spill] sm:$0xff] }
 0x580   : > { %5194 = vmatprep.subr.bf16.mxu1 %v3074_v22  ;;  %v8943_v22 = vld [vmem:[#allocation21_spill] sm:$0xff] }
 0x582   : > { %5152 = vmatpush1.bf16.msra.mxu0 %v3009_v61  ;;  %v3158_v61 = vunpack.c.h.s8.bf16 %v2122_v36 }
 0x583   : > { %5195 = vmatpush1.bf16.msra.mxu1 %v3073_v39  ;;  %5153 = vmatprep.subr.bf16.mxu0 %v3070_v6  ;;  %v3222_v39 = vunpack.c.h.s8.bf16 %v2154_v58  ;;  %v2121_v6 = vld [vmem:[%s7608_s17 + $0xc50] sm:$0xff] }
 0x584   : > { %5196 = vmatprep.subr.bf16.mxu1 %v3134_v9  ;;  %v2153_v9 = vld [vmem:[%s7608_s17 + $0xd50] sm:$0xff] }
 0x586   : > { %5154 = vmatpush2.bf16.msra.mxu0 %v3069_v7  ;;  %v3157_v7 = vunpack.c.h.s8.bf16 %v2121_v6 }
 0x587   : > { %5197 = vmatpush2.bf16.msra.mxu1 %v3133_v13  ;;  %5155 = vmatprep.subr.bf16.mxu0 %v3066_v17  ;;  %v3221_v13 = vunpack.c.h.s8.bf16 %v2153_v9  ;;  %v3154_v17 = vunpack.c.l.s8.bf16 %v2122_v36  ;;  %v2134_v36 = vld [vmem:[%s7608_s17 + $0xcb8] sm:$0xff] }
 0x588   : > { %5198 = vmatprep.subr.bf16.mxu1 %v3130_v37  ;;  %v3218_v37 = vunpack.c.l.s8.bf16 %v2154_v58  ;;  %v2166_v58 = vld [vmem:[%s7608_s17 + $0xdb8] sm:$0xff] }
 0x58a   : > { %5156 = vmatpush2.bf16.msra.mxu0 %v3065_v16  ;;  %v3153_v16 = vunpack.c.l.s8.bf16 %v2121_v6 }
 0x58b   : > { %5199 = vmatpush2.bf16.msra.mxu1 %v3129_v10  ;;  %5157 = vmatprep.subr.bf16.mxu0 %v3062_v46  ;;  %v3217_v10 = vunpack.c.l.s8.bf16 %v2153_v9  ;;  %v3150_v46 = vunpack.c.h.s8.bf16 %v2118_v0 }
 0x58c   : > { %5200 = vmatprep.subr.bf16.mxu1 %v3126_v25  ;;  %v3214_v25 = vunpack.c.h.s8.bf16 %v2150_v20 }
 0x58e   : > { %5158 = vmatpush2.bf16.msra.mxu0 %v3061_v49  ;;  %v3149_v49 = vunpack.c.h.s8.bf16 %v2117_v60 }
 0x58f   : > { %5201 = vmatpush2.bf16.msra.mxu1 %v3125_v32  ;;  %5159 = vmatprep.subr.bf16.mxu0 %v3058_v53  ;;  %v3213_v32 = vunpack.c.h.s8.bf16 %v2149_v59  ;;  %v3146_v53 = vunpack.c.l.s8.bf16 %v2118_v0 }
 0x590   : > { %5202 = vmatprep.subr.bf16.mxu1 %v3122_v62  ;;  %v3210_v62 = vunpack.c.l.s8.bf16 %v2150_v20 }
 0x592   : > { %5160 = vmatpush2.bf16.msra.mxu0 %v3057_v23  ;;  %v3145_v23 = vunpack.c.l.s8.bf16 %v2117_v60 }
 0x593   : > { %5203 = vmatpush2.bf16.msra.mxu1 %v3121_v1  ;;  %5161 = vmatprep.subr.bf16.mxu0 %v3054_v19  ;;  %v3209_v1 = vunpack.c.l.s8.bf16 %v2149_v59  ;;  %v3142_v19 = vunpack.c.h.s8.bf16 %v2114_v30 }
 0x594   : > { %5204 = vmatprep.subr.bf16.mxu1 %v3118_v12  ;;  %v3206_v12 = vunpack.c.h.s8.bf16 %v2146_v56 }
 0x596   : > { %5162 = vmatpush2.bf16.msra.mxu0 %v3053_v34  ;;  %v3141_v34 = vunpack.c.h.s8.bf16 %v2113_v11 }
 0x597   : > { %5205 = vmatpush2.bf16.msra.mxu1 %v3117_v54  ;;  %5163 = vmatprep.subr.bf16.mxu0 %v3050_v52  ;;  %v3205_v54 = vunpack.c.h.s8.bf16 %v2145_v3  ;;  %v3138_v52 = vunpack.c.l.s8.bf16 %v2114_v30 }
 0x598   : > { %5206 = vmatprep.subr.bf16.mxu1 %v3114_v2  ;;  %v3202_v2 = vunpack.c.l.s8.bf16 %v2146_v56 }
 0x59a   : > { %5164 = vmatpush2.bf16.msra.mxu0 %v3049_v38  ;;  %v3137_v38 = vunpack.c.l.s8.bf16 %v2113_v11 }
 0x59b   : > { %5207 = vmatpush2.bf16.msra.mxu1 %v3113_v4  ;;  %5165 = vmatprep.subr.bf16.mxu0 %v3046_v5  ;;  %v3201_v4 = vunpack.c.l.s8.bf16 %v2145_v3  ;;  %v3198_v5 = vunpack.c.h.s8.bf16 %v2142_v42 }
 0x59c   : > { %5208 = vmatprep.subr.bf16.mxu1 %v3110_v18  ;;  %v3262_v18 = vunpack.c.h.s8.bf16 %v2174_v15 }
 0x59e   : > { %5166 = vmatpush2.bf16.msra.mxu0 %v3045_v31  ;;  %v3197_v31 = vunpack.c.h.s8.bf16 %v2141_v27 }
 0x59f   : > { %5209 = vmatpush2.bf16.msra.mxu1 %v3109_v51  ;;  %5167 = vmatprep.subr.bf16.mxu0 %v3042_v41  ;;  %v3261_v51 = vunpack.c.h.s8.bf16 %v2173_v35  ;;  %v3194_v41 = vunpack.c.l.s8.bf16 %v2142_v42 }
 0x5a0   : > { %5210 = vmatprep.subr.bf16.mxu1 %v3106_v14  ;;  %v3258_v14 = vunpack.c.l.s8.bf16 %v2174_v15 }
 0x5a2   : > { %5168 = vmatpush2.bf16.msra.mxu0 %v3041_v47  ;;  %v3193_v47 = vunpack.c.l.s8.bf16 %v2141_v27  ;;  %v8948_v27 = vld [vmem:[#allocation26_spill] sm:$0xff] }
 0x5a3   : > { %5211 = vmatpush2.bf16.msra.mxu1 %v3105_v63  ;;  %5223 = vmatprep.subr.bf16.mxu0 %v3166_v43  ;;  %v3257_v63 = vunpack.c.l.s8.bf16 %v2173_v35  ;;  %v3190_v43 = vunpack.c.h.s8.bf16 %v2138_v50  ;;  %v8949_v35 = vld [vmem:[#allocation27_spill] sm:$0xff] }
 0x5a4   : > { %5266 = vmatprep.subr.bf16.mxu1 %v3230_v28  ;;  %v3254_v28 = vunpack.c.h.s8.bf16 %v2170_v8 }
 0x5a5   : > { %5170 = vmatmul.mubr.bf16.vlgmr.msra.gmra.mxu0 %v8942_v21  ;;  %v3185_v21 = vunpack.c.l.s8.bf16 %v2137_v57 }
 0x5a6   : > { %5213 = vmatmul.mubr.bf16.vlgmr.msra.gmra.mxu1 %v8943_v22  ;;  %5224 = vmatpush1.bf16.msra.mxu0 %v3165_v24  ;;  %v3189_v24 = vunpack.c.h.s8.bf16 %v2137_v57  ;;  %v3249_v22 = vunpack.c.l.s8.bf16 %v2169_v48  ;;  %v2181_v57 = vld [vmem:[%s7608_s17 + $0xe30] sm:$0xff] }
 0x5a7   : > { %5267 = vmatpush1.bf16.msra.mxu1 %v3229_v44  ;;  %5225 = vmatprep.subr.bf16.mxu0 %v3162_v40  ;;  %v3253_v44 = vunpack.c.h.s8.bf16 %v2169_v48  ;;  %v3186_v40 = vunpack.c.l.s8.bf16 %v2138_v50  ;;  %v2182_v50 = vld [vmem:[%s7608_s17 + $0xe38] sm:$0xff]  ;;  %v2213_v48 = vld [vmem:[%s7608_s17 + $0xf30] sm:$0xff] }
 0x5a8   : > { %5268 = vmatprep.subr.bf16.mxu1 %v3226_v33  ;;  %5255 = vmatprep.mubr.bf16.mxu0 %v8944_v29  ;;  %v3250_v33 = vunpack.c.l.s8.bf16 %v2170_v8  ;;  %v3178_v29 = vunpack.c.l.s8.bf16 %v2134_v36  ;;  %v2214_v8 = vld [vmem:[%s7608_s17 + $0xf38] sm:$0xff] }
 0x5a9   : > { %5298 = vmatprep.mubr.bf16.mxu1 %v8945_v26  ;;  %v3242_v26 = vunpack.c.l.s8.bf16 %v2166_v58 }
 0x5aa   : > { %5226 = vmatpush1.bf16.msra.mxu0 %v3161_v45  ;;  %v3182_v45 = vunpack.c.h.s8.bf16 %v2134_v36  ;;  %v2178_v36 = vld [vmem:[%s7608_s17 + $0xe18] sm:$0xff] }
 0x5ab   : > { %5269 = vmatpush1.bf16.msra.mxu1 %v3225_v55  ;;  %5227 = vmatprep.subr.bf16.mxu0 %v3158_v61  ;;  %v3246_v55 = vunpack.c.h.s8.bf16 %v2166_v58  ;;  %v2133_v61 = vld [vmem:[%s7608_s17 + $0xcb0] sm:$0xff]  ;;  %v2210_v58 = vld [vmem:[%s7608_s17 + $0xf18] sm:$0xff] }
 0x5ac   : > { %5270 = vmatprep.subr.bf16.mxu1 %v3222_v39  ;;  %v2165_v39 = vld [vmem:[%s7608_s17 + $0xdb0] sm:$0xff]  ;;  %v3181_v6 = vunpack.c.h.s8.bf16 %v2133_v61 }
 0x5ad   : > { %v3245_v9 = vunpack.c.h.s8.bf16 %v2165_v39 }
 0x5ae   : > { %5228 = vmatpush1.bf16.msra.mxu0 %v3157_v7  ;;  %v2130_v7 = vld [vmem:[%s7608_s17 + $0xc98] sm:$0xff] }
 0x5af   : > { %5271 = vmatpush1.bf16.msra.mxu1 %v3221_v13  ;;  %5229 = vmatprep.subr.bf16.mxu0 %v3154_v17  ;;  %v2162_v13 = vld [vmem:[%s7608_s17 + $0xd98] sm:$0xff]  ;;  %v3177_v17 = vunpack.c.l.s8.bf16 %v2133_v61  ;;  %v3174_v0 = vunpack.c.h.s8.bf16 %v2130_v7  ;;  %v3170_v60 = vunpack.c.l.s8.bf16 %v2130_v7  ;;  %v2177_v61 = vld [vmem:[%s7608_s17 + $0xe10] sm:$0xff] }
 0x5b0   : > { %5272 = vmatprep.subr.bf16.mxu1 %v3218_v37  ;;  %v3241_v37 = vunpack.c.l.s8.bf16 %v2165_v39  ;;  %v3238_v20 = vunpack.c.h.s8.bf16 %v2162_v13  ;;  %v3234_v59 = vunpack.c.l.s8.bf16 %v2162_v13  ;;  %v2209_v39 = vld [vmem:[%s7608_s17 + $0xf10] sm:$0xff]  ;;  %v2206_v7 = vld [vmem:[%s7608_s17 + $0xef8] sm:$0xff] }
 0x5b1   : > { %v2238_v13 = vld [vmem:[%s7608_s17 + $0xff8] sm:$0xff] }
 0x5b2   : > { %5230 = vmatpush1.bf16.msra.mxu0 %v3153_v16  ;;  %v2129_v16 = vld [vmem:[%s7608_s17 + $0xc90] sm:$0xff] }
 0x5b3   : > { %5273 = vmatpush1.bf16.msra.mxu1 %v3217_v10  ;;  %5231 = vmatprep.subr.bf16.mxu0 %v3150_v46  ;;  %v2161_v10 = vld [vmem:[%s7608_s17 + $0xd90] sm:$0xff]  ;;  %v3173_v46 = vunpack.c.h.s8.bf16 %v2129_v16 }
 0x5b4   : > { %5274 = vmatprep.subr.bf16.mxu1 %v3214_v25  ;;  %v3237_v25 = vunpack.c.h.s8.bf16 %v2161_v10 }
 0x5b6   : > { %5232 = vmatpush1.bf16.msra.mxu0 %v3149_v49  ;;  %v2190_v49 = vld [vmem:[%s7608_s17 + $0xe78] sm:$0xff] }
 0x5b7   : > { %5275 = vmatpush1.bf16.msra.mxu1 %v3213_v32  ;;  %5233 = vmatprep.subr.bf16.mxu0 %v3146_v53  ;;  %v2222_v32 = vld [vmem:[%s7608_s17 + $0xf78] sm:$0xff]  ;;  %v3169_v53 = vunpack.c.l.s8.bf16 %v2129_v16  ;;  %v3294_v30 = vunpack.c.h.s8.bf16 %v2190_v49  ;;  %v3290_v11 = vunpack.c.l.s8.bf16 %v2190_v49  ;;  %v2205_v16 = vld [vmem:[%s7608_s17 + $0xef0] sm:$0xff] }
 0x5b8   : > { %5276 = vmatprep.subr.bf16.mxu1 %v3210_v62  ;;  %v3233_v62 = vunpack.c.l.s8.bf16 %v2161_v10  ;;  %v3358_v56 = vunpack.c.h.s8.bf16 %v2222_v32  ;;  %v3354_v3 = vunpack.c.l.s8.bf16 %v2222_v32  ;;  %v2237_v10 = vld [vmem:[%s7608_s17 + $0xff0] sm:$0xff]  ;;  %v2202_v49 = vld [vmem:[%s7608_s17 + $0xed8] sm:$0xff] }
 0x5b9   : > { %v2234_v32 = vld [vmem:[%s7608_s17 + $0xfd8] sm:$0xff] }
 0x5ba   : > { %5234 = vmatpush1.bf16.msra.mxu0 %v3145_v23  ;;  %v2189_v23 = vld [vmem:[%s7608_s17 + $0xe70] sm:$0xff] }
 0x5bb   : > { %5277 = vmatpush1.bf16.msra.mxu1 %v3209_v1  ;;  %5235 = vmatprep.subr.bf16.mxu0 %v3142_v19  ;;  %v2221_v1 = vld [vmem:[%s7608_s17 + $0xf70] sm:$0xff]  ;;  %v3293_v19 = vunpack.c.h.s8.bf16 %v2189_v23  ;;  %v3289_v42 = vunpack.c.l.s8.bf16 %v2189_v23 }
 0x5bc   : > { %5278 = vmatprep.subr.bf16.mxu1 %v3206_v12  ;;  %v3357_v12 = vunpack.c.h.s8.bf16 %v2221_v1  ;;  %v3353_v15 = vunpack.c.l.s8.bf16 %v2221_v1  ;;  %v2201_v23 = vld [vmem:[%s7608_s17 + $0xed0] sm:$0xff] }
 0x5bd   : > { %v2233_v1 = vld [vmem:[%s7608_s17 + $0xfd0] sm:$0xff] }
 0x5be   : > { %5236 = vmatpush1.bf16.msra.mxu0 %v3141_v34  ;;  %v2186_v34 = vld [vmem:[%s7608_s17 + $0xe58] sm:$0xff] }
 0x5bf   : > { %5279 = vmatpush1.bf16.msra.mxu1 %v3205_v54  ;;  %5237 = vmatprep.subr.bf16.mxu0 %v3138_v52  ;;  %v2218_v54 = vld [vmem:[%s7608_s17 + $0xf58] sm:$0xff]  ;;  %v8946_v52 = vld [vmem:[#allocation24_spill] sm:$0xff] }
 0x5c0   : > { %5280 = vmatprep.subr.bf16.mxu1 %v3202_v2  ;;  %v8947_v2 = vld [vmem:[#allocation25_spill] sm:$0xff] }
 0x5c2   : > { %5238 = vmatpush1.bf16.msra.mxu0 %v3137_v38  ;;  %v3286_v38 = vunpack.c.h.s8.bf16 %v2186_v34 }
 0x5c3   : > { %5281 = vmatpush1.bf16.msra.mxu1 %v3201_v4  ;;  %5239 = vmatprep.subr.bf16.mxu0 %v3198_v5  ;;  %v3350_v4 = vunpack.c.h.s8.bf16 %v2218_v54  ;;  %v2185_v5 = vld [vmem:[%s7608_s17 + $0xe50] sm:$0xff] }
 0x5c4   : > { %5282 = vmatprep.subr.bf16.mxu1 %v3262_v18  ;;  %v2217_v18 = vld [vmem:[%s7608_s17 + $0xf50] sm:$0xff] }
 0x5c6   : > { %5240 = vmatpush2.bf16.msra.mxu0 %v3197_v31  ;;  %v3285_v31 = vunpack.c.h.s8.bf16 %v2185_v5 }
 0x5c7   : > { %5283 = vmatpush2.bf16.msra.mxu1 %v3261_v51  ;;  %5241 = vmatprep.subr.bf16.mxu0 %v3194_v41  ;;  %v3349_v51 = vunpack.c.h.s8.bf16 %v2217_v18  ;;  %v3282_v41 = vunpack.c.l.s8.bf16 %v2186_v34  ;;  %v2198_v34 = vld [vmem:[%s7608_s17 + $0xeb8] sm:$0xff] }
 0x5c8   : > { %5284 = vmatprep.subr.bf16.mxu1 %v3258_v14  ;;  %v3346_v14 = vunpack.c.l.s8.bf16 %v2218_v54  ;;  %v2230_v54 = vld [vmem:[%s7608_s17 + $0xfb8] sm:$0xff] }
 0x5ca   : > { %5242 = vmatpush2.bf16.msra.mxu0 %v3193_v47  ;;  %v3281_v47 = vunpack.c.l.s8.bf16 %v2185_v5 }
 0x5cb   : > { %5285 = vmatpush2.bf16.msra.mxu1 %v3257_v63  ;;  %5243 = vmatprep.subr.bf16.mxu0 %v3190_v43  ;;  %v3345_v63 = vunpack.c.l.s8.bf16 %v2217_v18  ;;  %v3278_v43 = vunpack.c.h.s8.bf16 %v2182_v50 }
 0x5cc   : > { %5286 = vmatprep.subr.bf16.mxu1 %v3254_v28  ;;  %v3342_v28 = vunpack.c.h.s8.bf16 %v2214_v8 }
 0x5ce   : > { %5244 = vmatpush2.bf16.msra.mxu0 %v3189_v24  ;;  %v3277_v24 = vunpack.c.h.s8.bf16 %v2181_v57 }
 0x5cf   : > { %5287 = vmatpush2.bf16.msra.mxu1 %v3253_v44  ;;  %5245 = vmatprep.subr.bf16.mxu0 %v3186_v40  ;;  %v3341_v44 = vunpack.c.h.s8.bf16 %v2213_v48  ;;  %v3274_v40 = vunpack.c.l.s8.bf16 %v2182_v50 }
 0x5d0   : > { %5288 = vmatprep.subr.bf16.mxu1 %v3250_v33  ;;  %v3338_v33 = vunpack.c.l.s8.bf16 %v2214_v8 }
 0x5d2   : > { %5246 = vmatpush2.bf16.msra.mxu0 %v3185_v21  ;;  %v3273_v21 = vunpack.c.l.s8.bf16 %v2181_v57 }
 0x5d3   : > { %5289 = vmatpush2.bf16.msra.mxu1 %v3249_v22  ;;  %5247 = vmatprep.subr.bf16.mxu0 %v3182_v45  ;;  %v3337_v22 = vunpack.c.l.s8.bf16 %v2213_v48  ;;  %v3270_v45 = vunpack.c.h.s8.bf16 %v2178_v36 }
 0x5d4   : > { %5290 = vmatprep.subr.bf16.mxu1 %v3246_v55  ;;  %v3334_v55 = vunpack.c.h.s8.bf16 %v2210_v58 }
 0x5d6   : > { %5248 = vmatpush2.bf16.msra.mxu0 %v3181_v6  ;;  %v3269_v6 = vunpack.c.h.s8.bf16 %v2177_v61 }
 0x5d7   : > { %5291 = vmatpush2.bf16.msra.mxu1 %v3245_v9  ;;  %5249 = vmatprep.subr.bf16.mxu0 %v3178_v29  ;;  %v3333_v9 = vunpack.c.h.s8.bf16 %v2209_v39  ;;  %v3266_v29 = vunpack.c.l.s8.bf16 %v2178_v36 }
 0x5d8   : > { %5292 = vmatprep.subr.bf16.mxu1 %v3242_v26  ;;  %v3330_v26 = vunpack.c.l.s8.bf16 %v2210_v58 }
 0x5da   : > { %5250 = vmatpush2.bf16.msra.mxu0 %v3177_v17  ;;  %v3265_v17 = vunpack.c.l.s8.bf16 %v2177_v61 }
 0x5db   : > { %5293 = vmatpush2.bf16.msra.mxu1 %v3241_v37  ;;  %5251 = vmatprep.subr.bf16.mxu0 %v3174_v0  ;;  %v3329_v37 = vunpack.c.l.s8.bf16 %v2209_v39  ;;  %v3326_v0 = vunpack.c.h.s8.bf16 %v2206_v7 }
 0x5dc   : > { %5294 = vmatprep.subr.bf16.mxu1 %v3238_v20  ;;  %v3390_v20 = vunpack.c.h.s8.bf16 %v2238_v13 }
 0x5de   : > { %5252 = vmatpush2.bf16.msra.mxu0 %v3173_v46  ;;  %v3325_v46 = vunpack.c.h.s8.bf16 %v2205_v16 }
 0x5df   : > { %5295 = vmatpush2.bf16.msra.mxu1 %v3237_v25  ;;  %5253 = vmatprep.subr.bf16.mxu0 %v3170_v60  ;;  %v3389_v25 = vunpack.c.h.s8.bf16 %v2237_v10  ;;  %v3322_v60 = vunpack.c.l.s8.bf16 %v2206_v7 }
 0x5e0   : > { %5296 = vmatprep.subr.bf16.mxu1 %v3234_v59  ;;  %v3386_v59 = vunpack.c.l.s8.bf16 %v2238_v13 }
 0x5e2   : > { %5254 = vmatpush2.bf16.msra.mxu0 %v3169_v53  ;;  %v3321_v53 = vunpack.c.l.s8.bf16 %v2205_v16  ;;  %v8952_v16 = vld [vmem:[#allocation30_spill] sm:$0xff] }
 0x5e3   : > { %5297 = vmatpush2.bf16.msra.mxu1 %v3233_v62  ;;  %5309 = vmatprep.subr.bf16.mxu0 %v3294_v30  ;;  %v3385_v62 = vunpack.c.l.s8.bf16 %v2237_v10  ;;  %v3318_v30 = vunpack.c.h.s8.bf16 %v2202_v49  ;;  %v8953_v10 = vld [vmem:[#allocation31_spill] sm:$0xff] }
 0x5e4   : > { %5352 = vmatprep.subr.bf16.mxu1 %v3358_v56  ;;  %v3382_v56 = vunpack.c.h.s8.bf16 %v2234_v32 }
 0x5e5   : > { %5256 = vmatmul.mubr.bf16.vlgmr.msra.gmra.mxu0 %v8946_v52  ;;  %v3313_v52 = vunpack.c.l.s8.bf16 %v2201_v23 }
 0x5e6   : > { %5299 = vmatmul.mubr.bf16.vlgmr.msra.gmra.mxu1 %v8947_v2  ;;  %5310 = vmatpush1.bf16.msra.mxu0 %v3293_v19  ;;  %v3317_v19 = vunpack.c.h.s8.bf16 %v2201_v23  ;;  %v3377_v2 = vunpack.c.l.s8.bf16 %v2233_v1  ;;  %v2245_v23 = vld [vmem:[%s7608_s17 + $0x1030] sm:$0xff] }
 0x5e7   : > { %5353 = vmatpush1.bf16.msra.mxu1 %v3357_v12  ;;  %5311 = vmatprep.subr.bf16.mxu0 %v3290_v11  ;;  %v3381_v12 = vunpack.c.h.s8.bf16 %v2233_v1  ;;  %v3314_v11 = vunpack.c.l.s8.bf16 %v2202_v49  ;;  %v2246_v49 = vld [vmem:[%s7608_s17 + $0x1038] sm:$0xff]  ;;  %v2277_v1 = vld [vmem:[%s7608_s17 + $0x1130] sm:$0xff] }
 0x5e8   : > { %5354 = vmatprep.subr.bf16.mxu1 %v3354_v3  ;;  %5341 = vmatprep.mubr.bf16.mxu0 %v8948_v27  ;;  %v3378_v3 = vunpack.c.l.s8.bf16 %v2234_v32  ;;  %v3306_v27 = vunpack.c.l.s8.bf16 %v2198_v34  ;;  %v2278_v32 = vld [vmem:[%s7608_s17 + $0x1138] sm:$0xff] }
 0x5e9   : > { %5384 = vmatprep.mubr.bf16.mxu1 %v8949_v35  ;;  %v3370_v35 = vunpack.c.l.s8.bf16 %v2230_v54 }
 0x5ea   : > { %5312 = vmatpush1.bf16.msra.mxu0 %v3289_v42  ;;  %v3310_v42 = vunpack.c.h.s8.bf16 %v2198_v34  ;;  %v2242_v34 = vld [vmem:[%s7608_s17 + $0x1018] sm:$0xff] }
 0x5eb   : > { %5355 = vmatpush1.bf16.msra.mxu1 %v3353_v15  ;;  %5313 = vmatprep.subr.bf16.mxu0 %v3286_v38  ;;  %v3374_v15 = vunpack.c.h.s8.bf16 %v2230_v54  ;;  %v2197_v38 = vld [vmem:[%s7608_s17 + $0xeb0] sm:$0xff]  ;;  %v2274_v54 = vld [vmem:[%s7608_s17 + $0x1118] sm:$0xff] }
 0x5ec   : > { %5356 = vmatprep.subr.bf16.mxu1 %v3350_v4  ;;  %v2229_v4 = vld [vmem:[%s7608_s17 + $0xfb0] sm:$0xff]  ;;  %v3309_v5 = vunpack.c.h.s8.bf16 %v2197_v38 }
 0x5ed   : > { %v3373_v18 = vunpack.c.h.s8.bf16 %v2229_v4 }
 0x5ee   : > { %5314 = vmatpush1.bf16.msra.mxu0 %v3285_v31  ;;  %v2194_v31 = vld [vmem:[%s7608_s17 + $0xe98] sm:$0xff] }
 0x5ef   : > { %5357 = vmatpush1.bf16.msra.mxu1 %v3349_v51  ;;  %5315 = vmatprep.subr.bf16.mxu0 %v3282_v41  ;;  %v2226_v51 = vld [vmem:[%s7608_s17 + $0xf98] sm:$0xff]  ;;  %v3305_v41 = vunpack.c.l.s8.bf16 %v2197_v38  ;;  %v3302_v50 = vunpack.c.h.s8.bf16 %v2194_v31  ;;  %v3298_v57 = vunpack.c.l.s8.bf16 %v2194_v31  ;;  %v2241_v38 = vld [vmem:[%s7608_s17 + $0x1010] sm:$0xff] }
 0x5f0   : > { %5358 = vmatprep.subr.bf16.mxu1 %v3346_v14  ;;  %v3369_v14 = vunpack.c.l.s8.bf16 %v2229_v4  ;;  %v3366_v8 = vunpack.c.h.s8.bf16 %v2226_v51  ;;  %v3362_v48 = vunpack.c.l.s8.bf16 %v2226_v51  ;;  %v2273_v4 = vld [vmem:[%s7608_s17 + $0x1110] sm:$0xff]  ;;  %v2270_v31 = vld [vmem:[%s7608_s17 + $0x10f8] sm:$0xff] }
 0x5f1   : > { %v2302_v51 = vld [vmem:[%s7608_s17 + $0x11f8] sm:$0xff] }
 0x5f2   : > { %5316 = vmatpush1.bf16.msra.mxu0 %v3281_v47  ;;  %v2193_v47 = vld [vmem:[%s7608_s17 + $0xe90] sm:$0xff] }
 0x5f3   : > { %5359 = vmatpush1.bf16.msra.mxu1 %v3345_v63  ;;  %5317 = vmatprep.subr.bf16.mxu0 %v3278_v43  ;;  %v2225_v63 = vld [vmem:[%s7608_s17 + $0xf90] sm:$0xff]  ;;  %v3301_v43 = vunpack.c.h.s8.bf16 %v2193_v47 }
 0x5f4   : > { %5360 = vmatprep.subr.bf16.mxu1 %v3342_v28  ;;  %v3365_v28 = vunpack.c.h.s8.bf16 %v2225_v63 }
 0x5f6   : > { %5318 = vmatpush1.bf16.msra.mxu0 %v3277_v24  ;;  %v2254_v24 = vld [vmem:[%s7608_s17 + $0x1078] sm:$0xff] }
 0x5f7   : > { %5361 = vmatpush1.bf16.msra.mxu1 %v3341_v44  ;;  %5319 = vmatprep.subr.bf16.mxu0 %v3274_v40  ;;  %v2286_v44 = vld [vmem:[%s7608_s17 + $0x1178] sm:$0xff]  ;;  %v3297_v40 = vunpack.c.l.s8.bf16 %v2193_v47  ;;  %v3422_v36 = vunpack.c.h.s8.bf16 %v2254_v24  ;;  %v3418_v61 = vunpack.c.l.s8.bf16 %v2254_v24  ;;  %v2269_v47 = vld [vmem:[%s7608_s17 + $0x10f0] sm:$0xff] }
 0x5f8   : > { %5362 = vmatprep.subr.bf16.mxu1 %v3338_v33  ;;  %v3361_v33 = vunpack.c.l.s8.bf16 %v2225_v63  ;;  %v3486_v58 = vunpack.c.h.s8.bf16 %v2286_v44  ;;  %v3482_v39 = vunpack.c.l.s8.bf16 %v2286_v44  ;;  %v2301_v63 = vld [vmem:[%s7608_s17 + $0x11f0] sm:$0xff]  ;;  %v2266_v24 = vld [vmem:[%s7608_s17 + $0x10d8] sm:$0xff] }
 0x5f9   : > { %v2298_v44 = vld [vmem:[%s7608_s17 + $0x11d8] sm:$0xff] }
 0x5fa   : > { %5320 = vmatpush1.bf16.msra.mxu0 %v3273_v21  ;;  %v2253_v21 = vld [vmem:[%s7608_s17 + $0x1070] sm:$0xff] }
 0x5fb   : > { %5363 = vmatpush1.bf16.msra.mxu1 %v3337_v22  ;;  %5321 = vmatprep.subr.bf16.mxu0 %v3270_v45  ;;  %v2285_v22 = vld [vmem:[%s7608_s17 + $0x1170] sm:$0xff]  ;;  %v3421_v45 = vunpack.c.h.s8.bf16 %v2253_v21  ;;  %v3417_v7 = vunpack.c.l.s8.bf16 %v2253_v21 }
 0x5fc   : > { %5364 = vmatprep.subr.bf16.mxu1 %v3334_v55  ;;  %v3485_v55 = vunpack.c.h.s8.bf16 %v2285_v22  ;;  %v3481_v13 = vunpack.c.l.s8.bf16 %v2285_v22  ;;  %v2265_v21 = vld [vmem:[%s7608_s17 + $0x10d0] sm:$0xff] }
 0x5fd   : > { %v2297_v22 = vld [vmem:[%s7608_s17 + $0x11d0] sm:$0xff] }
 0x5fe   : > { %5322 = vmatpush1.bf16.msra.mxu0 %v3269_v6  ;;  %v2250_v6 = vld [vmem:[%s7608_s17 + $0x1058] sm:$0xff] }
 0x5ff   : > { %5365 = vmatpush1.bf16.msra.mxu1 %v3333_v9  ;;  %5323 = vmatprep.subr.bf16.mxu0 %v3266_v29  ;;  %v2282_v9 = vld [vmem:[%s7608_s17 + $0x1158] sm:$0xff]  ;;  %v8950_v29 = vld [vmem:[#allocation28_spill] sm:$0xff] }
 0x600   : > { %5366 = vmatprep.subr.bf16.mxu1 %v3330_v26  ;;  %v8951_v26 = vld [vmem:[#allocation29_spill] sm:$0xff] }
 0x602   : > { %5324 = vmatpush1.bf16.msra.mxu0 %v3265_v17  ;;  %v3414_v17 = vunpack.c.h.s8.bf16 %v2250_v6 }
 0x603   : > { %5367 = vmatpush1.bf16.msra.mxu1 %v3329_v37  ;;  %5325 = vmatprep.subr.bf16.mxu0 %v3326_v0  ;;  %v3478_v37 = vunpack.c.h.s8.bf16 %v2282_v9  ;;  %v2249_v0 = vld [vmem:[%s7608_s17 + $0x1050] sm:$0xff] }
 0x604   : > { %5368 = vmatprep.subr.bf16.mxu1 %v3390_v20  ;;  %v2281_v20 = vld [vmem:[%s7608_s17 + $0x1150] sm:$0xff] }
 0x606   : > { %5326 = vmatpush2.bf16.msra.mxu0 %v3325_v46  ;;  %v3413_v46 = vunpack.c.h.s8.bf16 %v2249_v0 }
 0x607   : > { %5369 = vmatpush2.bf16.msra.mxu1 %v3389_v25  ;;  %5327 = vmatprep.subr.bf16.mxu0 %v3322_v60  ;;  %v3477_v25 = vunpack.c.h.s8.bf16 %v2281_v20  ;;  %v3410_v60 = vunpack.c.l.s8.bf16 %v2250_v6  ;;  %v2262_v6 = vld [vmem:[%s7608_s17 + $0x10b8] sm:$0xff] }
 0x608   : > { %5370 = vmatprep.subr.bf16.mxu1 %v3386_v59  ;;  %v3474_v59 = vunpack.c.l.s8.bf16 %v2282_v9  ;;  %v2294_v9 = vld [vmem:[%s7608_s17 + $0x11b8] sm:$0xff] }
 0x60a   : > { %5328 = vmatpush2.bf16.msra.mxu0 %v3321_v53  ;;  %v3409_v53 = vunpack.c.l.s8.bf16 %v2249_v0 }
 0x60b   : > { %5371 = vmatpush2.bf16.msra.mxu1 %v3385_v62  ;;  %5329 = vmatprep.subr.bf16.mxu0 %v3318_v30  ;;  %v3473_v62 = vunpack.c.l.s8.bf16 %v2281_v20  ;;  %v3406_v30 = vunpack.c.h.s8.bf16 %v2246_v49 }
 0x60c   : > { %5372 = vmatprep.subr.bf16.mxu1 %v3382_v56  ;;  %v3470_v56 = vunpack.c.h.s8.bf16 %v2278_v32 }
 0x60e   : > { %5330 = vmatpush2.bf16.msra.mxu0 %v3317_v19  ;;  %v3405_v19 = vunpack.c.h.s8.bf16 %v2245_v23 }
 0x60f   : > { %5373 = vmatpush2.bf16.msra.mxu1 %v3381_v12  ;;  %5331 = vmatprep.subr.bf16.mxu0 %v3314_v11  ;;  %v3469_v12 = vunpack.c.h.s8.bf16 %v2277_v1  ;;  %v3402_v11 = vunpack.c.l.s8.bf16 %v2246_v49 }
 0x610   : > { %5374 = vmatprep.subr.bf16.mxu1 %v3378_v3  ;;  %v3466_v3 = vunpack.c.l.s8.bf16 %v2278_v32 }
 0x612   : > { %5332 = vmatpush2.bf16.msra.mxu0 %v3313_v52  ;;  %v3401_v52 = vunpack.c.l.s8.bf16 %v2245_v23 }
 0x613   : > { %5375 = vmatpush2.bf16.msra.mxu1 %v3377_v2  ;;  %5333 = vmatprep.subr.bf16.mxu0 %v3310_v42  ;;  %v3465_v2 = vunpack.c.l.s8.bf16 %v2277_v1  ;;  %v3398_v42 = vunpack.c.h.s8.bf16 %v2242_v34 }
 0x614   : > { %5376 = vmatprep.subr.bf16.mxu1 %v3374_v15  ;;  %v3462_v15 = vunpack.c.h.s8.bf16 %v2274_v54 }
 0x616   : > { %5334 = vmatpush2.bf16.msra.mxu0 %v3309_v5  ;;  %v3397_v5 = vunpack.c.h.s8.bf16 %v2241_v38 }
 0x617   : > { %5377 = vmatpush2.bf16.msra.mxu1 %v3373_v18  ;;  %5335 = vmatprep.subr.bf16.mxu0 %v3306_v27  ;;  %v3461_v18 = vunpack.c.h.s8.bf16 %v2273_v4  ;;  %v3394_v27 = vunpack.c.l.s8.bf16 %v2242_v34 }
 0x618   : > { %5378 = vmatprep.subr.bf16.mxu1 %v3370_v35  ;;  %v3458_v35 = vunpack.c.l.s8.bf16 %v2274_v54 }
 0x61a   : > { %5336 = vmatpush2.bf16.msra.mxu0 %v3305_v41  ;;  %v3393_v41 = vunpack.c.l.s8.bf16 %v2241_v38 }
 0x61b   : > { %5379 = vmatpush2.bf16.msra.mxu1 %v3369_v14  ;;  %5337 = vmatprep.subr.bf16.mxu0 %v3302_v50  ;;  %v3457_v14 = vunpack.c.l.s8.bf16 %v2273_v4  ;;  %v3454_v50 = vunpack.c.h.s8.bf16 %v2270_v31 }
 0x61c   : > { %5380 = vmatprep.subr.bf16.mxu1 %v3366_v8  ;;  %v3518_v8 = vunpack.c.h.s8.bf16 %v2302_v51 }
 0x61e   : > { %5338 = vmatpush2.bf16.msra.mxu0 %v3301_v43  ;;  %v3453_v43 = vunpack.c.h.s8.bf16 %v2269_v47 }
 0x61f   : > { %5381 = vmatpush2.bf16.msra.mxu1 %v3365_v28  ;;  %5339 = vmatprep.subr.bf16.mxu0 %v3298_v57  ;;  %v3517_v28 = vunpack.c.h.s8.bf16 %v2301_v63  ;;  %v3450_v57 = vunpack.c.l.s8.bf16 %v2270_v31 }
 0x620   : > { %5382 = vmatprep.subr.bf16.mxu1 %v3362_v48  ;;  %v3514_v48 = vunpack.c.l.s8.bf16 %v2302_v51 }
 0x622   : > { %5340 = vmatpush2.bf16.msra.mxu0 %v3297_v40  ;;  %v3449_v40 = vunpack.c.l.s8.bf16 %v2269_v47  ;;  %v8956_v47 = vld [vmem:[#allocation34_spill] sm:$0xff] }
 0x623   : > { %5383 = vmatpush2.bf16.msra.mxu1 %v3361_v33  ;;  %5395 = vmatprep.subr.bf16.mxu0 %v3422_v36  ;;  %v3513_v33 = vunpack.c.l.s8.bf16 %v2301_v63  ;;  %v3446_v36 = vunpack.c.h.s8.bf16 %v2266_v24  ;;  %v8957_v63 = vld [vmem:[#allocation35_spill] sm:$0xff] }
 0x624   : > { %5438 = vmatprep.subr.bf16.mxu1 %v3486_v58  ;;  %v3510_v58 = vunpack.c.h.s8.bf16 %v2298_v44 }
 0x625   : > { %5342 = vmatmul.mubr.bf16.vlgmr.msra.gmra.mxu0 %v8950_v29  ;;  %v3441_v29 = vunpack.c.l.s8.bf16 %v2265_v21 }
 0x626   : > { %5385 = vmatmul.mubr.bf16.vlgmr.msra.gmra.mxu1 %v8951_v26  ;;  %5396 = vmatpush1.bf16.msra.mxu0 %v3421_v45  ;;  %v3445_v45 = vunpack.c.h.s8.bf16 %v2265_v21  ;;  %v3505_v26 = vunpack.c.l.s8.bf16 %v2297_v22  ;;  %v2309_v21 = vld [vmem:[%s7608_s17 + $0x1230] sm:$0xff] }
 0x627   : > { %5439 = vmatpush1.bf16.msra.mxu1 %v3485_v55  ;;  %5397 = vmatprep.subr.bf16.mxu0 %v3418_v61  ;;  %v3509_v55 = vunpack.c.h.s8.bf16 %v2297_v22  ;;  %v3442_v61 = vunpack.c.l.s8.bf16 %v2266_v24  ;;  %v2310_v24 = vld [vmem:[%s7608_s17 + $0x1238] sm:$0xff]  ;;  %v2341_v22 = vld [vmem:[%s7608_s17 + $0x1330] sm:$0xff] }
 0x628   : > { %5440 = vmatprep.subr.bf16.mxu1 %v3482_v39  ;;  %5427 = vmatprep.mubr.bf16.mxu0 %v8952_v16  ;;  %v3506_v39 = vunpack.c.l.s8.bf16 %v2298_v44  ;;  %v3434_v16 = vunpack.c.l.s8.bf16 %v2262_v6  ;;  %v2342_v44 = vld [vmem:[%s7608_s17 + $0x1338] sm:$0xff] }
 0x629   : > { %5470 = vmatprep.mubr.bf16.mxu1 %v8953_v10  ;;  %v3498_v10 = vunpack.c.l.s8.bf16 %v2294_v9 }
 0x62a   : > { %5398 = vmatpush1.bf16.msra.mxu0 %v3417_v7  ;;  %v3438_v7 = vunpack.c.h.s8.bf16 %v2262_v6  ;;  %v2306_v6 = vld [vmem:[%s7608_s17 + $0x1218] sm:$0xff] }
 0x62b   : > { %5441 = vmatpush1.bf16.msra.mxu1 %v3481_v13  ;;  %5399 = vmatprep.subr.bf16.mxu0 %v3414_v17  ;;  %v3502_v13 = vunpack.c.h.s8.bf16 %v2294_v9  ;;  %v2261_v17 = vld [vmem:[%s7608_s17 + $0x10b0] sm:$0xff]  ;;  %v2338_v9 = vld [vmem:[%s7608_s17 + $0x1318] sm:$0xff] }
 0x62c   : > { %5442 = vmatprep.subr.bf16.mxu1 %v3478_v37  ;;  %v2293_v37 = vld [vmem:[%s7608_s17 + $0x11b0] sm:$0xff]  ;;  %v3437_v0 = vunpack.c.h.s8.bf16 %v2261_v17 }
 0x62d   : > { %v3501_v20 = vunpack.c.h.s8.bf16 %v2293_v37 }
 0x62e   : > { %5400 = vmatpush1.bf16.msra.mxu0 %v3413_v46  ;;  %v2258_v46 = vld [vmem:[%s7608_s17 + $0x1098] sm:$0xff] }
 0x62f   : > { %5443 = vmatpush1.bf16.msra.mxu1 %v3477_v25  ;;  %5401 = vmatprep.subr.bf16.mxu0 %v3410_v60  ;;  %v2290_v25 = vld [vmem:[%s7608_s17 + $0x1198] sm:$0xff]  ;;  %v3433_v60 = vunpack.c.l.s8.bf16 %v2261_v17  ;;  %v3430_v49 = vunpack.c.h.s8.bf16 %v2258_v46  ;;  %v3426_v23 = vunpack.c.l.s8.bf16 %v2258_v46  ;;  %v2305_v17 = vld [vmem:[%s7608_s17 + $0x1210] sm:$0xff] }
 0x630   : > { %5444 = vmatprep.subr.bf16.mxu1 %v3474_v59  ;;  %v3497_v59 = vunpack.c.l.s8.bf16 %v2293_v37  ;;  %v3494_v32 = vunpack.c.h.s8.bf16 %v2290_v25  ;;  %v3490_v1 = vunpack.c.l.s8.bf16 %v2290_v25  ;;  %v2337_v37 = vld [vmem:[%s7608_s17 + $0x1310] sm:$0xff]  ;;  %v2334_v46 = vld [vmem:[%s7608_s17 + $0x12f8] sm:$0xff] }
 0x631   : > { %v2366_v25 = vld [vmem:[%s7608_s17 + $0x13f8] sm:$0xff] }
 0x632   : > { %5402 = vmatpush1.bf16.msra.mxu0 %v3409_v53  ;;  %v2257_v53 = vld [vmem:[%s7608_s17 + $0x1090] sm:$0xff] }
 0x633   : > { %5445 = vmatpush1.bf16.msra.mxu1 %v3473_v62  ;;  %5403 = vmatprep.subr.bf16.mxu0 %v3406_v30  ;;  %v2289_v62 = vld [vmem:[%s7608_s17 + $0x1190] sm:$0xff]  ;;  %v3429_v30 = vunpack.c.h.s8.bf16 %v2257_v53 }
 0x634   : > { %5446 = vmatprep.subr.bf16.mxu1 %v3470_v56  ;;  %v3493_v56 = vunpack.c.h.s8.bf16 %v2289_v62 }
 0x636   : > { %5404 = vmatpush1.bf16.msra.mxu0 %v3405_v19  ;;  %v2318_v19 = vld [vmem:[%s7608_s17 + $0x1278] sm:$0xff] }
 0x637   : > { %5447 = vmatpush1.bf16.msra.mxu1 %v3469_v12  ;;  %5405 = vmatprep.subr.bf16.mxu0 %v3402_v11  ;;  %v2350_v12 = vld [vmem:[%s7608_s17 + $0x1378] sm:$0xff]  ;;  %v3425_v11 = vunpack.c.l.s8.bf16 %v2257_v53  ;;  %v3550_v34 = vunpack.c.h.s8.bf16 %v2318_v19  ;;  %v3546_v38 = vunpack.c.l.s8.bf16 %v2318_v19  ;;  %v2333_v53 = vld [vmem:[%s7608_s17 + $0x12f0] sm:$0xff] }
 0x638   : > { %5448 = vmatprep.subr.bf16.mxu1 %v3466_v3  ;;  %v3489_v3 = vunpack.c.l.s8.bf16 %v2289_v62  ;;  %v3614_v54 = vunpack.c.h.s8.bf16 %v2350_v12  ;;  %v3610_v4 = vunpack.c.l.s8.bf16 %v2350_v12  ;;  %v2365_v62 = vld [vmem:[%s7608_s17 + $0x13f0] sm:$0xff]  ;;  %v2330_v19 = vld [vmem:[%s7608_s17 + $0x12d8] sm:$0xff] }
 0x639   : > { %v2362_v12 = vld [vmem:[%s7608_s17 + $0x13d8] sm:$0xff] }
 0x63a   : > { %5406 = vmatpush1.bf16.msra.mxu0 %v3401_v52  ;;  %v2317_v52 = vld [vmem:[%s7608_s17 + $0x1270] sm:$0xff] }
 0x63b   : > { %5449 = vmatpush1.bf16.msra.mxu1 %v3465_v2  ;;  %5407 = vmatprep.subr.bf16.mxu0 %v3398_v42  ;;  %v2349_v2 = vld [vmem:[%s7608_s17 + $0x1370] sm:$0xff]  ;;  %v3549_v42 = vunpack.c.h.s8.bf16 %v2317_v52  ;;  %v3545_v31 = vunpack.c.l.s8.bf16 %v2317_v52 }
 0x63c   : > { %5450 = vmatprep.subr.bf16.mxu1 %v3462_v15  ;;  %v3613_v15 = vunpack.c.h.s8.bf16 %v2349_v2  ;;  %v3609_v51 = vunpack.c.l.s8.bf16 %v2349_v2  ;;  %v2329_v52 = vld [vmem:[%s7608_s17 + $0x12d0] sm:$0xff] }
 0x63d   : > { %v2361_v2 = vld [vmem:[%s7608_s17 + $0x13d0] sm:$0xff] }
 0x63e   : > { %5408 = vmatpush1.bf16.msra.mxu0 %v3397_v5  ;;  %v2314_v5 = vld [vmem:[%s7608_s17 + $0x1258] sm:$0xff] }
 0x63f   : > { %5451 = vmatpush1.bf16.msra.mxu1 %v3461_v18  ;;  %5409 = vmatprep.subr.bf16.mxu0 %v3394_v27  ;;  %v2346_v18 = vld [vmem:[%s7608_s17 + $0x1358] sm:$0xff]  ;;  %v8954_v27 = vld [vmem:[#allocation32_spill] sm:$0xff] }
 0x640   : > { %5452 = vmatprep.subr.bf16.mxu1 %v3458_v35  ;;  %v8955_v35 = vld [vmem:[#allocation33_spill] sm:$0xff] }
 0x642   : > { %5410 = vmatpush1.bf16.msra.mxu0 %v3393_v41  ;;  %v3542_v41 = vunpack.c.h.s8.bf16 %v2314_v5 }
 0x643   : > { %5453 = vmatpush1.bf16.msra.mxu1 %v3457_v14  ;;  %5411 = vmatprep.subr.bf16.mxu0 %v3454_v50  ;;  %v3606_v14 = vunpack.c.h.s8.bf16 %v2346_v18  ;;  %v2313_v50 = vld [vmem:[%s7608_s17 + $0x1250] sm:$0xff] }
 0x644   : > { %5454 = vmatprep.subr.bf16.mxu1 %v3518_v8  ;;  %v2345_v8 = vld [vmem:[%s7608_s17 + $0x1350] sm:$0xff] }
 0x646   : > { %5412 = vmatpush2.bf16.msra.mxu0 %v3453_v43  ;;  %v3541_v43 = vunpack.c.h.s8.bf16 %v2313_v50 }
 0x647   : > { %5455 = vmatpush2.bf16.msra.mxu1 %v3517_v28  ;;  %5413 = vmatprep.subr.bf16.mxu0 %v3450_v57  ;;  %v3605_v28 = vunpack.c.h.s8.bf16 %v2345_v8  ;;  %v3538_v57 = vunpack.c.l.s8.bf16 %v2314_v5  ;;  %v2326_v5 = vld [vmem:[%s7608_s17 + $0x12b8] sm:$0xff] }
 0x648   : > { %5456 = vmatprep.subr.bf16.mxu1 %v3514_v48  ;;  %v3602_v48 = vunpack.c.l.s8.bf16 %v2346_v18  ;;  %v2358_v18 = vld [vmem:[%s7608_s17 + $0x13b8] sm:$0xff] }
 0x64a   : > { %5414 = vmatpush2.bf16.msra.mxu0 %v3449_v40  ;;  %v3537_v40 = vunpack.c.l.s8.bf16 %v2313_v50 }
 0x64b   : > { %5457 = vmatpush2.bf16.msra.mxu1 %v3513_v33  ;;  %5415 = vmatprep.subr.bf16.mxu0 %v3446_v36  ;;  %v3601_v33 = vunpack.c.l.s8.bf16 %v2345_v8  ;;  %v3534_v36 = vunpack.c.h.s8.bf16 %v2310_v24 }
 0x64c   : > { %5458 = vmatprep.subr.bf16.mxu1 %v3510_v58  ;;  %v3598_v58 = vunpack.c.h.s8.bf16 %v2342_v44 }
 0x64e   : > { %5416 = vmatpush2.bf16.msra.mxu0 %v3445_v45  ;;  %v3533_v45 = vunpack.c.h.s8.bf16 %v2309_v21 }
 0x64f   : > { %5459 = vmatpush2.bf16.msra.mxu1 %v3509_v55  ;;  %5417 = vmatprep.subr.bf16.mxu0 %v3442_v61  ;;  %v3597_v55 = vunpack.c.h.s8.bf16 %v2341_v22  ;;  %v3530_v61 = vunpack.c.l.s8.bf16 %v2310_v24 }
 0x650   : > { %5460 = vmatprep.subr.bf16.mxu1 %v3506_v39  ;;  %v3594_v39 = vunpack.c.l.s8.bf16 %v2342_v44 }
 0x652   : > { %5418 = vmatpush2.bf16.msra.mxu0 %v3441_v29  ;;  %v3529_v29 = vunpack.c.l.s8.bf16 %v2309_v21 }
 0x653   : > { %5461 = vmatpush2.bf16.msra.mxu1 %v3505_v26  ;;  %5419 = vmatprep.subr.bf16.mxu0 %v3438_v7  ;;  %v3593_v26 = vunpack.c.l.s8.bf16 %v2341_v22  ;;  %v3526_v7 = vunpack.c.h.s8.bf16 %v2306_v6 }
 0x654   : > { %5462 = vmatprep.subr.bf16.mxu1 %v3502_v13  ;;  %v3590_v13 = vunpack.c.h.s8.bf16 %v2338_v9 }
 0x656   : > { %5420 = vmatpush2.bf16.msra.mxu0 %v3437_v0  ;;  %v3525_v0 = vunpack.c.h.s8.bf16 %v2305_v17 }
 0x657   : > { %5463 = vmatpush2.bf16.msra.mxu1 %v3501_v20  ;;  %5421 = vmatprep.subr.bf16.mxu0 %v3434_v16  ;;  %v3589_v20 = vunpack.c.h.s8.bf16 %v2337_v37  ;;  %v3522_v16 = vunpack.c.l.s8.bf16 %v2306_v6  ;;  %v4741_v6 = vpop.f32.mrf.mxu0 }
 0x658   : > { %5464 = vmatprep.subr.bf16.mxu1 %v3498_v10  ;;  %v3586_v10 = vunpack.c.l.s8.bf16 %v2338_v9  ;;  %v4784_v9 = vpop.f32.mrf.mxu1 }
 0x65a   : > { %5422 = vmatpush2.bf16.msra.mxu0 %v3433_v60  ;;  %v3521_v60 = vunpack.c.l.s8.bf16 %v2305_v17 }
 0x65b   : > { %5465 = vmatpush2.bf16.msra.mxu1 %v3497_v59  ;;  %5423 = vmatprep.subr.bf16.mxu0 %v3430_v49  ;;  %v3585_v59 = vunpack.c.l.s8.bf16 %v2337_v37  ;;  %v3582_v49 = vunpack.c.h.s8.bf16 %v2334_v46 }
 0x65c   : > { %5466 = vmatprep.subr.bf16.mxu1 %v3494_v32  ;;  %v3646_v32 = vunpack.c.h.s8.bf16 %v2366_v25 }
 0x65e   : > { %5424 = vmatpush2.bf16.msra.mxu0 %v3429_v30  ;;  %v3581_v30 = vunpack.c.h.s8.bf16 %v2333_v53 }
 0x65f   : > { %5467 = vmatpush2.bf16.msra.mxu1 %v3493_v56  ;;  %5425 = vmatprep.subr.bf16.mxu0 %v3426_v23  ;;  %v3645_v56 = vunpack.c.h.s8.bf16 %v2365_v62  ;;  %v3578_v23 = vunpack.c.l.s8.bf16 %v2334_v46 }
 0x660   : > { %5468 = vmatprep.subr.bf16.mxu1 %v3490_v1  ;;  %v3642_v1 = vunpack.c.l.s8.bf16 %v2366_v25 }
 0x662   : > { %5426 = vmatpush2.bf16.msra.mxu0 %v3425_v11  ;;  %v3577_v11 = vunpack.c.l.s8.bf16 %v2333_v53 }
 0x663   : > { %5469 = vmatpush2.bf16.msra.mxu1 %v3489_v3  ;;  %5481 = vmatprep.subr.bf16.mxu0 %v3550_v34  ;;  %v3641_v3 = vunpack.c.l.s8.bf16 %v2365_v62  ;;  %v3574_v34 = vunpack.c.h.s8.bf16 %v2330_v19 }
 0x664   : > { %5524 = vmatprep.subr.bf16.mxu1 %v3614_v54  ;;  %v3638_v54 = vunpack.c.h.s8.bf16 %v2362_v12 }
 0x665   : > { %5428 = vmatmul.mubr.bf16.vlgmr.msra.gmra.mxu0 %v8954_v27  ;;  %v3569_v27 = vunpack.c.l.s8.bf16 %v2329_v52 }
 0x666   : > { %5471 = vmatmul.mubr.bf16.vlgmr.msra.gmra.mxu1 %v8955_v35  ;;  %5482 = vmatpush1.bf16.msra.mxu0 %v3549_v42  ;;  %v3573_v42 = vunpack.c.h.s8.bf16 %v2329_v52  ;;  %v3633_v35 = vunpack.c.l.s8.bf16 %v2361_v2 }
 0x667   : > { %5525 = vmatpush1.bf16.msra.mxu1 %v3613_v15  ;;  %5483 = vmatprep.subr.bf16.mxu0 %v3546_v38  ;;  %v3637_v15 = vunpack.c.h.s8.bf16 %v2361_v2  ;;  %v3570_v38 = vunpack.c.l.s8.bf16 %v2330_v19 }
 0x668   : > { %5526 = vmatprep.subr.bf16.mxu1 %v3610_v4  ;;  %5513 = vmatprep.mubr.bf16.mxu0 %v8956_v47  ;;  %v3634_v4 = vunpack.c.l.s8.bf16 %v2362_v12  ;;  %v3562_v47 = vunpack.c.l.s8.bf16 %v2326_v5 }
 0x669   : > { %5556 = vmatprep.mubr.bf16.mxu1 %v8957_v63  ;;  %v3626_v63 = vunpack.c.l.s8.bf16 %v2358_v18 }
 0x66a   : > { %5484 = vmatpush1.bf16.msra.mxu0 %v3545_v31  ;;  %v3566_v31 = vunpack.c.h.s8.bf16 %v2326_v5 }
 0x66b   : > { %5527 = vmatpush1.bf16.msra.mxu1 %v3609_v51  ;;  %5485 = vmatprep.subr.bf16.mxu0 %v3542_v41  ;;  %v3630_v51 = vunpack.c.h.s8.bf16 %v2358_v18  ;;  %v2325_v41 = vld [vmem:[%s7608_s17 + $0x12b0] sm:$0xff] }
 0x66c   : > { %5528 = vmatprep.subr.bf16.mxu1 %v3606_v14  ;;  %v2357_v14 = vld [vmem:[%s7608_s17 + $0x13b0] sm:$0xff]  ;;  %v3565_v50 = vunpack.c.h.s8.bf16 %v2325_v41 }
 0x66d   : > { %v3629_v8 = vunpack.c.h.s8.bf16 %v2357_v14 }
 0x66e   : > { %5486 = vmatpush1.bf16.msra.mxu0 %v3541_v43  ;;  %v2322_v43 = vld [vmem:[%s7608_s17 + $0x1298] sm:$0xff] }
 0x66f   : > { %5529 = vmatpush1.bf16.msra.mxu1 %v3605_v28  ;;  %5487 = vmatprep.subr.bf16.mxu0 %v3538_v57  ;;  %v2354_v28 = vld [vmem:[%s7608_s17 + $0x1398] sm:$0xff]  ;;  %v3561_v57 = vunpack.c.l.s8.bf16 %v2325_v41  ;;  %v3558_v24 = vunpack.c.h.s8.bf16 %v2322_v43  ;;  %v3554_v21 = vunpack.c.l.s8.bf16 %v2322_v43 }
 0x670   : > { %5530 = vmatprep.subr.bf16.mxu1 %v3602_v48  ;;  %v3625_v48 = vunpack.c.l.s8.bf16 %v2357_v14  ;;  %v3622_v44 = vunpack.c.h.s8.bf16 %v2354_v28  ;;  %v3618_v22 = vunpack.c.l.s8.bf16 %v2354_v28 }
 0x672   : > { %5488 = vmatpush1.bf16.msra.mxu0 %v3537_v40  ;;  %v2321_v40 = vld [vmem:[%s7608_s17 + $0x1290] sm:$0xff] }
 0x673   : > { %5531 = vmatpush1.bf16.msra.mxu1 %v3601_v33  ;;  %5489 = vmatprep.subr.bf16.mxu0 %v3534_v36  ;;  %v2353_v33 = vld [vmem:[%s7608_s17 + $0x1390] sm:$0xff]  ;;  %v3557_v36 = vunpack.c.h.s8.bf16 %v2321_v40 }
 0x674   : > { %5532 = vmatprep.subr.bf16.mxu1 %v3598_v58  ;;  %v3621_v58 = vunpack.c.h.s8.bf16 %v2353_v33 }
 0x676   : > { %5490 = vmatpush1.bf16.msra.mxu0 %v3533_v45  ;;  %v3553_v45 = vunpack.c.l.s8.bf16 %v2321_v40 }
 0x677   : > { %5533 = vmatpush1.bf16.msra.mxu1 %v3597_v55  ;;  %5491 = vmatprep.subr.bf16.mxu0 %v3530_v61  ;;  %v3617_v55 = vunpack.c.l.s8.bf16 %v2353_v33  ;;  %v8958_v61 = vld [vmem:[#allocation36_spill] sm:$0xff] }
 0x678   : > { %5534 = vmatprep.subr.bf16.mxu1 %v3594_v39  ;;  %v8959_v39 = vld [vmem:[#allocation37_spill] sm:$0xff] }
 0x67a   : > { %5492 = vmatpush1.bf16.msra.mxu0 %v3529_v29  ;;  %v4743_v29 = vpop.f32.mrf.mxu0 }
 0x67b   : > { %5535 = vmatpush1.bf16.msra.mxu1 %v3593_v26  ;;  %5493 = vmatprep.subr.bf16.mxu0 %v3526_v7  ;;  %v4786_v26 = vpop.f32.mrf.mxu1 }
 0x67c   : > { %5536 = vmatprep.subr.bf16.mxu1 %v3590_v13  ;;  %v4745_v7 = vpop.f32.mrf.mxu0 }
 0x67d   : > { %v4788_v13 = vpop.f32.mrf.mxu1 }
 0x67e   : > { %5494 = vmatpush1.bf16.msra.mxu0 %v3525_v0  ;;  %v4747_v17 = vpop.f32.mrf.mxu0  ;;  %v4789_v28 = vadd.f32 %v4788_v13, %v4745_v7 }
 0x67f   : > { %5537 = vmatpush1.bf16.msra.mxu1 %v3589_v20  ;;  %5495 = vmatprep.subr.bf16.mxu0 %v3522_v16  ;;  %v4790_v37 = vpop.f32.mrf.mxu1 }
 0x680   : > { %5538 = vmatprep.subr.bf16.mxu1 %v3586_v10  ;;  %v4827_v0 = vpop.f32.mrf.mxu0 }
 0x681   : > { %v4870_v20 = vpop.f32.mrf.mxu1 }
 0x682   : > { %5496 = vmatpush1.bf16.msra.mxu0 %v3521_v60  ;;  %v4829_v16 = vpop.f32.mrf.mxu0 }
 0x683   : > { %5539 = vmatpush1.bf16.msra.mxu1 %v3585_v59  ;;  %5497 = vmatprep.subr.bf16.mxu0 %v3582_v49  ;;  %v4872_v10 = vpop.f32.mrf.mxu1 }
 0x684   : > { %5540 = vmatprep.subr.bf16.mxu1 %v3646_v32  ;;  %v4831_v46 = vpop.f32.mrf.mxu0 }
 0x685   : > { %v4874_v25 = vpop.f32.mrf.mxu1  ;;  %v4832_v33 = vadd.f32 %v4831_v46, %v4789_v28 }
 0x686   : > { %5498 = vmatpush2.bf16.msra.mxu0 %v3581_v30  ;;  %v4833_v60 = vpop.f32.mrf.mxu0 }
 0x687   : > { %5541 = vmatpush2.bf16.msra.mxu1 %v3645_v56  ;;  %5499 = vmatprep.subr.bf16.mxu0 %v3578_v23  ;;  %v4876_v59 = vpop.f32.mrf.mxu1 }
 0x688   : > { %5542 = vmatprep.subr.bf16.mxu1 %v3642_v1  ;;  %v4913_v49 = vpop.f32.mrf.mxu0 }
 0x689   : > { %v4956_v32 = vpop.f32.mrf.mxu1 }
 0x68a   : > { %5500 = vmatpush2.bf16.msra.mxu0 %v3577_v11  ;;  %v4915_v53 = vpop.f32.mrf.mxu0 }
 0x68b   : > { %5543 = vmatpush2.bf16.msra.mxu1 %v3641_v3  ;;  %5501 = vmatprep.subr.bf16.mxu0 %v3574_v34  ;;  %v4958_v62 = vpop.f32.mrf.mxu1 }
 0x68c   : > { %5544 = vmatprep.subr.bf16.mxu1 %v3638_v54  ;;  %v4917_v30 = vpop.f32.mrf.mxu0 }
 0x68d   : > { %v4960_v56 = vpop.f32.mrf.mxu1 }
 0x68e   : > { %5502 = vmatpush2.bf16.msra.mxu0 %v3573_v42  ;;  %v4919_v23 = vpop.f32.mrf.mxu0 }
 0x68f   : > { %5545 = vmatpush2.bf16.msra.mxu1 %v3637_v15  ;;  %5503 = vmatprep.subr.bf16.mxu0 %v3570_v38  ;;  %v4962_v1 = vpop.f32.mrf.mxu1 }
 0x690   : > { %5546 = vmatprep.subr.bf16.mxu1 %v3634_v4  ;;  %v4999_v19 = vpop.f32.mrf.mxu0 }
 0x691   : > { %v5042_v12 = vpop.f32.mrf.mxu1 }
 0x692   : > { %5504 = vmatpush2.bf16.msra.mxu0 %v3569_v27  ;;  %v5001_v11 = vpop.f32.mrf.mxu0 }
 0x693   : > { %5547 = vmatpush2.bf16.msra.mxu1 %v3633_v35  ;;  %5505 = vmatprep.subr.bf16.mxu0 %v3566_v31  ;;  %v5044_v3 = vpop.f32.mrf.mxu1 }
 0x694   : > { %5548 = vmatprep.subr.bf16.mxu1 %v3630_v51  ;;  %v5003_v34 = vpop.f32.mrf.mxu0 }
 0x695   : > { %v5046_v54 = vpop.f32.mrf.mxu1 }
 0x696   : > { %5506 = vmatpush2.bf16.msra.mxu0 %v3565_v50  ;;  %v5005_v52 = vpop.f32.mrf.mxu0  ;;  %v4785_v50 = vadd.f32 %v4784_v9, %v4741_v6 }
 0x697   : > { %5549 = vmatpush2.bf16.msra.mxu1 %v3629_v8  ;;  %5507 = vmatprep.subr.bf16.mxu0 %v3562_v47  ;;  %v5048_v2 = vpop.f32.mrf.mxu1 }
 0x698   : > { %5550 = vmatprep.subr.bf16.mxu1 %v3626_v63  ;;  %v5085_v42 = vpop.f32.mrf.mxu0  ;;  %v4787_v63 = vadd.f32 %v4786_v26, %v4743_v29  ;;  %v4828_v43 = vadd.f32 %v4827_v0, %v4785_v50 }
 0x699   : > { %v5128_v15 = vpop.f32.mrf.mxu1 }
 0x69a   : > { %5508 = vmatpush2.bf16.msra.mxu0 %v3561_v57  ;;  %v5087_v38 = vpop.f32.mrf.mxu0  ;;  %v4830_v57 = vadd.f32 %v4829_v16, %v4787_v63  ;;  %v4871_v40 = vadd.f32 %v4870_v20, %v4828_v43 }
 0x69b   : > { %5551 = vmatpush2.bf16.msra.mxu1 %v3625_v48  ;;  %5509 = vmatprep.subr.bf16.mxu0 %v3558_v24  ;;  %v5130_v4 = vpop.f32.mrf.mxu1 }
 0x69c   : > { %5552 = vmatprep.subr.bf16.mxu1 %v3622_v44  ;;  %v5089_v5 = vpop.f32.mrf.mxu0  ;;  %v4791_v44 = vadd.f32 %v4790_v37, %v4747_v17 }
 0x69d   : > { %v5132_v18 = vpop.f32.mrf.mxu1 }
 0x69e   : > { %5510 = vmatpush2.bf16.msra.mxu0 %v3557_v36  ;;  %v5091_v27 = vpop.f32.mrf.mxu0 }
 0x69f   : > { %5553 = vmatpush2.bf16.msra.mxu1 %v3621_v58  ;;  %5511 = vmatprep.subr.bf16.mxu0 %v3554_v21  ;;  %v5134_v35 = vpop.f32.mrf.mxu1  ;;  %v4873_v21 = vadd.f32 %v4872_v10, %v4830_v57 }
 0x6a0   : > { %5554 = vmatprep.subr.bf16.mxu1 %v3618_v22  ;;  %v5171_v31 = vpop.f32.mrf.mxu0  ;;  %v4834_v22 = vadd.f32 %v4833_v60, %v4791_v44 }
 0x6a1   : > { %v5214_v51 = vpop.f32.mrf.mxu1 }
 0x6a2   : > { %5512 = vmatpush2.bf16.msra.mxu0 %v3553_v45  ;;  %v5173_v41 = vpop.f32.mrf.mxu0  ;;  %v4914_v45 = vadd.f32 %v4913_v49, %v4871_v40  ;;  %v4877_v9 = vadd.f32 %v4876_v59, %v4834_v22 }
 0x6a3   : > { %5555 = vmatpush2.bf16.msra.mxu1 %v3617_v55  ;;  %v5216_v14 = vpop.f32.mrf.mxu1  ;;  %v4875_v55 = vadd.f32 %v4874_v25, %v4832_v33 }
 0x6a4   : > { %v5175_v8 = vpop.f32.mrf.mxu0  ;;  %v4957_v26 = vadd.f32 %v4956_v32, %v4914_v45  ;;  %v4920_v7 = vadd.f32 %v4919_v23, %v4877_v9 }
 0x6a5   : > { %5514 = vmatmul.mubr.bf16.vlgmr.msra.gmra.mxu0 %v8958_v61  ;;  %v5218_v47 = vpop.f32.mrf.mxu1  ;;  %v4916_v61 = vadd.f32 %v4915_v53, %v4873_v21  ;;  %v4918_v29 = vadd.f32 %v4917_v30, %v4875_v55 }
 0x6a6   : > { %5557 = vmatmul.mubr.bf16.vlgmr.msra.gmra.mxu1 %v8959_v39  ;;  %v5177_v48 = vpop.f32.mrf.mxu0  ;;  %v5000_v13 = vadd.f32 %v4999_v19, %v4957_v26  ;;  %v4963_v20 = vadd.f32 %v4962_v1, %v4920_v7 }
 0x6a7   : > { %v5220_v24 = vpop.f32.mrf.mxu1  ;;  %v4959_v0 = vadd.f32 %v4958_v62, %v4916_v61  ;;  %v4961_v17 = vadd.f32 %v4960_v56, %v4918_v29 }
 0x6a8   : > { %v5257_v36 = vpop.f32.mrf.mxu0  ;;  %v5043_v46 = vadd.f32 %v5042_v12, %v5000_v13  ;;  %v5006_v25 = vadd.f32 %v5005_v52, %v4963_v20 }
 0x6a9   : > { %v5300_v58 = vpop.f32.mrf.mxu1  ;;  %v5002_v37 = vadd.f32 %v5001_v11, %v4959_v0  ;;  %v5004_v63 = vadd.f32 %v5003_v34, %v4961_v17 }
 0x6aa   : > { %v5259_v39 = vpop.f32.mrf.mxu0  ;;  %v5086_v53 = vadd.f32 %v5085_v42, %v5043_v46  ;;  %v5049_v30 = vadd.f32 %v5048_v2, %v5006_v25 }
 0x6ab   : > { %v5302_v6 = vpop.f32.mrf.mxu1  ;;  %v5045_v49 = vadd.f32 %v5044_v3, %v5002_v37  ;;  %v5047_v59 = vadd.f32 %v5046_v54, %v5004_v63  ;;  %v1681_v63 = vld [vmem:[#allocation2 + $0x18] sm:$0xff] }
 0x6ac   : > { %v5261_v16 = vpop.f32.mrf.mxu0  ;;  %v5129_v62 = vadd.f32 %v5128_v15, %v5086_v53  ;;  %v5092_v56 = vadd.f32 %v5091_v27, %v5049_v30 }
 0x6ad   : > { %v5304_v50 = vpop.f32.mrf.mxu1  ;;  %v5088_v32 = vadd.f32 %v5087_v38, %v5045_v49  ;;  %v5090_v23 = vadd.f32 %v5089_v5, %v5047_v59 }
 0x6ae   : > { %v5263_v10 = vpop.f32.mrf.mxu0  ;;  %v5172_v11 = vadd.f32 %v5171_v31, %v5129_v62  ;;  %v5135_v33 = vadd.f32 %v5134_v35, %v5092_v56 }
 0x6af   : > { %v5306_v60 = vpop.f32.mrf.mxu1  ;;  %v5131_v44 = vadd.f32 %v5130_v4, %v5088_v32  ;;  %v5133_v1 = vadd.f32 %v5132_v18, %v5090_v23 }
 0x6b0   : > { %v5215_v3 = vadd.f32 %v5214_v51, %v5172_v11  ;;  %v5178_v21 = vadd.f32 %v5177_v48, %v5135_v33 }
 0x6b1   : > { %v5174_v12 = vadd.f32 %v5173_v41, %v5131_v44  ;;  %v5176_v52 = vadd.f32 %v5175_v8, %v5133_v1  ;;  %v1686_v1 = vld [vmem:[#allocation2 + $0x38] sm:$0xff] }
 0x6b2   : > { %v5258_v22 = vadd.f32 %v5257_v36, %v5215_v3  ;;  %v5221_v55 = vadd.f32 %v5220_v24, %v5178_v21 }
 0x6b3   : > { %v5217_v42 = vadd.f32 %v5216_v14, %v5174_v12  ;;  %v5219_v2 = vadd.f32 %v5218_v47, %v5176_v52 }
 0x6b4   : > { %v5301_v4 = vadd.f32 %v5300_v58, %v5258_v22  ;;  %v5264_v18 = vadd.f32 %v5263_v10, %v5221_v55 }
 0x6b5   : > { %v5260_v15 = vadd.f32 %v5259_v39, %v5217_v42  ;;  %v5262_v27 = vadd.f32 %v5261_v16, %v5219_v2 }
 0x6b6   : > { %v5307_v8 = vadd.f32 %v5306_v60, %v5264_v18 }
 0x6b7   : > { %v5303_v31 = vadd.f32 %v5302_v6, %v5260_v15  ;;  %v5305_v35 = vadd.f32 %v5304_v50, %v5262_v27 }
 0x6e5   : > { %v5343_v43 = vpop.f32.mrf.mxu0 }
 0x6e6   : > { %v5386_v28 = vpop.f32.mrf.mxu1  ;;  %v5344_v41 = vadd.f32 %v5343_v43, %v5301_v4  ;;  %v1682_v43 = vld [vmem:[#allocation2 + $0x10] sm:$0xff] }
 0x6e7   : > { %v5345_v19 = vpop.f32.mrf.mxu0 }
 0x6e8   : > { %v5388_v57 = vpop.f32.mrf.mxu1  ;;  %v5346_v51 = vadd.f32 %v5345_v19, %v5303_v31  ;;  %v5387_v14 = vadd.f32 %v5386_v28, %v5344_v41  ;;  %v1685_v19 = vld [vmem:[#allocation2 + $0x28] sm:$0xff] }
 0x6e9   : > { %v5347_v34 = vpop.f32.mrf.mxu0 }
 0x6ea   : > { %v5390_v40 = vpop.f32.mrf.mxu1  ;;  %v5348_v48 = vadd.f32 %v5347_v34, %v5305_v35  ;;  %v5389_v29 = vadd.f32 %v5388_v57, %v5346_v51 }
 0x6eb   : > { %v5349_v54 = vpop.f32.mrf.mxu0 }
 0x6ec   : > { %v5392_v38 = vpop.f32.mrf.mxu1  ;;  %v5350_v47 = vadd.f32 %v5349_v54, %v5307_v8  ;;  %v5391_v0 = vadd.f32 %v5390_v40, %v5348_v48 }
 0x6ee   : > { %v5393_v13 = vadd.f32 %v5392_v38, %v5350_v47 }
 0x725   : > { %v5429_v5 = vpop.f32.mrf.mxu0 }
 0x726   : > { %v5472_v45 = vpop.f32.mrf.mxu1  ;;  %v5430_v39 = vadd.f32 %v5429_v5, %v5387_v14 }
 0x727   : > { %v5431_v61 = vpop.f32.mrf.mxu0 }
 0x728   : > { %v5474_v9 = vpop.f32.mrf.mxu1  ;;  %v5432_v7 = vadd.f32 %v5431_v61, %v5389_v29  ;;  %v5473_v6 = vadd.f32 %v5472_v45, %v5430_v39 }
 0x729   : > { %v5433_v36 = vpop.f32.mrf.mxu0 }
 0x72a   : > { %v5476_v26 = vpop.f32.mrf.mxu1  ;;  %v5434_v16 = vadd.f32 %v5433_v36, %v5391_v0  ;;  %v5475_v20 = vadd.f32 %v5474_v9, %v5432_v7 }
 0x72b   : > { %v5435_v24 = vpop.f32.mrf.mxu0 }
 0x72c   : > { %v5478_v58 = vpop.f32.mrf.mxu1  ;;  %v5436_v50 = vadd.f32 %v5435_v24, %v5393_v13  ;;  %v5477_v49 = vadd.f32 %v5476_v26, %v5434_v16 }
 0x72e   : > { %v5479_v32 = vadd.f32 %v5478_v58, %v5436_v50 }
 0x765   : > { %v5515_v17 = vpop.f32.mrf.mxu0 }
 0x766   : > { %v5558_v37 = vpop.f32.mrf.mxu1  ;;  %v5516_v46 = vadd.f32 %v5515_v17, %v5473_v6 }
 0x767   : > { %v5517_v10 = vpop.f32.mrf.mxu0 }
 0x768   : > { %v5560_v60 = vpop.f32.mrf.mxu1  ;;  %v5559_v25 = vadd.f32 %v5558_v37, %v5516_v46  ;;  %v5518_v53 = vadd.f32 %v5517_v10, %v5475_v20 }
 0x769   : > { %v5519_v28 = vpop.f32.mrf.mxu0 }
 0x76a   : > { %v5562_v59 = vpop.f32.mrf.mxu1  ;;  %v5569_v30 = vadd.f32 %v5559_v25, %v1681_v63  ;;  %v5561_v62 = vadd.f32 %v5560_v60, %v5518_v53  ;;  %v5520_v23 = vadd.f32 %v5519_v28, %v5477_v49 }
 0x76b   : > { %v5521_v57 = vpop.f32.mrf.mxu0 }
 0x76c   : > { %5577 = vst [vmem:[#allocation2 + $0x18] sm:$0xff] %v5569_v30  ;;  %v5570_v44 = vadd.f32 %v5561_v62, %v1682_v43  ;;  %v5563_v56 = vadd.f32 %v5562_v59, %v5520_v23  ;;  %v5522_v11 = vadd.f32 %v5521_v57, %v5479_v32  ;;  %v5564_v12 = vpop.f32.mrf.mxu1 }
 0x76e   : > { %5578 = vst [vmem:[#allocation2 + $0x10] sm:$0xff] %v5570_v44  ;;  %v5573_v34 = vadd.f32 %v5563_v56, %v1685_v19  ;;  %v5565_v40 = vadd.f32 %v5564_v12, %v5522_v11  ;;  %5586 = sbr.rel (%p5884_p5) target bundleno = 1925 (0x785), region = 90 }
 0x770   : > { %5581 = vst [vmem:[#allocation2 + $0x28] sm:$0xff] %v5573_v34  ;;  %v5574_v33 = vadd.f32 %v5565_v40, %v1686_v1 }
 0x772   : > { %5582 = vst [vmem:[#allocation2 + $0x38] sm:$0xff] %v5574_v33 }
 0x773   : > { %v5597_v3 = vlaneseq  ;;  %v5595_v42 = vld [vmem:[%s1659_s6] sm:$0xf]  ;;  %v5587_v22 = vld [vmem:[#allocation2 + $0x30] sm:$0xff]  ;;  %v5589_v45 = vld [vmem:[#allocation2 + $0x18] sm:$0xff] }
 0x774   : > { %v5625_v21 = vld [vmem:[%s1664_s1] sm:$0xf]  ;;  %v5591_v55 = vld [vmem:[#allocation2 + $0x8] sm:$0xff] }
 0x775   : > { %v5598_v52 = vshrl.u32 %v5597_v3, 7  ;;  %v5588_v54 = vld [vmem:[#allocation2] sm:$0xff]  ;;  %v5590_v61 = vld [vmem:[#allocation2 + $0x10] sm:$0xff] }
 0x776   : > { %v5592_v4 = vld [vmem:[#allocation2 + $0x20] sm:$0xff] }
 0x777   : > { %v5599_v38 = vsub.s32 0, %v5598_v52  ;;  %v5603_v2 = vsub.s32 1, %v5598_v52  ;;  %v5607_v15 = vsub.s32 2, %v5598_v52  ;;  %v5611_v5 = vsub.s32 3, %v5598_v52  ;;  %v5593_v9 = vld [vmem:[#allocation2 + $0x28] sm:$0xff] }
 0x779   : > { %v5600_v27 = vrot.slane %v5595_v42, %v5599_v38  ;;  %v5604_v31 = vrot.slane %v5595_v42, %v5603_v2  ;;  %v5630_v18 = vrot.slane %v5625_v21, %v5599_v38  ;;  %v5634_v41 = vrot.slane %v5625_v21, %v5603_v2  ;;  %v5594_v35 = vld [vmem:[#allocation2 + $0x38] sm:$0xff] }
 0x77a   : > { %v5608_v51 = vrot.slane %v5595_v42, %v5607_v15  ;;  %v5612_v8 = vrot.slane %v5595_v42, %v5611_v5  ;;  %v5638_v14 = vrot.slane %v5625_v21, %v5607_v15  ;;  %v5642_v48 = vrot.slane %v5625_v21, %v5611_v5 }
 0x77b   : > { %v5617_v36 = vmul.f32 %v5600_v27, %v5587_v22  ;;  %v5618_v26 = vmul.f32 %v5604_v31, %v5588_v54  ;;  %v5621_v29 = vmul.f32 %v5600_v27, %v5591_v55  ;;  %v5622_v47 = vmul.f32 %v5604_v31, %v5592_v4 }
 0x77c   : > { %v5619_v39 = vmul.f32 %v5608_v51, %v5589_v45  ;;  %v5620_v0 = vmul.f32 %v5612_v8, %v5590_v61  ;;  %v5623_v7 = vmul.f32 %v5608_v51, %v5593_v9  ;;  %v5624_v24 = vmul.f32 %v5612_v8, %v5594_v35 }
 0x77d   : > { %v5647_v58 = vadd.f32 %v5630_v18, %v5617_v36  ;;  %v5648_v13 = vadd.f32 %v5634_v41, %v5618_v26  ;;  %v5651_v6 = vadd.f32 %v5630_v18, %v5621_v29  ;;  %v5652_v16 = vadd.f32 %v5634_v41, %v5622_v47 }
 0x77e   : > { %v5649_v17 = vadd.f32 %v5638_v14, %v5619_v39  ;;  %v5650_v37 = vadd.f32 %v5642_v48, %v5620_v0  ;;  %v5653_v20 = vadd.f32 %v5638_v14, %v5623_v7  ;;  %v5654_v50 = vadd.f32 %v5642_v48, %v5624_v24 }
 0x77f   : > { %v5655_v46 = vmax.f32 %v5647_v58, 0.0  ;;  %v5656_v63 = vmax.f32 %v5648_v13, 0.0  ;;  %v5659_v10 = vmax.f32 %v5651_v6, 0.0  ;;  %v5660_v60 = vmax.f32 %v5652_v16, 0.0 }
 0x780   : > { %v5657_v49 = vmax.f32 %v5649_v17, 0.0  ;;  %v5658_v25 = vmax.f32 %v5650_v37, 0.0  ;;  %v5661_v53 = vmax.f32 %v5653_v20, 0.0  ;;  %v5662_v43 = vmax.f32 %v5654_v50, 0.0 }
 0x781   : > { %v5896_v28 = vpack.c.bf16 %v5656_v63, %v5655_v46  ;;  %v5898_v59 = vpack.c.bf16 %v5660_v60, %v5659_v10 }
 0x782   : > { %v5897_v32 = vpack.c.bf16 %v5658_v25, %v5657_v49  ;;  %v5899_v30 = vpack.c.bf16 %v5662_v43, %v5661_v53 }
 0x783   : > { %5687 = vst [vmem:[%s7610_s15] sm:$0xff] %v5896_v28  ;;  %5689 = vst [vmem:[%s7610_s15 + $0x10] sm:$0xff] %v5898_v59 }
 0x784   : > { %5688 = vst [vmem:[%s7610_s15 + $0x8] sm:$0xff] %v5897_v32  ;;  %5690 = vst [vmem:[%s7610_s15 + $0x18] sm:$0xff] %v5899_v30 }
 0x785 PF: > { %5697 = sbr.rel (!%p6202_p12) target bundleno = 1933 (0x78d), region = 94  ;;  %s5900_s1 = sshll.u32 (%p6202_p12), %s6068_s22, 4 }
 0x786   : > { %s5700_s29 = scalar_lea.vmem (%p6202_p12), %s8858_s4, %s5900_s1 }
 0x78a   : > { %v5713_v62 = vld [vmem:[%s7610_s15] sm:$0xff]  ;;  %v5717_v19 = vld [vmem:[%s7610_s15 + $0x10] sm:$0xff] }
 0x78b   : > { %v5715_v23 = vld [vmem:[%s7610_s15 + $0x8] sm:$0xff]  ;;  %v5719_v57 = vld [vmem:[%s7610_s15 + $0x18] sm:$0xff]  ;;  %5714 = vst [vmem:[%s5700_s29] sm:$0xff] %v5713_v62  ;;  %5718 = vst [vmem:[%s5700_s29 + $0x20] sm:$0xff] %v5717_v19 }
 0x78c   : > { %5716 = vst [vmem:[%s5700_s29 + $0x8] sm:$0xff] %v5715_v23  ;;  %5720 = vst [vmem:[%s5700_s29 + $0x28] sm:$0xff] %v5719_v57 }
 0x78d PF: > { %s14_s25 = sadd.s32 1, %s6080_s25   ;;  %s8960_s14 = sld [smem:[#allocation6_spill]] }
 0x78e   : > { %p11_p6 = scmp.ge.s32.totalorder %s14_s25, 6   ;;  %s8961_s27 = sld [smem:[#allocation7_spill]] }
 0x78f   : > { %s8962_s15 = smov %s6044_s16  ;;  %s8963_s16 = smov %s6200_s13 }
 0x790   : > { %s8964_s17 = smov %s6052_s18  ;;  %s8965_s18 = smov %s6197_s12 }
 0x791   : > { %s8966_s19 = smov %s6060_s20  ;;  %s8967_s20 = smov %s6183_s7 }
 0x792   : > { %s8968_s21 = smov %s6072_s23  ;;  %s8969_s22 = smov %s6076_s24 }
 0x793   : > { %s8970_s23 = smov %s8960_s14  ;;  %13 = sbr.rel (!%p11_p6) target bundleno = 9 (0x9), region = 162 }
 0x794   : > { %s8971_s24 = smov %s8961_s27 }

</bundles_post_ra>
